<compile_context>
chip_gen: v5e
topology: v5e:2x2
jax: 0.10.0
libtpu: 0.0.40
codegen_flags: <defaults>
</compile_context>

<pallas_src>
import functools

import jax
import jax.numpy as jnp
from jax.experimental import pallas as pl
from jax.experimental.pallas import tpu as pltpu

K = 5      # conv kernel size
DIL = 2    # dilation
PAD = 4    # reflect padding on each spatial side -> 'same' output size
NCONV = 9  # 8 convs over logits + 1 conv over the image


def _vanilla_lts_kernel(x_ref, w_ref, b_ref, out_ref, col_ref, *, H, W, Hp, C):
    # x_ref  : (Hp, C, Wp)      VMEM, padded input (batch squeezed), W on lanes
    # w_ref  : (NCONV, K*K*C)   VMEM, per-tap (9, C) weight matrices, tap-major
    # b_ref  : (NCONV, 1)       VMEM, biases (torch "+1" constants pre-folded)
    # out_ref: (1, H*W)         VMEM, single temperature plane, lane-dense
    # col_ref: (C, Hp*W)        VMEM scratch, im2col buffer for one column tap
    HW = H * W
    acc = jnp.zeros((NCONV, HW), dtype=jnp.float32)

    for kx in range(K):
        # Build the im2col buffer for this column tap once:
        #   col_ref[c, h*W + w] = x[h, c, DIL*kx + w]
        # One small (C, W) masked-vreg copy per padded row; each shifted row is
        # loaded exactly once and reused by all 5 row taps and all 9 convs.
        for h in range(Hp):
            col_ref[:, h * W:(h + 1) * W] = x_ref[h, :, DIL * kx:DIL * kx + W]

        for ky in range(K):
            t = ky * K + kx
            w_tap = w_ref[:, t * C:(t + 1) * C]                     # (9, C)
            slab = col_ref[:, DIL * ky * W:DIL * ky * W + HW]       # (C, HW)
            # (9, C) x (C, HW) -> (9, HW) on the MXU, lane-dense result.
            acc = acc + jax.lax.dot_general(
                w_tap, slab,
                dimension_numbers=(((1,), (0,)), ((), ())),
                preferred_element_type=jnp.float32,
                precision=jax.lax.Precision.HIGHEST)

    convs = acc + b_ref[...]        # (9, HW); rows 0-3 and 8 already include +1

    # ---- sigmoid-gated temperature mixing (lane-dense elementwise, VPU/EUP) ----
    t1 = convs[0:1, :]
    t2 = convs[1:2, :]
    t3 = convs[2:3, :]
    t4 = convs[3:4, :]
    s1 = jax.nn.sigmoid(convs[4:5, :])
    s2 = jax.nn.sigmoid(convs[5:6, :])
    s3 = jax.nn.sigmoid(convs[6:7, :])
    c8 = jax.nn.sigmoid(convs[7:8, :])      # == self.c8_act in the torch module
    temp2 = convs[8:9, :]                   # image conv (+1 folded into bias)

    temp_level_11 = t1 * s1 + t2 * (1.0 - s1)
    temp_level_12 = t3 * s2 + t4 * (1.0 - s2)
    temp1 = temp_level_11 * s3 + temp_level_12 * (1.0 - s3)

    temperature = temp1 * c8 + temp2 * (1.0 - c8)
    temperature = jnp.maximum(temperature + 1.0, 0.0) + 1e-8   # F.relu(.+1)+sigma

    out_ref[...] = temperature


def vanilla_lts_forward(logits, image, params):
    """logits: (N, nclass, H, W) f32, image: (N, 3, H, W) f32."""
    N, nclass, H, W = logits.shape
    assert image.shape == (N, 3, H, W)
    C = nclass + 3
    Hp, Wp = H + 2 * PAD, W + 2 * PAD

    # --- wrapper glue: reflect padding + (N, Hp, C, Wp) relayout (plain XLA) ---
    # TODO(synk): fold reflect padding / layout change into the kernel to avoid
    # the extra padded HBM copy on production shapes.
    x = jnp.concatenate([logits, image], axis=1).astype(jnp.float32)      # (N, C, H, W)
    xp = jnp.pad(x, ((0, 0), (0, 0), (PAD, PAD), (PAD, PAD)), mode="reflect")
    xp = jnp.transpose(xp, (0, 2, 1, 3))                                  # (N, Hp, C, Wp)

    # Per-tap weight matrices, flattened tap-major: wmat[j, (ky*K+kx)*C + c] =
    # w_j[c, ky, kx].  The 8 logits convs see zeros in the image channels and
    # vice versa, so a single matmul per tap computes all 9 conv outputs.
    wl = params["w_logits"].astype(jnp.float32)      # (8, nclass, K, K)
    wi = params["w_img"].astype(jnp.float32)         # (1, 3, K, K)
    w_all = jnp.zeros((NCONV, C, K, K), jnp.float32)
    w_all = w_all.at[:8, :nclass].set(wl)
    w_all = w_all.at[8, nclass:].set(wi[0])
    wmat = jnp.transpose(w_all, (0, 2, 3, 1)).reshape(NCONV, K * K * C)

    # Fold the torch "+ torch.ones(1)" of conv1..4 and conv_img into the bias.
    plus_one = jnp.array([1, 1, 1, 1, 0, 0, 0, 0, 1], jnp.float32)
    bias = (jnp.concatenate(
        [params["b_logits"].astype(jnp.float32),
         params["b_img"].astype(jnp.float32)]) + plus_one).reshape(NCONV, 1)

    kernel = functools.partial(_vanilla_lts_kernel, H=H, W=W, Hp=Hp, C=C)

    temp = pl.pallas_call(
        kernel,
        out_shape=jax.ShapeDtypeStruct((N, 1, H * W), jnp.float32),
        grid=(N,),
        in_specs=[
            pl.BlockSpec((None, Hp, C, Wp), lambda n: (n, 0, 0, 0)),
            pl.BlockSpec((NCONV, K * K * C), lambda n: (0, 0)),
            pl.BlockSpec((NCONV, 1), lambda n: (0, 0)),
        ],
        out_specs=pl.BlockSpec((None, 1, H * W), lambda n: (n, 0, 0)),
        scratch_shapes=[pltpu.VMEM((C, Hp * W), jnp.float32)],
        compiler_params=pltpu.CompilerParams(
            dimension_semantics=("parallel",),
            vmem_limit_bytes=64 * 1024 * 1024),
    )(xp, wmat, bias)

    # Single-channel result; the .repeat(1, nclass, 1, 1) of the torch module is
    # a broadcast outside the kernel (no redundant HBM writeback inside).
    temp = temp.reshape(N, 1, H, W)
    return jnp.broadcast_to(temp, (N, nclass, H, W))


# ----------------------- pure-JAX reference (for checking) -----------------------
def _conv_ref(x, w, b):
    xp = jnp.pad(x, ((0, 0), (0, 0), (PAD, PAD), (PAD, PAD)), mode="reflect")
    y = jax.lax.conv_general_dilated(
        xp, w, window_strides=(1, 1), padding="VALID", rhs_dilation=(DIL, DIL),
        dimension_numbers=("NCHW", "OIHW", "NCHW"),
        precision=jax.lax.Precision.HIGHEST)
    return y + b.reshape(1, -1, 1, 1)


def reference_forward(logits, image, params, nclass):
    outs = [_conv_ref(logits, params["w_logits"][j][None],
                      params["b_logits"][j:j + 1]) for j in range(8)]
    t1, t2, t3, t4 = (o + 1.0 for o in outs[:4])
    s1 = jax.nn.sigmoid(outs[4])
    s2 = jax.nn.sigmoid(outs[5])
    s3 = jax.nn.sigmoid(outs[6])
    c8 = jax.nn.sigmoid(outs[7])
    tl11 = t1 * s1 + t2 * (1.0 - s1)
    tl12 = t3 * s2 + t4 * (1.0 - s2)
    temp1 = tl11 * s3 + tl12 * (1.0 - s3)
    temp2 = _conv_ref(image, params["w_img"], params["b_img"]) + 1.0
    temperature = temp1 * c8 + temp2 * (1.0 - c8)
    temperature = jax.nn.relu(temperature + 1.0) + 1e-8
    return jnp.tile(temperature, (1, nclass, 1, 1))


if __name__ == "__main__":
    nclass = 4
    N, H, W = 2, 16, 16

    key = jax.random.PRNGKey(0)
    k1, k2, k3, k4 = jax.random.split(key, 4)
    logits = jax.random.normal(k1, (N, nclass, H, W), jnp.float32)
    image = jax.random.normal(k2, (N, 3, H, W), jnp.float32)

    # NOTE: the PyTorch module zero-inits every conv (output would be a constant
    # 2 + 1e-8). We use small deterministic random weights so the conv path is
    # actually exercised, and verify against a pure-JAX reference.
    params = {
        "w_logits": 0.05 * jax.random.normal(k3, (8, nclass, K, K), jnp.float32),
        "b_logits": jnp.linspace(-0.1, 0.1, 8, dtype=jnp.float32),
        "w_img": 0.05 * jax.random.normal(k4, (1, 3, K, K), jnp.float32),
        "b_img": jnp.array([0.03], jnp.float32),
    }

    out = vanilla_lts_forward(logits, image, params)
    out = jax.block_until_ready(out)

    ref = reference_forward(logits, image, params, nclass)
    assert out.shape == (N, nclass, H, W)
    err = float(jnp.max(jnp.abs(out - ref)))
    assert jnp.allclose(out, ref, atol=1e-3, rtol=1e-3), f"max err {err}"
    print("KERNEL_OK")
</pallas_src>

<mosaic_0001>
module attributes {stable_mosaic.version = 11 : i64} {
  func.func @_vanilla_lts_kernel(%arg0: i32, %arg1: memref<1x24x7x24xf32, #tpu.memory_space<vmem>>, %arg2: memref<9x175xf32, #tpu.memory_space<vmem>>, %arg3: memref<9x1xf32, #tpu.memory_space<vmem>>, %arg4: memref<1x1x256xf32, #tpu.memory_space<vmem>>, %arg5: memref<7x384xf32, #tpu.memory_space<vmem>>) attributes {dimension_semantics = [#tpu.dimension_semantics<parallel>], iteration_bounds = array<i64: 2>, scalar_prefetch = 0 : i64, scratch_operands = 1 : i64, tpu.core_type = #tpu.core_type<tc>, window_params = [{transform_indices = @transform_0, window_bounds = array<i64: 1, 24, 7, 24>}, {pipeline_mode = #tpu.pipeline_mode<synchronous>, transform_indices = @transform_1, window_bounds = array<i64: 9, 175>}, {pipeline_mode = #tpu.pipeline_mode<synchronous>, transform_indices = @transform_2, window_bounds = array<i64: 9, 1>}, {transform_indices = @transform_3, window_bounds = array<i64: 1, 1, 256>}]} {
    %cst = arith.constant 0.000000e+00 : f32
    %0 = vector.broadcast %cst : f32 to vector<9x256xf32>
    %c0 = arith.constant 0 : index
    %c0_0 = arith.constant 0 : index
    %c0_1 = arith.constant 0 : index
    %c0_2 = arith.constant 0 : index
    %1 = vector.load %arg1[%c0, %c0_0, %c0_1, %c0_2] : memref<1x24x7x24xf32, #tpu.memory_space<vmem>>, vector<1x1x7x16xf32>
    %2 = vector.shape_cast %1 : vector<1x1x7x16xf32> to vector<7x16xf32>
    %c0_3 = arith.constant 0 : index
    %c0_4 = arith.constant 0 : index
    %3 = vector.load %arg5[%c0_3, %c0_4] : memref<7x384xf32, #tpu.memory_space<vmem>>, vector<7x16xf32>
    tpu.vector_store %arg5[%c0_3, %c0_4], %2 {strides = array<i32>} : memref<7x384xf32, #tpu.memory_space<vmem>>, vector<7x16xf32>,
    %c0_5 = arith.constant 0 : index
    %c1 = arith.constant 1 : index
    %c0_6 = arith.constant 0 : index
    %c0_7 = arith.constant 0 : index
    %4 = vector.load %arg1[%c0_5, %c1, %c0_6, %c0_7] : memref<1x24x7x24xf32, #tpu.memory_space<vmem>>, vector<1x1x7x16xf32>
    %5 = vector.shape_cast %4 : vector<1x1x7x16xf32> to vector<7x16xf32>
    %c0_8 = arith.constant 0 : index
    %c16 = arith.constant 16 : index
    %6 = vector.load %arg5[%c0_8, %c16] : memref<7x384xf32, #tpu.memory_space<vmem>>, vector<7x16xf32>
    tpu.vector_store %arg5[%c0_8, %c16], %5 {strides = array<i32>} : memref<7x384xf32, #tpu.memory_space<vmem>>, vector<7x16xf32>,
    %c0_9 = arith.constant 0 : index
    %c2 = arith.constant 2 : index
    %c0_10 = arith.constant 0 : index
    %c0_11 = arith.constant 0 : index
    %7 = vector.load %arg1[%c0_9, %c2, %c0_10, %c0_11] : memref<1x24x7x24xf32, #tpu.memory_space<vmem>>, vector<1x1x7x16xf32>
    %8 = vector.shape_cast %7 : vector<1x1x7x16xf32> to vector<7x16xf32>
    %c0_12 = arith.constant 0 : index
    %c32 = arith.constant 32 : index
    %9 = vector.load %arg5[%c0_12, %c32] : memref<7x384xf32, #tpu.memory_space<vmem>>, vector<7x16xf32>
    tpu.vector_store %arg5[%c0_12, %c32], %8 {strides = array<i32>} : memref<7x384xf32, #tpu.memory_space<vmem>>, vector<7x16xf32>,
    %c0_13 = arith.constant 0 : index
    %c3 = arith.constant 3 : index
    %c0_14 = arith.constant 0 : index
    %c0_15 = arith.constant 0 : index
    %10 = vector.load %arg1[%c0_13, %c3, %c0_14, %c0_15] : memref<1x24x7x24xf32, #tpu.memory_space<vmem>>, vector<1x1x7x16xf32>
    %11 = vector.shape_cast %10 : vector<1x1x7x16xf32> to vector<7x16xf32>
    %c0_16 = arith.constant 0 : index
    %c48 = arith.constant 48 : index
    %12 = vector.load %arg5[%c0_16, %c48] : memref<7x384xf32, #tpu.memory_space<vmem>>, vector<7x16xf32>
    tpu.vector_store %arg5[%c0_16, %c48], %11 {strides = array<i32>} : memref<7x384xf32, #tpu.memory_space<vmem>>, vector<7x16xf32>,
    %c0_17 = arith.constant 0 : index
    %c4 = arith.constant 4 : index
    %c0_18 = arith.constant 0 : index
    %c0_19 = arith.constant 0 : index
    %13 = vector.load %arg1[%c0_17, %c4, %c0_18, %c0_19] : memref<1x24x7x24xf32, #tpu.memory_space<vmem>>, vector<1x1x7x16xf32>
    %14 = vector.shape_cast %13 : vector<1x1x7x16xf32> to vector<7x16xf32>
    %c0_20 = arith.constant 0 : index
    %c64 = arith.constant 64 : index
    %15 = vector.load %arg5[%c0_20, %c64] : memref<7x384xf32, #tpu.memory_space<vmem>>, vector<7x16xf32>
    tpu.vector_store %arg5[%c0_20, %c64], %14 {strides = array<i32>} : memref<7x384xf32, #tpu.memory_space<vmem>>, vector<7x16xf32>,
    %c0_21 = arith.constant 0 : index
    %c5 = arith.constant 5 : index
    %c0_22 = arith.constant 0 : index
    %c0_23 = arith.constant 0 : index
    %16 = vector.load %arg1[%c0_21, %c5, %c0_22, %c0_23] : memref<1x24x7x24xf32, #tpu.memory_space<vmem>>, vector<1x1x7x16xf32>
    %17 = vector.shape_cast %16 : vector<1x1x7x16xf32> to vector<7x16xf32>
    %c0_24 = arith.constant 0 : index
    %c80 = arith.constant 80 : index
    %18 = vector.load %arg5[%c0_24, %c80] : memref<7x384xf32, #tpu.memory_space<vmem>>, vector<7x16xf32>
    tpu.vector_store %arg5[%c0_24, %c80], %17 {strides = array<i32>} : memref<7x384xf32, #tpu.memory_space<vmem>>, vector<7x16xf32>,
    %c0_25 = arith.constant 0 : index
    %c6 = arith.constant 6 : index
    %c0_26 = arith.constant 0 : index
    %c0_27 = arith.constant 0 : index
    %19 = vector.load %arg1[%c0_25, %c6, %c0_26, %c0_27] : memref<1x24x7x24xf32, #tpu.memory_space<vmem>>, vector<1x1x7x16xf32>
    %20 = vector.shape_cast %19 : vector<1x1x7x16xf32> to vector<7x16xf32>
    %c0_28 = arith.constant 0 : index
    %c96 = arith.constant 96 : index
    %21 = vector.load %arg5[%c0_28, %c96] : memref<7x384xf32, #tpu.memory_space<vmem>>, vector<7x16xf32>
    tpu.vector_store %arg5[%c0_28, %c96], %20 {strides = array<i32>} : memref<7x384xf32, #tpu.memory_space<vmem>>, vector<7x16xf32>,
    %c0_29 = arith.constant 0 : index
    %c7 = arith.constant 7 : index
    %c0_30 = arith.constant 0 : index
    %c0_31 = arith.constant 0 : index
    %22 = vector.load %arg1[%c0_29, %c7, %c0_30, %c0_31] : memref<1x24x7x24xf32, #tpu.memory_space<vmem>>, vector<1x1x7x16xf32>
    %23 = vector.shape_cast %22 : vector<1x1x7x16xf32> to vector<7x16xf32>
    %c0_32 = arith.constant 0 : index
    %c112 = arith.constant 112 : index
    %24 = vector.load %arg5[%c0_32, %c112] : memref<7x384xf32, #tpu.memory_space<vmem>>, vector<7x16xf32>
    tpu.vector_store %arg5[%c0_32, %c112], %23 {strides = array<i32>} : memref<7x384xf32, #tpu.memory_space<vmem>>, vector<7x16xf32>,
    %c0_33 = arith.constant 0 : index
    %c8 = arith.constant 8 : index
    %c0_34 = arith.constant 0 : index
    %c0_35 = arith.constant 0 : index
    %25 = vector.load %arg1[%c0_33, %c8, %c0_34, %c0_35] : memref<1x24x7x24xf32, #tpu.memory_space<vmem>>, vector<1x1x7x16xf32>
    %26 = vector.shape_cast %25 : vector<1x1x7x16xf32> to vector<7x16xf32>
    %c0_36 = arith.constant 0 : index
    %c128 = arith.constant 128 : index
    %27 = vector.load %arg5[%c0_36, %c128] : memref<7x384xf32, #tpu.memory_space<vmem>>, vector<7x16xf32>
    tpu.vector_store %arg5[%c0_36, %c128], %26 {strides = array<i32>} : memref<7x384xf32, #tpu.memory_space<vmem>>, vector<7x16xf32>,
    %c0_37 = arith.constant 0 : index
    %c9 = arith.constant 9 : index
    %c0_38 = arith.constant 0 : index
    %c0_39 = arith.constant 0 : index
    %28 = vector.load %arg1[%c0_37, %c9, %c0_38, %c0_39] : memref<1x24x7x24xf32, #tpu.memory_space<vmem>>, vector<1x1x7x16xf32>
    %29 = vector.shape_cast %28 : vector<1x1x7x16xf32> to vector<7x16xf32>
    %c0_40 = arith.constant 0 : index
    %c144 = arith.constant 144 : index
    %30 = vector.load %arg5[%c0_40, %c144] : memref<7x384xf32, #tpu.memory_space<vmem>>, vector<7x16xf32>
    tpu.vector_store %arg5[%c0_40, %c144], %29 {strides = array<i32>} : memref<7x384xf32, #tpu.memory_space<vmem>>, vector<7x16xf32>,
    %c0_41 = arith.constant 0 : index
    %c10 = arith.constant 10 : index
    %c0_42 = arith.constant 0 : index
    %c0_43 = arith.constant 0 : index
    %31 = vector.load %arg1[%c0_41, %c10, %c0_42, %c0_43] : memref<1x24x7x24xf32, #tpu.memory_space<vmem>>, vector<1x1x7x16xf32>
    %32 = vector.shape_cast %31 : vector<1x1x7x16xf32> to vector<7x16xf32>
    %c0_44 = arith.constant 0 : index
    %c160 = arith.constant 160 : index
    %33 = vector.load %arg5[%c0_44, %c160] : memref<7x384xf32, #tpu.memory_space<vmem>>, vector<7x16xf32>
    tpu.vector_store %arg5[%c0_44, %c160], %32 {strides = array<i32>} : memref<7x384xf32, #tpu.memory_space<vmem>>, vector<7x16xf32>,
    %c0_45 = arith.constant 0 : index
    %c11 = arith.constant 11 : index
    %c0_46 = arith.constant 0 : index
    %c0_47 = arith.constant 0 : index
    %34 = vector.load %arg1[%c0_45, %c11, %c0_46, %c0_47] : memref<1x24x7x24xf32, #tpu.memory_space<vmem>>, vector<1x1x7x16xf32>
    %35 = vector.shape_cast %34 : vector<1x1x7x16xf32> to vector<7x16xf32>
    %c0_48 = arith.constant 0 : index
    %c176 = arith.constant 176 : index
    %36 = vector.load %arg5[%c0_48, %c176] : memref<7x384xf32, #tpu.memory_space<vmem>>, vector<7x16xf32>
    tpu.vector_store %arg5[%c0_48, %c176], %35 {strides = array<i32>} : memref<7x384xf32, #tpu.memory_space<vmem>>, vector<7x16xf32>,
    %c0_49 = arith.constant 0 : index
    %c12 = arith.constant 12 : index
    %c0_50 = arith.constant 0 : index
    %c0_51 = arith.constant 0 : index
    %37 = vector.load %arg1[%c0_49, %c12, %c0_50, %c0_51] : memref<1x24x7x24xf32, #tpu.memory_space<vmem>>, vector<1x1x7x16xf32>
    %38 = vector.shape_cast %37 : vector<1x1x7x16xf32> to vector<7x16xf32>
    %c0_52 = arith.constant 0 : index
    %c192 = arith.constant 192 : index
    %39 = vector.load %arg5[%c0_52, %c192] : memref<7x384xf32, #tpu.memory_space<vmem>>, vector<7x16xf32>
    tpu.vector_store %arg5[%c0_52, %c192], %38 {strides = array<i32>} : memref<7x384xf32, #tpu.memory_space<vmem>>, vector<7x16xf32>,
    %c0_53 = arith.constant 0 : index
    %c13 = arith.constant 13 : index
    %c0_54 = arith.constant 0 : index
    %c0_55 = arith.constant 0 : index
    %40 = vector.load %arg1[%c0_53, %c13, %c0_54, %c0_55] : memref<1x24x7x24xf32, #tpu.memory_space<vmem>>, vector<1x1x7x16xf32>
    %41 = vector.shape_cast %40 : vector<1x1x7x16xf32> to vector<7x16xf32>
    %c0_56 = arith.constant 0 : index
    %c208 = arith.constant 208 : index
    %42 = vector.load %arg5[%c0_56, %c208] : memref<7x384xf32, #tpu.memory_space<vmem>>, vector<7x16xf32>
    tpu.vector_store %arg5[%c0_56, %c208], %41 {strides = array<i32>} : memref<7x384xf32, #tpu.memory_space<vmem>>, vector<7x16xf32>,
    %c0_57 = arith.constant 0 : index
    %c14 = arith.constant 14 : index
    %c0_58 = arith.constant 0 : index
    %c0_59 = arith.constant 0 : index
    %43 = vector.load %arg1[%c0_57, %c14, %c0_58, %c0_59] : memref<1x24x7x24xf32, #tpu.memory_space<vmem>>, vector<1x1x7x16xf32>
    %44 = vector.shape_cast %43 : vector<1x1x7x16xf32> to vector<7x16xf32>
    %c0_60 = arith.constant 0 : index
    %c224 = arith.constant 224 : index
    %45 = vector.load %arg5[%c0_60, %c224] : memref<7x384xf32, #tpu.memory_space<vmem>>, vector<7x16xf32>
    tpu.vector_store %arg5[%c0_60, %c224], %44 {strides = array<i32>} : memref<7x384xf32, #tpu.memory_space<vmem>>, vector<7x16xf32>,
    %c0_61 = arith.constant 0 : index
    %c15 = arith.constant 15 : index
    %c0_62 = arith.constant 0 : index
    %c0_63 = arith.constant 0 : index
    %46 = vector.load %arg1[%c0_61, %c15, %c0_62, %c0_63] : memref<1x24x7x24xf32, #tpu.memory_space<vmem>>, vector<1x1x7x16xf32>
    %47 = vector.shape_cast %46 : vector<1x1x7x16xf32> to vector<7x16xf32>
    %c0_64 = arith.constant 0 : index
    %c240 = arith.constant 240 : index
    %48 = vector.load %arg5[%c0_64, %c240] : memref<7x384xf32, #tpu.memory_space<vmem>>, vector<7x16xf32>
    tpu.vector_store %arg5[%c0_64, %c240], %47 {strides = array<i32>} : memref<7x384xf32, #tpu.memory_space<vmem>>, vector<7x16xf32>,
    %c0_65 = arith.constant 0 : index
    %c16_66 = arith.constant 16 : index
    %c0_67 = arith.constant 0 : index
    %c0_68 = arith.constant 0 : index
    %49 = vector.load %arg1[%c0_65, %c16_66, %c0_67, %c0_68] : memref<1x24x7x24xf32, #tpu.memory_space<vmem>>, vector<1x1x7x16xf32>
    %50 = vector.shape_cast %49 : vector<1x1x7x16xf32> to vector<7x16xf32>
    %c0_69 = arith.constant 0 : index
    %c256 = arith.constant 256 : index
    %51 = vector.load %arg5[%c0_69, %c256] : memref<7x384xf32, #tpu.memory_space<vmem>>, vector<7x16xf32>
    tpu.vector_store %arg5[%c0_69, %c256], %50 {strides = array<i32>} : memref<7x384xf32, #tpu.memory_space<vmem>>, vector<7x16xf32>,
    %c0_70 = arith.constant 0 : index
    %c17 = arith.constant 17 : index
    %c0_71 = arith.constant 0 : index
    %c0_72 = arith.constant 0 : index
    %52 = vector.load %arg1[%c0_70, %c17, %c0_71, %c0_72] : memref<1x24x7x24xf32, #tpu.memory_space<vmem>>, vector<1x1x7x16xf32>
    %53 = vector.shape_cast %52 : vector<1x1x7x16xf32> to vector<7x16xf32>
    %c0_73 = arith.constant 0 : index
    %c272 = arith.constant 272 : index
    %54 = vector.load %arg5[%c0_73, %c272] : memref<7x384xf32, #tpu.memory_space<vmem>>, vector<7x16xf32>
    tpu.vector_store %arg5[%c0_73, %c272], %53 {strides = array<i32>} : memref<7x384xf32, #tpu.memory_space<vmem>>, vector<7x16xf32>,
    %c0_74 = arith.constant 0 : index
    %c18 = arith.constant 18 : index
    %c0_75 = arith.constant 0 : index
    %c0_76 = arith.constant 0 : index
    %55 = vector.load %arg1[%c0_74, %c18, %c0_75, %c0_76] : memref<1x24x7x24xf32, #tpu.memory_space<vmem>>, vector<1x1x7x16xf32>
    %56 = vector.shape_cast %55 : vector<1x1x7x16xf32> to vector<7x16xf32>
    %c0_77 = arith.constant 0 : index
    %c288 = arith.constant 288 : index
    %57 = vector.load %arg5[%c0_77, %c288] : memref<7x384xf32, #tpu.memory_space<vmem>>, vector<7x16xf32>
    tpu.vector_store %arg5[%c0_77, %c288], %56 {strides = array<i32>} : memref<7x384xf32, #tpu.memory_space<vmem>>, vector<7x16xf32>,
    %c0_78 = arith.constant 0 : index
    %c19 = arith.constant 19 : index
    %c0_79 = arith.constant 0 : index
    %c0_80 = arith.constant 0 : index
    %58 = vector.load %arg1[%c0_78, %c19, %c0_79, %c0_80] : memref<1x24x7x24xf32, #tpu.memory_space<vmem>>, vector<1x1x7x16xf32>
    %59 = vector.shape_cast %58 : vector<1x1x7x16xf32> to vector<7x16xf32>
    %c0_81 = arith.constant 0 : index
    %c304 = arith.constant 304 : index
    %60 = vector.load %arg5[%c0_81, %c304] : memref<7x384xf32, #tpu.memory_space<vmem>>, vector<7x16xf32>
    tpu.vector_store %arg5[%c0_81, %c304], %59 {strides = array<i32>} : memref<7x384xf32, #tpu.memory_space<vmem>>, vector<7x16xf32>,
    %c0_82 = arith.constant 0 : index
    %c20 = arith.constant 20 : index
    %c0_83 = arith.constant 0 : index
    %c0_84 = arith.constant 0 : index
    %61 = vector.load %arg1[%c0_82, %c20, %c0_83, %c0_84] : memref<1x24x7x24xf32, #tpu.memory_space<vmem>>, vector<1x1x7x16xf32>
    %62 = vector.shape_cast %61 : vector<1x1x7x16xf32> to vector<7x16xf32>
    %c0_85 = arith.constant 0 : index
    %c320 = arith.constant 320 : index
    %63 = vector.load %arg5[%c0_85, %c320] : memref<7x384xf32, #tpu.memory_space<vmem>>, vector<7x16xf32>
    tpu.vector_store %arg5[%c0_85, %c320], %62 {strides = array<i32>} : memref<7x384xf32, #tpu.memory_space<vmem>>, vector<7x16xf32>,
    %c0_86 = arith.constant 0 : index
    %c21 = arith.constant 21 : index
    %c0_87 = arith.constant 0 : index
    %c0_88 = arith.constant 0 : index
    %64 = vector.load %arg1[%c0_86, %c21, %c0_87, %c0_88] : memref<1x24x7x24xf32, #tpu.memory_space<vmem>>, vector<1x1x7x16xf32>
    %65 = vector.shape_cast %64 : vector<1x1x7x16xf32> to vector<7x16xf32>
    %c0_89 = arith.constant 0 : index
    %c336 = arith.constant 336 : index
    %66 = vector.load %arg5[%c0_89, %c336] : memref<7x384xf32, #tpu.memory_space<vmem>>, vector<7x16xf32>
    tpu.vector_store %arg5[%c0_89, %c336], %65 {strides = array<i32>} : memref<7x384xf32, #tpu.memory_space<vmem>>, vector<7x16xf32>,
    %c0_90 = arith.constant 0 : index
    %c22 = arith.constant 22 : index
    %c0_91 = arith.constant 0 : index
    %c0_92 = arith.constant 0 : index
    %67 = vector.load %arg1[%c0_90, %c22, %c0_91, %c0_92] : memref<1x24x7x24xf32, #tpu.memory_space<vmem>>, vector<1x1x7x16xf32>
    %68 = vector.shape_cast %67 : vector<1x1x7x16xf32> to vector<7x16xf32>
    %c0_93 = arith.constant 0 : index
    %c352 = arith.constant 352 : index
    %69 = vector.load %arg5[%c0_93, %c352] : memref<7x384xf32, #tpu.memory_space<vmem>>, vector<7x16xf32>
    tpu.vector_store %arg5[%c0_93, %c352], %68 {strides = array<i32>} : memref<7x384xf32, #tpu.memory_space<vmem>>, vector<7x16xf32>,
    %c0_94 = arith.constant 0 : index
    %c23 = arith.constant 23 : index
    %c0_95 = arith.constant 0 : index
    %c0_96 = arith.constant 0 : index
    %70 = vector.load %arg1[%c0_94, %c23, %c0_95, %c0_96] : memref<1x24x7x24xf32, #tpu.memory_space<vmem>>, vector<1x1x7x16xf32>
    %71 = vector.shape_cast %70 : vector<1x1x7x16xf32> to vector<7x16xf32>
    %c0_97 = arith.constant 0 : index
    %c368 = arith.constant 368 : index
    %72 = vector.load %arg5[%c0_97, %c368] : memref<7x384xf32, #tpu.memory_space<vmem>>, vector<7x16xf32>
    tpu.vector_store %arg5[%c0_97, %c368], %71 {strides = array<i32>} : memref<7x384xf32, #tpu.memory_space<vmem>>, vector<7x16xf32>,
    %c0_98 = arith.constant 0 : index
    %c0_99 = arith.constant 0 : index
    %73 = vector.load %arg2[%c0_98, %c0_99] : memref<9x175xf32, #tpu.memory_space<vmem>>, vector<9x7xf32>
    %c0_100 = arith.constant 0 : index
    %c0_101 = arith.constant 0 : index
    %74 = vector.load %arg5[%c0_100, %c0_101] : memref<7x384xf32, #tpu.memory_space<vmem>>, vector<7x256xf32>
    %cst_102 = arith.constant dense<0.000000e+00> : vector<9x256xf32>
    %75 = tpu.matmul %73, %74, %cst_102 {dimension_numbers = #tpu.dot_dimension_numbers<[1], [0], [0], [1], [0, 0, 1, 1], [], []>, precision = #tpu.contract_precision<fp32>} : vector<9x7xf32>, vector<7x256xf32>, vector<9x256xf32> -> vector<9x256xf32>
    %76 = arith.addf %0, %75 : vector<9x256xf32>
    %c0_103 = arith.constant 0 : index
    %c35 = arith.constant 35 : index
    %77 = vector.load %arg2[%c0_103, %c35] : memref<9x175xf32, #tpu.memory_space<vmem>>, vector<9x7xf32>
    %c0_104 = arith.constant 0 : index
    %c32_105 = arith.constant 32 : index
    %78 = vector.load %arg5[%c0_104, %c32_105] : memref<7x384xf32, #tpu.memory_space<vmem>>, vector<7x256xf32>
    %cst_106 = arith.constant dense<0.000000e+00> : vector<9x256xf32>
    %79 = tpu.matmul %77, %78, %cst_106 {dimension_numbers = #tpu.dot_dimension_numbers<[1], [0], [0], [1], [0, 0, 1, 1], [], []>, precision = #tpu.contract_precision<fp32>} : vector<9x7xf32>, vector<7x256xf32>, vector<9x256xf32> -> vector<9x256xf32>
    %80 = arith.addf %76, %79 : vector<9x256xf32>
    %c0_107 = arith.constant 0 : index
    %c70 = arith.constant 70 : index
    %81 = vector.load %arg2[%c0_107, %c70] : memref<9x175xf32, #tpu.memory_space<vmem>>, vector<9x7xf32>
    %c0_108 = arith.constant 0 : index
    %c64_109 = arith.constant 64 : index
    %82 = vector.load %arg5[%c0_108, %c64_109] : memref<7x384xf32, #tpu.memory_space<vmem>>, vector<7x256xf32>
    %cst_110 = arith.constant dense<0.000000e+00> : vector<9x256xf32>
    %83 = tpu.matmul %81, %82, %cst_110 {dimension_numbers = #tpu.dot_dimension_numbers<[1], [0], [0], [1], [0, 0, 1, 1], [], []>, precision = #tpu.contract_precision<fp32>} : vector<9x7xf32>, vector<7x256xf32>, vector<9x256xf32> -> vector<9x256xf32>
    %84 = arith.addf %80, %83 : vector<9x256xf32>
    %c0_111 = arith.constant 0 : index
    %c105 = arith.constant 105 : index
    %85 = vector.load %arg2[%c0_111, %c105] : memref<9x175xf32, #tpu.memory_space<vmem>>, vector<9x7xf32>
    %c0_112 = arith.constant 0 : index
    %c96_113 = arith.constant 96 : index
    %86 = vector.load %arg5[%c0_112, %c96_113] : memref<7x384xf32, #tpu.memory_space<vmem>>, vector<7x256xf32>
    %cst_114 = arith.constant dense<0.000000e+00> : vector<9x256xf32>
    %87 = tpu.matmul %85, %86, %cst_114 {dimension_numbers = #tpu.dot_dimension_numbers<[1], [0], [0], [1], [0, 0, 1, 1], [], []>, precision = #tpu.contract_precision<fp32>} : vector<9x7xf32>, vector<7x256xf32>, vector<9x256xf32> -> vector<9x256xf32>
    %88 = arith.addf %84, %87 : vector<9x256xf32>
    %c0_115 = arith.constant 0 : index
    %c140 = arith.constant 140 : index
    %89 = vector.load %arg2[%c0_115, %c140] : memref<9x175xf32, #tpu.memory_space<vmem>>, vector<9x7xf32>
    %c0_116 = arith.constant 0 : index
    %c128_117 = arith.constant 128 : index
    %90 = vector.load %arg5[%c0_116, %c128_117] : memref<7x384xf32, #tpu.memory_space<vmem>>, vector<7x256xf32>
    %cst_118 = arith.constant dense<0.000000e+00> : vector<9x256xf32>
    %91 = tpu.matmul %89, %90, %cst_118 {dimension_numbers = #tpu.dot_dimension_numbers<[1], [0], [0], [1], [0, 0, 1, 1], [], []>, precision = #tpu.contract_precision<fp32>} : vector<9x7xf32>, vector<7x256xf32>, vector<9x256xf32> -> vector<9x256xf32>
    %92 = arith.addf %88, %91 : vector<9x256xf32>
    %c0_119 = arith.constant 0 : index
    %c0_120 = arith.constant 0 : index
    %c0_121 = arith.constant 0 : index
    %c2_122 = arith.constant 2 : index
    %93 = vector.load %arg1[%c0_119, %c0_120, %c0_121, %c2_122] : memref<1x24x7x24xf32, #tpu.memory_space<vmem>>, vector<1x1x7x16xf32>
    %94 = vector.shape_cast %93 : vector<1x1x7x16xf32> to vector<7x16xf32>
    %c0_123 = arith.constant 0 : index
    %c0_124 = arith.constant 0 : index
    %95 = vector.load %arg5[%c0_123, %c0_124] : memref<7x384xf32, #tpu.memory_space<vmem>>, vector<7x16xf32>
    tpu.vector_store %arg5[%c0_123, %c0_124], %94 {strides = array<i32>} : memref<7x384xf32, #tpu.memory_space<vmem>>, vector<7x16xf32>,
    %c0_125 = arith.constant 0 : index
    %c1_126 = arith.constant 1 : index
    %c0_127 = arith.constant 0 : index
    %c2_128 = arith.constant 2 : index
    %96 = vector.load %arg1[%c0_125, %c1_126, %c0_127, %c2_128] : memref<1x24x7x24xf32, #tpu.memory_space<vmem>>, vector<1x1x7x16xf32>
    %97 = vector.shape_cast %96 : vector<1x1x7x16xf32> to vector<7x16xf32>
    %c0_129 = arith.constant 0 : index
    %c16_130 = arith.constant 16 : index
    %98 = vector.load %arg5[%c0_129, %c16_130] : memref<7x384xf32, #tpu.memory_space<vmem>>, vector<7x16xf32>
    tpu.vector_store %arg5[%c0_129, %c16_130], %97 {strides = array<i32>} : memref<7x384xf32, #tpu.memory_space<vmem>>, vector<7x16xf32>,
    %c0_131 = arith.constant 0 : index
    %c2_132 = arith.constant 2 : index
    %c0_133 = arith.constant 0 : index
    %c2_134 = arith.constant 2 : index
    %99 = vector.load %arg1[%c0_131, %c2_132, %c0_133, %c2_134] : memref<1x24x7x24xf32, #tpu.memory_space<vmem>>, vector<1x1x7x16xf32>
    %100 = vector.shape_cast %99 : vector<1x1x7x16xf32> to vector<7x16xf32>
    %c0_135 = arith.constant 0 : index
    %c32_136 = arith.constant 32 : index
    %101 = vector.load %arg5[%c0_135, %c32_136] : memref<7x384xf32, #tpu.memory_space<vmem>>, vector<7x16xf32>
    tpu.vector_store %arg5[%c0_135, %c32_136], %100 {strides = array<i32>} : memref<7x384xf32, #tpu.memory_space<vmem>>, vector<7x16xf32>,
    %c0_137 = arith.constant 0 : index
    %c3_138 = arith.constant 3 : index
    %c0_139 = arith.constant 0 : index
    %c2_140 = arith.constant 2 : index
    %102 = vector.load %arg1[%c0_137, %c3_138, %c0_139, %c2_140] : memref<1x24x7x24xf32, #tpu.memory_space<vmem>>, vector<1x1x7x16xf32>
    %103 = vector.shape_cast %102 : vector<1x1x7x16xf32> to vector<7x16xf32>
    %c0_141 = arith.constant 0 : index
    %c48_142 = arith.constant 48 : index
    %104 = vector.load %arg5[%c0_141, %c48_142] : memref<7x384xf32, #tpu.memory_space<vmem>>, vector<7x16xf32>
    tpu.vector_store %arg5[%c0_141, %c48_142], %103 {strides = array<i32>} : memref<7x384xf32, #tpu.memory_space<vmem>>, vector<7x16xf32>,
    %c0_143 = arith.constant 0 : index
    %c4_144 = arith.constant 4 : index
    %c0_145 = arith.constant 0 : index
    %c2_146 = arith.constant 2 : index
    %105 = vector.load %arg1[%c0_143, %c4_144, %c0_145, %c2_146] : memref<1x24x7x24xf32, #tpu.memory_space<vmem>>, vector<1x1x7x16xf32>
    %106 = vector.shape_cast %105 : vector<1x1x7x16xf32> to vector<7x16xf32>
    %c0_147 = arith.constant 0 : index
    %c64_148 = arith.constant 64 : index
    %107 = vector.load %arg5[%c0_147, %c64_148] : memref<7x384xf32, #tpu.memory_space<vmem>>, vector<7x16xf32>
    tpu.vector_store %arg5[%c0_147, %c64_148], %106 {strides = array<i32>} : memref<7x384xf32, #tpu.memory_space<vmem>>, vector<7x16xf32>,
    %c0_149 = arith.constant 0 : index
    %c5_150 = arith.constant 5 : index
    %c0_151 = arith.constant 0 : index
    %c2_152 = arith.constant 2 : index
    %108 = vector.load %arg1[%c0_149, %c5_150, %c0_151, %c2_152] : memref<1x24x7x24xf32, #tpu.memory_space<vmem>>, vector<1x1x7x16xf32>
    %109 = vector.shape_cast %108 : vector<1x1x7x16xf32> to vector<7x16xf32>
    %c0_153 = arith.constant 0 : index
    %c80_154 = arith.constant 80 : index
    %110 = vector.load %arg5[%c0_153, %c80_154] : memref<7x384xf32, #tpu.memory_space<vmem>>, vector<7x16xf32>
    tpu.vector_store %arg5[%c0_153, %c80_154], %109 {strides = array<i32>} : memref<7x384xf32, #tpu.memory_space<vmem>>, vector<7x16xf32>,
    %c0_155 = arith.constant 0 : index
    %c6_156 = arith.constant 6 : index
    %c0_157 = arith.constant 0 : index
    %c2_158 = arith.constant 2 : index
    %111 = vector.load %arg1[%c0_155, %c6_156, %c0_157, %c2_158] : memref<1x24x7x24xf32, #tpu.memory_space<vmem>>, vector<1x1x7x16xf32>
    %112 = vector.shape_cast %111 : vector<1x1x7x16xf32> to vector<7x16xf32>
    %c0_159 = arith.constant 0 : index
    %c96_160 = arith.constant 96 : index
    %113 = vector.load %arg5[%c0_159, %c96_160] : memref<7x384xf32, #tpu.memory_space<vmem>>, vector<7x16xf32>
    tpu.vector_store %arg5[%c0_159, %c96_160], %112 {strides = array<i32>} : memref<7x384xf32, #tpu.memory_space<vmem>>, vector<7x16xf32>,
    %c0_161 = arith.constant 0 : index
    %c7_162 = arith.constant 7 : index
    %c0_163 = arith.constant 0 : index
    %c2_164 = arith.constant 2 : index
    %114 = vector.load %arg1[%c0_161, %c7_162, %c0_163, %c2_164] : memref<1x24x7x24xf32, #tpu.memory_space<vmem>>, vector<1x1x7x16xf32>
    %115 = vector.shape_cast %114 : vector<1x1x7x16xf32> to vector<7x16xf32>
    %c0_165 = arith.constant 0 : index
    %c112_166 = arith.constant 112 : index
    %116 = vector.load %arg5[%c0_165, %c112_166] : memref<7x384xf32, #tpu.memory_space<vmem>>, vector<7x16xf32>
    tpu.vector_store %arg5[%c0_165, %c112_166], %115 {strides = array<i32>} : memref<7x384xf32, #tpu.memory_space<vmem>>, vector<7x16xf32>,
    %c0_167 = arith.constant 0 : index
    %c8_168 = arith.constant 8 : index
    %c0_169 = arith.constant 0 : index
    %c2_170 = arith.constant 2 : index
    %117 = vector.load %arg1[%c0_167, %c8_168, %c0_169, %c2_170] : memref<1x24x7x24xf32, #tpu.memory_space<vmem>>, vector<1x1x7x16xf32>
    %118 = vector.shape_cast %117 : vector<1x1x7x16xf32> to vector<7x16xf32>
    %c0_171 = arith.constant 0 : index
    %c128_172 = arith.constant 128 : index
    %119 = vector.load %arg5[%c0_171, %c128_172] : memref<7x384xf32, #tpu.memory_space<vmem>>, vector<7x16xf32>
    tpu.vector_store %arg5[%c0_171, %c128_172], %118 {strides = array<i32>} : memref<7x384xf32, #tpu.memory_space<vmem>>, vector<7x16xf32>,
    %c0_173 = arith.constant 0 : index
    %c9_174 = arith.constant 9 : index
    %c0_175 = arith.constant 0 : index
    %c2_176 = arith.constant 2 : index
    %120 = vector.load %arg1[%c0_173, %c9_174, %c0_175, %c2_176] : memref<1x24x7x24xf32, #tpu.memory_space<vmem>>, vector<1x1x7x16xf32>
    %121 = vector.shape_cast %120 : vector<1x1x7x16xf32> to vector<7x16xf32>
    %c0_177 = arith.constant 0 : index
    %c144_178 = arith.constant 144 : index
    %122 = vector.load %arg5[%c0_177, %c144_178] : memref<7x384xf32, #tpu.memory_space<vmem>>, vector<7x16xf32>
    tpu.vector_store %arg5[%c0_177, %c144_178], %121 {strides = array<i32>} : memref<7x384xf32, #tpu.memory_space<vmem>>, vector<7x16xf32>,
    %c0_179 = arith.constant 0 : index
    %c10_180 = arith.constant 10 : index
    %c0_181 = arith.constant 0 : index
    %c2_182 = arith.constant 2 : index
    %123 = vector.load %arg1[%c0_179, %c10_180, %c0_181, %c2_182] : memref<1x24x7x24xf32, #tpu.memory_space<vmem>>, vector<1x1x7x16xf32>
    %124 = vector.shape_cast %123 : vector<1x1x7x16xf32> to vector<7x16xf32>
    %c0_183 = arith.constant 0 : index
    %c160_184 = arith.constant 160 : index
    %125 = vector.load %arg5[%c0_183, %c160_184] : memref<7x384xf32, #tpu.memory_space<vmem>>, vector<7x16xf32>
    tpu.vector_store %arg5[%c0_183, %c160_184], %124 {strides = array<i32>} : memref<7x384xf32, #tpu.memory_space<vmem>>, vector<7x16xf32>,
    %c0_185 = arith.constant 0 : index
    %c11_186 = arith.constant 11 : index
    %c0_187 = arith.constant 0 : index
    %c2_188 = arith.constant 2 : index
    %126 = vector.load %arg1[%c0_185, %c11_186, %c0_187, %c2_188] : memref<1x24x7x24xf32, #tpu.memory_space<vmem>>, vector<1x1x7x16xf32>
    %127 = vector.shape_cast %126 : vector<1x1x7x16xf32> to vector<7x16xf32>
    %c0_189 = arith.constant 0 : index
    %c176_190 = arith.constant 176 : index
    %128 = vector.load %arg5[%c0_189, %c176_190] : memref<7x384xf32, #tpu.memory_space<vmem>>, vector<7x16xf32>
    tpu.vector_store %arg5[%c0_189, %c176_190], %127 {strides = array<i32>} : memref<7x384xf32, #tpu.memory_space<vmem>>, vector<7x16xf32>,
    %c0_191 = arith.constant 0 : index
    %c12_192 = arith.constant 12 : index
    %c0_193 = arith.constant 0 : index
    %c2_194 = arith.constant 2 : index
    %129 = vector.load %arg1[%c0_191, %c12_192, %c0_193, %c2_194] : memref<1x24x7x24xf32, #tpu.memory_space<vmem>>, vector<1x1x7x16xf32>
    %130 = vector.shape_cast %129 : vector<1x1x7x16xf32> to vector<7x16xf32>
    %c0_195 = arith.constant 0 : index
    %c192_196 = arith.constant 192 : index
    %131 = vector.load %arg5[%c0_195, %c192_196] : memref<7x384xf32, #tpu.memory_space<vmem>>, vector<7x16xf32>
    tpu.vector_store %arg5[%c0_195, %c192_196], %130 {strides = array<i32>} : memref<7x384xf32, #tpu.memory_space<vmem>>, vector<7x16xf32>,
    %c0_197 = arith.constant 0 : index
    %c13_198 = arith.constant 13 : index
    %c0_199 = arith.constant 0 : index
    %c2_200 = arith.constant 2 : index
    %132 = vector.load %arg1[%c0_197, %c13_198, %c0_199, %c2_200] : memref<1x24x7x24xf32, #tpu.memory_space<vmem>>, vector<1x1x7x16xf32>
    %133 = vector.shape_cast %132 : vector<1x1x7x16xf32> to vector<7x16xf32>
    %c0_201 = arith.constant 0 : index
    %c208_202 = arith.constant 208 : index
    %134 = vector.load %arg5[%c0_201, %c208_202] : memref<7x384xf32, #tpu.memory_space<vmem>>, vector<7x16xf32>
    tpu.vector_store %arg5[%c0_201, %c208_202], %133 {strides = array<i32>} : memref<7x384xf32, #tpu.memory_space<vmem>>, vector<7x16xf32>,
    %c0_203 = arith.constant 0 : index
    %c14_204 = arith.constant 14 : index
    %c0_205 = arith.constant 0 : index
    %c2_206 = arith.constant 2 : index
    %135 = vector.load %arg1[%c0_203, %c14_204, %c0_205, %c2_206] : memref<1x24x7x24xf32, #tpu.memory_space<vmem>>, vector<1x1x7x16xf32>
    %136 = vector.shape_cast %135 : vector<1x1x7x16xf32> to vector<7x16xf32>
    %c0_207 = arith.constant 0 : index
    %c224_208 = arith.constant 224 : index
    %137 = vector.load %arg5[%c0_207, %c224_208] : memref<7x384xf32, #tpu.memory_space<vmem>>, vector<7x16xf32>
    tpu.vector_store %arg5[%c0_207, %c224_208], %136 {strides = array<i32>} : memref<7x384xf32, #tpu.memory_space<vmem>>, vector<7x16xf32>,
    %c0_209 = arith.constant 0 : index
    %c15_210 = arith.constant 15 : index
    %c0_211 = arith.constant 0 : index
    %c2_212 = arith.constant 2 : index
    %138 = vector.load %arg1[%c0_209, %c15_210, %c0_211, %c2_212] : memref<1x24x7x24xf32, #tpu.memory_space<vmem>>, vector<1x1x7x16xf32>
    %139 = vector.shape_cast %138 : vector<1x1x7x16xf32> to vector<7x16xf32>
    %c0_213 = arith.constant 0 : index
    %c240_214 = arith.constant 240 : index
    %140 = vector.load %arg5[%c0_213, %c240_214] : memref<7x384xf32, #tpu.memory_space<vmem>>, vector<7x16xf32>
    tpu.vector_store %arg5[%c0_213, %c240_214], %139 {strides = array<i32>} : memref<7x384xf32, #tpu.memory_space<vmem>>, vector<7x16xf32>,
    %c0_215 = arith.constant 0 : index
    %c16_216 = arith.constant 16 : index
    %c0_217 = arith.constant 0 : index
    %c2_218 = arith.constant 2 : index
    %141 = vector.load %arg1[%c0_215, %c16_216, %c0_217, %c2_218] : memref<1x24x7x24xf32, #tpu.memory_space<vmem>>, vector<1x1x7x16xf32>
    %142 = vector.shape_cast %141 : vector<1x1x7x16xf32> to vector<7x16xf32>
    %c0_219 = arith.constant 0 : index
    %c256_220 = arith.constant 256 : index
    %143 = vector.load %arg5[%c0_219, %c256_220] : memref<7x384xf32, #tpu.memory_space<vmem>>, vector<7x16xf32>
    tpu.vector_store %arg5[%c0_219, %c256_220], %142 {strides = array<i32>} : memref<7x384xf32, #tpu.memory_space<vmem>>, vector<7x16xf32>,
    %c0_221 = arith.constant 0 : index
    %c17_222 = arith.constant 17 : index
    %c0_223 = arith.constant 0 : index
    %c2_224 = arith.constant 2 : index
    %144 = vector.load %arg1[%c0_221, %c17_222, %c0_223, %c2_224] : memref<1x24x7x24xf32, #tpu.memory_space<vmem>>, vector<1x1x7x16xf32>
    %145 = vector.shape_cast %144 : vector<1x1x7x16xf32> to vector<7x16xf32>
    %c0_225 = arith.constant 0 : index
    %c272_226 = arith.constant 272 : index
    %146 = vector.load %arg5[%c0_225, %c272_226] : memref<7x384xf32, #tpu.memory_space<vmem>>, vector<7x16xf32>
    tpu.vector_store %arg5[%c0_225, %c272_226], %145 {strides = array<i32>} : memref<7x384xf32, #tpu.memory_space<vmem>>, vector<7x16xf32>,
    %c0_227 = arith.constant 0 : index
    %c18_228 = arith.constant 18 : index
    %c0_229 = arith.constant 0 : index
    %c2_230 = arith.constant 2 : index
    %147 = vector.load %arg1[%c0_227, %c18_228, %c0_229, %c2_230] : memref<1x24x7x24xf32, #tpu.memory_space<vmem>>, vector<1x1x7x16xf32>
    %148 = vector.shape_cast %147 : vector<1x1x7x16xf32> to vector<7x16xf32>
    %c0_231 = arith.constant 0 : index
    %c288_232 = arith.constant 288 : index
    %149 = vector.load %arg5[%c0_231, %c288_232] : memref<7x384xf32, #tpu.memory_space<vmem>>, vector<7x16xf32>
    tpu.vector_store %arg5[%c0_231, %c288_232], %148 {strides = array<i32>} : memref<7x384xf32, #tpu.memory_space<vmem>>, vector<7x16xf32>,
    %c0_233 = arith.constant 0 : index
    %c19_234 = arith.constant 19 : index
    %c0_235 = arith.constant 0 : index
    %c2_236 = arith.constant 2 : index
    %150 = vector.load %arg1[%c0_233, %c19_234, %c0_235, %c2_236] : memref<1x24x7x24xf32, #tpu.memory_space<vmem>>, vector<1x1x7x16xf32>
    %151 = vector.shape_cast %150 : vector<1x1x7x16xf32> to vector<7x16xf32>
    %c0_237 = arith.constant 0 : index
    %c304_238 = arith.constant 304 : index
    %152 = vector.load %arg5[%c0_237, %c304_238] : memref<7x384xf32, #tpu.memory_space<vmem>>, vector<7x16xf32>
    tpu.vector_store %arg5[%c0_237, %c304_238], %151 {strides = array<i32>} : memref<7x384xf32, #tpu.memory_space<vmem>>, vector<7x16xf32>,
    %c0_239 = arith.constant 0 : index
    %c20_240 = arith.constant 20 : index
    %c0_241 = arith.constant 0 : index
    %c2_242 = arith.constant 2 : index
    %153 = vector.load %arg1[%c0_239, %c20_240, %c0_241, %c2_242] : memref<1x24x7x24xf32, #tpu.memory_space<vmem>>, vector<1x1x7x16xf32>
    %154 = vector.shape_cast %153 : vector<1x1x7x16xf32> to vector<7x16xf32>
    %c0_243 = arith.constant 0 : index
    %c320_244 = arith.constant 320 : index
    %155 = vector.load %arg5[%c0_243, %c320_244] : memref<7x384xf32, #tpu.memory_space<vmem>>, vector<7x16xf32>
    tpu.vector_store %arg5[%c0_243, %c320_244], %154 {strides = array<i32>} : memref<7x384xf32, #tpu.memory_space<vmem>>, vector<7x16xf32>,
    %c0_245 = arith.constant 0 : index
    %c21_246 = arith.constant 21 : index
    %c0_247 = arith.constant 0 : index
    %c2_248 = arith.constant 2 : index
    %156 = vector.load %arg1[%c0_245, %c21_246, %c0_247, %c2_248] : memref<1x24x7x24xf32, #tpu.memory_space<vmem>>, vector<1x1x7x16xf32>
    %157 = vector.shape_cast %156 : vector<1x1x7x16xf32> to vector<7x16xf32>
    %c0_249 = arith.constant 0 : index
    %c336_250 = arith.constant 336 : index
    %158 = vector.load %arg5[%c0_249, %c336_250] : memref<7x384xf32, #tpu.memory_space<vmem>>, vector<7x16xf32>
    tpu.vector_store %arg5[%c0_249, %c336_250], %157 {strides = array<i32>} : memref<7x384xf32, #tpu.memory_space<vmem>>, vector<7x16xf32>,
    %c0_251 = arith.constant 0 : index
    %c22_252 = arith.constant 22 : index
    %c0_253 = arith.constant 0 : index
    %c2_254 = arith.constant 2 : index
    %159 = vector.load %arg1[%c0_251, %c22_252, %c0_253, %c2_254] : memref<1x24x7x24xf32, #tpu.memory_space<vmem>>, vector<1x1x7x16xf32>
    %160 = vector.shape_cast %159 : vector<1x1x7x16xf32> to vector<7x16xf32>
    %c0_255 = arith.constant 0 : index
    %c352_256 = arith.constant 352 : index
    %161 = vector.load %arg5[%c0_255, %c352_256] : memref<7x384xf32, #tpu.memory_space<vmem>>, vector<7x16xf32>
    tpu.vector_store %arg5[%c0_255, %c352_256], %160 {strides = array<i32>} : memref<7x384xf32, #tpu.memory_space<vmem>>, vector<7x16xf32>,
    %c0_257 = arith.constant 0 : index
    %c23_258 = arith.constant 23 : index
    %c0_259 = arith.constant 0 : index
    %c2_260 = arith.constant 2 : index
    %162 = vector.load %arg1[%c0_257, %c23_258, %c0_259, %c2_260] : memref<1x24x7x24xf32, #tpu.memory_space<vmem>>, vector<1x1x7x16xf32>
    %163 = vector.shape_cast %162 : vector<1x1x7x16xf32> to vector<7x16xf32>
    %c0_261 = arith.constant 0 : index
    %c368_262 = arith.constant 368 : index
    %164 = vector.load %arg5[%c0_261, %c368_262] : memref<7x384xf32, #tpu.memory_space<vmem>>, vector<7x16xf32>
    tpu.vector_store %arg5[%c0_261, %c368_262], %163 {strides = array<i32>} : memref<7x384xf32, #tpu.memory_space<vmem>>, vector<7x16xf32>,
    %c0_263 = arith.constant 0 : index
    %c7_264 = arith.constant 7 : index
    %165 = vector.load %arg2[%c0_263, %c7_264] : memref<9x175xf32, #tpu.memory_space<vmem>>, vector<9x7xf32>
    %c0_265 = arith.constant 0 : index
    %c0_266 = arith.constant 0 : index
    %166 = vector.load %arg5[%c0_265, %c0_266] : memref<7x384xf32, #tpu.memory_space<vmem>>, vector<7x256xf32>
    %cst_267 = arith.constant dense<0.000000e+00> : vector<9x256xf32>
    %167 = tpu.matmul %165, %166, %cst_267 {dimension_numbers = #tpu.dot_dimension_numbers<[1], [0], [0], [1], [0, 0, 1, 1], [], []>, precision = #tpu.contract_precision<fp32>} : vector<9x7xf32>, vector<7x256xf32>, vector<9x256xf32> -> vector<9x256xf32>
    %168 = arith.addf %92, %167 : vector<9x256xf32>
    %c0_268 = arith.constant 0 : index
    %c42 = arith.constant 42 : index
    %169 = vector.load %arg2[%c0_268, %c42] : memref<9x175xf32, #tpu.memory_space<vmem>>, vector<9x7xf32>
    %c0_269 = arith.constant 0 : index
    %c32_270 = arith.constant 32 : index
    %170 = vector.load %arg5[%c0_269, %c32_270] : memref<7x384xf32, #tpu.memory_space<vmem>>, vector<7x256xf32>
    %cst_271 = arith.constant dense<0.000000e+00> : vector<9x256xf32>
    %171 = tpu.matmul %169, %170, %cst_271 {dimension_numbers = #tpu.dot_dimension_numbers<[1], [0], [0], [1], [0, 0, 1, 1], [], []>, precision = #tpu.contract_precision<fp32>} : vector<9x7xf32>, vector<7x256xf32>, vector<9x256xf32> -> vector<9x256xf32>
    %172 = arith.addf %168, %171 : vector<9x256xf32>
    %c0_272 = arith.constant 0 : index
    %c77 = arith.constant 77 : index
    %173 = vector.load %arg2[%c0_272, %c77] : memref<9x175xf32, #tpu.memory_space<vmem>>, vector<9x7xf32>
    %c0_273 = arith.constant 0 : index
    %c64_274 = arith.constant 64 : index
    %174 = vector.load %arg5[%c0_273, %c64_274] : memref<7x384xf32, #tpu.memory_space<vmem>>, vector<7x256xf32>
    %cst_275 = arith.constant dense<0.000000e+00> : vector<9x256xf32>
    %175 = tpu.matmul %173, %174, %cst_275 {dimension_numbers = #tpu.dot_dimension_numbers<[1], [0], [0], [1], [0, 0, 1, 1], [], []>, precision = #tpu.contract_precision<fp32>} : vector<9x7xf32>, vector<7x256xf32>, vector<9x256xf32> -> vector<9x256xf32>
    %176 = arith.addf %172, %175 : vector<9x256xf32>
    %c0_276 = arith.constant 0 : index
    %c112_277 = arith.constant 112 : index
    %177 = vector.load %arg2[%c0_276, %c112_277] : memref<9x175xf32, #tpu.memory_space<vmem>>, vector<9x7xf32>
    %c0_278 = arith.constant 0 : index
    %c96_279 = arith.constant 96 : index
    %178 = vector.load %arg5[%c0_278, %c96_279] : memref<7x384xf32, #tpu.memory_space<vmem>>, vector<7x256xf32>
    %cst_280 = arith.constant dense<0.000000e+00> : vector<9x256xf32>
    %179 = tpu.matmul %177, %178, %cst_280 {dimension_numbers = #tpu.dot_dimension_numbers<[1], [0], [0], [1], [0, 0, 1, 1], [], []>, precision = #tpu.contract_precision<fp32>} : vector<9x7xf32>, vector<7x256xf32>, vector<9x256xf32> -> vector<9x256xf32>
    %180 = arith.addf %176, %179 : vector<9x256xf32>
    %c0_281 = arith.constant 0 : index
    %c147 = arith.constant 147 : index
    %181 = vector.load %arg2[%c0_281, %c147] : memref<9x175xf32, #tpu.memory_space<vmem>>, vector<9x7xf32>
    %c0_282 = arith.constant 0 : index
    %c128_283 = arith.constant 128 : index
    %182 = vector.load %arg5[%c0_282, %c128_283] : memref<7x384xf32, #tpu.memory_space<vmem>>, vector<7x256xf32>
    %cst_284 = arith.constant dense<0.000000e+00> : vector<9x256xf32>
    %183 = tpu.matmul %181, %182, %cst_284 {dimension_numbers = #tpu.dot_dimension_numbers<[1], [0], [0], [1], [0, 0, 1, 1], [], []>, precision = #tpu.contract_precision<fp32>} : vector<9x7xf32>, vector<7x256xf32>, vector<9x256xf32> -> vector<9x256xf32>
    %184 = arith.addf %180, %183 : vector<9x256xf32>
    %c0_285 = arith.constant 0 : index
    %c0_286 = arith.constant 0 : index
    %c0_287 = arith.constant 0 : index
    %c4_288 = arith.constant 4 : index
    %185 = vector.load %arg1[%c0_285, %c0_286, %c0_287, %c4_288] : memref<1x24x7x24xf32, #tpu.memory_space<vmem>>, vector<1x1x7x16xf32>
    %186 = vector.shape_cast %185 : vector<1x1x7x16xf32> to vector<7x16xf32>
    %c0_289 = arith.constant 0 : index
    %c0_290 = arith.constant 0 : index
    %187 = vector.load %arg5[%c0_289, %c0_290] : memref<7x384xf32, #tpu.memory_space<vmem>>, vector<7x16xf32>
    tpu.vector_store %arg5[%c0_289, %c0_290], %186 {strides = array<i32>} : memref<7x384xf32, #tpu.memory_space<vmem>>, vector<7x16xf32>,
    %c0_291 = arith.constant 0 : index
    %c1_292 = arith.constant 1 : index
    %c0_293 = arith.constant 0 : index
    %c4_294 = arith.constant 4 : index
    %188 = vector.load %arg1[%c0_291, %c1_292, %c0_293, %c4_294] : memref<1x24x7x24xf32, #tpu.memory_space<vmem>>, vector<1x1x7x16xf32>
    %189 = vector.shape_cast %188 : vector<1x1x7x16xf32> to vector<7x16xf32>
    %c0_295 = arith.constant 0 : index
    %c16_296 = arith.constant 16 : index
    %190 = vector.load %arg5[%c0_295, %c16_296] : memref<7x384xf32, #tpu.memory_space<vmem>>, vector<7x16xf32>
    tpu.vector_store %arg5[%c0_295, %c16_296], %189 {strides = array<i32>} : memref<7x384xf32, #tpu.memory_space<vmem>>, vector<7x16xf32>,
    %c0_297 = arith.constant 0 : index
    %c2_298 = arith.constant 2 : index
    %c0_299 = arith.constant 0 : index
    %c4_300 = arith.constant 4 : index
    %191 = vector.load %arg1[%c0_297, %c2_298, %c0_299, %c4_300] : memref<1x24x7x24xf32, #tpu.memory_space<vmem>>, vector<1x1x7x16xf32>
    %192 = vector.shape_cast %191 : vector<1x1x7x16xf32> to vector<7x16xf32>
    %c0_301 = arith.constant 0 : index
    %c32_302 = arith.constant 32 : index
    %193 = vector.load %arg5[%c0_301, %c32_302] : memref<7x384xf32, #tpu.memory_space<vmem>>, vector<7x16xf32>
    tpu.vector_store %arg5[%c0_301, %c32_302], %192 {strides = array<i32>} : memref<7x384xf32, #tpu.memory_space<vmem>>, vector<7x16xf32>,
    %c0_303 = arith.constant 0 : index
    %c3_304 = arith.constant 3 : index
    %c0_305 = arith.constant 0 : index
    %c4_306 = arith.constant 4 : index
    %194 = vector.load %arg1[%c0_303, %c3_304, %c0_305, %c4_306] : memref<1x24x7x24xf32, #tpu.memory_space<vmem>>, vector<1x1x7x16xf32>
    %195 = vector.shape_cast %194 : vector<1x1x7x16xf32> to vector<7x16xf32>
    %c0_307 = arith.constant 0 : index
    %c48_308 = arith.constant 48 : index
    %196 = vector.load %arg5[%c0_307, %c48_308] : memref<7x384xf32, #tpu.memory_space<vmem>>, vector<7x16xf32>
    tpu.vector_store %arg5[%c0_307, %c48_308], %195 {strides = array<i32>} : memref<7x384xf32, #tpu.memory_space<vmem>>, vector<7x16xf32>,
    %c0_309 = arith.constant 0 : index
    %c4_310 = arith.constant 4 : index
    %c0_311 = arith.constant 0 : index
    %c4_312 = arith.constant 4 : index
    %197 = vector.load %arg1[%c0_309, %c4_310, %c0_311, %c4_312] : memref<1x24x7x24xf32, #tpu.memory_space<vmem>>, vector<1x1x7x16xf32>
    %198 = vector.shape_cast %197 : vector<1x1x7x16xf32> to vector<7x16xf32>
    %c0_313 = arith.constant 0 : index
    %c64_314 = arith.constant 64 : index
    %199 = vector.load %arg5[%c0_313, %c64_314] : memref<7x384xf32, #tpu.memory_space<vmem>>, vector<7x16xf32>
    tpu.vector_store %arg5[%c0_313, %c64_314], %198 {strides = array<i32>} : memref<7x384xf32, #tpu.memory_space<vmem>>, vector<7x16xf32>,
    %c0_315 = arith.constant 0 : index
    %c5_316 = arith.constant 5 : index
    %c0_317 = arith.constant 0 : index
    %c4_318 = arith.constant 4 : index
    %200 = vector.load %arg1[%c0_315, %c5_316, %c0_317, %c4_318] : memref<1x24x7x24xf32, #tpu.memory_space<vmem>>, vector<1x1x7x16xf32>
    %201 = vector.shape_cast %200 : vector<1x1x7x16xf32> to vector<7x16xf32>
    %c0_319 = arith.constant 0 : index
    %c80_320 = arith.constant 80 : index
    %202 = vector.load %arg5[%c0_319, %c80_320] : memref<7x384xf32, #tpu.memory_space<vmem>>, vector<7x16xf32>
    tpu.vector_store %arg5[%c0_319, %c80_320], %201 {strides = array<i32>} : memref<7x384xf32, #tpu.memory_space<vmem>>, vector<7x16xf32>,
    %c0_321 = arith.constant 0 : index
    %c6_322 = arith.constant 6 : index
    %c0_323 = arith.constant 0 : index
    %c4_324 = arith.constant 4 : index
    %203 = vector.load %arg1[%c0_321, %c6_322, %c0_323, %c4_324] : memref<1x24x7x24xf32, #tpu.memory_space<vmem>>, vector<1x1x7x16xf32>
    %204 = vector.shape_cast %203 : vector<1x1x7x16xf32> to vector<7x16xf32>
    %c0_325 = arith.constant 0 : index
    %c96_326 = arith.constant 96 : index
    %205 = vector.load %arg5[%c0_325, %c96_326] : memref<7x384xf32, #tpu.memory_space<vmem>>, vector<7x16xf32>
    tpu.vector_store %arg5[%c0_325, %c96_326], %204 {strides = array<i32>} : memref<7x384xf32, #tpu.memory_space<vmem>>, vector<7x16xf32>,
    %c0_327 = arith.constant 0 : index
    %c7_328 = arith.constant 7 : index
    %c0_329 = arith.constant 0 : index
    %c4_330 = arith.constant 4 : index
    %206 = vector.load %arg1[%c0_327, %c7_328, %c0_329, %c4_330] : memref<1x24x7x24xf32, #tpu.memory_space<vmem>>, vector<1x1x7x16xf32>
    %207 = vector.shape_cast %206 : vector<1x1x7x16xf32> to vector<7x16xf32>
    %c0_331 = arith.constant 0 : index
    %c112_332 = arith.constant 112 : index
    %208 = vector.load %arg5[%c0_331, %c112_332] : memref<7x384xf32, #tpu.memory_space<vmem>>, vector<7x16xf32>
    tpu.vector_store %arg5[%c0_331, %c112_332], %207 {strides = array<i32>} : memref<7x384xf32, #tpu.memory_space<vmem>>, vector<7x16xf32>,
    %c0_333 = arith.constant 0 : index
    %c8_334 = arith.constant 8 : index
    %c0_335 = arith.constant 0 : index
    %c4_336 = arith.constant 4 : index
    %209 = vector.load %arg1[%c0_333, %c8_334, %c0_335, %c4_336] : memref<1x24x7x24xf32, #tpu.memory_space<vmem>>, vector<1x1x7x16xf32>
    %210 = vector.shape_cast %209 : vector<1x1x7x16xf32> to vector<7x16xf32>
    %c0_337 = arith.constant 0 : index
    %c128_338 = arith.constant 128 : index
    %211 = vector.load %arg5[%c0_337, %c128_338] : memref<7x384xf32, #tpu.memory_space<vmem>>, vector<7x16xf32>
    tpu.vector_store %arg5[%c0_337, %c128_338], %210 {strides = array<i32>} : memref<7x384xf32, #tpu.memory_space<vmem>>, vector<7x16xf32>,
    %c0_339 = arith.constant 0 : index
    %c9_340 = arith.constant 9 : index
    %c0_341 = arith.constant 0 : index
    %c4_342 = arith.constant 4 : index
    %212 = vector.load %arg1[%c0_339, %c9_340, %c0_341, %c4_342] : memref<1x24x7x24xf32, #tpu.memory_space<vmem>>, vector<1x1x7x16xf32>
    %213 = vector.shape_cast %212 : vector<1x1x7x16xf32> to vector<7x16xf32>
    %c0_343 = arith.constant 0 : index
    %c144_344 = arith.constant 144 : index
    %214 = vector.load %arg5[%c0_343, %c144_344] : memref<7x384xf32, #tpu.memory_space<vmem>>, vector<7x16xf32>
    tpu.vector_store %arg5[%c0_343, %c144_344], %213 {strides = array<i32>} : memref<7x384xf32, #tpu.memory_space<vmem>>, vector<7x16xf32>,
    %c0_345 = arith.constant 0 : index
    %c10_346 = arith.constant 10 : index
    %c0_347 = arith.constant 0 : index
    %c4_348 = arith.constant 4 : index
    %215 = vector.load %arg1[%c0_345, %c10_346, %c0_347, %c4_348] : memref<1x24x7x24xf32, #tpu.memory_space<vmem>>, vector<1x1x7x16xf32>
    %216 = vector.shape_cast %215 : vector<1x1x7x16xf32> to vector<7x16xf32>
    %c0_349 = arith.constant 0 : index
    %c160_350 = arith.constant 160 : index
    %217 = vector.load %arg5[%c0_349, %c160_350] : memref<7x384xf32, #tpu.memory_space<vmem>>, vector<7x16xf32>
    tpu.vector_store %arg5[%c0_349, %c160_350], %216 {strides = array<i32>} : memref<7x384xf32, #tpu.memory_space<vmem>>, vector<7x16xf32>,
    %c0_351 = arith.constant 0 : index
    %c11_352 = arith.constant 11 : index
    %c0_353 = arith.constant 0 : index
    %c4_354 = arith.constant 4 : index
    %218 = vector.load %arg1[%c0_351, %c11_352, %c0_353, %c4_354] : memref<1x24x7x24xf32, #tpu.memory_space<vmem>>, vector<1x1x7x16xf32>
    %219 = vector.shape_cast %218 : vector<1x1x7x16xf32> to vector<7x16xf32>
    %c0_355 = arith.constant 0 : index
    %c176_356 = arith.constant 176 : index
    %220 = vector.load %arg5[%c0_355, %c176_356] : memref<7x384xf32, #tpu.memory_space<vmem>>, vector<7x16xf32>
    tpu.vector_store %arg5[%c0_355, %c176_356], %219 {strides = array<i32>} : memref<7x384xf32, #tpu.memory_space<vmem>>, vector<7x16xf32>,
    %c0_357 = arith.constant 0 : index
    %c12_358 = arith.constant 12 : index
    %c0_359 = arith.constant 0 : index
    %c4_360 = arith.constant 4 : index
    %221 = vector.load %arg1[%c0_357, %c12_358, %c0_359, %c4_360] : memref<1x24x7x24xf32, #tpu.memory_space<vmem>>, vector<1x1x7x16xf32>
    %222 = vector.shape_cast %221 : vector<1x1x7x16xf32> to vector<7x16xf32>
    %c0_361 = arith.constant 0 : index
    %c192_362 = arith.constant 192 : index
    %223 = vector.load %arg5[%c0_361, %c192_362] : memref<7x384xf32, #tpu.memory_space<vmem>>, vector<7x16xf32>
    tpu.vector_store %arg5[%c0_361, %c192_362], %222 {strides = array<i32>} : memref<7x384xf32, #tpu.memory_space<vmem>>, vector<7x16xf32>,
    %c0_363 = arith.constant 0 : index
    %c13_364 = arith.constant 13 : index
    %c0_365 = arith.constant 0 : index
    %c4_366 = arith.constant 4 : index
    %224 = vector.load %arg1[%c0_363, %c13_364, %c0_365, %c4_366] : memref<1x24x7x24xf32, #tpu.memory_space<vmem>>, vector<1x1x7x16xf32>
    %225 = vector.shape_cast %224 : vector<1x1x7x16xf32> to vector<7x16xf32>
    %c0_367 = arith.constant 0 : index
    %c208_368 = arith.constant 208 : index
    %226 = vector.load %arg5[%c0_367, %c208_368] : memref<7x384xf32, #tpu.memory_space<vmem>>, vector<7x16xf32>
    tpu.vector_store %arg5[%c0_367, %c208_368], %225 {strides = array<i32>} : memref<7x384xf32, #tpu.memory_space<vmem>>, vector<7x16xf32>,
    %c0_369 = arith.constant 0 : index
    %c14_370 = arith.constant 14 : index
    %c0_371 = arith.constant 0 : index
    %c4_372 = arith.constant 4 : index
    %227 = vector.load %arg1[%c0_369, %c14_370, %c0_371, %c4_372] : memref<1x24x7x24xf32, #tpu.memory_space<vmem>>, vector<1x1x7x16xf32>
    %228 = vector.shape_cast %227 : vector<1x1x7x16xf32> to vector<7x16xf32>
    %c0_373 = arith.constant 0 : index
    %c224_374 = arith.constant 224 : index
    %229 = vector.load %arg5[%c0_373, %c224_374] : memref<7x384xf32, #tpu.memory_space<vmem>>, vector<7x16xf32>
    tpu.vector_store %arg5[%c0_373, %c224_374], %228 {strides = array<i32>} : memref<7x384xf32, #tpu.memory_space<vmem>>, vector<7x16xf32>,
    %c0_375 = arith.constant 0 : index
    %c15_376 = arith.constant 15 : index
    %c0_377 = arith.constant 0 : index
    %c4_378 = arith.constant 4 : index
    %230 = vector.load %arg1[%c0_375, %c15_376, %c0_377, %c4_378] : memref<1x24x7x24xf32, #tpu.memory_space<vmem>>, vector<1x1x7x16xf32>
    %231 = vector.shape_cast %230 : vector<1x1x7x16xf32> to vector<7x16xf32>
    %c0_379 = arith.constant 0 : index
    %c240_380 = arith.constant 240 : index
    %232 = vector.load %arg5[%c0_379, %c240_380] : memref<7x384xf32, #tpu.memory_space<vmem>>, vector<7x16xf32>
    tpu.vector_store %arg5[%c0_379, %c240_380], %231 {strides = array<i32>} : memref<7x384xf32, #tpu.memory_space<vmem>>, vector<7x16xf32>,
    %c0_381 = arith.constant 0 : index
    %c16_382 = arith.constant 16 : index
    %c0_383 = arith.constant 0 : index
    %c4_384 = arith.constant 4 : index
    %233 = vector.load %arg1[%c0_381, %c16_382, %c0_383, %c4_384] : memref<1x24x7x24xf32, #tpu.memory_space<vmem>>, vector<1x1x7x16xf32>
    %234 = vector.shape_cast %233 : vector<1x1x7x16xf32> to vector<7x16xf32>
    %c0_385 = arith.constant 0 : index
    %c256_386 = arith.constant 256 : index
    %235 = vector.load %arg5[%c0_385, %c256_386] : memref<7x384xf32, #tpu.memory_space<vmem>>, vector<7x16xf32>
    tpu.vector_store %arg5[%c0_385, %c256_386], %234 {strides = array<i32>} : memref<7x384xf32, #tpu.memory_space<vmem>>, vector<7x16xf32>,
    %c0_387 = arith.constant 0 : index
    %c17_388 = arith.constant 17 : index
    %c0_389 = arith.constant 0 : index
    %c4_390 = arith.constant 4 : index
    %236 = vector.load %arg1[%c0_387, %c17_388, %c0_389, %c4_390] : memref<1x24x7x24xf32, #tpu.memory_space<vmem>>, vector<1x1x7x16xf32>
    %237 = vector.shape_cast %236 : vector<1x1x7x16xf32> to vector<7x16xf32>
    %c0_391 = arith.constant 0 : index
    %c272_392 = arith.constant 272 : index
    %238 = vector.load %arg5[%c0_391, %c272_392] : memref<7x384xf32, #tpu.memory_space<vmem>>, vector<7x16xf32>
    tpu.vector_store %arg5[%c0_391, %c272_392], %237 {strides = array<i32>} : memref<7x384xf32, #tpu.memory_space<vmem>>, vector<7x16xf32>,
    %c0_393 = arith.constant 0 : index
    %c18_394 = arith.constant 18 : index
    %c0_395 = arith.constant 0 : index
    %c4_396 = arith.constant 4 : index
    %239 = vector.load %arg1[%c0_393, %c18_394, %c0_395, %c4_396] : memref<1x24x7x24xf32, #tpu.memory_space<vmem>>, vector<1x1x7x16xf32>
    %240 = vector.shape_cast %239 : vector<1x1x7x16xf32> to vector<7x16xf32>
    %c0_397 = arith.constant 0 : index
    %c288_398 = arith.constant 288 : index
    %241 = vector.load %arg5[%c0_397, %c288_398] : memref<7x384xf32, #tpu.memory_space<vmem>>, vector<7x16xf32>
    tpu.vector_store %arg5[%c0_397, %c288_398], %240 {strides = array<i32>} : memref<7x384xf32, #tpu.memory_space<vmem>>, vector<7x16xf32>,
    %c0_399 = arith.constant 0 : index
    %c19_400 = arith.constant 19 : index
    %c0_401 = arith.constant 0 : index
    %c4_402 = arith.constant 4 : index
    %242 = vector.load %arg1[%c0_399, %c19_400, %c0_401, %c4_402] : memref<1x24x7x24xf32, #tpu.memory_space<vmem>>, vector<1x1x7x16xf32>
    %243 = vector.shape_cast %242 : vector<1x1x7x16xf32> to vector<7x16xf32>
    %c0_403 = arith.constant 0 : index
    %c304_404 = arith.constant 304 : index
    %244 = vector.load %arg5[%c0_403, %c304_404] : memref<7x384xf32, #tpu.memory_space<vmem>>, vector<7x16xf32>
    tpu.vector_store %arg5[%c0_403, %c304_404], %243 {strides = array<i32>} : memref<7x384xf32, #tpu.memory_space<vmem>>, vector<7x16xf32>,
    %c0_405 = arith.constant 0 : index
    %c20_406 = arith.constant 20 : index
    %c0_407 = arith.constant 0 : index
    %c4_408 = arith.constant 4 : index
    %245 = vector.load %arg1[%c0_405, %c20_406, %c0_407, %c4_408] : memref<1x24x7x24xf32, #tpu.memory_space<vmem>>, vector<1x1x7x16xf32>
    %246 = vector.shape_cast %245 : vector<1x1x7x16xf32> to vector<7x16xf32>
    %c0_409 = arith.constant 0 : index
    %c320_410 = arith.constant 320 : index
    %247 = vector.load %arg5[%c0_409, %c320_410] : memref<7x384xf32, #tpu.memory_space<vmem>>, vector<7x16xf32>
    tpu.vector_store %arg5[%c0_409, %c320_410], %246 {strides = array<i32>} : memref<7x384xf32, #tpu.memory_space<vmem>>, vector<7x16xf32>,
    %c0_411 = arith.constant 0 : index
    %c21_412 = arith.constant 21 : index
    %c0_413 = arith.constant 0 : index
    %c4_414 = arith.constant 4 : index
    %248 = vector.load %arg1[%c0_411, %c21_412, %c0_413, %c4_414] : memref<1x24x7x24xf32, #tpu.memory_space<vmem>>, vector<1x1x7x16xf32>
    %249 = vector.shape_cast %248 : vector<1x1x7x16xf32> to vector<7x16xf32>
    %c0_415 = arith.constant 0 : index
    %c336_416 = arith.constant 336 : index
    %250 = vector.load %arg5[%c0_415, %c336_416] : memref<7x384xf32, #tpu.memory_space<vmem>>, vector<7x16xf32>
    tpu.vector_store %arg5[%c0_415, %c336_416], %249 {strides = array<i32>} : memref<7x384xf32, #tpu.memory_space<vmem>>, vector<7x16xf32>,
    %c0_417 = arith.constant 0 : index
    %c22_418 = arith.constant 22 : index
    %c0_419 = arith.constant 0 : index
    %c4_420 = arith.constant 4 : index
    %251 = vector.load %arg1[%c0_417, %c22_418, %c0_419, %c4_420] : memref<1x24x7x24xf32, #tpu.memory_space<vmem>>, vector<1x1x7x16xf32>
    %252 = vector.shape_cast %251 : vector<1x1x7x16xf32> to vector<7x16xf32>
    %c0_421 = arith.constant 0 : index
    %c352_422 = arith.constant 352 : index
    %253 = vector.load %arg5[%c0_421, %c352_422] : memref<7x384xf32, #tpu.memory_space<vmem>>, vector<7x16xf32>
    tpu.vector_store %arg5[%c0_421, %c352_422], %252 {strides = array<i32>} : memref<7x384xf32, #tpu.memory_space<vmem>>, vector<7x16xf32>,
    %c0_423 = arith.constant 0 : index
    %c23_424 = arith.constant 23 : index
    %c0_425 = arith.constant 0 : index
    %c4_426 = arith.constant 4 : index
    %254 = vector.load %arg1[%c0_423, %c23_424, %c0_425, %c4_426] : memref<1x24x7x24xf32, #tpu.memory_space<vmem>>, vector<1x1x7x16xf32>
    %255 = vector.shape_cast %254 : vector<1x1x7x16xf32> to vector<7x16xf32>
    %c0_427 = arith.constant 0 : index
    %c368_428 = arith.constant 368 : index
    %256 = vector.load %arg5[%c0_427, %c368_428] : memref<7x384xf32, #tpu.memory_space<vmem>>, vector<7x16xf32>
    tpu.vector_store %arg5[%c0_427, %c368_428], %255 {strides = array<i32>} : memref<7x384xf32, #tpu.memory_space<vmem>>, vector<7x16xf32>,
    %c0_429 = arith.constant 0 : index
    %c14_430 = arith.constant 14 : index
    %257 = vector.load %arg2[%c0_429, %c14_430] : memref<9x175xf32, #tpu.memory_space<vmem>>, vector<9x7xf32>
    %c0_431 = arith.constant 0 : index
    %c0_432 = arith.constant 0 : index
    %258 = vector.load %arg5[%c0_431, %c0_432] : memref<7x384xf32, #tpu.memory_space<vmem>>, vector<7x256xf32>
    %cst_433 = arith.constant dense<0.000000e+00> : vector<9x256xf32>
    %259 = tpu.matmul %257, %258, %cst_433 {dimension_numbers = #tpu.dot_dimension_numbers<[1], [0], [0], [1], [0, 0, 1, 1], [], []>, precision = #tpu.contract_precision<fp32>} : vector<9x7xf32>, vector<7x256xf32>, vector<9x256xf32> -> vector<9x256xf32>
    %260 = arith.addf %184, %259 : vector<9x256xf32>
    %c0_434 = arith.constant 0 : index
    %c49 = arith.constant 49 : index
    %261 = vector.load %arg2[%c0_434, %c49] : memref<9x175xf32, #tpu.memory_space<vmem>>, vector<9x7xf32>
    %c0_435 = arith.constant 0 : index
    %c32_436 = arith.constant 32 : index
    %262 = vector.load %arg5[%c0_435, %c32_436] : memref<7x384xf32, #tpu.memory_space<vmem>>, vector<7x256xf32>
    %cst_437 = arith.constant dense<0.000000e+00> : vector<9x256xf32>
    %263 = tpu.matmul %261, %262, %cst_437 {dimension_numbers = #tpu.dot_dimension_numbers<[1], [0], [0], [1], [0, 0, 1, 1], [], []>, precision = #tpu.contract_precision<fp32>} : vector<9x7xf32>, vector<7x256xf32>, vector<9x256xf32> -> vector<9x256xf32>
    %264 = arith.addf %260, %263 : vector<9x256xf32>
    %c0_438 = arith.constant 0 : index
    %c84 = arith.constant 84 : index
    %265 = vector.load %arg2[%c0_438, %c84] : memref<9x175xf32, #tpu.memory_space<vmem>>, vector<9x7xf32>
    %c0_439 = arith.constant 0 : index
    %c64_440 = arith.constant 64 : index
    %266 = vector.load %arg5[%c0_439, %c64_440] : memref<7x384xf32, #tpu.memory_space<vmem>>, vector<7x256xf32>
    %cst_441 = arith.constant dense<0.000000e+00> : vector<9x256xf32>
    %267 = tpu.matmul %265, %266, %cst_441 {dimension_numbers = #tpu.dot_dimension_numbers<[1], [0], [0], [1], [0, 0, 1, 1], [], []>, precision = #tpu.contract_precision<fp32>} : vector<9x7xf32>, vector<7x256xf32>, vector<9x256xf32> -> vector<9x256xf32>
    %268 = arith.addf %264, %267 : vector<9x256xf32>
    %c0_442 = arith.constant 0 : index
    %c119 = arith.constant 119 : index
    %269 = vector.load %arg2[%c0_442, %c119] : memref<9x175xf32, #tpu.memory_space<vmem>>, vector<9x7xf32>
    %c0_443 = arith.constant 0 : index
    %c96_444 = arith.constant 96 : index
    %270 = vector.load %arg5[%c0_443, %c96_444] : memref<7x384xf32, #tpu.memory_space<vmem>>, vector<7x256xf32>
    %cst_445 = arith.constant dense<0.000000e+00> : vector<9x256xf32>
    %271 = tpu.matmul %269, %270, %cst_445 {dimension_numbers = #tpu.dot_dimension_numbers<[1], [0], [0], [1], [0, 0, 1, 1], [], []>, precision = #tpu.contract_precision<fp32>} : vector<9x7xf32>, vector<7x256xf32>, vector<9x256xf32> -> vector<9x256xf32>
    %272 = arith.addf %268, %271 : vector<9x256xf32>
    %c0_446 = arith.constant 0 : index
    %c154 = arith.constant 154 : index
    %273 = vector.load %arg2[%c0_446, %c154] : memref<9x175xf32, #tpu.memory_space<vmem>>, vector<9x7xf32>
    %c0_447 = arith.constant 0 : index
    %c128_448 = arith.constant 128 : index
    %274 = vector.load %arg5[%c0_447, %c128_448] : memref<7x384xf32, #tpu.memory_space<vmem>>, vector<7x256xf32>
    %cst_449 = arith.constant dense<0.000000e+00> : vector<9x256xf32>
    %275 = tpu.matmul %273, %274, %cst_449 {dimension_numbers = #tpu.dot_dimension_numbers<[1], [0], [0], [1], [0, 0, 1, 1], [], []>, precision = #tpu.contract_precision<fp32>} : vector<9x7xf32>, vector<7x256xf32>, vector<9x256xf32> -> vector<9x256xf32>
    %276 = arith.addf %272, %275 : vector<9x256xf32>
    %c0_450 = arith.constant 0 : index
    %c0_451 = arith.constant 0 : index
    %c0_452 = arith.constant 0 : index
    %c6_453 = arith.constant 6 : index
    %277 = vector.load %arg1[%c0_450, %c0_451, %c0_452, %c6_453] : memref<1x24x7x24xf32, #tpu.memory_space<vmem>>, vector<1x1x7x16xf32>
    %278 = vector.shape_cast %277 : vector<1x1x7x16xf32> to vector<7x16xf32>
    %c0_454 = arith.constant 0 : index
    %c0_455 = arith.constant 0 : index
    %279 = vector.load %arg5[%c0_454, %c0_455] : memref<7x384xf32, #tpu.memory_space<vmem>>, vector<7x16xf32>
    tpu.vector_store %arg5[%c0_454, %c0_455], %278 {strides = array<i32>} : memref<7x384xf32, #tpu.memory_space<vmem>>, vector<7x16xf32>,
    %c0_456 = arith.constant 0 : index
    %c1_457 = arith.constant 1 : index
    %c0_458 = arith.constant 0 : index
    %c6_459 = arith.constant 6 : index
    %280 = vector.load %arg1[%c0_456, %c1_457, %c0_458, %c6_459] : memref<1x24x7x24xf32, #tpu.memory_space<vmem>>, vector<1x1x7x16xf32>
    %281 = vector.shape_cast %280 : vector<1x1x7x16xf32> to vector<7x16xf32>
    %c0_460 = arith.constant 0 : index
    %c16_461 = arith.constant 16 : index
    %282 = vector.load %arg5[%c0_460, %c16_461] : memref<7x384xf32, #tpu.memory_space<vmem>>, vector<7x16xf32>
    tpu.vector_store %arg5[%c0_460, %c16_461], %281 {strides = array<i32>} : memref<7x384xf32, #tpu.memory_space<vmem>>, vector<7x16xf32>,
    %c0_462 = arith.constant 0 : index
    %c2_463 = arith.constant 2 : index
    %c0_464 = arith.constant 0 : index
    %c6_465 = arith.constant 6 : index
    %283 = vector.load %arg1[%c0_462, %c2_463, %c0_464, %c6_465] : memref<1x24x7x24xf32, #tpu.memory_space<vmem>>, vector<1x1x7x16xf32>
    %284 = vector.shape_cast %283 : vector<1x1x7x16xf32> to vector<7x16xf32>
    %c0_466 = arith.constant 0 : index
    %c32_467 = arith.constant 32 : index
    %285 = vector.load %arg5[%c0_466, %c32_467] : memref<7x384xf32, #tpu.memory_space<vmem>>, vector<7x16xf32>
    tpu.vector_store %arg5[%c0_466, %c32_467], %284 {strides = array<i32>} : memref<7x384xf32, #tpu.memory_space<vmem>>, vector<7x16xf32>,
    %c0_468 = arith.constant 0 : index
    %c3_469 = arith.constant 3 : index
    %c0_470 = arith.constant 0 : index
    %c6_471 = arith.constant 6 : index
    %286 = vector.load %arg1[%c0_468, %c3_469, %c0_470, %c6_471] : memref<1x24x7x24xf32, #tpu.memory_space<vmem>>, vector<1x1x7x16xf32>
    %287 = vector.shape_cast %286 : vector<1x1x7x16xf32> to vector<7x16xf32>
    %c0_472 = arith.constant 0 : index
    %c48_473 = arith.constant 48 : index
    %288 = vector.load %arg5[%c0_472, %c48_473] : memref<7x384xf32, #tpu.memory_space<vmem>>, vector<7x16xf32>
    tpu.vector_store %arg5[%c0_472, %c48_473], %287 {strides = array<i32>} : memref<7x384xf32, #tpu.memory_space<vmem>>, vector<7x16xf32>,
    %c0_474 = arith.constant 0 : index
    %c4_475 = arith.constant 4 : index
    %c0_476 = arith.constant 0 : index
    %c6_477 = arith.constant 6 : index
    %289 = vector.load %arg1[%c0_474, %c4_475, %c0_476, %c6_477] : memref<1x24x7x24xf32, #tpu.memory_space<vmem>>, vector<1x1x7x16xf32>
    %290 = vector.shape_cast %289 : vector<1x1x7x16xf32> to vector<7x16xf32>
    %c0_478 = arith.constant 0 : index
    %c64_479 = arith.constant 64 : index
    %291 = vector.load %arg5[%c0_478, %c64_479] : memref<7x384xf32, #tpu.memory_space<vmem>>, vector<7x16xf32>
    tpu.vector_store %arg5[%c0_478, %c64_479], %290 {strides = array<i32>} : memref<7x384xf32, #tpu.memory_space<vmem>>, vector<7x16xf32>,
    %c0_480 = arith.constant 0 : index
    %c5_481 = arith.constant 5 : index
    %c0_482 = arith.constant 0 : index
    %c6_483 = arith.constant 6 : index
    %292 = vector.load %arg1[%c0_480, %c5_481, %c0_482, %c6_483] : memref<1x24x7x24xf32, #tpu.memory_space<vmem>>, vector<1x1x7x16xf32>
    %293 = vector.shape_cast %292 : vector<1x1x7x16xf32> to vector<7x16xf32>
    %c0_484 = arith.constant 0 : index
    %c80_485 = arith.constant 80 : index
    %294 = vector.load %arg5[%c0_484, %c80_485] : memref<7x384xf32, #tpu.memory_space<vmem>>, vector<7x16xf32>
    tpu.vector_store %arg5[%c0_484, %c80_485], %293 {strides = array<i32>} : memref<7x384xf32, #tpu.memory_space<vmem>>, vector<7x16xf32>,
    %c0_486 = arith.constant 0 : index
    %c6_487 = arith.constant 6 : index
    %c0_488 = arith.constant 0 : index
    %c6_489 = arith.constant 6 : index
    %295 = vector.load %arg1[%c0_486, %c6_487, %c0_488, %c6_489] : memref<1x24x7x24xf32, #tpu.memory_space<vmem>>, vector<1x1x7x16xf32>
    %296 = vector.shape_cast %295 : vector<1x1x7x16xf32> to vector<7x16xf32>
    %c0_490 = arith.constant 0 : index
    %c96_491 = arith.constant 96 : index
    %297 = vector.load %arg5[%c0_490, %c96_491] : memref<7x384xf32, #tpu.memory_space<vmem>>, vector<7x16xf32>
    tpu.vector_store %arg5[%c0_490, %c96_491], %296 {strides = array<i32>} : memref<7x384xf32, #tpu.memory_space<vmem>>, vector<7x16xf32>,
    %c0_492 = arith.constant 0 : index
    %c7_493 = arith.constant 7 : index
    %c0_494 = arith.constant 0 : index
    %c6_495 = arith.constant 6 : index
    %298 = vector.load %arg1[%c0_492, %c7_493, %c0_494, %c6_495] : memref<1x24x7x24xf32, #tpu.memory_space<vmem>>, vector<1x1x7x16xf32>
    %299 = vector.shape_cast %298 : vector<1x1x7x16xf32> to vector<7x16xf32>
    %c0_496 = arith.constant 0 : index
    %c112_497 = arith.constant 112 : index
    %300 = vector.load %arg5[%c0_496, %c112_497] : memref<7x384xf32, #tpu.memory_space<vmem>>, vector<7x16xf32>
    tpu.vector_store %arg5[%c0_496, %c112_497], %299 {strides = array<i32>} : memref<7x384xf32, #tpu.memory_space<vmem>>, vector<7x16xf32>,
    %c0_498 = arith.constant 0 : index
    %c8_499 = arith.constant 8 : index
    %c0_500 = arith.constant 0 : index
    %c6_501 = arith.constant 6 : index
    %301 = vector.load %arg1[%c0_498, %c8_499, %c0_500, %c6_501] : memref<1x24x7x24xf32, #tpu.memory_space<vmem>>, vector<1x1x7x16xf32>
    %302 = vector.shape_cast %301 : vector<1x1x7x16xf32> to vector<7x16xf32>
    %c0_502 = arith.constant 0 : index
    %c128_503 = arith.constant 128 : index
    %303 = vector.load %arg5[%c0_502, %c128_503] : memref<7x384xf32, #tpu.memory_space<vmem>>, vector<7x16xf32>
    tpu.vector_store %arg5[%c0_502, %c128_503], %302 {strides = array<i32>} : memref<7x384xf32, #tpu.memory_space<vmem>>, vector<7x16xf32>,
    %c0_504 = arith.constant 0 : index
    %c9_505 = arith.constant 9 : index
    %c0_506 = arith.constant 0 : index
    %c6_507 = arith.constant 6 : index
    %304 = vector.load %arg1[%c0_504, %c9_505, %c0_506, %c6_507] : memref<1x24x7x24xf32, #tpu.memory_space<vmem>>, vector<1x1x7x16xf32>
    %305 = vector.shape_cast %304 : vector<1x1x7x16xf32> to vector<7x16xf32>
    %c0_508 = arith.constant 0 : index
    %c144_509 = arith.constant 144 : index
    %306 = vector.load %arg5[%c0_508, %c144_509] : memref<7x384xf32, #tpu.memory_space<vmem>>, vector<7x16xf32>
    tpu.vector_store %arg5[%c0_508, %c144_509], %305 {strides = array<i32>} : memref<7x384xf32, #tpu.memory_space<vmem>>, vector<7x16xf32>,
    %c0_510 = arith.constant 0 : index
    %c10_511 = arith.constant 10 : index
    %c0_512 = arith.constant 0 : index
    %c6_513 = arith.constant 6 : index
    %307 = vector.load %arg1[%c0_510, %c10_511, %c0_512, %c6_513] : memref<1x24x7x24xf32, #tpu.memory_space<vmem>>, vector<1x1x7x16xf32>
    %308 = vector.shape_cast %307 : vector<1x1x7x16xf32> to vector<7x16xf32>
    %c0_514 = arith.constant 0 : index
    %c160_515 = arith.constant 160 : index
    %309 = vector.load %arg5[%c0_514, %c160_515] : memref<7x384xf32, #tpu.memory_space<vmem>>, vector<7x16xf32>
    tpu.vector_store %arg5[%c0_514, %c160_515], %308 {strides = array<i32>} : memref<7x384xf32, #tpu.memory_space<vmem>>, vector<7x16xf32>,
    %c0_516 = arith.constant 0 : index
    %c11_517 = arith.constant 11 : index
    %c0_518 = arith.constant 0 : index
    %c6_519 = arith.constant 6 : index
    %310 = vector.load %arg1[%c0_516, %c11_517, %c0_518, %c6_519] : memref<1x24x7x24xf32, #tpu.memory_space<vmem>>, vector<1x1x7x16xf32>
    %311 = vector.shape_cast %310 : vector<1x1x7x16xf32> to vector<7x16xf32>
    %c0_520 = arith.constant 0 : index
    %c176_521 = arith.constant 176 : index
    %312 = vector.load %arg5[%c0_520, %c176_521] : memref<7x384xf32, #tpu.memory_space<vmem>>, vector<7x16xf32>
    tpu.vector_store %arg5[%c0_520, %c176_521], %311 {strides = array<i32>} : memref<7x384xf32, #tpu.memory_space<vmem>>, vector<7x16xf32>,
    %c0_522 = arith.constant 0 : index
    %c12_523 = arith.constant 12 : index
    %c0_524 = arith.constant 0 : index
    %c6_525 = arith.constant 6 : index
    %313 = vector.load %arg1[%c0_522, %c12_523, %c0_524, %c6_525] : memref<1x24x7x24xf32, #tpu.memory_space<vmem>>, vector<1x1x7x16xf32>
    %314 = vector.shape_cast %313 : vector<1x1x7x16xf32> to vector<7x16xf32>
    %c0_526 = arith.constant 0 : index
    %c192_527 = arith.constant 192 : index
    %315 = vector.load %arg5[%c0_526, %c192_527] : memref<7x384xf32, #tpu.memory_space<vmem>>, vector<7x16xf32>
    tpu.vector_store %arg5[%c0_526, %c192_527], %314 {strides = array<i32>} : memref<7x384xf32, #tpu.memory_space<vmem>>, vector<7x16xf32>,
    %c0_528 = arith.constant 0 : index
    %c13_529 = arith.constant 13 : index
    %c0_530 = arith.constant 0 : index
    %c6_531 = arith.constant 6 : index
    %316 = vector.load %arg1[%c0_528, %c13_529, %c0_530, %c6_531] : memref<1x24x7x24xf32, #tpu.memory_space<vmem>>, vector<1x1x7x16xf32>
    %317 = vector.shape_cast %316 : vector<1x1x7x16xf32> to vector<7x16xf32>
    %c0_532 = arith.constant 0 : index
    %c208_533 = arith.constant 208 : index
    %318 = vector.load %arg5[%c0_532, %c208_533] : memref<7x384xf32, #tpu.memory_space<vmem>>, vector<7x16xf32>
    tpu.vector_store %arg5[%c0_532, %c208_533], %317 {strides = array<i32>} : memref<7x384xf32, #tpu.memory_space<vmem>>, vector<7x16xf32>,
    %c0_534 = arith.constant 0 : index
    %c14_535 = arith.constant 14 : index
    %c0_536 = arith.constant 0 : index
    %c6_537 = arith.constant 6 : index
    %319 = vector.load %arg1[%c0_534, %c14_535, %c0_536, %c6_537] : memref<1x24x7x24xf32, #tpu.memory_space<vmem>>, vector<1x1x7x16xf32>
    %320 = vector.shape_cast %319 : vector<1x1x7x16xf32> to vector<7x16xf32>
    %c0_538 = arith.constant 0 : index
    %c224_539 = arith.constant 224 : index
    %321 = vector.load %arg5[%c0_538, %c224_539] : memref<7x384xf32, #tpu.memory_space<vmem>>, vector<7x16xf32>
    tpu.vector_store %arg5[%c0_538, %c224_539], %320 {strides = array<i32>} : memref<7x384xf32, #tpu.memory_space<vmem>>, vector<7x16xf32>,
    %c0_540 = arith.constant 0 : index
    %c15_541 = arith.constant 15 : index
    %c0_542 = arith.constant 0 : index
    %c6_543 = arith.constant 6 : index
    %322 = vector.load %arg1[%c0_540, %c15_541, %c0_542, %c6_543] : memref<1x24x7x24xf32, #tpu.memory_space<vmem>>, vector<1x1x7x16xf32>
    %323 = vector.shape_cast %322 : vector<1x1x7x16xf32> to vector<7x16xf32>
    %c0_544 = arith.constant 0 : index
    %c240_545 = arith.constant 240 : index
    %324 = vector.load %arg5[%c0_544, %c240_545] : memref<7x384xf32, #tpu.memory_space<vmem>>, vector<7x16xf32>
    tpu.vector_store %arg5[%c0_544, %c240_545], %323 {strides = array<i32>} : memref<7x384xf32, #tpu.memory_space<vmem>>, vector<7x16xf32>,
    %c0_546 = arith.constant 0 : index
    %c16_547 = arith.constant 16 : index
    %c0_548 = arith.constant 0 : index
    %c6_549 = arith.constant 6 : index
    %325 = vector.load %arg1[%c0_546, %c16_547, %c0_548, %c6_549] : memref<1x24x7x24xf32, #tpu.memory_space<vmem>>, vector<1x1x7x16xf32>
    %326 = vector.shape_cast %325 : vector<1x1x7x16xf32> to vector<7x16xf32>
    %c0_550 = arith.constant 0 : index
    %c256_551 = arith.constant 256 : index
    %327 = vector.load %arg5[%c0_550, %c256_551] : memref<7x384xf32, #tpu.memory_space<vmem>>, vector<7x16xf32>
    tpu.vector_store %arg5[%c0_550, %c256_551], %326 {strides = array<i32>} : memref<7x384xf32, #tpu.memory_space<vmem>>, vector<7x16xf32>,
    %c0_552 = arith.constant 0 : index
    %c17_553 = arith.constant 17 : index
    %c0_554 = arith.constant 0 : index
    %c6_555 = arith.constant 6 : index
    %328 = vector.load %arg1[%c0_552, %c17_553, %c0_554, %c6_555] : memref<1x24x7x24xf32, #tpu.memory_space<vmem>>, vector<1x1x7x16xf32>
    %329 = vector.shape_cast %328 : vector<1x1x7x16xf32> to vector<7x16xf32>
    %c0_556 = arith.constant 0 : index
    %c272_557 = arith.constant 272 : index
    %330 = vector.load %arg5[%c0_556, %c272_557] : memref<7x384xf32, #tpu.memory_space<vmem>>, vector<7x16xf32>
    tpu.vector_store %arg5[%c0_556, %c272_557], %329 {strides = array<i32>} : memref<7x384xf32, #tpu.memory_space<vmem>>, vector<7x16xf32>,
    %c0_558 = arith.constant 0 : index
    %c18_559 = arith.constant 18 : index
    %c0_560 = arith.constant 0 : index
    %c6_561 = arith.constant 6 : index
    %331 = vector.load %arg1[%c0_558, %c18_559, %c0_560, %c6_561] : memref<1x24x7x24xf32, #tpu.memory_space<vmem>>, vector<1x1x7x16xf32>
    %332 = vector.shape_cast %331 : vector<1x1x7x16xf32> to vector<7x16xf32>
    %c0_562 = arith.constant 0 : index
    %c288_563 = arith.constant 288 : index
    %333 = vector.load %arg5[%c0_562, %c288_563] : memref<7x384xf32, #tpu.memory_space<vmem>>, vector<7x16xf32>
    tpu.vector_store %arg5[%c0_562, %c288_563], %332 {strides = array<i32>} : memref<7x384xf32, #tpu.memory_space<vmem>>, vector<7x16xf32>,
    %c0_564 = arith.constant 0 : index
    %c19_565 = arith.constant 19 : index
    %c0_566 = arith.constant 0 : index
    %c6_567 = arith.constant 6 : index
    %334 = vector.load %arg1[%c0_564, %c19_565, %c0_566, %c6_567] : memref<1x24x7x24xf32, #tpu.memory_space<vmem>>, vector<1x1x7x16xf32>
    %335 = vector.shape_cast %334 : vector<1x1x7x16xf32> to vector<7x16xf32>
    %c0_568 = arith.constant 0 : index
    %c304_569 = arith.constant 304 : index
    %336 = vector.load %arg5[%c0_568, %c304_569] : memref<7x384xf32, #tpu.memory_space<vmem>>, vector<7x16xf32>
    tpu.vector_store %arg5[%c0_568, %c304_569], %335 {strides = array<i32>} : memref<7x384xf32, #tpu.memory_space<vmem>>, vector<7x16xf32>,
    %c0_570 = arith.constant 0 : index
    %c20_571 = arith.constant 20 : index
    %c0_572 = arith.constant 0 : index
    %c6_573 = arith.constant 6 : index
    %337 = vector.load %arg1[%c0_570, %c20_571, %c0_572, %c6_573] : memref<1x24x7x24xf32, #tpu.memory_space<vmem>>, vector<1x1x7x16xf32>
    %338 = vector.shape_cast %337 : vector<1x1x7x16xf32> to vector<7x16xf32>
    %c0_574 = arith.constant 0 : index
    %c320_575 = arith.constant 320 : index
    %339 = vector.load %arg5[%c0_574, %c320_575] : memref<7x384xf32, #tpu.memory_space<vmem>>, vector<7x16xf32>
    tpu.vector_store %arg5[%c0_574, %c320_575], %338 {strides = array<i32>} : memref<7x384xf32, #tpu.memory_space<vmem>>, vector<7x16xf32>,
    %c0_576 = arith.constant 0 : index
    %c21_577 = arith.constant 21 : index
    %c0_578 = arith.constant 0 : index
    %c6_579 = arith.constant 6 : index
    %340 = vector.load %arg1[%c0_576, %c21_577, %c0_578, %c6_579] : memref<1x24x7x24xf32, #tpu.memory_space<vmem>>, vector<1x1x7x16xf32>
    %341 = vector.shape_cast %340 : vector<1x1x7x16xf32> to vector<7x16xf32>
    %c0_580 = arith.constant 0 : index
    %c336_581 = arith.constant 336 : index
    %342 = vector.load %arg5[%c0_580, %c336_581] : memref<7x384xf32, #tpu.memory_space<vmem>>, vector<7x16xf32>
    tpu.vector_store %arg5[%c0_580, %c336_581], %341 {strides = array<i32>} : memref<7x384xf32, #tpu.memory_space<vmem>>, vector<7x16xf32>,
    %c0_582 = arith.constant 0 : index
    %c22_583 = arith.constant 22 : index
    %c0_584 = arith.constant 0 : index
    %c6_585 = arith.constant 6 : index
    %343 = vector.load %arg1[%c0_582, %c22_583, %c0_584, %c6_585] : memref<1x24x7x24xf32, #tpu.memory_space<vmem>>, vector<1x1x7x16xf32>
    %344 = vector.shape_cast %343 : vector<1x1x7x16xf32> to vector<7x16xf32>
    %c0_586 = arith.constant 0 : index
    %c352_587 = arith.constant 352 : index
    %345 = vector.load %arg5[%c0_586, %c352_587] : memref<7x384xf32, #tpu.memory_space<vmem>>, vector<7x16xf32>
    tpu.vector_store %arg5[%c0_586, %c352_587], %344 {strides = array<i32>} : memref<7x384xf32, #tpu.memory_space<vmem>>, vector<7x16xf32>,
    %c0_588 = arith.constant 0 : index
    %c23_589 = arith.constant 23 : index
    %c0_590 = arith.constant 0 : index
    %c6_591 = arith.constant 6 : index
    %346 = vector.load %arg1[%c0_588, %c23_589, %c0_590, %c6_591] : memref<1x24x7x24xf32, #tpu.memory_space<vmem>>, vector<1x1x7x16xf32>
    %347 = vector.shape_cast %346 : vector<1x1x7x16xf32> to vector<7x16xf32>
    %c0_592 = arith.constant 0 : index
    %c368_593 = arith.constant 368 : index
    %348 = vector.load %arg5[%c0_592, %c368_593] : memref<7x384xf32, #tpu.memory_space<vmem>>, vector<7x16xf32>
    tpu.vector_store %arg5[%c0_592, %c368_593], %347 {strides = array<i32>} : memref<7x384xf32, #tpu.memory_space<vmem>>, vector<7x16xf32>,
    %c0_594 = arith.constant 0 : index
    %c21_595 = arith.constant 21 : index
    %349 = vector.load %arg2[%c0_594, %c21_595] : memref<9x175xf32, #tpu.memory_space<vmem>>, vector<9x7xf32>
    %c0_596 = arith.constant 0 : index
    %c0_597 = arith.constant 0 : index
    %350 = vector.load %arg5[%c0_596, %c0_597] : memref<7x384xf32, #tpu.memory_space<vmem>>, vector<7x256xf32>
    %cst_598 = arith.constant dense<0.000000e+00> : vector<9x256xf32>
    %351 = tpu.matmul %349, %350, %cst_598 {dimension_numbers = #tpu.dot_dimension_numbers<[1], [0], [0], [1], [0, 0, 1, 1], [], []>, precision = #tpu.contract_precision<fp32>} : vector<9x7xf32>, vector<7x256xf32>, vector<9x256xf32> -> vector<9x256xf32>
    %352 = arith.addf %276, %351 : vector<9x256xf32>
    %c0_599 = arith.constant 0 : index
    %c56 = arith.constant 56 : index
    %353 = vector.load %arg2[%c0_599, %c56] : memref<9x175xf32, #tpu.memory_space<vmem>>, vector<9x7xf32>
    %c0_600 = arith.constant 0 : index
    %c32_601 = arith.constant 32 : index
    %354 = vector.load %arg5[%c0_600, %c32_601] : memref<7x384xf32, #tpu.memory_space<vmem>>, vector<7x256xf32>
    %cst_602 = arith.constant dense<0.000000e+00> : vector<9x256xf32>
    %355 = tpu.matmul %353, %354, %cst_602 {dimension_numbers = #tpu.dot_dimension_numbers<[1], [0], [0], [1], [0, 0, 1, 1], [], []>, precision = #tpu.contract_precision<fp32>} : vector<9x7xf32>, vector<7x256xf32>, vector<9x256xf32> -> vector<9x256xf32>
    %356 = arith.addf %352, %355 : vector<9x256xf32>
    %c0_603 = arith.constant 0 : index
    %c91 = arith.constant 91 : index
    %357 = vector.load %arg2[%c0_603, %c91] : memref<9x175xf32, #tpu.memory_space<vmem>>, vector<9x7xf32>
    %c0_604 = arith.constant 0 : index
    %c64_605 = arith.constant 64 : index
    %358 = vector.load %arg5[%c0_604, %c64_605] : memref<7x384xf32, #tpu.memory_space<vmem>>, vector<7x256xf32>
    %cst_606 = arith.constant dense<0.000000e+00> : vector<9x256xf32>
    %359 = tpu.matmul %357, %358, %cst_606 {dimension_numbers = #tpu.dot_dimension_numbers<[1], [0], [0], [1], [0, 0, 1, 1], [], []>, precision = #tpu.contract_precision<fp32>} : vector<9x7xf32>, vector<7x256xf32>, vector<9x256xf32> -> vector<9x256xf32>
    %360 = arith.addf %356, %359 : vector<9x256xf32>
    %c0_607 = arith.constant 0 : index
    %c126 = arith.constant 126 : index
    %361 = vector.load %arg2[%c0_607, %c126] : memref<9x175xf32, #tpu.memory_space<vmem>>, vector<9x7xf32>
    %c0_608 = arith.constant 0 : index
    %c96_609 = arith.constant 96 : index
    %362 = vector.load %arg5[%c0_608, %c96_609] : memref<7x384xf32, #tpu.memory_space<vmem>>, vector<7x256xf32>
    %cst_610 = arith.constant dense<0.000000e+00> : vector<9x256xf32>
    %363 = tpu.matmul %361, %362, %cst_610 {dimension_numbers = #tpu.dot_dimension_numbers<[1], [0], [0], [1], [0, 0, 1, 1], [], []>, precision = #tpu.contract_precision<fp32>} : vector<9x7xf32>, vector<7x256xf32>, vector<9x256xf32> -> vector<9x256xf32>
    %364 = arith.addf %360, %363 : vector<9x256xf32>
    %c0_611 = arith.constant 0 : index
    %c161 = arith.constant 161 : index
    %365 = vector.load %arg2[%c0_611, %c161] : memref<9x175xf32, #tpu.memory_space<vmem>>, vector<9x7xf32>
    %c0_612 = arith.constant 0 : index
    %c128_613 = arith.constant 128 : index
    %366 = vector.load %arg5[%c0_612, %c128_613] : memref<7x384xf32, #tpu.memory_space<vmem>>, vector<7x256xf32>
    %cst_614 = arith.constant dense<0.000000e+00> : vector<9x256xf32>
    %367 = tpu.matmul %365, %366, %cst_614 {dimension_numbers = #tpu.dot_dimension_numbers<[1], [0], [0], [1], [0, 0, 1, 1], [], []>, precision = #tpu.contract_precision<fp32>} : vector<9x7xf32>, vector<7x256xf32>, vector<9x256xf32> -> vector<9x256xf32>
    %368 = arith.addf %364, %367 : vector<9x256xf32>
    %c0_615 = arith.constant 0 : index
    %c0_616 = arith.constant 0 : index
    %c0_617 = arith.constant 0 : index
    %c8_618 = arith.constant 8 : index
    %369 = vector.load %arg1[%c0_615, %c0_616, %c0_617, %c8_618] : memref<1x24x7x24xf32, #tpu.memory_space<vmem>>, vector<1x1x7x16xf32>
    %370 = vector.shape_cast %369 : vector<1x1x7x16xf32> to vector<7x16xf32>
    %c0_619 = arith.constant 0 : index
    %c0_620 = arith.constant 0 : index
    %371 = vector.load %arg5[%c0_619, %c0_620] : memref<7x384xf32, #tpu.memory_space<vmem>>, vector<7x16xf32>
    tpu.vector_store %arg5[%c0_619, %c0_620], %370 {strides = array<i32>} : memref<7x384xf32, #tpu.memory_space<vmem>>, vector<7x16xf32>,
    %c0_621 = arith.constant 0 : index
    %c1_622 = arith.constant 1 : index
    %c0_623 = arith.constant 0 : index
    %c8_624 = arith.constant 8 : index
    %372 = vector.load %arg1[%c0_621, %c1_622, %c0_623, %c8_624] : memref<1x24x7x24xf32, #tpu.memory_space<vmem>>, vector<1x1x7x16xf32>
    %373 = vector.shape_cast %372 : vector<1x1x7x16xf32> to vector<7x16xf32>
    %c0_625 = arith.constant 0 : index
    %c16_626 = arith.constant 16 : index
    %374 = vector.load %arg5[%c0_625, %c16_626] : memref<7x384xf32, #tpu.memory_space<vmem>>, vector<7x16xf32>
    tpu.vector_store %arg5[%c0_625, %c16_626], %373 {strides = array<i32>} : memref<7x384xf32, #tpu.memory_space<vmem>>, vector<7x16xf32>,
    %c0_627 = arith.constant 0 : index
    %c2_628 = arith.constant 2 : index
    %c0_629 = arith.constant 0 : index
    %c8_630 = arith.constant 8 : index
    %375 = vector.load %arg1[%c0_627, %c2_628, %c0_629, %c8_630] : memref<1x24x7x24xf32, #tpu.memory_space<vmem>>, vector<1x1x7x16xf32>
    %376 = vector.shape_cast %375 : vector<1x1x7x16xf32> to vector<7x16xf32>
    %c0_631 = arith.constant 0 : index
    %c32_632 = arith.constant 32 : index
    %377 = vector.load %arg5[%c0_631, %c32_632] : memref<7x384xf32, #tpu.memory_space<vmem>>, vector<7x16xf32>
    tpu.vector_store %arg5[%c0_631, %c32_632], %376 {strides = array<i32>} : memref<7x384xf32, #tpu.memory_space<vmem>>, vector<7x16xf32>,
    %c0_633 = arith.constant 0 : index
    %c3_634 = arith.constant 3 : index
    %c0_635 = arith.constant 0 : index
    %c8_636 = arith.constant 8 : index
    %378 = vector.load %arg1[%c0_633, %c3_634, %c0_635, %c8_636] : memref<1x24x7x24xf32, #tpu.memory_space<vmem>>, vector<1x1x7x16xf32>
    %379 = vector.shape_cast %378 : vector<1x1x7x16xf32> to vector<7x16xf32>
    %c0_637 = arith.constant 0 : index
    %c48_638 = arith.constant 48 : index
    %380 = vector.load %arg5[%c0_637, %c48_638] : memref<7x384xf32, #tpu.memory_space<vmem>>, vector<7x16xf32>
    tpu.vector_store %arg5[%c0_637, %c48_638], %379 {strides = array<i32>} : memref<7x384xf32, #tpu.memory_space<vmem>>, vector<7x16xf32>,
    %c0_639 = arith.constant 0 : index
    %c4_640 = arith.constant 4 : index
    %c0_641 = arith.constant 0 : index
    %c8_642 = arith.constant 8 : index
    %381 = vector.load %arg1[%c0_639, %c4_640, %c0_641, %c8_642] : memref<1x24x7x24xf32, #tpu.memory_space<vmem>>, vector<1x1x7x16xf32>
    %382 = vector.shape_cast %381 : vector<1x1x7x16xf32> to vector<7x16xf32>
    %c0_643 = arith.constant 0 : index
    %c64_644 = arith.constant 64 : index
    %383 = vector.load %arg5[%c0_643, %c64_644] : memref<7x384xf32, #tpu.memory_space<vmem>>, vector<7x16xf32>
    tpu.vector_store %arg5[%c0_643, %c64_644], %382 {strides = array<i32>} : memref<7x384xf32, #tpu.memory_space<vmem>>, vector<7x16xf32>,
    %c0_645 = arith.constant 0 : index
    %c5_646 = arith.constant 5 : index
    %c0_647 = arith.constant 0 : index
    %c8_648 = arith.constant 8 : index
    %384 = vector.load %arg1[%c0_645, %c5_646, %c0_647, %c8_648] : memref<1x24x7x24xf32, #tpu.memory_space<vmem>>, vector<1x1x7x16xf32>
    %385 = vector.shape_cast %384 : vector<1x1x7x16xf32> to vector<7x16xf32>
    %c0_649 = arith.constant 0 : index
    %c80_650 = arith.constant 80 : index
    %386 = vector.load %arg5[%c0_649, %c80_650] : memref<7x384xf32, #tpu.memory_space<vmem>>, vector<7x16xf32>
    tpu.vector_store %arg5[%c0_649, %c80_650], %385 {strides = array<i32>} : memref<7x384xf32, #tpu.memory_space<vmem>>, vector<7x16xf32>,
    %c0_651 = arith.constant 0 : index
    %c6_652 = arith.constant 6 : index
    %c0_653 = arith.constant 0 : index
    %c8_654 = arith.constant 8 : index
    %387 = vector.load %arg1[%c0_651, %c6_652, %c0_653, %c8_654] : memref<1x24x7x24xf32, #tpu.memory_space<vmem>>, vector<1x1x7x16xf32>
    %388 = vector.shape_cast %387 : vector<1x1x7x16xf32> to vector<7x16xf32>
    %c0_655 = arith.constant 0 : index
    %c96_656 = arith.constant 96 : index
    %389 = vector.load %arg5[%c0_655, %c96_656] : memref<7x384xf32, #tpu.memory_space<vmem>>, vector<7x16xf32>
    tpu.vector_store %arg5[%c0_655, %c96_656], %388 {strides = array<i32>} : memref<7x384xf32, #tpu.memory_space<vmem>>, vector<7x16xf32>,
    %c0_657 = arith.constant 0 : index
    %c7_658 = arith.constant 7 : index
    %c0_659 = arith.constant 0 : index
    %c8_660 = arith.constant 8 : index
    %390 = vector.load %arg1[%c0_657, %c7_658, %c0_659, %c8_660] : memref<1x24x7x24xf32, #tpu.memory_space<vmem>>, vector<1x1x7x16xf32>
    %391 = vector.shape_cast %390 : vector<1x1x7x16xf32> to vector<7x16xf32>
    %c0_661 = arith.constant 0 : index
    %c112_662 = arith.constant 112 : index
    %392 = vector.load %arg5[%c0_661, %c112_662] : memref<7x384xf32, #tpu.memory_space<vmem>>, vector<7x16xf32>
    tpu.vector_store %arg5[%c0_661, %c112_662], %391 {strides = array<i32>} : memref<7x384xf32, #tpu.memory_space<vmem>>, vector<7x16xf32>,
    %c0_663 = arith.constant 0 : index
    %c8_664 = arith.constant 8 : index
    %c0_665 = arith.constant 0 : index
    %c8_666 = arith.constant 8 : index
    %393 = vector.load %arg1[%c0_663, %c8_664, %c0_665, %c8_666] : memref<1x24x7x24xf32, #tpu.memory_space<vmem>>, vector<1x1x7x16xf32>
    %394 = vector.shape_cast %393 : vector<1x1x7x16xf32> to vector<7x16xf32>
    %c0_667 = arith.constant 0 : index
    %c128_668 = arith.constant 128 : index
    %395 = vector.load %arg5[%c0_667, %c128_668] : memref<7x384xf32, #tpu.memory_space<vmem>>, vector<7x16xf32>
    tpu.vector_store %arg5[%c0_667, %c128_668], %394 {strides = array<i32>} : memref<7x384xf32, #tpu.memory_space<vmem>>, vector<7x16xf32>,
    %c0_669 = arith.constant 0 : index
    %c9_670 = arith.constant 9 : index
    %c0_671 = arith.constant 0 : index
    %c8_672 = arith.constant 8 : index
    %396 = vector.load %arg1[%c0_669, %c9_670, %c0_671, %c8_672] : memref<1x24x7x24xf32, #tpu.memory_space<vmem>>, vector<1x1x7x16xf32>
    %397 = vector.shape_cast %396 : vector<1x1x7x16xf32> to vector<7x16xf32>
    %c0_673 = arith.constant 0 : index
    %c144_674 = arith.constant 144 : index
    %398 = vector.load %arg5[%c0_673, %c144_674] : memref<7x384xf32, #tpu.memory_space<vmem>>, vector<7x16xf32>
    tpu.vector_store %arg5[%c0_673, %c144_674], %397 {strides = array<i32>} : memref<7x384xf32, #tpu.memory_space<vmem>>, vector<7x16xf32>,
    %c0_675 = arith.constant 0 : index
    %c10_676 = arith.constant 10 : index
    %c0_677 = arith.constant 0 : index
    %c8_678 = arith.constant 8 : index
    %399 = vector.load %arg1[%c0_675, %c10_676, %c0_677, %c8_678] : memref<1x24x7x24xf32, #tpu.memory_space<vmem>>, vector<1x1x7x16xf32>
    %400 = vector.shape_cast %399 : vector<1x1x7x16xf32> to vector<7x16xf32>
    %c0_679 = arith.constant 0 : index
    %c160_680 = arith.constant 160 : index
    %401 = vector.load %arg5[%c0_679, %c160_680] : memref<7x384xf32, #tpu.memory_space<vmem>>, vector<7x16xf32>
    tpu.vector_store %arg5[%c0_679, %c160_680], %400 {strides = array<i32>} : memref<7x384xf32, #tpu.memory_space<vmem>>, vector<7x16xf32>,
    %c0_681 = arith.constant 0 : index
    %c11_682 = arith.constant 11 : index
    %c0_683 = arith.constant 0 : index
    %c8_684 = arith.constant 8 : index
    %402 = vector.load %arg1[%c0_681, %c11_682, %c0_683, %c8_684] : memref<1x24x7x24xf32, #tpu.memory_space<vmem>>, vector<1x1x7x16xf32>
    %403 = vector.shape_cast %402 : vector<1x1x7x16xf32> to vector<7x16xf32>
    %c0_685 = arith.constant 0 : index
    %c176_686 = arith.constant 176 : index
    %404 = vector.load %arg5[%c0_685, %c176_686] : memref<7x384xf32, #tpu.memory_space<vmem>>, vector<7x16xf32>
    tpu.vector_store %arg5[%c0_685, %c176_686], %403 {strides = array<i32>} : memref<7x384xf32, #tpu.memory_space<vmem>>, vector<7x16xf32>,
    %c0_687 = arith.constant 0 : index
    %c12_688 = arith.constant 12 : index
    %c0_689 = arith.constant 0 : index
    %c8_690 = arith.constant 8 : index
    %405 = vector.load %arg1[%c0_687, %c12_688, %c0_689, %c8_690] : memref<1x24x7x24xf32, #tpu.memory_space<vmem>>, vector<1x1x7x16xf32>
    %406 = vector.shape_cast %405 : vector<1x1x7x16xf32> to vector<7x16xf32>
    %c0_691 = arith.constant 0 : index
    %c192_692 = arith.constant 192 : index
    %407 = vector.load %arg5[%c0_691, %c192_692] : memref<7x384xf32, #tpu.memory_space<vmem>>, vector<7x16xf32>
    tpu.vector_store %arg5[%c0_691, %c192_692], %406 {strides = array<i32>} : memref<7x384xf32, #tpu.memory_space<vmem>>, vector<7x16xf32>,
    %c0_693 = arith.constant 0 : index
    %c13_694 = arith.constant 13 : index
    %c0_695 = arith.constant 0 : index
    %c8_696 = arith.constant 8 : index
    %408 = vector.load %arg1[%c0_693, %c13_694, %c0_695, %c8_696] : memref<1x24x7x24xf32, #tpu.memory_space<vmem>>, vector<1x1x7x16xf32>
    %409 = vector.shape_cast %408 : vector<1x1x7x16xf32> to vector<7x16xf32>
    %c0_697 = arith.constant 0 : index
    %c208_698 = arith.constant 208 : index
    %410 = vector.load %arg5[%c0_697, %c208_698] : memref<7x384xf32, #tpu.memory_space<vmem>>, vector<7x16xf32>
    tpu.vector_store %arg5[%c0_697, %c208_698], %409 {strides = array<i32>} : memref<7x384xf32, #tpu.memory_space<vmem>>, vector<7x16xf32>,
    %c0_699 = arith.constant 0 : index
    %c14_700 = arith.constant 14 : index
    %c0_701 = arith.constant 0 : index
    %c8_702 = arith.constant 8 : index
    %411 = vector.load %arg1[%c0_699, %c14_700, %c0_701, %c8_702] : memref<1x24x7x24xf32, #tpu.memory_space<vmem>>, vector<1x1x7x16xf32>
    %412 = vector.shape_cast %411 : vector<1x1x7x16xf32> to vector<7x16xf32>
    %c0_703 = arith.constant 0 : index
    %c224_704 = arith.constant 224 : index
    %413 = vector.load %arg5[%c0_703, %c224_704] : memref<7x384xf32, #tpu.memory_space<vmem>>, vector<7x16xf32>
    tpu.vector_store %arg5[%c0_703, %c224_704], %412 {strides = array<i32>} : memref<7x384xf32, #tpu.memory_space<vmem>>, vector<7x16xf32>,
    %c0_705 = arith.constant 0 : index
    %c15_706 = arith.constant 15 : index
    %c0_707 = arith.constant 0 : index
    %c8_708 = arith.constant 8 : index
    %414 = vector.load %arg1[%c0_705, %c15_706, %c0_707, %c8_708] : memref<1x24x7x24xf32, #tpu.memory_space<vmem>>, vector<1x1x7x16xf32>
    %415 = vector.shape_cast %414 : vector<1x1x7x16xf32> to vector<7x16xf32>
    %c0_709 = arith.constant 0 : index
    %c240_710 = arith.constant 240 : index
    %416 = vector.load %arg5[%c0_709, %c240_710] : memref<7x384xf32, #tpu.memory_space<vmem>>, vector<7x16xf32>
    tpu.vector_store %arg5[%c0_709, %c240_710], %415 {strides = array<i32>} : memref<7x384xf32, #tpu.memory_space<vmem>>, vector<7x16xf32>,
    %c0_711 = arith.constant 0 : index
    %c16_712 = arith.constant 16 : index
    %c0_713 = arith.constant 0 : index
    %c8_714 = arith.constant 8 : index
    %417 = vector.load %arg1[%c0_711, %c16_712, %c0_713, %c8_714] : memref<1x24x7x24xf32, #tpu.memory_space<vmem>>, vector<1x1x7x16xf32>
    %418 = vector.shape_cast %417 : vector<1x1x7x16xf32> to vector<7x16xf32>
    %c0_715 = arith.constant 0 : index
    %c256_716 = arith.constant 256 : index
    %419 = vector.load %arg5[%c0_715, %c256_716] : memref<7x384xf32, #tpu.memory_space<vmem>>, vector<7x16xf32>
    tpu.vector_store %arg5[%c0_715, %c256_716], %418 {strides = array<i32>} : memref<7x384xf32, #tpu.memory_space<vmem>>, vector<7x16xf32>,
    %c0_717 = arith.constant 0 : index
    %c17_718 = arith.constant 17 : index
    %c0_719 = arith.constant 0 : index
    %c8_720 = arith.constant 8 : index
    %420 = vector.load %arg1[%c0_717, %c17_718, %c0_719, %c8_720] : memref<1x24x7x24xf32, #tpu.memory_space<vmem>>, vector<1x1x7x16xf32>
    %421 = vector.shape_cast %420 : vector<1x1x7x16xf32> to vector<7x16xf32>
    %c0_721 = arith.constant 0 : index
    %c272_722 = arith.constant 272 : index
    %422 = vector.load %arg5[%c0_721, %c272_722] : memref<7x384xf32, #tpu.memory_space<vmem>>, vector<7x16xf32>
    tpu.vector_store %arg5[%c0_721, %c272_722], %421 {strides = array<i32>} : memref<7x384xf32, #tpu.memory_space<vmem>>, vector<7x16xf32>,
    %c0_723 = arith.constant 0 : index
    %c18_724 = arith.constant 18 : index
    %c0_725 = arith.constant 0 : index
    %c8_726 = arith.constant 8 : index
    %423 = vector.load %arg1[%c0_723, %c18_724, %c0_725, %c8_726] : memref<1x24x7x24xf32, #tpu.memory_space<vmem>>, vector<1x1x7x16xf32>
    %424 = vector.shape_cast %423 : vector<1x1x7x16xf32> to vector<7x16xf32>
    %c0_727 = arith.constant 0 : index
    %c288_728 = arith.constant 288 : index
    %425 = vector.load %arg5[%c0_727, %c288_728] : memref<7x384xf32, #tpu.memory_space<vmem>>, vector<7x16xf32>
    tpu.vector_store %arg5[%c0_727, %c288_728], %424 {strides = array<i32>} : memref<7x384xf32, #tpu.memory_space<vmem>>, vector<7x16xf32>,
    %c0_729 = arith.constant 0 : index
    %c19_730 = arith.constant 19 : index
    %c0_731 = arith.constant 0 : index
    %c8_732 = arith.constant 8 : index
    %426 = vector.load %arg1[%c0_729, %c19_730, %c0_731, %c8_732] : memref<1x24x7x24xf32, #tpu.memory_space<vmem>>, vector<1x1x7x16xf32>
    %427 = vector.shape_cast %426 : vector<1x1x7x16xf32> to vector<7x16xf32>
    %c0_733 = arith.constant 0 : index
    %c304_734 = arith.constant 304 : index
    %428 = vector.load %arg5[%c0_733, %c304_734] : memref<7x384xf32, #tpu.memory_space<vmem>>, vector<7x16xf32>
    tpu.vector_store %arg5[%c0_733, %c304_734], %427 {strides = array<i32>} : memref<7x384xf32, #tpu.memory_space<vmem>>, vector<7x16xf32>,
    %c0_735 = arith.constant 0 : index
    %c20_736 = arith.constant 20 : index
    %c0_737 = arith.constant 0 : index
    %c8_738 = arith.constant 8 : index
    %429 = vector.load %arg1[%c0_735, %c20_736, %c0_737, %c8_738] : memref<1x24x7x24xf32, #tpu.memory_space<vmem>>, vector<1x1x7x16xf32>
    %430 = vector.shape_cast %429 : vector<1x1x7x16xf32> to vector<7x16xf32>
    %c0_739 = arith.constant 0 : index
    %c320_740 = arith.constant 320 : index
    %431 = vector.load %arg5[%c0_739, %c320_740] : memref<7x384xf32, #tpu.memory_space<vmem>>, vector<7x16xf32>
    tpu.vector_store %arg5[%c0_739, %c320_740], %430 {strides = array<i32>} : memref<7x384xf32, #tpu.memory_space<vmem>>, vector<7x16xf32>,
    %c0_741 = arith.constant 0 : index
    %c21_742 = arith.constant 21 : index
    %c0_743 = arith.constant 0 : index
    %c8_744 = arith.constant 8 : index
    %432 = vector.load %arg1[%c0_741, %c21_742, %c0_743, %c8_744] : memref<1x24x7x24xf32, #tpu.memory_space<vmem>>, vector<1x1x7x16xf32>
    %433 = vector.shape_cast %432 : vector<1x1x7x16xf32> to vector<7x16xf32>
    %c0_745 = arith.constant 0 : index
    %c336_746 = arith.constant 336 : index
    %434 = vector.load %arg5[%c0_745, %c336_746] : memref<7x384xf32, #tpu.memory_space<vmem>>, vector<7x16xf32>
    tpu.vector_store %arg5[%c0_745, %c336_746], %433 {strides = array<i32>} : memref<7x384xf32, #tpu.memory_space<vmem>>, vector<7x16xf32>,
    %c0_747 = arith.constant 0 : index
    %c22_748 = arith.constant 22 : index
    %c0_749 = arith.constant 0 : index
    %c8_750 = arith.constant 8 : index
    %435 = vector.load %arg1[%c0_747, %c22_748, %c0_749, %c8_750] : memref<1x24x7x24xf32, #tpu.memory_space<vmem>>, vector<1x1x7x16xf32>
    %436 = vector.shape_cast %435 : vector<1x1x7x16xf32> to vector<7x16xf32>
    %c0_751 = arith.constant 0 : index
    %c352_752 = arith.constant 352 : index
    %437 = vector.load %arg5[%c0_751, %c352_752] : memref<7x384xf32, #tpu.memory_space<vmem>>, vector<7x16xf32>
    tpu.vector_store %arg5[%c0_751, %c352_752], %436 {strides = array<i32>} : memref<7x384xf32, #tpu.memory_space<vmem>>, vector<7x16xf32>,
    %c0_753 = arith.constant 0 : index
    %c23_754 = arith.constant 23 : index
    %c0_755 = arith.constant 0 : index
    %c8_756 = arith.constant 8 : index
    %438 = vector.load %arg1[%c0_753, %c23_754, %c0_755, %c8_756] : memref<1x24x7x24xf32, #tpu.memory_space<vmem>>, vector<1x1x7x16xf32>
    %439 = vector.shape_cast %438 : vector<1x1x7x16xf32> to vector<7x16xf32>
    %c0_757 = arith.constant 0 : index
    %c368_758 = arith.constant 368 : index
    %440 = vector.load %arg5[%c0_757, %c368_758] : memref<7x384xf32, #tpu.memory_space<vmem>>, vector<7x16xf32>
    tpu.vector_store %arg5[%c0_757, %c368_758], %439 {strides = array<i32>} : memref<7x384xf32, #tpu.memory_space<vmem>>, vector<7x16xf32>,
    %c0_759 = arith.constant 0 : index
    %c28 = arith.constant 28 : index
    %441 = vector.load %arg2[%c0_759, %c28] : memref<9x175xf32, #tpu.memory_space<vmem>>, vector<9x7xf32>
    %c0_760 = arith.constant 0 : index
    %c0_761 = arith.constant 0 : index
    %442 = vector.load %arg5[%c0_760, %c0_761] : memref<7x384xf32, #tpu.memory_space<vmem>>, vector<7x256xf32>
    %cst_762 = arith.constant dense<0.000000e+00> : vector<9x256xf32>
    %443 = tpu.matmul %441, %442, %cst_762 {dimension_numbers = #tpu.dot_dimension_numbers<[1], [0], [0], [1], [0, 0, 1, 1], [], []>, precision = #tpu.contract_precision<fp32>} : vector<9x7xf32>, vector<7x256xf32>, vector<9x256xf32> -> vector<9x256xf32>
    %444 = arith.addf %368, %443 : vector<9x256xf32>
    %c0_763 = arith.constant 0 : index
    %c63 = arith.constant 63 : index
    %445 = vector.load %arg2[%c0_763, %c63] : memref<9x175xf32, #tpu.memory_space<vmem>>, vector<9x7xf32>
    %c0_764 = arith.constant 0 : index
    %c32_765 = arith.constant 32 : index
    %446 = vector.load %arg5[%c0_764, %c32_765] : memref<7x384xf32, #tpu.memory_space<vmem>>, vector<7x256xf32>
    %cst_766 = arith.constant dense<0.000000e+00> : vector<9x256xf32>
    %447 = tpu.matmul %445, %446, %cst_766 {dimension_numbers = #tpu.dot_dimension_numbers<[1], [0], [0], [1], [0, 0, 1, 1], [], []>, precision = #tpu.contract_precision<fp32>} : vector<9x7xf32>, vector<7x256xf32>, vector<9x256xf32> -> vector<9x256xf32>
    %448 = arith.addf %444, %447 : vector<9x256xf32>
    %c0_767 = arith.constant 0 : index
    %c98 = arith.constant 98 : index
    %449 = vector.load %arg2[%c0_767, %c98] : memref<9x175xf32, #tpu.memory_space<vmem>>, vector<9x7xf32>
    %c0_768 = arith.constant 0 : index
    %c64_769 = arith.constant 64 : index
    %450 = vector.load %arg5[%c0_768, %c64_769] : memref<7x384xf32, #tpu.memory_space<vmem>>, vector<7x256xf32>
    %cst_770 = arith.constant dense<0.000000e+00> : vector<9x256xf32>
    %451 = tpu.matmul %449, %450, %cst_770 {dimension_numbers = #tpu.dot_dimension_numbers<[1], [0], [0], [1], [0, 0, 1, 1], [], []>, precision = #tpu.contract_precision<fp32>} : vector<9x7xf32>, vector<7x256xf32>, vector<9x256xf32> -> vector<9x256xf32>
    %452 = arith.addf %448, %451 : vector<9x256xf32>
    %c0_771 = arith.constant 0 : index
    %c133 = arith.constant 133 : index
    %453 = vector.load %arg2[%c0_771, %c133] : memref<9x175xf32, #tpu.memory_space<vmem>>, vector<9x7xf32>
    %c0_772 = arith.constant 0 : index
    %c96_773 = arith.constant 96 : index
    %454 = vector.load %arg5[%c0_772, %c96_773] : memref<7x384xf32, #tpu.memory_space<vmem>>, vector<7x256xf32>
    %cst_774 = arith.constant dense<0.000000e+00> : vector<9x256xf32>
    %455 = tpu.matmul %453, %454, %cst_774 {dimension_numbers = #tpu.dot_dimension_numbers<[1], [0], [0], [1], [0, 0, 1, 1], [], []>, precision = #tpu.contract_precision<fp32>} : vector<9x7xf32>, vector<7x256xf32>, vector<9x256xf32> -> vector<9x256xf32>
    %456 = arith.addf %452, %455 : vector<9x256xf32>
    %c0_775 = arith.constant 0 : index
    %c168 = arith.constant 168 : index
    %457 = vector.load %arg2[%c0_775, %c168] : memref<9x175xf32, #tpu.memory_space<vmem>>, vector<9x7xf32>
    %c0_776 = arith.constant 0 : index
    %c128_777 = arith.constant 128 : index
    %458 = vector.load %arg5[%c0_776, %c128_777] : memref<7x384xf32, #tpu.memory_space<vmem>>, vector<7x256xf32>
    %cst_778 = arith.constant dense<0.000000e+00> : vector<9x256xf32>
    %459 = tpu.matmul %457, %458, %cst_778 {dimension_numbers = #tpu.dot_dimension_numbers<[1], [0], [0], [1], [0, 0, 1, 1], [], []>, precision = #tpu.contract_precision<fp32>} : vector<9x7xf32>, vector<7x256xf32>, vector<9x256xf32> -> vector<9x256xf32>
    %460 = arith.addf %456, %459 : vector<9x256xf32>
    %c0_779 = arith.constant 0 : index
    %c0_780 = arith.constant 0 : index
    %461 = vector.load %arg3[%c0_779, %c0_780] : memref<9x1xf32, #tpu.memory_space<vmem>>, vector<9x1xf32>
    %462 = vector.broadcast %461 : vector<9x1xf32> to vector<9x256xf32>
    %463 = arith.addf %460, %462 : vector<9x256xf32>
    %464 = vector.extract_strided_slice %463 {offsets = [0, 0], sizes = [1, 256], strides = [1, 1]} : vector<9x256xf32> to vector<1x256xf32>
    %465 = vector.extract_strided_slice %463 {offsets = [1, 0], sizes = [1, 256], strides = [1, 1]} : vector<9x256xf32> to vector<1x256xf32>
    %466 = vector.extract_strided_slice %463 {offsets = [2, 0], sizes = [1, 256], strides = [1, 1]} : vector<9x256xf32> to vector<1x256xf32>
    %467 = vector.extract_strided_slice %463 {offsets = [3, 0], sizes = [1, 256], strides = [1, 1]} : vector<9x256xf32> to vector<1x256xf32>
    %468 = vector.extract_strided_slice %463 {offsets = [4, 0], sizes = [1, 256], strides = [1, 1]} : vector<9x256xf32> to vector<1x256xf32>
    %469 = arith.negf %468 : vector<1x256xf32>
    %470 = math.exp %469 : vector<1x256xf32>
    %cst_781 = arith.constant 1.000000e+00 : f32
    %471 = vector.broadcast %cst_781 : f32 to vector<1x256xf32>
    %472 = arith.addf %471, %470 : vector<1x256xf32>
    %473 = arith.divf %471, %472 : vector<1x256xf32>
    %474 = vector.extract_strided_slice %463 {offsets = [5, 0], sizes = [1, 256], strides = [1, 1]} : vector<9x256xf32> to vector<1x256xf32>
    %475 = arith.negf %474 : vector<1x256xf32>
    %476 = math.exp %475 : vector<1x256xf32>
    %cst_782 = arith.constant 1.000000e+00 : f32
    %477 = vector.broadcast %cst_782 : f32 to vector<1x256xf32>
    %478 = arith.addf %477, %476 : vector<1x256xf32>
    %479 = arith.divf %477, %478 : vector<1x256xf32>
    %480 = vector.extract_strided_slice %463 {offsets = [6, 0], sizes = [1, 256], strides = [1, 1]} : vector<9x256xf32> to vector<1x256xf32>
    %481 = arith.negf %480 : vector<1x256xf32>
    %482 = math.exp %481 : vector<1x256xf32>
    %cst_783 = arith.constant 1.000000e+00 : f32
    %483 = vector.broadcast %cst_783 : f32 to vector<1x256xf32>
    %484 = arith.addf %483, %482 : vector<1x256xf32>
    %485 = arith.divf %483, %484 : vector<1x256xf32>
    %486 = vector.extract_strided_slice %463 {offsets = [7, 0], sizes = [1, 256], strides = [1, 1]} : vector<9x256xf32> to vector<1x256xf32>
    %487 = arith.negf %486 : vector<1x256xf32>
    %488 = math.exp %487 : vector<1x256xf32>
    %cst_784 = arith.constant 1.000000e+00 : f32
    %489 = vector.broadcast %cst_784 : f32 to vector<1x256xf32>
    %490 = arith.addf %489, %488 : vector<1x256xf32>
    %491 = arith.divf %489, %490 : vector<1x256xf32>
    %492 = vector.extract_strided_slice %463 {offsets = [8, 0], sizes = [1, 256], strides = [1, 1]} : vector<9x256xf32> to vector<1x256xf32>
    %493 = arith.mulf %464, %473 : vector<1x256xf32>
    %cst_785 = arith.constant 1.000000e+00 : f32
    %494 = vector.broadcast %cst_785 : f32 to vector<1x256xf32>
    %495 = arith.subf %494, %473 : vector<1x256xf32>
    %496 = arith.mulf %465, %495 : vector<1x256xf32>
    %497 = arith.addf %493, %496 : vector<1x256xf32>
    %498 = arith.mulf %466, %479 : vector<1x256xf32>
    %cst_786 = arith.constant 1.000000e+00 : f32
    %499 = vector.broadcast %cst_786 : f32 to vector<1x256xf32>
    %500 = arith.subf %499, %479 : vector<1x256xf32>
    %501 = arith.mulf %467, %500 : vector<1x256xf32>
    %502 = arith.addf %498, %501 : vector<1x256xf32>
    %503 = arith.mulf %497, %485 : vector<1x256xf32>
    %cst_787 = arith.constant 1.000000e+00 : f32
    %504 = vector.broadcast %cst_787 : f32 to vector<1x256xf32>
    %505 = arith.subf %504, %485 : vector<1x256xf32>
    %506 = arith.mulf %502, %505 : vector<1x256xf32>
    %507 = arith.addf %503, %506 : vector<1x256xf32>
    %508 = arith.mulf %507, %491 : vector<1x256xf32>
    %cst_788 = arith.constant 1.000000e+00 : f32
    %509 = vector.broadcast %cst_788 : f32 to vector<1x256xf32>
    %510 = arith.subf %509, %491 : vector<1x256xf32>
    %511 = arith.mulf %492, %510 : vector<1x256xf32>
    %512 = arith.addf %508, %511 : vector<1x256xf32>
    %cst_789 = arith.constant 1.000000e+00 : f32
    %513 = vector.broadcast %cst_789 : f32 to vector<1x256xf32>
    %514 = arith.addf %512, %513 : vector<1x256xf32>
    %cst_790 = arith.constant 0.000000e+00 : f32
    %515 = vector.broadcast %cst_790 : f32 to vector<1x256xf32>
    %516 = arith.maximumf %514, %515 : vector<1x256xf32>
    %cst_791 = arith.constant 9.99999993E-9 : f32
    %517 = vector.broadcast %cst_791 : f32 to vector<1x256xf32>
    %518 = arith.addf %516, %517 : vector<1x256xf32>
    %c0_792 = arith.constant 0 : index
    %c0_793 = arith.constant 0 : index
    %c0_794 = arith.constant 0 : index
    %519 = vector.load %arg4[%c0_792, %c0_793, %c0_794] : memref<1x1x256xf32, #tpu.memory_space<vmem>>, vector<1x1x256xf32>
    %520 = vector.shape_cast %519 : vector<1x1x256xf32> to vector<1x256xf32>
    %521 = vector.shape_cast %518 : vector<1x256xf32> to vector<1x1x256xf32>
    tpu.vector_store %arg4[%c0_792, %c0_793, %c0_794], %521 {strides = array<i32>} : memref<1x1x256xf32, #tpu.memory_space<vmem>>, vector<1x1x256xf32>,
    return
  }
  func.func @transform_0(%arg0: i32) -> (i32, i32, i32, i32) {
    %c0_i32 = arith.constant 0 : i32
    %c0_i32_0 = arith.constant 0 : i32
    %c0_i32_1 = arith.constant 0 : i32
    %c0_i32_2 = arith.constant 0 : i32
    return %arg0, %c0_i32, %c0_i32_0, %c0_i32_1 : i32, i32, i32, i32
  }
  func.func @transform_1(%arg0: i32) -> (i32, i32) {
    %c0_i32 = arith.constant 0 : i32
    %c0_i32_0 = arith.constant 0 : i32
    %c0_i32_1 = arith.constant 0 : i32
    return %c0_i32, %c0_i32_0 : i32, i32
  }
  func.func @transform_2(%arg0: i32) -> (i32, i32) {
    %c0_i32 = arith.constant 0 : i32
    %c0_i32_0 = arith.constant 0 : i32
    %c0_i32_1 = arith.constant 0 : i32
    return %c0_i32, %c0_i32_0 : i32, i32
  }
  func.func @transform_3(%arg0: i32) -> (i32, i32, i32) {
    %c0_i32 = arith.constant 0 : i32
    %c0_i32_0 = arith.constant 0 : i32
    %c0_i32_1 = arith.constant 0 : i32
    return %arg0, %c0_i32, %c0_i32_0 : i32, i32, i32
  }
}

</mosaic_0001>

<bundles_post_ra>
// kernel: tpu_custom_call.1
= control target key start
LH: loop header
LB: loop body
LE: loop exit
PB: predicated region body
PF: predicated region fallthrough
CT: control target
= control target key end

     0   :  { %8 = vsyncpa [#allocation4], 0  ;;  %s13717_s0 = inlined_call_operand.vmem [shape: f32[2,24,7,24], index: 0, kind: input, shape index: {}]   ;;  %s13718_s1 = inlined_call_operand.vmem [shape: f32[9,175], index: 1, kind: input, shape index: {}]   ;;  %s13719_s2 = inlined_call_operand.vmem [shape: f32[9,1], index: 2, kind: input, shape index: {}]   ;;  %s13720_s3 = inlined_call_operand.hbm [shape: f32[2,1,256], index: 3, kind: output, shape index: {}]  }
   0x1   :  { %10 = vsyncpa [#allocation4 + $0x1], 0  ;;  %s10973_s12 = smov 0   ;;  %s10975_s13 = smov 0  }
   0x2   :  { %s10977_s14 = smov 0   ;;  %s10979_s15 = smov 0  }
   0x3 LB: > { %s10994_s16 = sadd.s32 4294967295, %s10893_s15   ;;  %s10592_s17 = sadd.s32 4294967294, %s10893_s15   ;;  %s10893_s15 = sphi %s10979_s15, %s13726_s15   ;;  %s10889_s14 = sphi %s10977_s14, %s13725_s14   ;;  %s10885_s13 = sphi %s10975_s13, %s13724_s13   ;;  %s10881_s12 = sphi %s10973_s12, %s13723_s12  }
   0x4   : > { %s10998_s18 = sadd.s32 1, %s10893_s15   ;;  %s91_s19 = sadd.s32 1, %s10889_s14 }
   0x5   : > { %s88_s20 = ssub.s32 %s10893_s15, %s10998_s18  ;;  %p101_p0 = scmp.ne.s32.totalorder %s10889_s14, %s10885_s13 }
   0x6   : > { %p89_p1 = scmp.eq.s32.totalorder %s88_s20, 0  ;;  %p102_p2 = scmp.eq.s32.totalorder %s10994_s16, 1 }
   0x7   : > { %p107_p3 = scmp.ne.s32.totalorder %s10885_s13, %s10881_s12  ;;  %p108_p4 = scmp.eq.s32.totalorder %s10592_s17, 1 }
   0x8   : > { %s11009_s21 = scalar_select %p89_p1, %s10889_s14, %s91_s19  }
   0x9   : > { %p11011_p5 = por %p102_p2, %p101_p0  ;;  %p11015_p6 = por %p108_p4, %p107_p3 }
   0xa   : > { %p10595_p7 = scmp.ge.s32.totalorder %s10893_s15, 1  ;;  %p140_p8 = scmp.lt.s32.totalorder %s10893_s15, 3 }
   0xc   : > { %p141_p9 = pnand %p10595_p7, %p140_p8 }
   0xd   : > { %p164_p10 = scmp.lt.s32.totalorder (!%p141_p9), %s10994_s16, 1  ;;  %s10895_s29 = smov (!%p141_p9), 32  }
   0xe   : > { %144 = sbr.rel (%p141_p9) target bundleno = 1694 (0x69e), region = 32  ;;  %s10896_s30 = smov (!%p141_p9), 16  }
   0xf   : > { %s10897_s4 = smov (!%p141_p9), 48   ;;  %s10898_s5 = smov (!%p141_p9), 64  }
  0x10   : > { %s10899_s6 = smov (!%p141_p9), 80   ;;  %s10900_s7 = smov (!%p141_p9), 96  }
  0x11   : > { %s10901_s8 = smov (!%p141_p9), 112   ;;  %s10902_s11 = smov (!%p141_p9), 93  }
  0x12   : > { %s10903_s20 = smov (!%p141_p9), 58   ;;  %s10904_s26 = smov (!%p141_p9), 23  }
  0x13   : > { %s165_s24 = scalar_select %p164_p10, %s10994_s16, 1  ;;  %vm170_vm0 = vcmask 129024   ;;  %v11071_v25 = vld [vmem:[%s13718_s1] sm:$0xff]  ;;  %vm178_vm1 = vcmask 260224   ;;  %vm186_vm2 = vcmask 391424   ;;  %vm194_vm3 = vcmask 522624  }
  0x14   : > { %v11078_v29 = vld [vmem:[%s13718_s1 + $0x10] sm:$0x1]  ;;  %vm202_vm4 = vcmask 653824   ;;  %vm210_vm5 = vcmask 785024   ;;  %vm218_vm6 = vcmask 916224   ;;  %vm226_vm7 = vcmask 1047424  }
  0x15   : > { %s10719_s25 = smul.u32 192, %s165_s24  ;;  %v11132_v50 = vld [vmem:[%s13718_s1 + $0x8] sm:$0xff]  ;;  %s10905_s27 = smov 116   ;;  %v1840_v53 = vld [vmem:[%s13718_s1 + $0x18] sm:$0x1]  ;;  %vm355_vm8 = vcmask 56320  }
  0x16   : > { %s10908_s10 = smov 62   ;;  %s10910_s17 = smov 110   ;;  %vm352_vm9 = vcmask 785408   ;;  %vm360_vm10 = vcmask 1046528   ;;  %vm1091_vm11 = vcmask 523264   ;;  %vm1470_vm12 = vcmask 261120  }
  0x17   : > { %s11026_s28 = scalar_lea.vmem %s13717_s0, %s10719_s25  ;;  %s10911_s19 = smov 46   ;;  %vm7583_vm13 = vcmask 15360  }
  0x18   : > { %v10599_v0 = vld [vmem:[%s11026_s28 + $0x10] sm:$0x7f]  ;;  %v10598_v1 = vld [vmem:[%s11026_s28 + $0x8] sm:$0x7f]  ;;  %v10600_v2 = vld [vmem:[%s11026_s28 + $0x18] sm:$0x7f] }
  0x19   : > { %183 = vrot.lane.b32.xlu1 %v10599_v0, %s10895_s29  ;;  %175 = vrot.lane.b32.xlu0 %v10598_v1, %s10896_s30  ;;  %v10607_v3 = vld [vmem:[%s11026_s28 + $0x50] sm:$0x7f]  ;;  %v10606_v4 = vld [vmem:[%s11026_s28 + $0x48] sm:$0x7f]  ;;  %s10912_s24 = smov 78   ;;  %s10913_s25 = smov 94  }
  0x1a   : > { %191 = vrot.lane.b32.xlu2 %v10600_v2, %s10897_s4  ;;  %v10608_v5 = vld [vmem:[%s11026_s28 + $0x58] sm:$0x7f]  ;;  %v10609_v6 = vld [vmem:[%s11026_s28 + $0x60] sm:$0x7f]  ;;  %v10602_v8 = vld [vmem:[%s11026_s28 + $0x28] sm:$0x7f] }
  0x1b   : > { %v10601_v7 = vld [vmem:[%s11026_s28 + $0x20] sm:$0x7f]  ;;  %v10603_v9 = vld [vmem:[%s11026_s28 + $0x30] sm:$0x7f]  ;;  %v10610_v10 = vld [vmem:[%s11026_s28 + $0x68] sm:$0x7f] }
  0x1c   : > { %v10611_v11 = vld [vmem:[%s11026_s28 + $0x70] sm:$0x7f]  ;;  %v10612_v12 = vld [vmem:[%s11026_s28 + $0x78] sm:$0x7f]  ;;  %v10614_v14 = vld [vmem:[%s11026_s28 + $0x88] sm:$0x7f] }
  0x1d   : > { %v10604_v13 = vld [vmem:[%s11026_s28 + $0x38] sm:$0x7f]  ;;  %v10615_v15 = vld [vmem:[%s11026_s28 + $0x90] sm:$0x7f]  ;;  %v10617_v17 = vld [vmem:[%s11026_s28 + $0xa0] sm:$0x7f] }
  0x1e   : > { %v10616_v16 = vld [vmem:[%s11026_s28 + $0x98] sm:$0x7f]  ;;  %v10618_v18 = vld [vmem:[%s11026_s28 + $0xa8] sm:$0x7f]  ;;  %v10619_v19 = vld [vmem:[%s11026_s28 + $0xb0] sm:$0x7f] }
  0x1f   : > { %v10620_v20 = vld [vmem:[%s11026_s28 + $0xb8] sm:$0x7f]  ;;  %v169_v21 = vld [vmem:[%s11026_s28] sm:$0x7f]  ;;  %v10621_v51 = vld [vmem:[%s11026_s28 + $0x8] sm:$0x7f] }
  0x20   : > { %171 = vst.msk [vmem:[#allocation2] sm:$0x7f] %vm170_vm0, %v169_v21  ;;  %v10605_v22 = vld [vmem:[%s11026_s28 + $0x40] sm:$0x7f]  ;;  %v10622_v55 = vld [vmem:[%s11026_s28 + $0x10] sm:$0x7f] }
  0x21   : > { %241 = vrot.lane.b32.xlu1 %v10607_v3, %s10895_s29  ;;  %234 = vrot.lane.b32.xlu0 %v10606_v4, %s10896_s30  ;;  %230 = vst.msk [vmem:[#allocation2 + $0x8] sm:$0x7f] %vm170_vm0, %v10605_v22  ;;  %v10613_v30 = vld [vmem:[%s11026_s28 + $0x80] sm:$0x7f]  ;;  %v10627_v56 = vld [vmem:[%s11026_s28 + $0x38] sm:$0x7f] }
  0x22   : > { %248 = vrot.lane.b32.xlu2 %v10608_v5, %s10897_s4  ;;  %282 = vst.msk [vmem:[#allocation2 + $0x10] sm:$0x7f] %vm170_vm0, %v10613_v30  ;;  %v2211_v52 = vld [vmem:[%s11026_s28] sm:$0x7f]  ;;  %v10623_v57 = vld [vmem:[%s11026_s28 + $0x18] sm:$0x7f] }
  0x23   : > { %v10624_v54 = vld [vmem:[%s11026_s28 + $0x20] sm:$0x7f]  ;;  %v10625_v58 = vld [vmem:[%s11026_s28 + $0x28] sm:$0x7f]  ;;  %v10630_v59 = vld [vmem:[%s11026_s28 + $0x50] sm:$0x7f] }
  0x24   : > { %v10628_v60 = vld [vmem:[%s11026_s28 + $0x40] sm:$0x7f]  ;;  %v10633_v61 = vld [vmem:[%s11026_s28 + $0x68] sm:$0x7f]  ;;  %v10626_v62 = vld [vmem:[%s11026_s28 + $0x30] sm:$0x7f] }
  0x25   : > { %v10629_v63 = vld [vmem:[%s11026_s28 + $0x48] sm:$0x7f]  ;;  %v10631_v0 = vld [vmem:[%s11026_s28 + $0x58] sm:$0x7f]  ;;  %v10634_v2 = vld [vmem:[%s11026_s28 + $0x70] sm:$0x7f] }
  0x26   : > { %v10635_v1 = vld [vmem:[%s11026_s28 + $0x78] sm:$0x7f]  ;;  %v10637_v3 = vld [vmem:[%s11026_s28 + $0x88] sm:$0x7f]  ;;  %v10632_v4 = vld [vmem:[%s11026_s28 + $0x60] sm:$0x7f] }
  0x27   : > { %v10639_v21 = vld [vmem:[%s11026_s28 + $0x98] sm:$0x7f]  ;;  %s10917_s9 = smov 124  }
  0x29   : > { %255 = vrot.lane.b32.xlu1 %v10609_v6, %s10898_s5  ;;  %199 = vrot.lane.b32.xlu0 %v10601_v7, %s10898_s5  ;;  %v10636_v6 = vld [vmem:[%s11026_s28 + $0x80] sm:$0x7f] }
  0x2a   : > { %207 = vrot.lane.b32.xlu2 %v10602_v8, %s10899_s6  ;;  %v10640_v7 = vld [vmem:[%s11026_s28 + $0xa0] sm:$0x7f] }
  0x31   : > { %215 = vrot.lane.b32.xlu1 %v10603_v9, %s10900_s7  ;;  %262 = vrot.lane.b32.xlu0 %v10610_v10, %s10899_s6 }
  0x32   : > { %269 = vrot.lane.b32.xlu2 %v10611_v11, %s10900_s7  ;;  %v10638_v11 = vld [vmem:[%s11026_s28 + $0x90] sm:$0x7f] }
  0x39   : > { %276 = vrot.lane.b32.xlu1 %v10612_v12, %s10901_s8  ;;  %223 = vrot.lane.b32.xlu0 %v10604_v13, %s10901_s8  ;;  %v10643_v12 = vld [vmem:[%s11026_s28 + $0xb8] sm:$0x7f]  ;;  %v11189_v13 = vld [vmem:[%s13718_s1 + $0x10] sm:$0x1] }
  0x3a   : > { %286 = vrot.lane.b32.xlu2 %v10614_v14, %s10896_s30 }
  0x41   : > { %293 = vrot.lane.b32.xlu0 %v10615_v15, %s10895_s29  ;;  %300 = vrot.lane.b32.xlu1 %v10616_v16, %s10897_s4  ;;  %s10906_s4 = smov 14  }
  0x42   : > { %307 = vrot.lane.b32.xlu2 %v10617_v17, %s10898_s5 }
  0x49   : > { %314 = vrot.lane.b32.xlu0 %v10618_v18, %s10899_s6  ;;  %321 = vrot.lane.b32.xlu1 %v10619_v19, %s10900_s7  ;;  %s10907_s6 = smov 126  }
  0x4a   : > { %328 = vrot.lane.b32.xlu2 %v10620_v20, %s10901_s8  ;;  %v10641_v20 = vld [vmem:[%s11026_s28 + $0xa8] sm:$0x7f]  ;;  %s10916_s8 = smov 51  }
  0x51   : > { %339 = vrot.lane.b32.xlu0 %v11071_v25, %s10902_s11 }
  0x59   : > { %341 = vrot.lane.b32.xlu0 %v11078_v29, %s10902_s11  ;;  %s10909_s11 = smov 30  }
  0x74   : > { %v192_v23 = vpop.permute.xlu2 %191 }
  0x7c   : > { %v249_v24 = vpop.permute.xlu2 %248 }
  0x84   : > { %v208_v26 = vpop.permute.xlu2 %207 }
  0x8b   : > { %v184_v27 = vpop.permute.xlu1 %183  ;;  %v176_v28 = vpop.permute.xlu0 %175 }
  0x8c   : > { %179 = vst.msk [vmem:[#allocation2] sm:$0x7f] %vm178_vm1, %v176_v28  ;;  %v270_v31 = vpop.permute.xlu2 %269 }
  0x8d   : > { %187 = vst.msk [vmem:[#allocation2] sm:$0x7f] %vm186_vm2, %v184_v27 }
  0x8e   : > { %195 = vst.msk [vmem:[#allocation2] sm:$0x7f] %vm194_vm3, %v192_v23 }
  0x93   : > { %v242_v32 = vpop.permute.xlu1 %241  ;;  %v235_v33 = vpop.permute.xlu0 %234 }
  0x94   : > { %237 = vst.msk [vmem:[#allocation2 + $0x8] sm:$0x7f] %vm178_vm1, %v235_v33  ;;  %v287_v34 = vpop.permute.xlu2 %286  ;;  %v10642_v33 = vld [vmem:[%s11026_s28 + $0xb0] sm:$0x7f] }
  0x95   : > { %244 = vst.msk [vmem:[#allocation2 + $0x8] sm:$0x7f] %vm186_vm2, %v242_v32 }
  0x96   : > { %251 = vst.msk [vmem:[#allocation2 + $0x8] sm:$0x7f] %vm194_vm3, %v249_v24 }
  0x97   : > { %289 = vst.msk [vmem:[#allocation2 + $0x10] sm:$0x7f] %vm178_vm1, %v287_v34 }
  0x9b   : > { %v256_v35 = vpop.permute.xlu1 %255  ;;  %v200_v36 = vpop.permute.xlu0 %199 }
  0x9c   : > { %258 = vst.msk [vmem:[#allocation2 + $0x8] sm:$0x7f] %vm202_vm4, %v256_v35  ;;  %v308_v41 = vpop.permute.xlu2 %307 }
  0x9d   : > { %203 = vst.msk [vmem:[#allocation2] sm:$0x7f] %vm202_vm4, %v200_v36 }
  0x9e   : > { %211 = vst.msk [vmem:[#allocation2] sm:$0x7f] %vm210_vm5, %v208_v26 }
  0xa3   : > { %v216_v37 = vpop.permute.xlu1 %215  ;;  %v263_v38 = vpop.permute.xlu0 %262 }
  0xa4   : > { %219 = vst.msk [vmem:[#allocation2] sm:$0x7f] %vm218_vm6, %v216_v37  ;;  %v329_v46 = vpop.permute.xlu2 %328 }
  0xa5   : > { %265 = vst.msk [vmem:[#allocation2 + $0x8] sm:$0x7f] %vm210_vm5, %v263_v38 }
  0xa6   : > { %272 = vst.msk [vmem:[#allocation2 + $0x8] sm:$0x7f] %vm218_vm6, %v270_v31 }
  0xab   : > { %v277_v39 = vpop.permute.xlu1 %276  ;;  %v224_v40 = vpop.permute.xlu0 %223 }
  0xac   : > { %279 = vst.msk [vmem:[#allocation2 + $0x8] sm:$0x7f] %vm226_vm7, %v277_v39 }
  0xad   : > { %227 = vst.msk [vmem:[#allocation2] sm:$0x7f] %vm226_vm7, %v224_v40 }
  0xb3   : > { %v11097_v42 = vld [vmem:[#allocation2 + $0x8] sm:$0x7f]  ;;  %v294_v43 = vpop.permute.xlu0 %293  ;;  %v301_v44 = vpop.permute.xlu1 %300 }
  0xb4   : > { %v11099_v45 = vld [vmem:[#allocation2] sm:$0x7f]  ;;  %296 = vst.msk [vmem:[#allocation2 + $0x10] sm:$0x7f] %vm186_vm2, %v294_v43  ;;  %348 = vrot.lane.b32.xlu2 %v11097_v42, %s10900_s7 }
  0xb5   : > { %303 = vst.msk [vmem:[#allocation2 + $0x10] sm:$0x7f] %vm194_vm3, %v301_v44  ;;  %1085 = vrot.lane.b32.xlu0 %v11099_v45, %s10898_s5  ;;  %346 = vrot.lane.b32.xlu1 %v11099_v45, %s10900_s7 }
  0xb6   : > { %310 = vst.msk [vmem:[#allocation2 + $0x10] sm:$0x7f] %vm202_vm4, %v308_v41  ;;  %v723_v41 = vsel %vm360_vm10, %v11099_v45, 0 }
  0xb7   : > { %v11235_v44 = vand.u32 4294901760, %v723_v41 }
  0xbb   : > { %v315_v47 = vpop.permute.xlu0 %314  ;;  %v322_v48 = vpop.permute.xlu1 %321 }
  0xbc   : > { %317 = vst.msk [vmem:[#allocation2 + $0x10] sm:$0x7f] %vm210_vm5, %v315_v47  ;;  %1081 = vrot.lane.b32.xlu2 %v11071_v25, %s10903_s20 }
  0xbd   : > { %324 = vst.msk [vmem:[#allocation2 + $0x10] sm:$0x7f] %vm218_vm6, %v322_v48  ;;  %v777_v48 = vsub.f32 %v723_v41, %v11235_v44 }
  0xbe   : > { %331 = vst.msk [vmem:[#allocation2 + $0x10] sm:$0x7f] %vm226_vm7, %v329_v46 }
  0xc3   : > { %v340_v5 = vpop.permute.xlu0 %339 }
  0xc4   : > { %1083 = vrot.lane.b32.xlu2 %v11078_v29, %s10903_s20  ;;  %v356_v8 = vsel %vm355_vm8, %v340_v5, 0 }
  0xc5   : > { %v11117_v49 = vld [vmem:[#allocation2 + $0x10] sm:$0x7f]  ;;  %v11182_v10 = vand.u32 4294901760, %v356_v8 }
  0xc6   : > { %1089 = vrot.lane.b32.xlu0 %v11117_v49, %s10898_s5  ;;  %350 = vrot.lane.b32.xlu1 %v11117_v49, %s10900_s7 }
  0xc7   : > { %v11192_v14 = vsub.f32 %v356_v8, %v11182_v10 }
  0xc9   : > { %v11203_v19 = vand.u32 4294901760, %v11192_v14 }
  0xcb   : > { %v342_v15 = vpop.permute.xlu0 %341  ;;  %v385_v23 = vsub.f32 %v11192_v14, %v11203_v19 }
  0xcc   : > { %1464 = vrot.lane.b32.xlu2 %v11099_v45, %s10895_s29  ;;  %v358_v16 = vsel %vm355_vm8, %v342_v15, 0 }
  0xcd   : > { %v11200_v18 = vand.u32 4294901760, %v358_v16  ;;  %v386_v28 = vand.u32 4294901760, %v385_v23 }
  0xce   : > { %1466 = vrot.lane.b32.xlu0 %v11097_v42, %s10895_s29  ;;  %1087 = vrot.lane.b32.xlu1 %v11097_v42, %s10898_s5 }
  0xcf   : > { %v11208_v22 = vsub.f32 %v358_v16, %v11200_v18 }
  0xd1   : > { %v11217_v30 = vand.u32 4294901760, %v11208_v22 }
  0xd3   : > { %v393_v35 = vsub.f32 %v11208_v22, %v11217_v30 }
  0xd4   : > { %1468 = vrot.lane.b32.xlu2 %v11117_v49, %s10895_s29 }
  0xd5   : > { %v394_v39 = vand.u32 4294901760, %v393_v35 }
  0xd6   : > { %1460 = vrot.lane.b32.xlu1 %v11071_v25, %s10904_s26  ;;  %1843 = vrot.lane.b32.xlu0 %v11132_v50, %s10905_s27 }
  0xdc   : > { %2213 = vrot.lane.b32.xlu2 %v2211_v52, %s10907_s6 }
  0xde   : > { %1462 = vrot.lane.b32.xlu1 %v11078_v29, %s10904_s26  ;;  %2219 = vrot.lane.b32.xlu0 %v10621_v51, %s10906_s4  ;;  %s10914_s26 = smov 121  }
  0xe4   : > { %2231 = vrot.lane.b32.xlu2 %v10623_v57, %s10911_s19 }
  0xe6   : > { %1845 = vrot.lane.b32.xlu1 %v1840_v53, %s10905_s27  ;;  %2237 = vrot.lane.b32.xlu0 %v10624_v54, %s10908_s10  ;;  %v778_v54 = vand.u32 4294901760, %v777_v48  ;;  %s10923_s27 = smov 108  }
  0xec   : > { %2249 = vrot.lane.b32.xlu2 %v10626_v62, %s10913_s25  ;;  %v725_v62 = vsel %vm360_vm10, %v11097_v42, 0 }
  0xee   : > { %2225 = vrot.lane.b32.xlu1 %v10622_v55, %s10909_s11  ;;  %2255 = vrot.lane.b32.xlu0 %v10627_v56, %s10910_s17 }
  0xf4   : > { %2267 = vrot.lane.b32.xlu2 %v10629_v63, %s10906_s4  ;;  %v719_v63 = vsel %vm355_vm8, %v11071_v25, 0 }
  0xf5   : > { %v11267_v5 = vand.u32 4294901760, %v719_v63 }
  0xf6   : > { %2243 = vrot.lane.b32.xlu1 %v10625_v58, %s10912_s24  ;;  %2273 = vrot.lane.b32.xlu0 %v10630_v59, %s10909_s11  ;;  %v779_v59 = vsub.f32 %v777_v48, %v778_v54 }
  0xfc   : > { %2285 = vrot.lane.b32.xlu2 %v10632_v4, %s10908_s10 }
  0xfe   : > { %2261 = vrot.lane.b32.xlu1 %v10628_v60, %s10907_s6  ;;  %2291 = vrot.lane.b32.xlu0 %v10633_v61, %s10912_s24  ;;  %v780_v61 = vand.u32 4294901760, %v779_v59 }
 0x104   : > { %2361 = vrot.lane.b32.xlu2 %v11071_v25, %s10914_s26 }
 0x106   : > { %2279 = vrot.lane.b32.xlu1 %v10631_v0, %s10911_s19  ;;  %2303 = vrot.lane.b32.xlu0 %v10635_v1, %s10910_s17 }
 0x10c   : > { %2363 = vrot.lane.b32.xlu2 %v11189_v13, %s10914_s26  ;;  %s10922_s26 = smov 60  }
 0x10e   : > { %2297 = vrot.lane.b32.xlu1 %v10634_v2, %s10913_s25  ;;  %2315 = vrot.lane.b32.xlu0 %v10637_v3, %s10906_s4  ;;  %v349_v9 = vpop.permute.xlu2 %348  ;;  %v11260_v2 = vand.u32 4294901760, %v725_v62  ;;  %s10924_s4 = smov 28  }
 0x110   : > { %v11272_v42 = vsub.f32 %v725_v62, %v11260_v2 }
 0x112   : > { %v11284_v8 = vand.u32 4294901760, %v11272_v42 }
 0x114   : > { %2327 = vrot.lane.b32.xlu2 %v10639_v21, %s10911_s19  ;;  %v956_v15 = vsub.f32 %v11272_v42, %v11284_v8  ;;  %s10920_s19 = smov 12  }
 0x116   : > { %2309 = vrot.lane.b32.xlu1 %v10636_v6, %s10907_s6  ;;  %2333 = vrot.lane.b32.xlu0 %v10640_v7, %s10908_s10  ;;  %v11198_v17 = vpop.permute.xlu2 %1081  ;;  %s10915_s6 = smov 86   ;;  %v11275_v6 = vsub.f32 %v719_v63, %v11267_v5  ;;  %v721_v7 = vsel %vm355_vm8, %v11078_v29, 0  ;;  %v11306_v21 = vand.u32 4294901760, %v956_v15  ;;  %s10918_s10 = smov 109  }
 0x11c   : > { %2345 = vrot.lane.b32.xlu2 %v10642_v33, %s10913_s25  ;;  %s10931_s25 = smov 26  }
 0x11e   : > { %2321 = vrot.lane.b32.xlu1 %v10638_v11, %s10909_s11  ;;  %2351 = vrot.lane.b32.xlu0 %v10643_v12, %s10910_s17  ;;  %v11219_v32 = vpop.permute.xlu2 %1083  ;;  %v11288_v12 = vand.u32 4294901760, %v721_v7  ;;  %s10919_s17 = smov 44  }
 0x120   : > { %v11298_v16 = vsub.f32 %v721_v7, %v11288_v12 }
 0x126   : > { %2339 = vrot.lane.b32.xlu1 %v10641_v20, %s10912_s24  ;;  %v11232_v43 = vpop.permute.xlu2 %1464  ;;  %s10926_s24 = smov 114  }
 0x127   : > { %v347_v24 = vpop.permute.xlu1 %346  ;;  %v11228_v37 = vpop.permute.xlu0 %1085 }
 0x128   : > { %v353_v26 = vsel %vm352_vm9, %v347_v24, %v349_v9 }
 0x129   : > { %v361_v27 = vsel %vm360_vm10, %v353_v26, 0 }
 0x12a   : > { %v380_v31 = vand.u32 4294901760, %v361_v27 }
 0x12c   : > { %v415_v34 = vsub.f32 %v361_v27, %v380_v31  ;;  %381 = vmatpush.msra.mxu0 %v380_v31  ;;  %474 = vmatpush.msra.mxu3 %v380_v31  ;;  %v11312_v27 = vand.u32 4294901760, %v11298_v16 }
 0x12d   : > { %387 = vmatmul.f32.vlgmr.msra.gmra.mxu0 %v386_v28  ;;  %478 = vmatmul.f32.vlgmr.msra.gmra.mxu3 %v11203_v19 }
 0x12e   : > { %446 = vmatpush.msra.mxu2 %v415_v34  ;;  %v416_v36 = vand.u32 4294901760, %v415_v34  ;;  %2736 = vrot.lane.b32.xlu1 %v11071_v25, %s10915_s6  ;;  %v11247_v55 = vpop.permute.xlu2 %1468 }
 0x12f   : > { %449 = vmatmul.f32.vlgmr.msra.gmra.mxu2 %v11192_v14 }
 0x130   : > { %506 = vmatpush.msrb.mxu0 %v416_v36  ;;  %v417_v38 = vsub.f32 %v415_v34, %v416_v36 }
 0x132   : > { %v418_v40 = vand.u32 4294901760, %v417_v38 }
 0x134   : > { %419 = vmatpush.msra.mxu1 %v418_v40 }
 0x135   : > { %395 = vmatmul.f32.gmra.mxu0 %v394_v39  ;;  %421 = vmatmul.f32.vlgmr.msra.gmra.mxu1 %v11182_v10 }
 0x136   : > { %532 = vmatpush.msrb.mxu1 %v380_v31  ;;  %484 = vmatmul.f32.gmra.mxu3 %v11217_v30  ;;  %v2214_v1 = vpop.permute.xlu2 %2213 }
 0x137   : > { %454 = vmatmul.f32.gmra.mxu2 %v11208_v22  ;;  %2738 = vrot.lane.b32.xlu1 %v11189_v13, %s10915_s6  ;;  %2216 = vst.msk [vmem:[#allocation2] sm:$0x7f] %vm170_vm0, %v2214_v1  ;;  %s10925_s6 = smov 76  }
 0x138   : > { %v11240_v46 = vpop.permute.xlu0 %1089  ;;  %v351_v47 = vpop.permute.xlu1 %350 }
 0x139   : > { %v354_v45 = vsel %vm352_vm9, %v349_v9, %v351_v47 }
 0x13a   : > { %v363_v51 = vsel %vm360_vm10, %v354_v45, 0 }
 0x13b   : > { %v557_v52 = vand.u32 4294901760, %v363_v51 }
 0x13d   : > { %v592_v53 = vsub.f32 %v363_v51, %v557_v52  ;;  %425 = vmatmul.f32.gmra.mxu1 %v11200_v18  ;;  %508 = vmatmul.f32.vlgmr.msrb.gmra.mxu0 %v11182_v10 }
 0x13e   : > { %558 = vmatpush.msrb.mxu2 %v557_v52  ;;  %651 = vmatpush.msra.mxu1 %v557_v52  ;;  %v2232_v29 = vpop.permute.xlu2 %2231 }
 0x13f   : > { %564 = vmatmul.f32.vlgmr.msrb.gmra.mxu2 %v386_v28  ;;  %623 = vmatpush.msra.mxu0 %v592_v53  ;;  %v593_v56 = vand.u32 4294901760, %v592_v53 }
 0x140   : > { %v11249_v57 = vpop.permute.xlu0 %1466  ;;  %v11251_v58 = vpop.permute.xlu1 %1087 }
 0x141   : > { %743 = vmatpush.msrb.mxu0 %v11235_v44  ;;  %683 = vmatpush.msra.mxu2 %v593_v56  ;;  %v594_v60 = vsub.f32 %v592_v53, %v593_v56  ;;  %v1093_v47 = vsel %vm1091_vm11, %v11251_v58, %v11240_v46  ;;  %v1094_v46 = vsel %vm355_vm8, %v11198_v17, 0 }
 0x143   : > { %808 = vmatpush.msrb.mxu2 %v777_v48  ;;  %v595_v0 = vand.u32 4294901760, %v594_v60  ;;  %v1100_v48 = vsel %vm360_vm10, %v1093_v47, 0  ;;  %v1096_v60 = vsel %vm355_vm8, %v11219_v32, 0 }
 0x145   : > { %512 = vmatmul.f32.gmra.mxu0 %v11200_v18  ;;  %534 = vmatmul.f32.vlgmr.msrb.gmra.mxu1 %v11182_v10 }
 0x146   : > { %781 = vmatpush.msrb.mxu1 %v780_v61  ;;  %596 = vmatpush.msrb.mxu3 %v595_v0  ;;  %v11385_v0 = vand.u32 4294901760, %v1096_v60 }
 0x147   : > { %572 = vmatmul.f32.gmra.mxu2 %v394_v39  ;;  %598 = vmatmul.f32.vlgmr.msrb.gmra.mxu3 %v11182_v10 }
 0x148   : > { %v11262_v3 = vpop.permute.xlu1 %1460  ;;  %v11264_v4 = vpop.permute.xlu0 %1843  ;;  %709 = vmatpush.msra.mxu3 %v557_v52  ;;  %v11361_v52 = vand.u32 4294901760, %v1100_v48  ;;  %v11393_v7 = vsub.f32 %v1096_v60, %v11385_v0 }
 0x14a   : > { %836 = vmatpush.msrb.mxu3 %v11235_v44 }
 0x14d   : > { %626 = vmatmul.f32.vlgmr.msra.gmra.mxu0 %v11192_v14  ;;  %538 = vmatmul.f32.gmra.mxu1 %v11200_v18  ;;  %v11292_v14 = vand.u32 4294901760, %v11275_v6 }
 0x14e   : > { %868 = vmatpush.msra.mxu0 %v778_v54  ;;  %v11363_v54 = vand.u32 4294901760, %v1094_v46 }
 0x14f   : > { %685 = vmatmul.f32.vlgmr.msra.gmra.mxu2 %v11182_v10  ;;  %602 = vmatmul.f32.gmra.mxu3 %v11200_v18  ;;  %v747_v20 = vsub.f32 %v11275_v6, %v11292_v14 }
 0x150   : > { %920 = vmatpush.msra.mxu2 %v11260_v2  ;;  %v11286_v9 = vpop.permute.xlu1 %1462  ;;  %v2220_v11 = vpop.permute.xlu0 %2219  ;;  %v11374_v59 = vsub.f32 %v1094_v46, %v11363_v54 }
 0x151   : > { %2222 = vst.msk [vmem:[#allocation2] sm:$0x7f] %vm178_vm1, %v2220_v11  ;;  %v748_v26 = vand.u32 4294901760, %v747_v20 }
 0x152   : > { %v11383_v63 = vand.u32 4294901760, %v11374_v59 }
 0x154   : > { %v1122_v11 = vsub.f32 %v11374_v59, %v11383_v63 }
 0x155   : > { %631 = vmatmul.f32.gmra.mxu0 %v11208_v22  ;;  %655 = vmatmul.f32.vlgmr.msra.gmra.mxu1 %v11203_v19  ;;  %v2250_v22 = vpop.permute.xlu2 %2249  ;;  %v755_v19 = vsub.f32 %v11298_v16, %v11312_v27 }
 0x156   : > { %894 = vmatpush.msra.mxu1 %v11235_v44  ;;  %v1123_v20 = vand.u32 4294901760, %v1122_v11 }
 0x157   : > { %689 = vmatmul.f32.gmra.mxu2 %v11200_v18  ;;  %711 = vmatmul.f32.vlgmr.msra.gmra.mxu3 %v11182_v10  ;;  %v1092_v10 = vsel %vm1091_vm11, %v11228_v37, %v11251_v58  ;;  %v756_v33 = vand.u32 4294901760, %v755_v19  ;;  %v1329_v58 = vsub.f32 %v1100_v48, %v11361_v52 }
 0x158   : > { %v11308_v23 = vpop.permute.xlu1 %1845  ;;  %v2238_v24 = vpop.permute.xlu0 %2237  ;;  %958 = vmatpush.msra.mxu3 %v11306_v21  ;;  %v1098_v34 = vsel %vm360_vm10, %v1092_v10, 0 }
 0x159   : > { %v1330_v61 = vand.u32 4294901760, %v1329_v58 }
 0x15b   : > { %v1331_v1 = vsub.f32 %v1329_v58, %v1330_v61 }
 0x15d   : > { %749 = vmatmul.f32.vlgmr.msrb.gmra.mxu0 %v748_v26  ;;  %661 = vmatmul.f32.gmra.mxu1 %v11217_v30  ;;  %v11329_v30 = vand.u32 4294901760, %v1098_v34  ;;  %v2268_v35 = vpop.permute.xlu2 %2267 }
 0x15e   : > { %985 = vmatpush.msrb.mxu0 %v11272_v42 }
 0x15f   : > { %811 = vmatmul.f32.vlgmr.msrb.gmra.mxu2 %v11275_v6  ;;  %715 = vmatmul.f32.gmra.mxu3 %v11200_v18  ;;  %v1152_v37 = vsub.f32 %v1098_v34, %v11329_v30 }
 0x160   : > { %1045 = vmatpush.msrb.mxu2 %v11284_v8  ;;  %v2226_v28 = vpop.permute.xlu1 %2225  ;;  %v2256_v31 = vpop.permute.xlu0 %2255 }
 0x161   : > { %2228 = vst.msk [vmem:[#allocation2] sm:$0x7f] %vm186_vm2, %v2226_v28  ;;  %v1153_v38 = vand.u32 4294901760, %v1152_v37 }
 0x162   : > { %2234 = vst.msk [vmem:[#allocation2] sm:$0x7f] %vm194_vm3, %v2232_v29  ;;  %v1332_v29 = vand.u32 4294901760, %v1331_v1 }
 0x163   : > { %2240 = vst.msk [vmem:[#allocation2] sm:$0x7f] %vm202_vm4, %v2238_v24  ;;  %v1154_v44 = vsub.f32 %v1152_v37, %v1153_v38 }
 0x165   : > { %757 = vmatmul.f32.gmra.mxu0 %v756_v33  ;;  %783 = vmatmul.f32.vlgmr.msrb.gmra.mxu1 %v11267_v5  ;;  %v2286_v39 = vpop.permute.xlu2 %2285  ;;  %v1155_v51 = vand.u32 4294901760, %v1154_v44  ;;  %v1475_v44 = vsel %vm355_vm8, %v11286_v9, 0 }
 0x166   : > { %1013 = vmatpush.msrb.mxu1 %v11260_v2  ;;  %v11484_v46 = vand.u32 4294901760, %v1475_v44 }
 0x167   : > { %816 = vmatmul.f32.gmra.mxu2 %v11298_v16  ;;  %840 = vmatmul.f32.vlgmr.msrb.gmra.mxu3 %v11292_v14 }
 0x168   : > { %v2244_v18 = vpop.permute.xlu1 %2243  ;;  %v2274_v36 = vpop.permute.xlu0 %2273  ;;  %1071 = vmatpush.msrb.mxu3 %v11260_v2 }
 0x169   : > { %2246 = vst.msk [vmem:[#allocation2] sm:$0x7f] %vm210_vm5, %v2244_v18 }
 0x16a   : > { %2252 = vst.msk [vmem:[#allocation2] sm:$0x7f] %vm218_vm6, %v2250_v22  ;;  %v1471_v22 = vsel %vm1470_vm12, %v11232_v43, %v11249_v57 }
 0x16b   : > { %2258 = vst.msk [vmem:[#allocation2] sm:$0x7f] %vm226_vm7, %v2256_v31  ;;  %v1477_v28 = vsel %vm360_vm10, %v1471_v22, 0 }
 0x16d   : > { %870 = vmatmul.f32.vlgmr.msra.gmra.mxu0 %v11267_v5  ;;  %787 = vmatmul.f32.gmra.mxu1 %v11288_v12  ;;  %v11367_v56 = vpop.permute.xlu2 %2361 }
 0x16e   : > { %1118 = vmatpush.msra.mxu0 %v11329_v30 }
 0x16f   : > { %926 = vmatmul.f32.vlgmr.msra.gmra.mxu2 %v748_v26  ;;  %846 = vmatmul.f32.gmra.mxu3 %v11312_v27 }
 0x170   : > { %1183 = vmatpush.msra.mxu2 %v1152_v37  ;;  %v2262_v40 = vpop.permute.xlu1 %2261  ;;  %v2292_v41 = vpop.permute.xlu0 %2291 }
 0x171   : > { %2264 = vst.msk [vmem:[#allocation2 + $0x8] sm:$0x7f] %vm170_vm0, %v2262_v40 }
 0x172   : > { %v11348_v45 = vld [vmem:[#allocation2] sm:$0x7f]  ;;  %2270 = vst.msk [vmem:[#allocation2 + $0x8] sm:$0x7f] %vm178_vm1, %v2268_v35  ;;  %v1472_v35 = vsel %vm1470_vm12, %v11249_v57, %v11247_v55  ;;  %v1473_v57 = vsel %vm355_vm8, %v11262_v3, 0 }
 0x173   : > { %2276 = vst.msk [vmem:[#allocation2 + $0x8] sm:$0x7f] %vm186_vm2, %v2274_v36  ;;  %3121 = vrot.lane.b32.xlu1 %v11348_v45, %s10898_s5  ;;  %2743 = vrot.lane.b32.xlu2 %v11348_v45, %s10900_s7  ;;  %v1479_v36 = vsel %vm360_vm10, %v1472_v35, 0  ;;  %v10648_v35 = vld [vmem:[%s11026_s28 + $0x28] sm:$0x7f] }
 0x174   : > { %v11454_v55 = vand.u32 4294901760, %v1479_v36 }
 0x175   : > { %874 = vmatmul.f32.gmra.mxu0 %v11288_v12  ;;  %896 = vmatmul.f32.vlgmr.msra.gmra.mxu1 %v11267_v5  ;;  %v11390_v32 = vpop.permute.xlu2 %2363 }
 0x176   : > { %1156 = vmatpush.msra.mxu1 %v1155_v51  ;;  %v1708_v40 = vsub.f32 %v1479_v36, %v11454_v55 }
 0x177   : > { %934 = vmatmul.f32.gmra.mxu2 %v756_v33  ;;  %960 = vmatmul.f32.vlgmr.msra.gmra.mxu3 %v11267_v5 }
 0x178   : > { %v2280_v53 = vpop.permute.xlu1 %2279  ;;  %1211 = vmatpush.msra.mxu3 %v11329_v30  ;;  %v2304_v17 = vpop.permute.xlu0 %2303  ;;  %v1709_v47 = vand.u32 4294901760, %v1708_v40 }
 0x179   : > { %2282 = vst.msk [vmem:[#allocation2 + $0x8] sm:$0x7f] %vm194_vm3, %v2280_v53 }
 0x17a   : > { %2288 = vst.msk [vmem:[#allocation2 + $0x8] sm:$0x7f] %vm202_vm4, %v2286_v39  ;;  %v11462_v39 = vand.u32 4294901760, %v1473_v57  ;;  %v1710_v9 = vsub.f32 %v1708_v40, %v1709_v47 }
 0x17b   : > { %2294 = vst.msk [vmem:[#allocation2 + $0x8] sm:$0x7f] %vm210_vm5, %v2292_v41  ;;  %v4247_v41 = vld [vmem:[%s11026_s28] sm:$0x7f] }
 0x17c   : > { %v11472_v3 = vsub.f32 %v1473_v57, %v11462_v39  ;;  %v1711_v60 = vand.u32 4294901760, %v1710_v9 }
 0x17d   : > { %988 = vmatmul.f32.vlgmr.msrb.gmra.mxu0 %v11275_v6  ;;  %900 = vmatmul.f32.gmra.mxu1 %v11288_v12 }
 0x17e   : > { %1243 = vmatpush.msrb.mxu0 %v1153_v38  ;;  %v11482_v51 = vand.u32 4294901760, %v11472_v3 }
 0x17f   : > { %1047 = vmatmul.f32.vlgmr.msrb.gmra.mxu2 %v11267_v5  ;;  %964 = vmatmul.f32.gmra.mxu3 %v11288_v12 }
 0x180   : > { %1295 = vmatpush.msrb.mxu2 %v11361_v52  ;;  %v2298_v62 = vpop.permute.xlu1 %2297  ;;  %v2316_v6 = vpop.permute.xlu0 %2315 }
 0x181   : > { %2300 = vst.msk [vmem:[#allocation2 + $0x8] sm:$0x7f] %vm218_vm6, %v2298_v62 }
 0x182   : > { %2306 = vst.msk [vmem:[#allocation2 + $0x8] sm:$0x7f] %vm226_vm7, %v2304_v17 }
 0x185   : > { %993 = vmatmul.f32.gmra.mxu0 %v11298_v16  ;;  %1017 = vmatmul.f32.vlgmr.msrb.gmra.mxu1 %v11292_v14  ;;  %v11406_v16 = vand.u32 4294901760, %v11393_v7 }
 0x186   : > { %1269 = vmatpush.msrb.mxu1 %v11329_v30 }
 0x187   : > { %1051 = vmatmul.f32.gmra.mxu2 %v11288_v12  ;;  %1073 = vmatmul.f32.vlgmr.msrb.gmra.mxu3 %v11267_v5  ;;  %v1130_v14 = vsub.f32 %v11393_v7, %v11406_v16  ;;  %v2328_v5 = vpop.permute.xlu2 %2327 }
 0x188   : > { %v2310_v15 = vpop.permute.xlu1 %2309  ;;  %1333 = vmatpush.msrb.mxu3 %v1332_v29  ;;  %v2334_v26 = vpop.permute.xlu0 %2333 }
 0x189   : > { %v11402_v24 = vld [vmem:[#allocation2 + $0x8] sm:$0x7f]  ;;  %2312 = vst.msk [vmem:[#allocation2 + $0x10] sm:$0x7f] %vm170_vm0, %v2310_v15  ;;  %v1131_v10 = vand.u32 4294901760, %v1130_v14 }
 0x18a   : > { %2318 = vst.msk [vmem:[#allocation2 + $0x10] sm:$0x7f] %vm178_vm1, %v2316_v6  ;;  %2745 = vrot.lane.b32.xlu0 %v11402_v24, %s10900_s7  ;;  %v10649_v15 = vld [vmem:[%s11026_s28 + $0x30] sm:$0x7f]  ;;  %v3874_v14 = vld [vmem:[%s13718_s1 + $0x18] sm:$0x1] }
 0x18d   : > { %1124 = vmatmul.f32.vlgmr.msra.gmra.mxu0 %v1123_v20  ;;  %1023 = vmatmul.f32.gmra.mxu1 %v11312_v27  ;;  %v11424_v27 = vand.u32 4294901760, %v1477_v28 }
 0x18e   : > { %1360 = vmatpush.msra.mxu0 %v1329_v58  ;;  %v11495_v58 = vsub.f32 %v1475_v44, %v11484_v46 }
 0x18f   : > { %1186 = vmatmul.f32.vlgmr.msra.gmra.mxu2 %v11374_v59  ;;  %1077 = vmatmul.f32.gmra.mxu3 %v11288_v12  ;;  %v2346_v43 = vpop.permute.xlu2 %2345  ;;  %v1531_v33 = vsub.f32 %v1477_v28, %v11424_v27 }
 0x190   : > { %1420 = vmatpush.msra.mxu2 %v1330_v61  ;;  %v2322_v19 = vpop.permute.xlu1 %2321  ;;  %v2352_v31 = vpop.permute.xlu0 %2351  ;;  %v11510_v11 = vand.u32 4294901760, %v11495_v58 }
 0x191   : > { %2324 = vst.msk [vmem:[#allocation2 + $0x10] sm:$0x7f] %vm186_vm2, %v2322_v19  ;;  %v1532_v34 = vand.u32 4294901760, %v1531_v33  ;;  %v10650_v19 = vld [vmem:[%s11026_s28 + $0x38] sm:$0x7f] }
 0x192   : > { %2330 = vst.msk [vmem:[#allocation2 + $0x10] sm:$0x7f] %vm194_vm3, %v2328_v5  ;;  %3117 = vrot.lane.b32.xlu0 %v11071_v25, %s10916_s8  ;;  %v1509_v29 = vsub.f32 %v11495_v58, %v11510_v11 }
 0x193   : > { %2336 = vst.msk [vmem:[#allocation2 + $0x10] sm:$0x7f] %vm202_vm4, %v2334_v26  ;;  %v1533_v30 = vsub.f32 %v1531_v33, %v1532_v34 }
 0x194   : > { %v1510_v26 = vand.u32 4294901760, %v1509_v29  ;;  %v10654_v29 = vld [vmem:[%s11026_s28 + $0x58] sm:$0x7f] }
 0x195   : > { %1132 = vmatmul.f32.gmra.mxu0 %v1131_v10  ;;  %1158 = vmatmul.f32.vlgmr.msra.gmra.mxu1 %v11363_v54  ;;  %v1534_v37 = vand.u32 4294901760, %v1533_v30  ;;  %v10653_v30 = vld [vmem:[%s11026_s28 + $0x50] sm:$0x7f] }
 0x196   : > { %1388 = vmatpush.msra.mxu1 %v11361_v52 }
 0x197   : > { %1191 = vmatmul.f32.gmra.mxu2 %v11393_v7  ;;  %1215 = vmatmul.f32.vlgmr.msra.gmra.mxu3 %v11383_v63 }
 0x198   : > { %v2340_v12 = vpop.permute.xlu1 %2339  ;;  %1446 = vmatpush.msra.mxu3 %v11361_v52 }
 0x199   : > { %2342 = vst.msk [vmem:[#allocation2 + $0x10] sm:$0x7f] %vm210_vm5, %v2340_v12 }
 0x19a   : > { %2348 = vst.msk [vmem:[#allocation2 + $0x10] sm:$0x7f] %vm218_vm6, %v2346_v43  ;;  %3119 = vrot.lane.b32.xlu0 %v11189_v13, %s10916_s8  ;;  %s10932_s8 = smov 42  }
 0x19b   : > { %2354 = vst.msk [vmem:[#allocation2 + $0x10] sm:$0x7f] %vm226_vm7, %v2352_v31 }
 0x19d   : > { %1245 = vmatmul.f32.vlgmr.msrb.gmra.mxu0 %v11363_v54  ;;  %1162 = vmatmul.f32.gmra.mxu1 %v11385_v0 }
 0x19e   : > { %1497 = vmatpush.msrb.mxu0 %v11424_v27 }
 0x19f   : > { %1301 = vmatmul.f32.vlgmr.msrb.gmra.mxu2 %v1123_v20  ;;  %1221 = vmatmul.f32.gmra.mxu3 %v11406_v16  ;;  %v10647_v20 = vld [vmem:[%s11026_s28 + $0x20] sm:$0x7f] }
 0x1a0   : > { %1562 = vmatpush.msrb.mxu2 %v1531_v33 }
 0x1a2   : > { %v11443_v18 = vld [vmem:[#allocation2 + $0x10] sm:$0x7f]  ;;  %3499 = vrot.lane.b32.xlu0 %v11348_v45, %s10895_s29 }
 0x1a3   : > { %3125 = vrot.lane.b32.xlu1 %v11443_v18, %s10898_s5  ;;  %2747 = vrot.lane.b32.xlu2 %v11443_v18, %s10900_s7 }
 0x1a5   : > { %1249 = vmatmul.f32.gmra.mxu0 %v11385_v0  ;;  %1271 = vmatmul.f32.vlgmr.msrb.gmra.mxu1 %v11363_v54 }
 0x1a6   : > { %1535 = vmatpush.msrb.mxu1 %v1534_v37 }
 0x1a7   : > { %1309 = vmatmul.f32.gmra.mxu2 %v1131_v10  ;;  %1335 = vmatmul.f32.vlgmr.msrb.gmra.mxu3 %v11363_v54  ;;  %v10645_v10 = vld [vmem:[%s11026_s28 + $0x10] sm:$0x7f] }
 0x1a8   : > { %1590 = vmatpush.msrb.mxu3 %v11424_v27 }
 0x1aa   : > { %v388_v38 = vpop.f32.mrf.mxu0  ;;  %3503 = vrot.lane.b32.xlu0 %v11443_v18, %s10895_s29 }
 0x1ab   : > { %3501 = vrot.lane.b32.xlu1 %v11402_v24, %s10895_s29  ;;  %3123 = vrot.lane.b32.xlu2 %v11402_v24, %s10898_s5 }
 0x1ad   : > { %1363 = vmatmul.f32.vlgmr.msra.gmra.mxu0 %v11374_v59  ;;  %1275 = vmatmul.f32.gmra.mxu1 %v11385_v0  ;;  %v10646_v59 = vld [vmem:[%s11026_s28 + $0x18] sm:$0x7f] }
 0x1ae   : > { %1622 = vmatpush.msra.mxu0 %v1532_v34  ;;  %v10655_v34 = vld [vmem:[%s11026_s28 + $0x60] sm:$0x7f] }
 0x1af   : > { %1422 = vmatmul.f32.vlgmr.msra.gmra.mxu2 %v11363_v54  ;;  %1339 = vmatmul.f32.gmra.mxu3 %v11385_v0 }
 0x1b0   : > { %1674 = vmatpush.msra.mxu2 %v11454_v55  ;;  %v11504_v61 = vpop.f32.mrf.mxu3 }
 0x1b2   : > { %v396_v45 = vpop.f32.mrf.mxu0  ;;  %v422_v48 = vpop.f32.mrf.mxu1  ;;  %4249 = vrot.lane.b32.xlu0 %v4247_v41, %s10917_s9 }
 0x1b3   : > { %v423_v52 = vadd.f32 %v422_v48, %v388_v38  ;;  %v450_v53 = vpop.f32.mrf.mxu2  ;;  %3877 = vrot.lane.b32.xlu1 %v11132_v50, %s10918_s10  ;;  %3495 = vrot.lane.b32.xlu2 %v11071_v25, %s10896_s30  ;;  %v1501_v50 = vsub.f32 %v11472_v3, %v11482_v51  ;;  %v10644_v25 = vld [vmem:[%s11026_s28 + $0x8] sm:$0x7f] }
 0x1b5   : > { %v11490_v17 = vadd.f32 %v450_v53, %v423_v52  ;;  %1368 = vmatmul.f32.gmra.mxu0 %v11393_v7  ;;  %1392 = vmatmul.f32.vlgmr.msra.gmra.mxu1 %v11383_v63  ;;  %v1502_v7 = vand.u32 4294901760, %v1501_v50  ;;  %v10656_v52 = vld [vmem:[%s11026_s28 + $0x68] sm:$0x7f]  ;;  %v10651_v53 = vld [vmem:[%s11026_s28 + $0x40] sm:$0x7f] }
 0x1b6   : > { %1648 = vmatpush.msra.mxu1 %v11424_v27 }
 0x1b7   : > { %1426 = vmatmul.f32.gmra.mxu2 %v11385_v0  ;;  %1448 = vmatmul.f32.vlgmr.msra.gmra.mxu3 %v11363_v54 }
 0x1b8   : > { %1712 = vmatpush.msra.mxu3 %v1711_v60 }
 0x1b9   : > { %v11534_v22 = vpop.f32.mrf.mxu3 }
 0x1ba   : > { %v426_v62 = vpop.f32.mrf.mxu1  ;;  %v11506_v63 = vpop.f32.mrf.mxu0  ;;  %4267 = vrot.lane.b32.xlu0 %v10646_v59, %s10919_s17 }
 0x1bb   : > { %v427_v1 = vadd.f32 %v426_v62, %v396_v45  ;;  %v455_v6 = vpop.f32.mrf.mxu2  ;;  %4255 = vrot.lane.b32.xlu1 %v10644_v25, %s10920_s19  ;;  %3497 = vrot.lane.b32.xlu2 %v11189_v13, %s10896_s30  ;;  %s10921_s30 = smov 92   ;;  %v1847_v45 = vsel %vm355_vm8, %v11264_v4, 0  ;;  %v480_v4 = vadd.f32 %v11504_v61, %v11490_v17  ;;  %v11601_v61 = vld [vmem:[%s13718_s1 + $0x10] sm:$0x1] }
 0x1bd   : > { %v11515_v54 = vadd.f32 %v455_v6, %v427_v1  ;;  %1503 = vmatmul.f32.vlgmr.msrb.gmra.mxu0 %v1502_v7  ;;  %1398 = vmatmul.f32.gmra.mxu1 %v11406_v16  ;;  %v510_v1 = vadd.f32 %v11506_v63, %v480_v4 }
 0x1be   : > { %1739 = vmatpush.msrb.mxu0 %v1708_v40 }
 0x1bf   : > { %1565 = vmatmul.f32.vlgmr.msrb.gmra.mxu2 %v11472_v3  ;;  %1452 = vmatmul.f32.gmra.mxu3 %v11385_v0  ;;  %v10652_v0 = vld [vmem:[%s11026_s28 + $0x48] sm:$0x7f] }
 0x1c0   : > { %1799 = vmatpush.msrb.mxu2 %v1709_v47  ;;  %v11568_v47 = vld [vmem:[%s13718_s1] sm:$0xff] }
 0x1c2   : > { %v11527_v13 = vpop.f32.mrf.mxu0  ;;  %4285 = vrot.lane.b32.xlu0 %v10649_v15, %s10921_s30  ;;  %v11530_v16 = vpop.f32.mrf.mxu1 }
 0x1c3   : > { %v565_v5 = vpop.f32.mrf.mxu2  ;;  %4273 = vrot.lane.b32.xlu1 %v10647_v20, %s10922_s26  ;;  %3879 = vrot.lane.b32.xlu2 %v3874_v14, %s10918_s10  ;;  %v536_v63 = vadd.f32 %v11530_v16, %v510_v1  ;;  %v486_v16 = vadd.f32 %v11534_v22, %v11515_v54  ;;  %v10662_v22 = vld [vmem:[%s11026_s28 + $0x98] sm:$0x7f]  ;;  %s10929_s10 = smov 102  }
 0x1c5   : > { %1511 = vmatmul.f32.gmra.mxu0 %v1510_v26  ;;  %1537 = vmatmul.f32.vlgmr.msrb.gmra.mxu1 %v11462_v39 }
 0x1c6   : > { %1767 = vmatpush.msrb.mxu1 %v11454_v55 }
 0x1c7   : > { %1570 = vmatmul.f32.gmra.mxu2 %v11495_v58  ;;  %1594 = vmatmul.f32.vlgmr.msrb.gmra.mxu3 %v11482_v51 }
 0x1c8   : > { %1825 = vmatpush.msrb.mxu3 %v11454_v55 }
 0x1ca   : > { %v627_v28 = vpop.f32.mrf.mxu0  ;;  %4303 = vrot.lane.b32.xlu0 %v10652_v0, %s10920_s19  ;;  %v11545_v27 = vpop.f32.mrf.mxu1 }
 0x1cb   : > { %v573_v43 = vpop.f32.mrf.mxu2  ;;  %4291 = vrot.lane.b32.xlu1 %v10650_v19, %s10923_s27  ;;  %4261 = vrot.lane.b32.xlu2 %v10645_v10, %s10924_s4  ;;  %v599_v12 = vpop.f32.mrf.mxu3 }
 0x1cc   : > { %v600_v31 = vadd.f32 %v599_v12, %v565_v5 }
 0x1cd   : > { %1624 = vmatmul.f32.vlgmr.msra.gmra.mxu0 %v11462_v39  ;;  %1541 = vmatmul.f32.gmra.mxu1 %v11484_v46 }
 0x1ce   : > { %1869 = vmatpush.msra.mxu0 %v11260_v2  ;;  %v628_v33 = vadd.f32 %v627_v28, %v600_v31 }
 0x1cf   : > { %1680 = vmatmul.f32.vlgmr.msra.gmra.mxu2 %v1502_v7  ;;  %1600 = vmatmul.f32.gmra.mxu3 %v11510_v11 }
 0x1d0   : > { %1934 = vmatpush.msra.mxu2 %v11272_v42  ;;  %v1851_v42 = vsel %vm360_vm10, %v11117_v49, 0 }
 0x1d1   : > { %v11572_v48 = vand.u32 4294901760, %v1851_v42 }
 0x1d2   : > { %v632_v36 = vpop.f32.mrf.mxu0  ;;  %4321 = vrot.lane.b32.xlu0 %v10655_v34, %s10922_s26  ;;  %v656_v37 = vpop.f32.mrf.mxu1 }
 0x1d3   : > { %v686_v55 = vpop.f32.mrf.mxu2  ;;  %4309 = vrot.lane.b32.xlu1 %v10653_v30, %s10924_s4  ;;  %4279 = vrot.lane.b32.xlu2 %v10648_v35, %s10925_s6  ;;  %v603_v57 = vpop.f32.mrf.mxu3  ;;  %v657_v38 = vadd.f32 %v656_v37, %v628_v33  ;;  %v11586_v25 = vsub.f32 %v1851_v42, %v11572_v48  ;;  %v10657_v30 = vld [vmem:[%s11026_s28 + $0x70] sm:$0x7f] }
 0x1d4   : > { %v604_v40 = vadd.f32 %v603_v57, %v573_v43  ;;  %v514_v43 = vadd.f32 %v11527_v13, %v486_v16 }
 0x1d5   : > { %1628 = vmatmul.f32.gmra.mxu0 %v11484_v46  ;;  %v687_v41 = vadd.f32 %v686_v55, %v657_v38  ;;  %1650 = vmatmul.f32.vlgmr.msra.gmra.mxu1 %v11462_v39  ;;  %v2081_v7 = vand.u32 4294901760, %v11586_v25  ;;  %v2357_v38 = vld [vmem:[#allocation2] sm:$0x7f] }
 0x1d6   : > { %v633_v44 = vadd.f32 %v632_v36, %v604_v40  ;;  %1907 = vmatpush.msra.mxu1 %v11306_v21  ;;  %v11579_v21 = vand.u32 4294901760, %v1847_v45  ;;  %v540_v33 = vadd.f32 %v11545_v27, %v514_v43 }
 0x1d7   : > { %1688 = vmatmul.f32.gmra.mxu2 %v1510_v26  ;;  %1714 = vmatmul.f32.vlgmr.msra.gmra.mxu3 %v11462_v39  ;;  %v2082_v10 = vsub.f32 %v11586_v25, %v2081_v7 }
 0x1d8   : > { %1962 = vmatpush.msra.mxu3 %v11260_v2  ;;  %v11595_v17 = vsub.f32 %v1847_v45, %v11579_v21  ;;  %v11654_v45 = vpop.permute.xlu1 %2736 }
 0x1d9   : > { %v2083_v34 = vand.u32 4294901760, %v2082_v10 }
 0x1da   : > { %v750_v49 = vpop.f32.mrf.mxu0  ;;  %4397 = vrot.lane.b32.xlu0 %v11568_v47, %s10926_s24  ;;  %v662_v9 = vpop.f32.mrf.mxu1  ;;  %v11613_v14 = vand.u32 4294901760, %v11595_v17 }
 0x1db   : > { %v690_v50 = vpop.f32.mrf.mxu2  ;;  %4327 = vrot.lane.b32.xlu1 %v10656_v52, %s10925_s6  ;;  %4297 = vrot.lane.b32.xlu2 %v10651_v53, %s10917_s9  ;;  %v663_v59 = vadd.f32 %v662_v9, %v633_v44  ;;  %v712_v60 = vpop.f32.mrf.mxu3  ;;  %v751_v15 = vadd.f32 %v750_v49, %v536_v63  ;;  %v10663_v44 = vld [vmem:[%s11026_s28 + $0xa0] sm:$0x7f] }
 0x1dc   : > { %v11588_v62 = vadd.f32 %v712_v60, %v687_v41  ;;  %v1873_v31 = vsub.f32 %v11595_v17, %v11613_v14  ;;  %v10665_v41 = vld [vmem:[%s11026_s28 + $0xb0] sm:$0x7f]  ;;  %v10659_v52 = vld [vmem:[%s11026_s28 + $0x80] sm:$0x7f]  ;;  %v11660_v49 = vpop.permute.xlu2 %2743 }
 0x1dd   : > { %1742 = vmatmul.f32.vlgmr.msrb.gmra.mxu0 %v11472_v3  ;;  %v691_v6 = vadd.f32 %v690_v50, %v663_v59  ;;  %1654 = vmatmul.f32.gmra.mxu1 %v11484_v46  ;;  %v1849_v3 = vsel %vm355_vm8, %v11308_v23, 0 }
 0x1de   : > { %1994 = vmatpush.msrb.mxu0 %v11284_v8  ;;  %v10658_v8 = vld [vmem:[%s11026_s28 + $0x78] sm:$0x7f]  ;;  %v11615_v5 = vand.u32 4294901760, %v1849_v3  ;;  %v1874_v35 = vand.u32 4294901760, %v1873_v31 }
 0x1df   : > { %1801 = vmatmul.f32.vlgmr.msrb.gmra.mxu2 %v11462_v39  ;;  %1718 = vmatmul.f32.gmra.mxu3 %v11484_v46 }
 0x1e0   : > { %2046 = vmatpush.msrb.mxu2 %v11572_v48  ;;  %v11630_v54 = vsub.f32 %v1849_v3, %v11615_v5  ;;  %v10661_v3 = vld [vmem:[%s11026_s28 + $0x90] sm:$0x7f] }
 0x1e2   : > { %v758_v20 = vpop.f32.mrf.mxu0  ;;  %4399 = vrot.lane.b32.xlu0 %v11601_v61, %s10926_s24  ;;  %v784_v23 = vpop.f32.mrf.mxu1  ;;  %s10930_s24 = smov 122  }
 0x1e3   : > { %v812_v26 = vpop.f32.mrf.mxu2  ;;  %4339 = vrot.lane.b32.xlu1 %v10658_v8, %s10923_s27  ;;  %4315 = vrot.lane.b32.xlu2 %v10654_v29, %s10919_s17  ;;  %v716_v0 = vpop.f32.mrf.mxu3  ;;  %v785_v19 = vadd.f32 %v784_v23, %v751_v15  ;;  %v759_v13 = vadd.f32 %v758_v20, %v540_v33 }
 0x1e4   : > { %v11622_v28 = vadd.f32 %v716_v0, %v691_v6  ;;  %v10666_v6 = vld [vmem:[%s11026_s28 + $0xb8] sm:$0x7f] }
 0x1e5   : > { %1747 = vmatmul.f32.gmra.mxu0 %v11495_v58  ;;  %v813_v12 = vadd.f32 %v812_v26, %v785_v19  ;;  %1771 = vmatmul.f32.vlgmr.msrb.gmra.mxu1 %v11482_v51  ;;  %v10660_v58 = vld [vmem:[%s11026_s28 + $0x88] sm:$0x7f] }
 0x1e6   : > { %2020 = vmatpush.msrb.mxu1 %v11260_v2  ;;  %v11641_v2 = vand.u32 4294901760, %v11630_v54  ;;  %v10664_v19 = vld [vmem:[%s11026_s28 + $0xa8] sm:$0x7f] }
 0x1e7   : > { %1805 = vmatmul.f32.gmra.mxu2 %v11484_v46  ;;  %1827 = vmatmul.f32.vlgmr.msrb.gmra.mxu3 %v11462_v39 }
 0x1e8   : > { %2084 = vmatpush.msrb.mxu3 %v2083_v34  ;;  %v1881_v42 = vsub.f32 %v11630_v54, %v11641_v2 }
 0x1ea   : > { %v871_v51 = vpop.f32.mrf.mxu0  ;;  %4363 = vrot.lane.b32.xlu0 %v10662_v22, %s10919_s17  ;;  %v788_v36 = vpop.f32.mrf.mxu1  ;;  %v1882_v4 = vand.u32 4294901760, %v1881_v42 }
 0x1eb   : > { %v817_v37 = vpop.f32.mrf.mxu2  ;;  %4351 = vrot.lane.b32.xlu1 %v10660_v58, %s10920_s19  ;;  %4333 = vrot.lane.b32.xlu2 %v10657_v30, %s10921_s30  ;;  %v789_v27 = vadd.f32 %v788_v36, %v759_v13  ;;  %v841_v39 = vpop.f32.mrf.mxu3 }
 0x1ec   : > { %v842_v55 = vadd.f32 %v841_v39, %v813_v12  ;;  %v2365_v39 = vsel %vm355_vm8, %v11367_v56, 0 }
 0x1ed   : > { %1875 = vmatmul.f32.vlgmr.msra.gmra.mxu0 %v1874_v35  ;;  %v818_v57 = vadd.f32 %v817_v37, %v789_v27  ;;  %1777 = vmatmul.f32.gmra.mxu1 %v11510_v11  ;;  %v2370_v11 = vsel %vm360_vm10, %v2357_v38, 0  ;;  %v11710_v38 = vand.u32 4294901760, %v2365_v39 }
 0x1ee   : > { %2111 = vmatpush.msra.mxu0 %v11586_v25  ;;  %v11647_v40 = vadd.f32 %v871_v51, %v842_v55  ;;  %v11667_v25 = vand.u32 4294901760, %v2370_v11 }
 0x1ef   : > { %1937 = vmatmul.f32.vlgmr.msra.gmra.mxu2 %v11595_v17  ;;  %1831 = vmatmul.f32.gmra.mxu3 %v11484_v46 }
 0x1f0   : > { %2171 = vmatpush.msra.mxu2 %v2081_v7  ;;  %v2425_v63 = vsub.f32 %v2370_v11, %v11667_v25  ;;  %v11679_v7 = vpop.permute.xlu1 %2738 }
 0x1f2   : > { %v875_v53 = vpop.f32.mrf.mxu0  ;;  %4381 = vrot.lane.b32.xlu0 %v10665_v41, %s10921_s30  ;;  %v11662_v9 = vpop.f32.mrf.mxu1  ;;  %s10928_s30 = smov 9  }
 0x1f3   : > { %v927_v50 = vpop.f32.mrf.mxu2  ;;  %4369 = vrot.lane.b32.xlu1 %v10663_v44, %s10922_s26  ;;  %4345 = vrot.lane.b32.xlu2 %v10659_v52, %s10917_s9  ;;  %v847_v59 = vpop.f32.mrf.mxu3  ;;  %s10927_s9 = smov 79   ;;  %s10935_s26 = smov 10  }
 0x1f4   : > { %v928_v46 = vadd.f32 %v927_v50, %v11588_v62  ;;  %v848_v60 = vadd.f32 %v847_v59, %v818_v57  ;;  %v11722_v59 = vsub.f32 %v2365_v39, %v11710_v38 }
 0x1f5   : > { %1883 = vmatmul.f32.gmra.mxu0 %v1882_v4  ;;  %1909 = vmatmul.f32.vlgmr.msra.gmra.mxu1 %v11579_v21 }
 0x1f6   : > { %v11670_v1 = vadd.f32 %v875_v53, %v848_v60  ;;  %2139 = vmatpush.msra.mxu1 %v11572_v48 }
 0x1f7   : > { %1942 = vmatmul.f32.gmra.mxu2 %v11630_v54  ;;  %1966 = vmatmul.f32.vlgmr.msra.gmra.mxu3 %v11613_v14 }
 0x1f8   : > { %2197 = vmatpush.msra.mxu3 %v11572_v48  ;;  %v2426_v48 = vand.u32 4294901760, %v2425_v63  ;;  %v3122_v51 = vpop.permute.xlu1 %3121 }
 0x1fa   : > { %v989_v62 = vpop.f32.mrf.mxu0  ;;  %v11681_v8 = vpop.f32.mrf.mxu1  ;;  %v2427_v10 = vsub.f32 %v2425_v63, %v2426_v48 }
 0x1fb   : > { %v935_v29 = vpop.f32.mrf.mxu2  ;;  %4387 = vrot.lane.b32.xlu1 %v10666_v6, %s10923_s27  ;;  %4357 = vrot.lane.b32.xlu2 %v10661_v3, %s10924_s4  ;;  %v961_v20 = vpop.f32.mrf.mxu3  ;;  %v11730_v6 = vand.u32 4294901760, %v11722_v59  ;;  %s10948_s27 = smov 100   ;;  %s10949_s4 = smov 104  }
 0x1fc   : > { %v936_v15 = vadd.f32 %v935_v29, %v11622_v28  ;;  %v11686_v23 = vpop.permute.xlu0 %2745  ;;  %v962_v26 = vadd.f32 %v961_v20, %v928_v46  ;;  %v2358_v28 = vld [vmem:[#allocation2 + $0x8] sm:$0x7f]  ;;  %v2428_v30 = vand.u32 4294901760, %v2427_v10  ;;  %v2367_v46 = vsel %vm355_vm8, %v11390_v32, 0 }
 0x1fd   : > { %1996 = vmatmul.f32.vlgmr.msrb.gmra.mxu0 %v11579_v21  ;;  %v11689_v16 = vpop.permute.xlu2 %2747  ;;  %1913 = vmatmul.f32.gmra.mxu1 %v11615_v5  ;;  %v2373_v13 = vsel %vm360_vm10, %v2358_v28, 0  ;;  %v11732_v3 = vand.u32 4294901760, %v2367_v46  ;;  %v2395_v28 = vsub.f32 %v11722_v59, %v11730_v6  ;;  %v2749_v39 = vsel %vm352_vm9, %v11660_v49, %v11686_v23 }
 0x1fe   : > { %2391 = vmatpush.msrb.mxu0 %v11667_v25  ;;  %v990_v0 = vadd.f32 %v989_v62, %v962_v26  ;;  %v11706_v55 = vand.u32 4294901760, %v2373_v13  ;;  %v898_v49 = vadd.f32 %v11662_v9, %v11647_v40 }
 0x1ff   : > { %2052 = vmatmul.f32.vlgmr.msrb.gmra.mxu2 %v1874_v35  ;;  %1972 = vmatmul.f32.gmra.mxu3 %v11641_v2 }
 0x200   : > { %2456 = vmatpush.msrb.mxu2 %v2425_v63  ;;  %v2602_v53 = vsub.f32 %v2373_v13, %v11706_v55 }
 0x202   : > { %v994_v43 = vpop.f32.mrf.mxu0  ;;  %v1018_v12 = vpop.f32.mrf.mxu1  ;;  %v2603_v60 = vand.u32 4294901760, %v2602_v53 }
 0x203   : > { %v1048_v31 = vpop.f32.mrf.mxu2  ;;  %4375 = vrot.lane.b32.xlu2 %v10664_v19, %s10925_s6  ;;  %v965_v22 = vpop.f32.mrf.mxu3  ;;  %v1019_v33 = vadd.f32 %v1018_v12, %v990_v0  ;;  %v11752_v12 = vand.u32 4294901760, %v2395_v28  ;;  %s10936_s6 = smov 107  }
 0x204   : > { %v11696_v34 = vpop.permute.xlu0 %3117  ;;  %v966_v58 = vadd.f32 %v965_v22, %v936_v15  ;;  %v2604_v20 = vsub.f32 %v2602_v53, %v2603_v60 }
 0x205   : > { %2000 = vmatmul.f32.gmra.mxu0 %v11615_v5  ;;  %v3124_v35 = vpop.permute.xlu2 %3123  ;;  %v1049_v36 = vadd.f32 %v1048_v31, %v1019_v33  ;;  %2022 = vmatmul.f32.vlgmr.msrb.gmra.mxu1 %v11579_v21 }
 0x206   : > { %v11702_v37 = vsel %vm1091_vm11, %v3122_v51, %v3124_v35  ;;  %v995_v27 = vadd.f32 %v994_v43, %v966_v58  ;;  %2429 = vmatpush.msrb.mxu1 %v2428_v30  ;;  %v11747_v43 = vsub.f32 %v2367_v46, %v11732_v3 }
 0x207   : > { %2060 = vmatmul.f32.gmra.mxu2 %v1882_v4  ;;  %2086 = vmatmul.f32.vlgmr.msrb.gmra.mxu3 %v11579_v21 }
 0x208   : > { %2484 = vmatpush.msrb.mxu3 %v11667_v25  ;;  %v11755_v33 = vand.u32 4294901760, %v11747_v43 }
 0x20a   : > { %v1125_v57 = vpop.f32.mrf.mxu0  ;;  %v1024_v42 = vpop.f32.mrf.mxu1 }
 0x20b   : > { %v1052_v41 = vpop.f32.mrf.mxu2  ;;  %v1025_v44 = vadd.f32 %v1024_v42, %v995_v27  ;;  %v1074_v52 = vpop.f32.mrf.mxu3  ;;  %4772 = vrot.lane.b32.xlu2 %v11568_v47, %s10927_s9  ;;  %v2403_v42 = vsub.f32 %v11747_v43, %v11755_v33 }
 0x20c   : > { %v11713_v11 = vpop.permute.xlu0 %3119  ;;  %v11715_v50 = vadd.f32 %v1074_v52, %v1049_v36 }
 0x20d   : > { %2114 = vmatmul.f32.vlgmr.msra.gmra.mxu0 %v11595_v17  ;;  %v11718_v56 = vpop.permute.xlu2 %3495  ;;  %v1053_v4 = vadd.f32 %v1052_v41, %v1025_v44  ;;  %2026 = vmatmul.f32.gmra.mxu1 %v11615_v5 }
 0x20e   : > { %2516 = vmatpush.msra.mxu0 %v2426_v48 }
 0x20f   : > { %2173 = vmatmul.f32.vlgmr.msra.gmra.mxu2 %v11579_v21  ;;  %2090 = vmatmul.f32.gmra.mxu3 %v11615_v5 }
 0x210   : > { %2568 = vmatpush.msra.mxu2 %v11706_v55 }
 0x212   : > { %v1133_v17 = vpop.f32.mrf.mxu0  ;;  %v1159_v63 = vpop.f32.mrf.mxu1 }
 0x213   : > { %v1187_v62 = vpop.f32.mrf.mxu2  ;;  %v1078_v29 = vpop.f32.mrf.mxu3  ;;  %v1160_v15 = vadd.f32 %v1159_v63, %v1125_v57  ;;  %4774 = vrot.lane.b32.xlu2 %v11601_v61, %s10927_s9  ;;  %s10933_s9 = smov 74  }
 0x214   : > { %v3500_v26 = vpop.permute.xlu0 %3499  ;;  %v11734_v48 = vadd.f32 %v1078_v29, %v1053_v4 }
 0x215   : > { %2119 = vmatmul.f32.gmra.mxu0 %v11630_v54  ;;  %v3126_v32 = vpop.permute.xlu1 %3125  ;;  %v11737_v0 = vpop.permute.xlu2 %3497  ;;  %v1188_v19 = vadd.f32 %v1187_v62, %v1160_v15  ;;  %2143 = vmatmul.f32.vlgmr.msra.gmra.mxu1 %v11613_v14  ;;  %v2605_v54 = vand.u32 4294901760, %v2604_v20 }
 0x216   : > { %v11741_v10 = vsel %vm1091_vm11, %v3124_v35, %v3126_v32  ;;  %2542 = vmatpush.msra.mxu1 %v11667_v25  ;;  %v902_v32 = vadd.f32 %v11681_v8, %v11670_v1  ;;  %v2750_v1 = vsel %vm352_vm9, %v11686_v23, %v11689_v16 }
 0x217   : > { %2177 = vmatmul.f32.gmra.mxu2 %v11615_v5  ;;  %2199 = vmatmul.f32.vlgmr.msra.gmra.mxu3 %v11579_v21 }
 0x218   : > { %2606 = vmatpush.msra.mxu3 %v2605_v54 }
 0x21a   : > { %v1246_v14 = vpop.f32.mrf.mxu0  ;;  %v1163_v31 = vpop.f32.mrf.mxu1 }
 0x21b   : > { %v1192_v22 = vpop.f32.mrf.mxu2  ;;  %v1164_v58 = vadd.f32 %v1163_v31, %v1133_v17  ;;  %v1216_v30 = vpop.f32.mrf.mxu3 }
 0x21c   : > { %v3504_v13 = vpop.permute.xlu0 %3503  ;;  %v1217_v51 = vadd.f32 %v1216_v30, %v1188_v19 }
 0x21d   : > { %2397 = vmatmul.f32.vlgmr.msrb.gmra.mxu0 %v11752_v12  ;;  %v3502_v25 = vpop.permute.xlu1 %3501  ;;  %v11758_v35 = vpop.permute.xlu2 %3879  ;;  %v1193_v36 = vadd.f32 %v1192_v22, %v1164_v58  ;;  %2149 = vmatmul.f32.gmra.mxu1 %v11641_v2  ;;  %v2755_v2 = vsel %vm360_vm10, %v2749_v39, 0 }
 0x21e   : > { %2633 = vmatpush.msrb.mxu0 %v2602_v53  ;;  %v11762_v21 = vsel %vm1470_vm12, %v3500_v26, %v3502_v25  ;;  %v11765_v27 = vsel %vm1470_vm12, %v3502_v25, %v3504_v13  ;;  %v1247_v57 = vadd.f32 %v1246_v14, %v1217_v51  ;;  %v2404_v53 = vand.u32 4294901760, %v2403_v42 }
 0x21f   : > { %2459 = vmatmul.f32.vlgmr.msrb.gmra.mxu2 %v11722_v59  ;;  %2203 = vmatmul.f32.gmra.mxu3 %v11615_v5  ;;  %v11778_v63 = vand.u32 4294901760, %v2755_v2  ;;  %v2757_v51 = vsel %vm360_vm10, %v2750_v1, 0 }
 0x220   : > { %2693 = vmatpush.msrb.mxu2 %v2603_v60 }
 0x221   : > { %v11789_v40 = vsub.f32 %v2755_v2, %v11778_v63 }
 0x222   : > { %v1250_v41 = vpop.f32.mrf.mxu0  ;;  %v1272_v44 = vpop.f32.mrf.mxu1 }
 0x223   : > { %v1302_v52 = vpop.f32.mrf.mxu2  ;;  %v1222_v4 = vpop.f32.mrf.mxu3  ;;  %v1273_v46 = vadd.f32 %v1272_v44, %v1247_v57  ;;  %v2810_v31 = vand.u32 4294901760, %v11789_v40  ;;  %v11815_v44 = vand.u32 4294901760, %v2757_v51 }
 0x224   : > { %v4250_v17 = vpop.permute.xlu0 %4249  ;;  %v1223_v62 = vadd.f32 %v1222_v4, %v1193_v36 }
 0x225   : > { %2405 = vmatmul.f32.gmra.mxu0 %v2404_v53  ;;  %v11780_v29 = vpop.permute.xlu1 %3877  ;;  %4252 = vst.msk [vmem:[#allocation2] sm:$0x7f] %vm170_vm0, %v4250_v17  ;;  %v4262_v5 = vpop.permute.xlu2 %4261  ;;  %v11783_v60 = vadd.f32 %v1273_v46, %v898_v49  ;;  %2431 = vmatmul.f32.vlgmr.msrb.gmra.mxu1 %v11710_v38  ;;  %v2811_v8 = vsub.f32 %v11789_v40, %v2810_v31 }
 0x226   : > { %v1251_v15 = vadd.f32 %v1250_v41, %v1223_v62  ;;  %2661 = vmatpush.msrb.mxu1 %v11706_v55  ;;  %v2751_v41 = vsel %vm355_vm8, %v11654_v45, 0  ;;  %v11826_v45 = vsub.f32 %v2757_v51, %v11815_v44 }
 0x227   : > { %2464 = vmatmul.f32.gmra.mxu2 %v11747_v43  ;;  %2488 = vmatmul.f32.vlgmr.msrb.gmra.mxu3 %v11730_v6  ;;  %v2812_v23 = vand.u32 4294901760, %v2811_v8  ;;  %v11821_v4 = vand.u32 4294901760, %v2751_v41 }
 0x228   : > { %2719 = vmatpush.msrb.mxu3 %v11706_v55 }
 0x22a   : > { %v1364_v9 = vpop.f32.mrf.mxu0  ;;  %v1276_v20 = vpop.f32.mrf.mxu1 }
 0x22b   : > { %v1310_v26 = vpop.f32.mrf.mxu2  ;;  %v1277_v19 = vadd.f32 %v1276_v20, %v1251_v15  ;;  %v1336_v28 = vpop.f32.mrf.mxu3 }
 0x22c   : > { %v4268_v54 = vpop.permute.xlu0 %4267  ;;  %v1337_v14 = vadd.f32 %v1336_v28, %v1302_v52  ;;  %v2987_v28 = vand.u32 4294901760, %v11826_v45 }
 0x22d   : > { %2518 = vmatmul.f32.vlgmr.msra.gmra.mxu0 %v11710_v38  ;;  %v4256_v22 = vpop.permute.xlu1 %4255  ;;  %v4280_v58 = vpop.permute.xlu2 %4279  ;;  %v11797_v30 = vadd.f32 %v1277_v19, %v902_v32  ;;  %2435 = vmatmul.f32.gmra.mxu1 %v11732_v3  ;;  %v2753_v32 = vsel %vm355_vm8, %v11679_v7, 0 }
 0x22e   : > { %2775 = vmatpush.msra.mxu0 %v11778_v63  ;;  %4258 = vst.msk [vmem:[#allocation2] sm:$0x7f] %vm178_vm1, %v4256_v22  ;;  %v1365_v55 = vadd.f32 %v1364_v9, %v1337_v14  ;;  %v11847_v14 = vand.u32 4294901760, %v2753_v32 }
 0x22f   : > { %2574 = vmatmul.f32.vlgmr.msra.gmra.mxu2 %v11752_v12  ;;  %4264 = vst.msk [vmem:[#allocation2] sm:$0x7f] %vm186_vm2, %v4262_v5  ;;  %2494 = vmatmul.f32.gmra.mxu3 %v11755_v33 }
 0x230   : > { %2840 = vmatpush.msra.mxu2 %v11789_v40  ;;  %4270 = vst.msk [vmem:[#allocation2] sm:$0x7f] %vm194_vm3, %v4268_v54  ;;  %v11830_v40 = vsub.f32 %v2751_v41, %v11821_v4 }
 0x232   : > { %v1369_v13 = vpop.f32.mrf.mxu0  ;;  %v1393_v25 = vpop.f32.mrf.mxu1 }
 0x233   : > { %v1423_v36 = vpop.f32.mrf.mxu2  ;;  %v1340_v12 = vpop.f32.mrf.mxu3  ;;  %v1394_v39 = vadd.f32 %v1393_v25, %v1365_v55 }
 0x234   : > { %v4286_v57 = vpop.permute.xlu0 %4285  ;;  %v1341_v42 = vadd.f32 %v1340_v12, %v1310_v26 }
 0x235   : > { %2522 = vmatmul.f32.gmra.mxu0 %v11732_v3  ;;  %v4274_v16 = vpop.permute.xlu1 %4273  ;;  %v4298_v2 = vpop.permute.xlu2 %4297  ;;  %v1424_v52 = vadd.f32 %v1423_v36, %v1394_v39  ;;  %2544 = vmatmul.f32.vlgmr.msra.gmra.mxu1 %v11710_v38 }
 0x236   : > { %4276 = vst.msk [vmem:[#allocation2] sm:$0x7f] %vm202_vm4, %v4274_v16  ;;  %v1370_v49 = vadd.f32 %v1369_v13, %v1341_v42  ;;  %2813 = vmatpush.msra.mxu1 %v2812_v23  ;;  %v11854_v13 = vsub.f32 %v2753_v32, %v11847_v14 }
 0x237   : > { %2582 = vmatmul.f32.gmra.mxu2 %v2404_v53  ;;  %4282 = vst.msk [vmem:[#allocation2] sm:$0x7f] %vm210_vm5, %v4280_v58  ;;  %2608 = vmatmul.f32.vlgmr.msra.gmra.mxu3 %v11710_v38 }
 0x238   : > { %4288 = vst.msk [vmem:[#allocation2] sm:$0x7f] %vm218_vm6, %v4286_v57  ;;  %2868 = vmatpush.msra.mxu3 %v11778_v63 }
 0x239   : > { %4300 = vst.msk [vmem:[#allocation2 + $0x8] sm:$0x7f] %vm170_vm0, %v4298_v2 }
 0x23a   : > { %v1504_v46 = vpop.f32.mrf.mxu0  ;;  %v1399_v17 = vpop.f32.mrf.mxu1 }
 0x23b   : > { %v1427_v62 = vpop.f32.mrf.mxu2  ;;  %v1400_v5 = vadd.f32 %v1399_v17, %v1370_v49  ;;  %v1449_v53 = vpop.f32.mrf.mxu3 }
 0x23c   : > { %v4304_v15 = vpop.permute.xlu0 %4303  ;;  %v1450_v9 = vadd.f32 %v1449_v53, %v1424_v52  ;;  %v3133_v53 = vsel %vm360_vm10, %v11702_v37, 0 }
 0x23d   : > { %2636 = vmatmul.f32.vlgmr.msrb.gmra.mxu0 %v11722_v59  ;;  %v4292_v20 = vpop.permute.xlu1 %4291  ;;  %4306 = vst.msk [vmem:[#allocation2 + $0x8] sm:$0x7f] %vm178_vm1, %v4304_v15  ;;  %v4316_v26 = vpop.permute.xlu2 %4315  ;;  %v1428_v19 = vadd.f32 %v1427_v62, %v1400_v5  ;;  %2548 = vmatmul.f32.gmra.mxu1 %v11732_v3  ;;  %v11845_v59 = vand.u32 4294901760, %v11830_v40  ;;  %v11894_v32 = vand.u32 4294901760, %v3133_v53 }
 0x23e   : > { %2900 = vmatpush.msrb.mxu0 %v2810_v31  ;;  %4294 = vst.msk [vmem:[#allocation2] sm:$0x7f] %vm226_vm7, %v4292_v20  ;;  %v11840_v54 = vadd.f32 %v1450_v9, %v11715_v50  ;;  %v2988_v31 = vsub.f32 %v11826_v45, %v2987_v28 }
 0x23f   : > { %2695 = vmatmul.f32.vlgmr.msrb.gmra.mxu2 %v11710_v38  ;;  %2612 = vmatmul.f32.gmra.mxu3 %v11732_v3  ;;  %v2779_v8 = vsub.f32 %v11830_v40, %v11845_v59 }
 0x240   : > { %2952 = vmatpush.msrb.mxu2 %v11815_v44  ;;  %v2989_v57 = vand.u32 4294901760, %v2988_v31 }
 0x242   : > { %v1512_v7 = vpop.f32.mrf.mxu0  ;;  %v1538_v22 = vpop.f32.mrf.mxu1 }
 0x243   : > { %v1566_v58 = vpop.f32.mrf.mxu2  ;;  %v1453_v55 = vpop.f32.mrf.mxu3  ;;  %v1539_v1 = vadd.f32 %v1538_v22, %v1504_v46 }
 0x244   : > { %v4322_v50 = vpop.permute.xlu0 %4321  ;;  %v1454_v51 = vadd.f32 %v1453_v55, %v1428_v19 }
 0x245   : > { %2641 = vmatmul.f32.gmra.mxu0 %v11747_v43  ;;  %v11857_v25 = vld [vmem:[#allocation2] sm:$0x7f]  ;;  %v4310_v36 = vpop.permute.xlu1 %4309  ;;  %v4334_v12 = vpop.permute.xlu2 %4333  ;;  %v1567_v39 = vadd.f32 %v1566_v58, %v1539_v1  ;;  %2665 = vmatmul.f32.vlgmr.msrb.gmra.mxu1 %v11730_v6  ;;  %v11872_v6 = vand.u32 4294901760, %v2779_v8  ;;  %v11876_v43 = vand.u32 4294901760, %v11854_v13 }
 0x246   : > { %4312 = vst.msk [vmem:[#allocation2 + $0x8] sm:$0x7f] %vm186_vm2, %v4310_v36  ;;  %4779 = vrot.lane.b32.xlu0 %v11857_v25, %s10900_s7  ;;  %v11864_v42 = vadd.f32 %v1454_v51, %v11734_v48  ;;  %2926 = vmatpush.msrb.mxu1 %v11778_v63 }
 0x247   : > { %2699 = vmatmul.f32.gmra.mxu2 %v11732_v3  ;;  %4318 = vst.msk [vmem:[#allocation2 + $0x8] sm:$0x7f] %vm194_vm3, %v4316_v26  ;;  %5157 = vrot.lane.b32.xlu2 %v11857_v25, %s10898_s5  ;;  %v2787_v49 = vsub.f32 %v11854_v13, %v11876_v43 }
 0x248   : > { %4324 = vst.msk [vmem:[#allocation2 + $0x8] sm:$0x7f] %vm202_vm4, %v4322_v50  ;;  %2721 = vmatmul.f32.vlgmr.msrb.gmra.mxu3 %v11710_v38 }
 0x249   : > { %2990 = vmatpush.msrb.mxu3 %v2989_v57  ;;  %v2788_v5 = vand.u32 4294901760, %v2787_v49 }
 0x24a   : > { %v1625_v48 = vpop.f32.mrf.mxu0  ;;  %v1542_v23 = vpop.f32.mrf.mxu1 }
 0x24b   : > { %v1571_v63 = vpop.f32.mrf.mxu2  ;;  %v1543_v16 = vadd.f32 %v1542_v23, %v1512_v7  ;;  %v1595_v2 = vpop.f32.mrf.mxu3 }
 0x24c   : > { %v11878_v41 = vpop.permute.xlu0 %4397  ;;  %v1596_v52 = vadd.f32 %v1595_v2, %v1567_v39 }
 0x24d   : > { %2781 = vmatmul.f32.vlgmr.msra.gmra.mxu0 %v11872_v6  ;;  %v4328_v46 = vpop.permute.xlu1 %4327  ;;  %v1572_v17 = vadd.f32 %v1571_v63, %v1543_v16  ;;  %2671 = vmatmul.f32.gmra.mxu1 %v11755_v33  ;;  %v4346_v62 = vpop.permute.xlu2 %4345 }
 0x24e   : > { %3017 = vmatpush.msra.mxu0 %v11826_v45  ;;  %4330 = vst.msk [vmem:[#allocation2 + $0x8] sm:$0x7f] %vm210_vm5, %v4328_v46  ;;  %v1626_v38 = vadd.f32 %v1625_v48, %v1596_v52 }
 0x24f   : > { %2843 = vmatmul.f32.vlgmr.msra.gmra.mxu2 %v11830_v40  ;;  %4336 = vst.msk [vmem:[#allocation2 + $0x8] sm:$0x7f] %vm218_vm6, %v4334_v12 }
 0x250   : > { %3077 = vmatpush.msra.mxu2 %v2987_v28  ;;  %4348 = vst.msk [vmem:[#allocation2 + $0x10] sm:$0x7f] %vm170_vm0, %v4346_v62  ;;  %2725 = vmatmul.f32.gmra.mxu3 %v11732_v3  ;;  %v11904_v3 = vsub.f32 %v3133_v53, %v11894_v32  ;;  %v3129_v53 = vsel %vm355_vm8, %v11696_v34, 0 }
 0x252   : > { %v1629_v33 = vpop.f32.mrf.mxu0  ;;  %v1651_v15 = vpop.f32.mrf.mxu1  ;;  %v3188_v8 = vand.u32 4294901760, %v11904_v3 }
 0x253   : > { %v1681_v45 = vpop.f32.mrf.mxu2  ;;  %v1601_v9 = vpop.f32.mrf.mxu3  ;;  %v1652_v20 = vadd.f32 %v1651_v15, %v1626_v38  ;;  %v11941_v15 = vand.u32 4294901760, %v3129_v53 }
 0x254   : > { %v11892_v26 = vpop.permute.xlu0 %4399  ;;  %v1602_v19 = vadd.f32 %v1601_v9, %v1572_v17 }
 0x255   : > { %2789 = vmatmul.f32.gmra.mxu0 %v2788_v5  ;;  %v4340_v28 = vpop.permute.xlu1 %4339  ;;  %v11897_v7 = vadd.f32 %v1652_v20, %v11783_v60  ;;  %2815 = vmatmul.f32.vlgmr.msra.gmra.mxu1 %v11821_v4  ;;  %v4358_v22 = vpop.permute.xlu2 %4357 }
 0x256   : > { %4342 = vst.msk [vmem:[#allocation2 + $0x8] sm:$0x7f] %vm226_vm7, %v4340_v28  ;;  %v1630_v37 = vadd.f32 %v1629_v33, %v1602_v19  ;;  %3045 = vmatpush.msra.mxu1 %v11815_v44 }
 0x257   : > { %2848 = vmatmul.f32.gmra.mxu2 %v11854_v13 }
 0x258   : > { %2872 = vmatmul.f32.vlgmr.msra.gmra.mxu3 %v11845_v59 }
 0x259   : > { %3103 = vmatpush.msra.mxu3 %v11815_v44 }
 0x25a   : > { %v1743_v31 = vpop.f32.mrf.mxu0  ;;  %v1655_v60 = vpop.f32.mrf.mxu1 }
 0x25b   : > { %v1689_v58 = vpop.f32.mrf.mxu2  ;;  %v1656_v55 = vadd.f32 %v1655_v60, %v1630_v37  ;;  %v1715_v1 = vpop.f32.mrf.mxu3 }
 0x25c   : > { %v4364_v50 = vpop.permute.xlu0 %4363  ;;  %v1716_v51 = vadd.f32 %v1715_v1, %v1681_v45 }
 0x25d   : > { %2902 = vmatmul.f32.vlgmr.msrb.gmra.mxu0 %v11821_v4  ;;  %v11910_v36 = vld [vmem:[#allocation2 + $0x8] sm:$0x7f]  ;;  %v4352_v12 = vpop.permute.xlu1 %4351  ;;  %v11913_v39 = vadd.f32 %v1656_v55, %v11797_v30  ;;  %2819 = vmatmul.f32.gmra.mxu1 %v11847_v14  ;;  %v3189_v30 = vsub.f32 %v11904_v3, %v3188_v8  ;;  %v4376_v2 = vpop.permute.xlu2 %4375 }
 0x25e   : > { %3153 = vmatpush.msrb.mxu0 %v11894_v32  ;;  %4354 = vst.msk [vmem:[#allocation2 + $0x10] sm:$0x7f] %vm178_vm1, %v4352_v12  ;;  %v1744_v44 = vadd.f32 %v1743_v31, %v1716_v51  ;;  %4781 = vrot.lane.b32.xlu1 %v11910_v36, %s10900_s7  ;;  %v3131_v31 = vsel %vm355_vm8, %v11713_v11, 0 }
 0x25f   : > { %2958 = vmatmul.f32.vlgmr.msrb.gmra.mxu2 %v11872_v6  ;;  %4360 = vst.msk [vmem:[#allocation2 + $0x10] sm:$0x7f] %vm186_vm2, %v4358_v22  ;;  %v3135_v6 = vsel %vm360_vm10, %v11741_v10, 0  ;;  %v3190_v49 = vand.u32 4294901760, %v3189_v30 }
 0x260   : > { %3218 = vmatpush.msrb.mxu2 %v11904_v3  ;;  %4366 = vst.msk [vmem:[#allocation2 + $0x10] sm:$0x7f] %vm194_vm3, %v4364_v50  ;;  %2878 = vmatmul.f32.gmra.mxu3 %v11876_v43  ;;  %v11934_v10 = vand.u32 4294901760, %v3135_v6 }
 0x262   : > { %v1748_v57 = vpop.f32.mrf.mxu0  ;;  %v1772_v48 = vpop.f32.mrf.mxu1  ;;  %v3364_v9 = vsub.f32 %v3135_v6, %v11934_v10 }
 0x263   : > { %v1802_v23 = vpop.f32.mrf.mxu2  ;;  %v1719_v63 = vpop.f32.mrf.mxu3  ;;  %v1773_v16 = vadd.f32 %v1772_v48, %v1744_v44 }
 0x264   : > { %v1720_v52 = vadd.f32 %v1719_v63, %v1689_v58  ;;  %v4382_v17 = vpop.permute.xlu0 %4381  ;;  %v3365_v22 = vand.u32 4294901760, %v3364_v9  ;;  %v11963_v58 = vand.u32 4294901760, %v3131_v31 }
 0x265   : > { %2906 = vmatmul.f32.gmra.mxu0 %v11847_v14  ;;  %v4370_v46 = vpop.permute.xlu1 %4369  ;;  %v1803_v38 = vadd.f32 %v1802_v23, %v1773_v16  ;;  %2928 = vmatmul.f32.vlgmr.msrb.gmra.mxu1 %v11821_v4 }
 0x266   : > { %4372 = vst.msk [vmem:[#allocation2 + $0x10] sm:$0x7f] %vm202_vm4, %v4370_v46  ;;  %v1749_v62 = vadd.f32 %v1748_v57, %v1720_v52  ;;  %3191 = vmatpush.msrb.mxu1 %v3190_v49  ;;  %5153 = vrot.lane.b32.xlu1 %v11568_v47, %s10919_s17  ;;  %v11948_v47 = vsub.f32 %v3129_v53, %v11941_v15 }
 0x267   : > { %2966 = vmatmul.f32.gmra.mxu2 %v2788_v5  ;;  %4378 = vst.msk [vmem:[#allocation2 + $0x10] sm:$0x7f] %vm210_vm5, %v4376_v2  ;;  %v11974_v44 = vsub.f32 %v3131_v31, %v11963_v58 }
 0x268   : > { %4384 = vst.msk [vmem:[#allocation2 + $0x10] sm:$0x7f] %vm218_vm6, %v4382_v17  ;;  %2992 = vmatmul.f32.vlgmr.msrb.gmra.mxu3 %v11821_v4  ;;  %v11961_v60 = vand.u32 4294901760, %v11948_v47 }
 0x269   : > { %3246 = vmatpush.msrb.mxu3 %v11894_v32 }
 0x26a   : > { %v1876_v33 = vpop.f32.mrf.mxu0  ;;  %v1778_v5 = vpop.f32.mrf.mxu1 }
 0x26b   : > { %v1806_v45 = vpop.f32.mrf.mxu2  ;;  %v1779_v20 = vadd.f32 %v1778_v5, %v1749_v62  ;;  %v1828_v34 = vpop.f32.mrf.mxu3 }
 0x26c   : > { %v1829_v19 = vadd.f32 %v1828_v34, %v1803_v38 }
 0x26d   : > { %3020 = vmatmul.f32.vlgmr.msra.gmra.mxu0 %v11830_v40  ;;  %v4388_v28 = vpop.permute.xlu1 %4387  ;;  %v1807_v37 = vadd.f32 %v1806_v45, %v1779_v20  ;;  %2932 = vmatmul.f32.gmra.mxu1 %v11847_v14 }
 0x26e   : > { %3278 = vmatpush.msra.mxu0 %v3188_v8  ;;  %4390 = vst.msk [vmem:[#allocation2 + $0x10] sm:$0x7f] %vm226_vm7, %v4388_v28  ;;  %v11951_v3 = vadd.f32 %v1829_v19, %v11840_v54  ;;  %5155 = vrot.lane.b32.xlu1 %v11601_v61, %s10919_s17  ;;  %v3366_v8 = vsub.f32 %v3364_v9, %v3365_v22  ;;  %s10934_s17 = smov 90  }
 0x26f   : > { %3079 = vmatmul.f32.vlgmr.msra.gmra.mxu2 %v11821_v4  ;;  %v3157_v61 = vsub.f32 %v11948_v47, %v11961_v60 }
 0x270   : > { %3330 = vmatpush.msra.mxu2 %v11934_v10  ;;  %2996 = vmatmul.f32.gmra.mxu3 %v11847_v14 }
 0x271   : > { %v3158_v57 = vand.u32 4294901760, %v3157_v61 }
 0x272   : > { %v1884_v40 = vpop.f32.mrf.mxu0  ;;  %v1910_v54 = vpop.f32.mrf.mxu1 }
 0x273   : > { %v1938_v55 = vpop.f32.mrf.mxu2  ;;  %v1832_v1 = vpop.f32.mrf.mxu3  ;;  %v1911_v50 = vadd.f32 %v1910_v54, %v1876_v33 }
 0x274   : > { %v1833_v11 = vadd.f32 %v1832_v1, %v1807_v37 }
 0x275   : > { %3025 = vmatmul.f32.gmra.mxu0 %v11854_v13  ;;  %v11966_v51 = vld [vmem:[#allocation2 + $0x10] sm:$0x7f]  ;;  %v1939_v12 = vadd.f32 %v1938_v55, %v1911_v50  ;;  %3049 = vmatmul.f32.vlgmr.msra.gmra.mxu1 %v11845_v59  ;;  %v3367_v13 = vand.u32 4294901760, %v3366_v8  ;;  %v3513_v50 = vsel %vm360_vm10, %v11765_v27, 0 }
 0x276   : > { %4783 = vrot.lane.b32.xlu0 %v11966_v51, %s10900_s7  ;;  %v11977_v30 = vadd.f32 %v1833_v11, %v11864_v42  ;;  %3304 = vmatpush.msra.mxu1 %v11894_v32  ;;  %v11987_v42 = vand.u32 4294901760, %v11974_v44 }
 0x277   : > { %3083 = vmatmul.f32.gmra.mxu2 %v11847_v14  ;;  %5535 = vrot.lane.b32.xlu1 %v11857_v25, %s10895_s29 }
 0x278   : > { %5161 = vrot.lane.b32.xlu2 %v11966_v51, %s10898_s5  ;;  %3105 = vmatmul.f32.vlgmr.msra.gmra.mxu3 %v11821_v4  ;;  %v3165_v4 = vsub.f32 %v11974_v44, %v11987_v42 }
 0x279   : > { %3368 = vmatpush.msra.mxu3 %v3367_v13  ;;  %v3507_v13 = vsel %vm355_vm8, %v11718_v56, 0 }
 0x27a   : > { %v1997_v59 = vpop.f32.mrf.mxu0  ;;  %v1914_v48 = vpop.f32.mrf.mxu1  ;;  %v3166_v46 = vand.u32 4294901760, %v3165_v4 }
 0x27b   : > { %v1943_v23 = vpop.f32.mrf.mxu2  ;;  %v1915_v32 = vadd.f32 %v1914_v48, %v1884_v40  ;;  %v1967_v63 = vpop.f32.mrf.mxu3 }
 0x27c   : > { %v1968_v16 = vadd.f32 %v1967_v63, %v1939_v12 }
 0x27d   : > { %3159 = vmatmul.f32.vlgmr.msrb.gmra.mxu0 %v3158_v57  ;;  %v1944_v2 = vadd.f32 %v1943_v23, %v1915_v32  ;;  %3055 = vmatmul.f32.gmra.mxu1 %v11876_v43  ;;  %v3511_v43 = vsel %vm360_vm10, %v11762_v21, 0  ;;  %v10827_v21 = vld [vmem:[%s13718_s1] sm:$0xff] }
 0x27e   : > { %3395 = vmatpush.msrb.mxu0 %v3364_v9  ;;  %v1998_v25 = vadd.f32 %v1997_v59, %v1968_v16  ;;  %5159 = vrot.lane.b32.xlu0 %v11910_v36, %s10898_s5  ;;  %v12002_v62 = vand.u32 4294901760, %v3511_v43  ;;  %v12032_v59 = vand.u32 4294901760, %v3513_v50 }
 0x27f   : > { %3221 = vmatmul.f32.vlgmr.msrb.gmra.mxu2 %v11948_v47  ;;  %5539 = vrot.lane.b32.xlu1 %v11966_v51, %s10895_s29 }
 0x280   : > { %3455 = vmatpush.msrb.mxu2 %v3365_v22  ;;  %3109 = vmatmul.f32.gmra.mxu3 %v11847_v14  ;;  %v3565_v5 = vsub.f32 %v3511_v43, %v12002_v62  ;;  %v12039_v32 = vsub.f32 %v3513_v50, %v12032_v59  ;;  %v5910_v43 = vld [vmem:[%s13718_s1 + $0x18] sm:$0x1]  ;;  %v3885_v50 = vsel %vm360_vm10, %v11402_v24, 0  ;;  %v10674_v24 = vld [vmem:[%s11026_s28 + $0x40] sm:$0x7f] }
 0x281   : > { %5537 = vrot.lane.b32.xlu2 %v11910_v36, %s10895_s29 }
 0x282   : > { %v2001_v6 = vpop.f32.mrf.mxu0  ;;  %v2023_v52 = vpop.f32.mrf.mxu1  ;;  %v3566_v19 = vand.u32 4294901760, %v3565_v5 }
 0x283   : > { %v2053_v49 = vpop.f32.mrf.mxu2  ;;  %v1973_v17 = vpop.f32.mrf.mxu3  ;;  %v2024_v38 = vadd.f32 %v2023_v52, %v1998_v25  ;;  %v3743_v52 = vand.u32 4294901760, %v12039_v32 }
 0x284   : > { %v1974_v53 = vadd.f32 %v1973_v17, %v1944_v2  ;;  %v3567_v22 = vsub.f32 %v3565_v5, %v3566_v19 }
 0x285   : > { %3167 = vmatmul.f32.gmra.mxu0 %v3166_v46  ;;  %v12005_v33 = vadd.f32 %v2024_v38, %v11897_v7  ;;  %3193 = vmatmul.f32.vlgmr.msrb.gmra.mxu1 %v11941_v15 }
 0x286   : > { %v2002_v14 = vadd.f32 %v2001_v6, %v1974_v53  ;;  %3423 = vmatpush.msrb.mxu1 %v11934_v10  ;;  %5531 = vrot.lane.b32.xlu0 %v10827_v21, %s10928_s30  ;;  %v3568_v11 = vand.u32 4294901760, %v3567_v22  ;;  %v6283_v6 = vld [vmem:[%s11026_s28] sm:$0x7f] }
 0x287   : > { %3226 = vmatmul.f32.gmra.mxu2 %v11974_v44  ;;  %6285 = vrot.lane.b32.xlu1 %v6283_v6, %s10930_s24 }
 0x288   : > { %3250 = vmatmul.f32.vlgmr.msrb.gmra.mxu3 %v11961_v60 }
 0x289   : > { %3481 = vmatpush.msrb.mxu3 %v11934_v10  ;;  %v10828_v10 = vld [vmem:[%s13718_s1 + $0x10] sm:$0x1] }
 0x28a   : > { %v2115_v7 = vpop.f32.mrf.mxu0  ;;  %v2027_v45 = vpop.f32.mrf.mxu1 }
 0x28b   : > { %v2061_v9 = vpop.f32.mrf.mxu2  ;;  %v2028_v20 = vadd.f32 %v2027_v45, %v2002_v14  ;;  %v2087_v34 = vpop.f32.mrf.mxu3  ;;  %v3744_v14 = vsub.f32 %v12039_v32, %v3743_v52 }
 0x28c   : > { %v2088_v28 = vadd.f32 %v2087_v34, %v2053_v49  ;;  %v10669_v34 = vld [vmem:[%s11026_s28 + $0x18] sm:$0x7f] }
 0x28d   : > { %3280 = vmatmul.f32.vlgmr.msra.gmra.mxu0 %v11941_v15  ;;  %v12018_v37 = vadd.f32 %v2028_v20, %v11913_v39  ;;  %3197 = vmatmul.f32.gmra.mxu1 %v11963_v58  ;;  %v10668_v20 = vld [vmem:[%s11026_s28 + $0x10] sm:$0x7f] }
 0x28e   : > { %3531 = vmatpush.msra.mxu0 %v12002_v62  ;;  %v2116_v31 = vadd.f32 %v2115_v7, %v2088_v28  ;;  %5533 = vrot.lane.b32.xlu0 %v10828_v10, %s10928_s30 }
 0x28f   : > { %3336 = vmatmul.f32.vlgmr.msra.gmra.mxu2 %v3158_v57  ;;  %v12036_v57 = vand.u32 4294901760, %v3507_v13  ;;  %6303 = vrot.lane.b32.xlu1 %v10669_v34, %s10932_s8 }
 0x290   : > { %3596 = vmatpush.msra.mxu2 %v3565_v5  ;;  %3256 = vmatmul.f32.gmra.mxu3 %v11987_v42 }
 0x291   : > { %v12044_v25 = vsub.f32 %v3507_v13, %v12036_v57 }
 0x292   : > { %v2120_v40 = vpop.f32.mrf.mxu0  ;;  %v2144_v54 = vpop.f32.mrf.mxu1 }
 0x293   : > { %v2174_v55 = vpop.f32.mrf.mxu2  ;;  %v2091_v39 = vpop.f32.mrf.mxu3  ;;  %v2145_v1 = vadd.f32 %v2144_v54, %v2116_v31  ;;  %v12062_v49 = vand.u32 4294901760, %v12044_v25 }
 0x294   : > { %v2092_v8 = vadd.f32 %v2091_v39, %v2061_v9  ;;  %v10672_v39 = vld [vmem:[%s11026_s28 + $0x30] sm:$0x7f] }
 0x295   : > { %3284 = vmatmul.f32.gmra.mxu0 %v11963_v58  ;;  %v2175_v12 = vadd.f32 %v2174_v55, %v2145_v1  ;;  %3306 = vmatmul.f32.vlgmr.msra.gmra.mxu1 %v11941_v15  ;;  %v3535_v7 = vsub.f32 %v12044_v25, %v12062_v49  ;;  %v10671_v55 = vld [vmem:[%s11026_s28 + $0x28] sm:$0x7f] }
 0x296   : > { %v2121_v61 = vadd.f32 %v2120_v40, %v2092_v8  ;;  %3569 = vmatpush.msra.mxu1 %v3568_v11  ;;  %5915 = vrot.lane.b32.xlu0 %v5910_v43, %s10929_s10 }
 0x297   : > { %3344 = vmatmul.f32.gmra.mxu2 %v3166_v46  ;;  %6321 = vrot.lane.b32.xlu1 %v10672_v39, %s10934_s17 }
 0x298   : > { %3370 = vmatmul.f32.vlgmr.msra.gmra.mxu3 %v11941_v15 }
 0x299   : > { %3624 = vmatpush.msra.mxu3 %v12002_v62 }
 0x29a   : > { %v2398_v27 = vpop.f32.mrf.mxu0  ;;  %v2150_v48 = vpop.f32.mrf.mxu1 }
 0x29b   : > { %v2178_v23 = vpop.f32.mrf.mxu2  ;;  %v2151_v63 = vadd.f32 %v2150_v48, %v2121_v61  ;;  %v2200_v16 = vpop.f32.mrf.mxu3 }
 0x29c   : > { %v2201_v2 = vadd.f32 %v2200_v16, %v2175_v12  ;;  %v10667_v16 = vld [vmem:[%s11026_s28 + $0x8] sm:$0x7f] }
 0x29d   : > { %3398 = vmatmul.f32.vlgmr.msrb.gmra.mxu0 %v11948_v47  ;;  %v2179_v56 = vadd.f32 %v2178_v23, %v2151_v63  ;;  %3310 = vmatmul.f32.gmra.mxu1 %v11963_v58  ;;  %v3509_v47 = vsel %vm355_vm8, %v11737_v0, 0 }
 0x29e   : > { %3656 = vmatpush.msrb.mxu0 %v3566_v19  ;;  %v12047_v4 = vadd.f32 %v2201_v2, %v11951_v3  ;;  %v12064_v46 = vand.u32 4294901760, %v3509_v47  ;;  %v3745_v19 = vand.u32 4294901760, %v3744_v14  ;;  %6297 = vrot.lane.b32.xlu0 %v10668_v20, %s10931_s25 }
 0x29f   : > { %3457 = vmatmul.f32.vlgmr.msrb.gmra.mxu2 %v11941_v15 }
 0x2a0   : > { %3708 = vmatpush.msrb.mxu2 %v12032_v59  ;;  %3374 = vmatmul.f32.gmra.mxu3 %v11963_v58  ;;  %v12072_v45 = vsub.f32 %v3509_v47, %v12064_v46 }
 0x2a2   : > { %v2406_v3 = vpop.f32.mrf.mxu0  ;;  %v2432_v0 = vpop.f32.mrf.mxu1  ;;  %v12085_v28 = vand.u32 4294901760, %v12072_v45 }
 0x2a3   : > { %v2460_v17 = vpop.f32.mrf.mxu2  ;;  %v2204_v38 = vpop.f32.mrf.mxu3  ;;  %v2433_v53 = vadd.f32 %v2432_v0, %v2398_v27  ;;  %v12103_v27 = vand.u32 4294901760, %v3885_v50  ;;  %v10677_v0 = vld [vmem:[%s11026_s28 + $0x58] sm:$0x7f] }
 0x2a4   : > { %v2205_v21 = vadd.f32 %v2204_v38, %v2179_v56  ;;  %v3543_v54 = vsub.f32 %v12072_v45, %v12085_v28 }
 0x2a5   : > { %3403 = vmatmul.f32.gmra.mxu0 %v11974_v44  ;;  %v2461_v5 = vadd.f32 %v2460_v17, %v2433_v53  ;;  %3427 = vmatmul.f32.vlgmr.msrb.gmra.mxu1 %v11961_v60  ;;  %v3536_v44 = vand.u32 4294901760, %v3535_v7  ;;  %v12116_v63 = vsub.f32 %v3885_v50, %v12103_v27  ;;  %v10678_v17 = vld [vmem:[%s11026_s28 + $0x60] sm:$0x7f] }
 0x2a6   : > { %v12075_v9 = vadd.f32 %v2205_v21, %v11977_v30  ;;  %3682 = vmatpush.msrb.mxu1 %v12002_v62  ;;  %6315 = vrot.lane.b32.xlu0 %v10671_v55, %s10933_s9  ;;  %v3544_v12 = vand.u32 4294901760, %v3543_v54 }
 0x2a7   : > { %3461 = vmatmul.f32.gmra.mxu2 %v11963_v58 }
 0x2a8   : > { %3483 = vmatmul.f32.vlgmr.msrb.gmra.mxu3 %v11941_v15 }
 0x2a9   : > { %3746 = vmatpush.msrb.mxu3 %v3745_v19  ;;  %v3887_v19 = vsel %vm360_vm10, %v11443_v18, 0 }
 0x2aa   : > { %v2519_v60 = vpop.f32.mrf.mxu0  ;;  %v2436_v30 = vpop.f32.mrf.mxu1 }
 0x2ab   : > { %v2465_v62 = vpop.f32.mrf.mxu2  ;;  %v2437_v31 = vadd.f32 %v2436_v30, %v2406_v3  ;;  %v2489_v10 = vpop.f32.mrf.mxu3  ;;  %v10680_v30 = vld [vmem:[%s11026_s28 + $0x70] sm:$0x7f] }
 0x2ac   : > { %v2490_v22 = vadd.f32 %v2489_v10, %v2461_v5  ;;  %v12150_v10 = vand.u32 4294901760, %v3887_v19 }
 0x2ad   : > { %3537 = vmatmul.f32.vlgmr.msra.gmra.mxu0 %v3536_v44  ;;  %v2466_v40 = vadd.f32 %v2465_v62, %v2437_v31  ;;  %3433 = vmatmul.f32.gmra.mxu1 %v11987_v42  ;;  %v5909_v42 = vld [vmem:[%s13718_s1 + $0x8] sm:$0xff]  ;;  %v12146_v62 = vld [vmem:[%s13718_s1] sm:$0xff]  ;;  %v3881_v31 = vsel %vm355_vm8, %v11780_v29, 0 }
 0x2ae   : > { %3773 = vmatpush.msra.mxu0 %v12039_v32  ;;  %v2520_v15 = vadd.f32 %v2519_v60, %v2490_v22  ;;  %5913 = vrot.lane.b32.xlu2 %v5909_v42, %s10929_s10  ;;  %v10675_v32 = vld [vmem:[%s11026_s28 + $0x48] sm:$0x7f]  ;;  %v10673_v22 = vld [vmem:[%s11026_s28 + $0x38] sm:$0x7f]  ;;  %s10937_s10 = smov 106   ;;  %v12161_v39 = vsub.f32 %v3887_v19, %v12150_v10 }
 0x2af   : > { %3599 = vmatmul.f32.vlgmr.msra.gmra.mxu2 %v12044_v25  ;;  %6333 = vrot.lane.b32.xlu0 %v10674_v24, %s10930_s24 }
 0x2b0   : > { %3833 = vmatpush.msra.mxu2 %v3743_v52  ;;  %3487 = vmatmul.f32.gmra.mxu3 %v11963_v58  ;;  %v3940_v52 = vand.u32 4294901760, %v12116_v63 }
 0x2b1   : > { %6339 = vrot.lane.b32.xlu1 %v10675_v32, %s10935_s26 }
 0x2b2   : > { %v2523_v1 = vpop.f32.mrf.mxu0  ;;  %v2545_v8 = vpop.f32.mrf.mxu1  ;;  %v3941_v38 = vsub.f32 %v12116_v63, %v3940_v52 }
 0x2b3   : > { %v2575_v11 = vpop.f32.mrf.mxu2  ;;  %v2495_v61 = vpop.f32.mrf.mxu3  ;;  %v2546_v58 = vadd.f32 %v2545_v8, %v2520_v15 }
 0x2b4   : > { %v2496_v13 = vadd.f32 %v2495_v61, %v2466_v40  ;;  %v3942_v34 = vand.u32 4294901760, %v3941_v38  ;;  %v12157_v40 = vand.u32 4294901760, %v3881_v31  ;;  %v4117_v61 = vand.u32 4294901760, %v12161_v39 }
 0x2b5   : > { %3545 = vmatmul.f32.gmra.mxu0 %v3544_v12  ;;  %v12106_v48 = vadd.f32 %v2546_v58, %v12005_v33  ;;  %3571 = vmatmul.f32.vlgmr.msra.gmra.mxu1 %v12036_v57 }
 0x2b6   : > { %v2524_v23 = vadd.f32 %v2523_v1, %v2496_v13  ;;  %3801 = vmatpush.msra.mxu1 %v12032_v59  ;;  %6291 = vrot.lane.b32.xlu2 %v10667_v16, %s10935_s26  ;;  %v12166_v50 = vsub.f32 %v3881_v31, %v12157_v40  ;;  %v12186_v13 = vpop.permute.xlu2 %4772  ;;  %v4118_v16 = vsub.f32 %v12161_v39, %v4117_v61 }
 0x2b7   : > { %3604 = vmatmul.f32.gmra.mxu2 %v12072_v45  ;;  %6351 = vrot.lane.b32.xlu0 %v10677_v0, %s10932_s8 }
 0x2b8   : > { %3628 = vmatmul.f32.vlgmr.msra.gmra.mxu3 %v12062_v49  ;;  %v4119_v0 = vand.u32 4294901760, %v4118_v16 }
 0x2b9   : > { %3859 = vmatpush.msra.mxu3 %v12032_v59  ;;  %6357 = vrot.lane.b32.xlu1 %v10678_v17, %s10903_s20  ;;  %v10679_v17 = vld [vmem:[%s11026_s28 + $0x68] sm:$0x7f] }
 0x2ba   : > { %v2637_v33 = vpop.f32.mrf.mxu0  ;;  %v2549_v2 = vpop.f32.mrf.mxu1 }
 0x2bb   : > { %v2583_v56 = vpop.f32.mrf.mxu2  ;;  %v2550_v43 = vadd.f32 %v2549_v2, %v2524_v23  ;;  %v2609_v6 = vpop.f32.mrf.mxu3  ;;  %v12189_v23 = vand.u32 4294901760, %v12166_v50 }
 0x2bc   : > { %v2610_v47 = vadd.f32 %v2609_v6, %v2575_v11  ;;  %v10682_v11 = vld [vmem:[%s11026_s28 + $0x80] sm:$0x7f] }
 0x2bd   : > { %3658 = vmatmul.f32.vlgmr.msrb.gmra.mxu0 %v12036_v57  ;;  %v12125_v3 = vadd.f32 %v2550_v43, %v12018_v37  ;;  %3575 = vmatmul.f32.gmra.mxu1 %v12064_v46  ;;  %v10670_v37 = vld [vmem:[%s11026_s28 + $0x20] sm:$0x7f]  ;;  %v3909_v43 = vsub.f32 %v12166_v50, %v12189_v23 }
 0x2be   : > { %3905 = vmatpush.msrb.mxu0 %v12103_v27  ;;  %v2638_v59 = vadd.f32 %v2637_v33, %v2610_v47  ;;  %6309 = vrot.lane.b32.xlu2 %v10670_v37, %s10903_s20 }
 0x2bf   : > { %3714 = vmatmul.f32.vlgmr.msrb.gmra.mxu2 %v3536_v44  ;;  %6369 = vrot.lane.b32.xlu0 %v10680_v30, %s10934_s17  ;;  %v10688_v30 = vld [vmem:[%s11026_s28 + $0xb0] sm:$0x7f] }
 0x2c0   : > { %3970 = vmatpush.msrb.mxu2 %v12116_v63  ;;  %3634 = vmatmul.f32.gmra.mxu3 %v12085_v28 }
 0x2c1   : > { %6433 = vrot.lane.b32.xlu1 %v12146_v62, %s10936_s6 }
 0x2c2   : > { %v2642_v53 = vpop.f32.mrf.mxu0  ;;  %v2666_v14 = vpop.f32.mrf.mxu1 }
 0x2c3   : > { %v2696_v21 = vpop.f32.mrf.mxu2  ;;  %v2613_v5 = vpop.f32.mrf.mxu3  ;;  %v2667_v7 = vadd.f32 %v2666_v14, %v2638_v59  ;;  %v10685_v59 = vld [vmem:[%s11026_s28 + $0x98] sm:$0x7f] }
 0x2c4   : > { %v2614_v20 = vadd.f32 %v2613_v5, %v2583_v56 }
 0x2c5   : > { %3662 = vmatmul.f32.gmra.mxu0 %v12064_v46  ;;  %v2697_v60 = vadd.f32 %v2696_v21, %v2667_v7  ;;  %3684 = vmatmul.f32.vlgmr.msrb.gmra.mxu1 %v12036_v57  ;;  %v12223_v7 = vpop.permute.xlu0 %4779 }
 0x2c6   : > { %v2643_v44 = vadd.f32 %v2642_v53, %v2614_v20  ;;  %3943 = vmatpush.msrb.mxu1 %v3942_v34  ;;  %6327 = vrot.lane.b32.xlu2 %v10673_v22, %s10937_s10  ;;  %v4393_v20 = vld [vmem:[#allocation2] sm:$0x7f] }
 0x2c7   : > { %3722 = vmatmul.f32.gmra.mxu2 %v3544_v12  ;;  %v12176_v12 = vld [vmem:[%s13718_s1 + $0x10] sm:$0x1]  ;;  %6381 = vrot.lane.b32.xlu0 %v10682_v11, %s10930_s24  ;;  %s10938_s24 = smov 72  }
 0x2c8   : > { %3748 = vmatmul.f32.vlgmr.msrb.gmra.mxu3 %v12036_v57 }
 0x2c9   : > { %3998 = vmatpush.msrb.mxu3 %v12103_v27  ;;  %6435 = vrot.lane.b32.xlu1 %v12176_v12, %s10936_s6  ;;  %s10943_s6 = smov 24  }
 0x2ca   : > { %v2782_v18 = vpop.f32.mrf.mxu0  ;;  %v2672_v15 = vpop.f32.mrf.mxu1 }
 0x2cb   : > { %v2700_v54 = vpop.f32.mrf.mxu2  ;;  %v2673_v29 = vadd.f32 %v2672_v15, %v2643_v44  ;;  %v2722_v55 = vpop.f32.mrf.mxu3  ;;  %v10687_v44 = vld [vmem:[%s11026_s28 + $0xa8] sm:$0x7f] }
 0x2cc   : > { %v2723_v42 = vadd.f32 %v2722_v55, %v2697_v60 }
 0x2cd   : > { %3776 = vmatmul.f32.vlgmr.msra.gmra.mxu0 %v12044_v25  ;;  %v2701_v1 = vadd.f32 %v2700_v54, %v2673_v29  ;;  %3688 = vmatmul.f32.gmra.mxu1 %v12064_v46  ;;  %v3883_v25 = vsel %vm355_vm8, %v11758_v35, 0 }
 0x2ce   : > { %4030 = vmatpush.msra.mxu0 %v3940_v52  ;;  %v12169_v8 = vadd.f32 %v2723_v42, %v12047_v4  ;;  %v10676_v4 = vld [vmem:[%s11026_s28 + $0x50] sm:$0x7f]  ;;  %v12191_v24 = vand.u32 4294901760, %v3883_v25 }
 0x2cf   : > { %3835 = vmatmul.f32.vlgmr.msra.gmra.mxu2 %v12036_v57  ;;  %6345 = vrot.lane.b32.xlu2 %v10676_v4, %s10931_s25 }
 0x2d0   : > { %4082 = vmatpush.msra.mxu2 %v12150_v10  ;;  %3752 = vmatmul.f32.gmra.mxu3 %v12064_v46  ;;  %v12200_v6 = vsub.f32 %v3883_v25, %v12191_v24  ;;  %v12207_v52 = vpop.permute.xlu1 %4781 }
 0x2d1   : > { %6399 = vrot.lane.b32.xlu1 %v10685_v59, %s10932_s8  ;;  %s10947_s8 = smov 56  }
 0x2d2   : > { %v2790_v58 = vpop.f32.mrf.mxu0  ;;  %v2816_v35 = vpop.f32.mrf.mxu1 }
 0x2d3   : > { %v2844_v32 = vpop.f32.mrf.mxu2  ;;  %v2726_v63 = vpop.f32.mrf.mxu3  ;;  %v2817_v33 = vadd.f32 %v2816_v35, %v2782_v18  ;;  %v4406_v18 = vsel %vm360_vm10, %v4393_v20, 0 }
 0x2d4   : > { %v2727_v2 = vadd.f32 %v2726_v63, %v2701_v1  ;;  %v12238_v42 = vand.u32 4294901760, %v4406_v18 }
 0x2d5   : > { %3781 = vmatmul.f32.gmra.mxu0 %v12072_v45  ;;  %v2845_v56 = vadd.f32 %v2844_v32, %v2817_v33  ;;  %3805 = vmatmul.f32.vlgmr.msra.gmra.mxu1 %v12062_v49  ;;  %v10684_v45 = vld [vmem:[%s11026_s28 + $0x90] sm:$0x7f] }
 0x2d6   : > { %v12203_v47 = vadd.f32 %v2727_v2, %v12075_v9  ;;  %4056 = vmatpush.msra.mxu1 %v12103_v27  ;;  %6393 = vrot.lane.b32.xlu0 %v10684_v45, %s10931_s25  ;;  %v3910_v9 = vand.u32 4294901760, %v3909_v43  ;;  %v12216_v27 = vand.u32 4294901760, %v12200_v6  ;;  %v12252_v4 = vsub.f32 %v4406_v18, %v12238_v42  ;;  %s10940_s25 = smov 2  }
 0x2d7   : > { %3839 = vmatmul.f32.gmra.mxu2 %v12064_v46  ;;  %6363 = vrot.lane.b32.xlu2 %v10679_v17, %s10933_s9  ;;  %v4394_v17 = vld [vmem:[#allocation2 + $0x8] sm:$0x7f] }
 0x2d8   : > { %3861 = vmatmul.f32.vlgmr.msra.gmra.mxu3 %v12036_v57  ;;  %v12219_v57 = vpop.permute.xlu2 %4774  ;;  %v3917_v19 = vsub.f32 %v12200_v6, %v12216_v27  ;;  %v12228_v60 = vpop.permute.xlu1 %5153  ;;  %v4462_v2 = vand.u32 4294901760, %v12252_v4 }
 0x2d9   : > { %4120 = vmatpush.msra.mxu3 %v4119_v0  ;;  %6417 = vrot.lane.b32.xlu1 %v10688_v30, %s10934_s17  ;;  %s10941_s17 = smov 95  }
 0x2da   : > { %v2903_v49 = vpop.f32.mrf.mxu0  ;;  %v2820_v38 = vpop.f32.mrf.mxu1  ;;  %v3918_v54 = vand.u32 4294901760, %v3917_v19  ;;  %v4463_v59 = vsub.f32 %v12252_v4, %v4462_v2 }
 0x2db   : > { %v2849_v37 = vpop.f32.mrf.mxu2  ;;  %v2821_v53 = vadd.f32 %v2820_v38, %v2790_v58  ;;  %v2873_v14 = vpop.f32.mrf.mxu3  ;;  %v10683_v58 = vld [vmem:[%s11026_s28 + $0x88] sm:$0x7f] }
 0x2dc   : > { %v2874_v21 = vadd.f32 %v2873_v14, %v2845_v56  ;;  %v4464_v20 = vand.u32 4294901760, %v4463_v59 }
 0x2dd   : > { %3911 = vmatmul.f32.vlgmr.msrb.gmra.mxu0 %v3910_v9  ;;  %v2850_v5 = vadd.f32 %v2849_v37, %v2821_v53  ;;  %3811 = vmatmul.f32.gmra.mxu1 %v12085_v28  ;;  %v10681_v28 = vld [vmem:[%s11026_s28 + $0x78] sm:$0x7f] }
 0x2de   : > { %4147 = vmatpush.msrb.mxu0 %v12161_v39  ;;  %v2904_v34 = vadd.f32 %v2903_v49, %v2874_v21  ;;  %6411 = vrot.lane.b32.xlu0 %v10687_v44, %s10933_s9  ;;  %v10686_v49 = vld [vmem:[%s11026_s28 + $0xa0] sm:$0x7f]  ;;  %s10716_s9 = sshll.u32 %s10994_s16, 1 }
 0x2df   : > { %3973 = vmatmul.f32.vlgmr.msrb.gmra.mxu2 %v12166_v50  ;;  %6375 = vrot.lane.b32.xlu2 %v10681_v28, %s10937_s10 }
 0x2e0   : > { %4207 = vmatpush.msrb.mxu2 %v4117_v61  ;;  %3865 = vmatmul.f32.gmra.mxu3 %v12064_v46  ;;  %v5158_v11 = vpop.permute.xlu2 %5157  ;;  %v12246_v25 = vpop.permute.xlu1 %5155 }
 0x2e2   : > { %v2907_v31 = vpop.f32.mrf.mxu0  ;;  %v2929_v22 = vpop.f32.mrf.mxu1 }
 0x2e3   : > { %v2959_v15 = vpop.f32.mrf.mxu2  ;;  %v2879_v29 = vpop.f32.mrf.mxu3  ;;  %v2930_v55 = vadd.f32 %v2929_v22, %v2904_v34  ;;  %v4409_v34 = vsel %vm360_vm10, %v4394_v17, 0 }
 0x2e4   : > { %v2880_v39 = vadd.f32 %v2879_v29, %v2850_v5  ;;  %v12282_v18 = vand.u32 4294901760, %v4409_v34 }
 0x2e5   : > { %3919 = vmatmul.f32.gmra.mxu0 %v3918_v54  ;;  %v12241_v46 = vadd.f32 %v2930_v55, %v12106_v48  ;;  %3945 = vmatmul.f32.vlgmr.msrb.gmra.mxu1 %v12157_v40  ;;  %v10689_v55 = vld [vmem:[%s11026_s28 + $0xb8] sm:$0x7f] }
 0x2e6   : > { %v2908_v1 = vadd.f32 %v2907_v31, %v2880_v39  ;;  %4175 = vmatpush.msrb.mxu1 %v12150_v10  ;;  %6808 = vrot.lane.b32.xlu0 %v12146_v62, %s10938_s24  ;;  %v4401_v31 = vsel %vm355_vm8, %v11878_v41, 0 }
 0x2e7   : > { %3978 = vmatmul.f32.gmra.mxu2 %v12200_v6  ;;  %6387 = vrot.lane.b32.xlu2 %v10683_v58, %s10935_s26  ;;  %s10942_s26 = smov 120  }
 0x2e8   : > { %v12248_v61 = vpop.permute.xlu0 %4783  ;;  %4002 = vmatmul.f32.vlgmr.msrb.gmra.mxu3 %v12189_v23  ;;  %v5162_v43 = vpop.permute.xlu2 %5161 }
 0x2e9   : > { %4233 = vmatpush.msrb.mxu3 %v12150_v10  ;;  %v5536_v45 = vpop.permute.xlu1 %5535 }
 0x2ea   : > { %v3021_v48 = vpop.f32.mrf.mxu0  ;;  %v2933_v35 = vpop.f32.mrf.mxu1 }
 0x2eb   : > { %v2967_v32 = vpop.f32.mrf.mxu2  ;;  %v2934_v63 = vadd.f32 %v2933_v35, %v2908_v1  ;;  %v2993_v33 = vpop.f32.mrf.mxu3 }
 0x2ec   : > { %v2994_v16 = vadd.f32 %v2993_v33, %v2959_v15 }
 0x2ed   : > { %4032 = vmatmul.f32.vlgmr.msra.gmra.mxu0 %v12157_v40  ;;  %v12260_v56 = vadd.f32 %v2934_v63, %v12125_v3  ;;  %3949 = vmatmul.f32.gmra.mxu1 %v12191_v24  ;;  %v4403_v63 = vsel %vm355_vm8, %v11892_v26, 0 }
 0x2ee   : > { %4427 = vmatpush.msra.mxu0 %v12238_v42  ;;  %v3022_v10 = vadd.f32 %v3021_v48, %v2994_v16  ;;  %6810 = vrot.lane.b32.xlu0 %v12176_v12, %s10938_s24 }
 0x2ef   : > { %4088 = vmatmul.f32.vlgmr.msra.gmra.mxu2 %v3910_v9  ;;  %6405 = vrot.lane.b32.xlu2 %v10686_v49, %s10903_s20  ;;  %s10939_s20 = smov 37  }
 0x2f0   : > { %4492 = vmatpush.msra.mxu2 %v12252_v4  ;;  %4008 = vmatmul.f32.gmra.mxu3 %v12216_v27  ;;  %v5160_v0 = vpop.permute.xlu0 %5159  ;;  %v5538_v30 = vpop.permute.xlu2 %5537  ;;  %v4638_v4 = vsub.f32 %v4409_v34, %v12282_v18 }
 0x2f1   : > { %v12269_v3 = vsel %vm1091_vm11, %v5158_v11, %v5160_v0  ;;  %v12272_v37 = vsel %vm1091_vm11, %v5160_v0, %v5162_v43  ;;  %v5540_v28 = vpop.permute.xlu1 %5539  ;;  %v12285_v22 = vsel %vm1470_vm12, %v5536_v45, %v5538_v30 }
 0x2f2   : > { %v3026_v38 = vpop.f32.mrf.mxu0  ;;  %v3050_v53 = vpop.f32.mrf.mxu1  ;;  %v12288_v15 = vsel %vm1470_vm12, %v5538_v30, %v5540_v28 }
 0x2f3   : > { %v3080_v9 = vpop.f32.mrf.mxu2  ;;  %v2997_v14 = vpop.f32.mrf.mxu3  ;;  %v3051_v21 = vadd.f32 %v3050_v53, %v3022_v10 }
 0x2f4   : > { %v2998_v5 = vadd.f32 %v2997_v14, %v2967_v32 }
 0x2f5   : > { %4036 = vmatmul.f32.gmra.mxu0 %v12191_v24  ;;  %v3081_v19 = vadd.f32 %v3080_v9, %v3051_v21  ;;  %4058 = vmatmul.f32.vlgmr.msra.gmra.mxu1 %v12157_v40 }
 0x2f6   : > { %v3027_v44 = vadd.f32 %v3026_v38, %v2998_v5  ;;  %4465 = vmatpush.msra.mxu1 %v4464_v20 }
 0x2f7   : > { %4096 = vmatmul.f32.gmra.mxu2 %v3918_v54  ;;  %v12293_v54 = vand.u32 4294901760, %v4401_v31  ;;  %6423 = vrot.lane.b32.xlu2 %v10689_v55, %s10937_s10  ;;  %s10944_s10 = smov 40  }
 0x2f8   : > { %4122 = vmatmul.f32.vlgmr.msra.gmra.mxu3 %v12157_v40  ;;  %v12312_v33 = vpop.permute.xlu0 %5531 }
 0x2f9   : > { %4520 = vmatpush.msra.mxu3 %v12238_v42  ;;  %v12300_v35 = vsub.f32 %v4401_v31, %v12293_v54 }
 0x2fa   : > { %v3160_v29 = vpop.f32.mrf.mxu0  ;;  %v3056_v39 = vpop.f32.mrf.mxu1 }
 0x2fb   : > { %v3084_v1 = vpop.f32.mrf.mxu2  ;;  %v3057_v41 = vadd.f32 %v3056_v39, %v3027_v44  ;;  %v3106_v11 = vpop.f32.mrf.mxu3 }
 0x2fc   : > { %v3107_v48 = vadd.f32 %v3106_v11, %v3081_v19 }
 0x2fd   : > { %4150 = vmatmul.f32.vlgmr.msrb.gmra.mxu0 %v12166_v50  ;;  %v3085_v58 = vadd.f32 %v3084_v1, %v3057_v41  ;;  %4062 = vmatmul.f32.gmra.mxu1 %v12191_v24  ;;  %v4639_v50 = vand.u32 4294901760, %v4638_v4 }
 0x2fe   : > { %4552 = vmatpush.msrb.mxu0 %v4462_v2  ;;  %v12303_v32 = vadd.f32 %v3107_v48, %v12169_v8  ;;  %v12315_v2 = vand.u32 4294901760, %v12300_v35  ;;  %v12317_v8 = vand.u32 4294901760, %v4403_v63 }
 0x2ff   : > { %4209 = vmatmul.f32.vlgmr.msrb.gmra.mxu2 %v12157_v40  ;;  %v4640_v0 = vsub.f32 %v4638_v4, %v4639_v50 }
 0x300   : > { %4604 = vmatpush.msrb.mxu2 %v12282_v18  ;;  %4126 = vmatmul.f32.gmra.mxu3 %v12191_v24  ;;  %v4431_v17 = vsub.f32 %v12300_v35, %v12315_v2  ;;  %v12324_v38 = vsub.f32 %v4403_v63, %v12317_v8  ;;  %v12332_v14 = vpop.permute.xlu0 %5533 }
 0x301   : > { %v4641_v9 = vand.u32 4294901760, %v4640_v0 }
 0x302   : > { %v3168_v16 = vpop.f32.mrf.mxu0  ;;  %v3194_v10 = vpop.f32.mrf.mxu1  ;;  %v12335_v20 = vand.u32 4294901760, %v12324_v38 }
 0x303   : > { %v3222_v43 = vpop.f32.mrf.mxu2  ;;  %v3110_v45 = vpop.f32.mrf.mxu3  ;;  %v3195_v59 = vadd.f32 %v3194_v10, %v3160_v29 }
 0x304   : > { %v3111_v49 = vadd.f32 %v3110_v45, %v3085_v58  ;;  %v4439_v28 = vsub.f32 %v12324_v38, %v12335_v20 }
 0x305   : > { %4155 = vmatmul.f32.gmra.mxu0 %v12200_v6  ;;  %v3223_v26 = vadd.f32 %v3222_v43, %v3195_v59  ;;  %4179 = vmatmul.f32.vlgmr.msrb.gmra.mxu1 %v12189_v23  ;;  %v4432_v23 = vand.u32 4294901760, %v4431_v17 }
 0x306   : > { %v12327_v53 = vadd.f32 %v3111_v49, %v12203_v47  ;;  %4578 = vmatpush.msrb.mxu1 %v12238_v42  ;;  %v4440_v1 = vand.u32 4294901760, %v4439_v28  ;;  %v4787_v28 = vsel %vm355_vm8, %v12186_v13, 0 }
 0x307   : > { %4213 = vmatmul.f32.gmra.mxu2 %v12191_v24 }
 0x308   : > { %4235 = vmatmul.f32.vlgmr.msrb.gmra.mxu3 %v12157_v40  ;;  %v12337_v19 = vpop.permute.xlu2 %5913  ;;  %v4785_v40 = vsel %vm352_vm9, %v12223_v7, %v12207_v52  ;;  %v12348_v55 = vpop.permute.xlu0 %5915 }
 0x309   : > { %4642 = vmatpush.msrb.mxu3 %v4641_v9  ;;  %v4791_v31 = vsel %vm360_vm10, %v4785_v40, 0  ;;  %v6286_v7 = vpop.permute.xlu1 %6285 }
 0x30a   : > { %v3281_v6 = vpop.f32.mrf.mxu0  ;;  %v3198_v21 = vpop.f32.mrf.mxu1  ;;  %6288 = vst.msk [vmem:[#allocation2] sm:$0x7f] %vm170_vm0, %v6286_v7 }
 0x30b   : > { %v3227_v5 = vpop.f32.mrf.mxu2  ;;  %v3199_v34 = vadd.f32 %v3198_v21, %v3168_v16  ;;  %v3251_v47 = vpop.f32.mrf.mxu3 }
 0x30c   : > { %v3252_v42 = vadd.f32 %v3251_v47, %v3223_v26 }
 0x30d   : > { %4433 = vmatmul.f32.vlgmr.msra.gmra.mxu0 %v4432_v23  ;;  %v3228_v44 = vadd.f32 %v3227_v5, %v3199_v34  ;;  %4185 = vmatmul.f32.gmra.mxu1 %v12216_v27 }
 0x30e   : > { %4669 = vmatpush.msra.mxu0 %v4638_v4  ;;  %v3282_v30 = vadd.f32 %v3281_v6, %v3252_v42  ;;  %v12350_v4 = vand.u32 4294901760, %v4791_v31  ;;  %v4786_v6 = vsel %vm352_vm9, %v12207_v52, %v12248_v61 }
 0x30f   : > { %4495 = vmatmul.f32.vlgmr.msra.gmra.mxu2 %v12300_v35  ;;  %v4793_v34 = vsel %vm360_vm10, %v4786_v6, 0 }
 0x310   : > { %4729 = vmatpush.msra.mxu2 %v4639_v50  ;;  %4239 = vmatmul.f32.gmra.mxu3 %v12191_v24  ;;  %v6292_v58 = vpop.permute.xlu2 %6291  ;;  %v12361_v50 = vsub.f32 %v4791_v31, %v12350_v4  ;;  %v6298_v10 = vpop.permute.xlu0 %6297  ;;  %v12387_v31 = vand.u32 4294901760, %v4793_v34 }
 0x311   : > { %6294 = vst.msk [vmem:[#allocation2] sm:$0x7f] %vm178_vm1, %v6292_v58  ;;  %v6304_v0 = vpop.permute.xlu1 %6303 }
 0x312   : > { %v3285_v29 = vpop.f32.mrf.mxu0  ;;  %v3307_v27 = vpop.f32.mrf.mxu1  ;;  %6300 = vst.msk [vmem:[#allocation2] sm:$0x7f] %vm186_vm2, %v6298_v10  ;;  %v4846_v49 = vand.u32 4294901760, %v12361_v50 }
 0x313   : > { %v3337_v39 = vpop.f32.mrf.mxu2  ;;  %v3257_v41 = vpop.f32.mrf.mxu3  ;;  %v3308_v11 = vadd.f32 %v3307_v27, %v3282_v30  ;;  %6306 = vst.msk [vmem:[#allocation2] sm:$0x7f] %vm194_vm3, %v6304_v0 }
 0x314   : > { %v3258_v48 = vadd.f32 %v3257_v41, %v3228_v44  ;;  %v4847_v21 = vsub.f32 %v12361_v50, %v4846_v49  ;;  %v12395_v41 = vsub.f32 %v4793_v34, %v12387_v31 }
 0x315   : > { %4441 = vmatmul.f32.gmra.mxu0 %v4440_v1  ;;  %v12354_v24 = vadd.f32 %v3308_v11, %v12241_v46  ;;  %4467 = vmatmul.f32.vlgmr.msra.gmra.mxu1 %v12293_v54 }
 0x316   : > { %v3286_v63 = vadd.f32 %v3285_v29, %v3258_v48  ;;  %4697 = vmatpush.msra.mxu1 %v12282_v18  ;;  %v4848_v52 = vand.u32 4294901760, %v4847_v21 }
 0x317   : > { %4500 = vmatmul.f32.gmra.mxu2 %v12324_v38 }
 0x318   : > { %4524 = vmatmul.f32.vlgmr.msra.gmra.mxu3 %v12315_v2  ;;  %v6310_v17 = vpop.permute.xlu2 %6309  ;;  %v6316_v5 = vpop.permute.xlu0 %6315 }
 0x319   : > { %4755 = vmatpush.msra.mxu3 %v12282_v18  ;;  %6312 = vst.msk [vmem:[#allocation2] sm:$0x7f] %vm202_vm4, %v6310_v17  ;;  %v6322_v40 = vpop.permute.xlu1 %6321 }
 0x31a   : > { %v3399_v16 = vpop.f32.mrf.mxu0  ;;  %v3311_v46 = vpop.f32.mrf.mxu1  ;;  %6318 = vst.msk [vmem:[#allocation2] sm:$0x7f] %vm210_vm5, %v6316_v5 }
 0x31b   : > { %v3345_v43 = vpop.f32.mrf.mxu2  ;;  %v3312_v45 = vadd.f32 %v3311_v46, %v3286_v63  ;;  %v3371_v59 = vpop.f32.mrf.mxu3  ;;  %6324 = vst.msk [vmem:[#allocation2] sm:$0x7f] %vm218_vm6, %v6322_v40  ;;  %v4789_v46 = vsel %vm355_vm8, %v12219_v57, 0 }
 0x31c   : > { %v3372_v26 = vadd.f32 %v3371_v59, %v3337_v39  ;;  %v12391_v39 = vand.u32 4294901760, %v4787_v28  ;;  %v12417_v0 = vand.u32 4294901760, %v4789_v46 }
 0x31d   : > { %4554 = vmatmul.f32.vlgmr.msrb.gmra.mxu0 %v12293_v54  ;;  %v12370_v9 = vadd.f32 %v3312_v45, %v12260_v56  ;;  %4471 = vmatmul.f32.gmra.mxu1 %v12317_v8 }
 0x31e   : > { %4811 = vmatpush.msrb.mxu0 %v12350_v4  ;;  %v3400_v18 = vadd.f32 %v3399_v16, %v3372_v26  ;;  %v12425_v5 = vsub.f32 %v4789_v46, %v12417_v0 }
 0x31f   : > { %4610 = vmatmul.f32.vlgmr.msrb.gmra.mxu2 %v4432_v23 }
 0x320   : > { %4876 = vmatpush.msrb.mxu2 %v12361_v50  ;;  %4530 = vmatmul.f32.gmra.mxu3 %v12335_v20  ;;  %v6328_v61 = vpop.permute.xlu2 %6327 }
 0x321   : > { %6330 = vst.msk [vmem:[#allocation2] sm:$0x7f] %vm226_vm7, %v6328_v61  ;;  %v6334_v11 = vpop.permute.xlu0 %6333 }
 0x322   : > { %v3404_v56 = vpop.f32.mrf.mxu0  ;;  %v3428_v47 = vpop.f32.mrf.mxu1  ;;  %6336 = vst.msk [vmem:[#allocation2 + $0x8] sm:$0x7f] %vm170_vm0, %v6334_v11 }
 0x323   : > { %v3458_v42 = vpop.f32.mrf.mxu2  ;;  %v3375_v44 = vpop.f32.mrf.mxu3  ;;  %v3429_v23 = vadd.f32 %v3428_v47, %v3400_v18 }
 0x324   : > { %v3376_v30 = vadd.f32 %v3375_v44, %v3345_v43  ;;  %v6340_v50 = vpop.permute.xlu1 %6339  ;;  %v5023_v43 = vand.u32 4294901760, %v12395_v41 }
 0x325   : > { %4558 = vmatmul.f32.gmra.mxu0 %v12317_v8  ;;  %v3459_v29 = vadd.f32 %v3458_v42, %v3429_v23  ;;  %4580 = vmatmul.f32.vlgmr.msrb.gmra.mxu1 %v12293_v54  ;;  %6342 = vst.msk [vmem:[#allocation2 + $0x8] sm:$0x7f] %vm178_vm1, %v6340_v50 }
 0x326   : > { %v3405_v27 = vadd.f32 %v3404_v56, %v3376_v30  ;;  %4849 = vmatpush.msrb.mxu1 %v4848_v52  ;;  %v5024_v26 = vsub.f32 %v12395_v41, %v5023_v43 }
 0x327   : > { %4618 = vmatmul.f32.gmra.mxu2 %v4440_v1  ;;  %v12400_v1 = vsub.f32 %v4787_v28, %v12391_v39 }
 0x328   : > { %4644 = vmatmul.f32.vlgmr.msrb.gmra.mxu3 %v12293_v54  ;;  %v5025_v44 = vand.u32 4294901760, %v5024_v26 }
 0x329   : > { %4904 = vmatpush.msrb.mxu3 %v12350_v4  ;;  %v6346_v10 = vpop.permute.xlu2 %6345 }
 0x32a   : > { %v3538_v13 = vpop.f32.mrf.mxu0  ;;  %v3434_v7 = vpop.f32.mrf.mxu1  ;;  %6348 = vst.msk [vmem:[#allocation2 + $0x8] sm:$0x7f] %vm186_vm2, %v6346_v10 }
 0x32b   : > { %v3462_v48 = vpop.f32.mrf.mxu2  ;;  %v3435_v58 = vadd.f32 %v3434_v7, %v3405_v27  ;;  %v3484_v63 = vpop.f32.mrf.mxu3 }
 0x32c   : > { %v3485_v16 = vadd.f32 %v3484_v63, %v3459_v29  ;;  %v6358_v21 = vpop.permute.xlu1 %6357 }
 0x32d   : > { %4672 = vmatmul.f32.vlgmr.msra.gmra.mxu0 %v12300_v35  ;;  %v3463_v45 = vadd.f32 %v3462_v48, %v3435_v58  ;;  %4584 = vmatmul.f32.gmra.mxu1 %v12317_v8  ;;  %v12415_v35 = vand.u32 4294901760, %v12400_v1  ;;  %v5169_v48 = vsel %vm360_vm10, %v12269_v3, 0 }
 0x32e   : > { %4936 = vmatpush.msra.mxu0 %v4846_v49  ;;  %v12410_v59 = vadd.f32 %v3485_v16, %v12303_v32  ;;  %v6352_v49 = vpop.permute.xlu0 %6351  ;;  %v12460_v46 = vand.u32 4294901760, %v5169_v48 }
 0x32f   : > { %4731 = vmatmul.f32.vlgmr.msra.gmra.mxu2 %v12293_v54  ;;  %6354 = vst.msk [vmem:[#allocation2 + $0x8] sm:$0x7f] %vm194_vm3, %v6352_v49  ;;  %v4815_v56 = vsub.f32 %v12400_v1, %v12415_v35 }
 0x330   : > { %4988 = vmatpush.msra.mxu2 %v12387_v31  ;;  %4648 = vmatmul.f32.gmra.mxu3 %v12317_v8  ;;  %6360 = vst.msk [vmem:[#allocation2 + $0x8] sm:$0x7f] %vm202_vm4, %v6358_v21 }
 0x331   : > { %v6364_v47 = vpop.permute.xlu2 %6363  ;;  %v12436_v40 = vand.u32 4294901760, %v4815_v56 }
 0x332   : > { %v3546_v57 = vpop.f32.mrf.mxu0  ;;  %v3572_v17 = vpop.f32.mrf.mxu1  ;;  %6366 = vst.msk [vmem:[#allocation2 + $0x8] sm:$0x7f] %vm210_vm5, %v6364_v47 }
 0x333   : > { %v3600_v18 = vpop.f32.mrf.mxu2  ;;  %v3488_v32 = vpop.f32.mrf.mxu3  ;;  %v3573_v6 = vadd.f32 %v3572_v17, %v3538_v13 }
 0x334   : > { %v3489_v34 = vadd.f32 %v3488_v32, %v3463_v45  ;;  %v12443_v29 = vpop.permute.xlu1 %6433 }
 0x335   : > { %4677 = vmatmul.f32.gmra.mxu0 %v12324_v38  ;;  %v3601_v42 = vadd.f32 %v3600_v18, %v3573_v6  ;;  %4701 = vmatmul.f32.vlgmr.msra.gmra.mxu1 %v12315_v2  ;;  %v12440_v38 = vand.u32 4294901760, %v12425_v5 }
 0x336   : > { %v12432_v23 = vadd.f32 %v3489_v34, %v12327_v53  ;;  %4962 = vmatpush.msra.mxu1 %v12350_v4  ;;  %v6370_v2 = vpop.permute.xlu0 %6369 }
 0x337   : > { %4735 = vmatmul.f32.gmra.mxu2 %v12317_v8  ;;  %6372 = vst.msk [vmem:[#allocation2 + $0x8] sm:$0x7f] %vm218_vm6, %v6370_v2 }
 0x338   : > { %4757 = vmatmul.f32.vlgmr.msra.gmra.mxu3 %v12293_v54  ;;  %v4823_v54 = vsub.f32 %v12425_v5, %v12440_v38 }
 0x339   : > { %5026 = vmatpush.msra.mxu3 %v5025_v44  ;;  %v6376_v27 = vpop.permute.xlu2 %6375 }
 0x33a   : > { %v3659_v30 = vpop.f32.mrf.mxu0  ;;  %v3576_v52 = vpop.f32.mrf.mxu1  ;;  %6378 = vst.msk [vmem:[#allocation2 + $0x8] sm:$0x7f] %vm226_vm7, %v6376_v27  ;;  %v12453_v7 = vand.u32 4294901760, %v4823_v54  ;;  %v6805_v27 = vld [vmem:[#allocation2] sm:$0x7f] }
 0x33b   : > { %v3605_v61 = vpop.f32.mrf.mxu2  ;;  %v3577_v53 = vadd.f32 %v3576_v52, %v3546_v57  ;;  %v3629_v28 = vpop.f32.mrf.mxu3  ;;  %v12471_v57 = vsub.f32 %v5169_v48, %v12460_v46  ;;  %6815 = vrot.lane.b32.xlu1 %v6805_v27, %s10900_s7  ;;  %7193 = vrot.lane.b32.xlu0 %v6805_v27, %s10898_s5 }
 0x33c   : > { %v3630_v4 = vadd.f32 %v3629_v28, %v3601_v42  ;;  %v12458_v10 = vpop.permute.xlu1 %6435  ;;  %v5171_v28 = vsel %vm360_vm10, %v12272_v37, 0  ;;  %v5165_v37 = vsel %vm355_vm8, %v12228_v60, 0 }
 0x33d   : > { %4817 = vmatmul.f32.vlgmr.msrb.gmra.mxu0 %v12436_v40  ;;  %v3606_v13 = vadd.f32 %v3605_v61, %v3577_v53  ;;  %4707 = vmatmul.f32.gmra.mxu1 %v12335_v20  ;;  %v5224_v21 = vand.u32 4294901760, %v12471_v57  ;;  %v12500_v48 = vand.u32 4294901760, %v5171_v28 }
 0x33e   : > { %5053 = vmatpush.msrb.mxu0 %v12395_v41  ;;  %v3660_v11 = vadd.f32 %v3659_v30, %v3630_v4  ;;  %v6382_v63 = vpop.permute.xlu0 %6381 }
 0x33f   : > { %4879 = vmatmul.f32.vlgmr.msrb.gmra.mxu2 %v12400_v1  ;;  %6384 = vst.msk [vmem:[#allocation2 + $0x10] sm:$0x7f] %vm170_vm0, %v6382_v63  ;;  %v5225_v42 = vsub.f32 %v12471_v57, %v5224_v21  ;;  %v12505_v63 = vand.u32 4294901760, %v5165_v37 }
 0x340   : > { %5113 = vmatpush.msrb.mxu2 %v5023_v43  ;;  %4761 = vmatmul.f32.gmra.mxu3 %v12317_v8 }
 0x341   : > { %v6388_v8 = vpop.permute.xlu2 %6387 }
 0x342   : > { %v3663_v58 = vpop.f32.mrf.mxu0  ;;  %v3685_v50 = vpop.f32.mrf.mxu1  ;;  %6390 = vst.msk [vmem:[#allocation2 + $0x10] sm:$0x7f] %vm178_vm1, %v6388_v8 }
 0x343   : > { %v3715_v16 = vpop.f32.mrf.mxu2  ;;  %v3635_v20 = vpop.f32.mrf.mxu3  ;;  %v3686_v41 = vadd.f32 %v3685_v50, %v3660_v11 }
 0x344   : > { %v3636_v43 = vadd.f32 %v3635_v20, %v3606_v13  ;;  %v6400_v6 = vpop.permute.xlu1 %6399  ;;  %v5400_v20 = vsub.f32 %v5171_v28, %v12500_v48 }
 0x345   : > { %4825 = vmatmul.f32.gmra.mxu0 %v12453_v7  ;;  %v12464_v45 = vadd.f32 %v3686_v41, %v12354_v24  ;;  %4851 = vmatmul.f32.vlgmr.msrb.gmra.mxu1 %v12391_v39 }
 0x346   : > { %v3664_v3 = vadd.f32 %v3663_v58, %v3636_v43  ;;  %5081 = vmatpush.msrb.mxu1 %v12387_v31 }
 0x347   : > { %4884 = vmatmul.f32.gmra.mxu2 %v12425_v5 }
 0x348   : > { %4908 = vmatmul.f32.vlgmr.msrb.gmra.mxu3 %v12415_v35  ;;  %v6394_v49 = vpop.permute.xlu0 %6393 }
 0x349   : > { %5139 = vmatpush.msrb.mxu3 %v12387_v31  ;;  %6396 = vst.msk [vmem:[#allocation2 + $0x10] sm:$0x7f] %vm186_vm2, %v6394_v49  ;;  %v6406_v34 = vpop.permute.xlu2 %6405 }
 0x34a   : > { %v3777_v26 = vpop.f32.mrf.mxu0  ;;  %v3689_v24 = vpop.f32.mrf.mxu1  ;;  %6402 = vst.msk [vmem:[#allocation2 + $0x10] sm:$0x7f] %vm194_vm3, %v6400_v6 }
 0x34b   : > { %v3723_v17 = vpop.f32.mrf.mxu2  ;;  %v3690_v18 = vadd.f32 %v3689_v24, %v3664_v3  ;;  %v3749_v32 = vpop.f32.mrf.mxu3  ;;  %6408 = vst.msk [vmem:[#allocation2 + $0x10] sm:$0x7f] %vm202_vm4, %v6406_v34  ;;  %v12513_v3 = vsub.f32 %v5165_v37, %v12505_v63 }
 0x34c   : > { %v3750_v56 = vadd.f32 %v3749_v32, %v3715_v16  ;;  %v6418_v53 = vpop.permute.xlu1 %6417 }
 0x34d   : > { %4938 = vmatmul.f32.vlgmr.msra.gmra.mxu0 %v12391_v39  ;;  %v12480_v47 = vadd.f32 %v3690_v18, %v12370_v9  ;;  %4855 = vmatmul.f32.gmra.mxu1 %v12417_v0 }
 0x34e   : > { %5189 = vmatpush.msra.mxu0 %v12460_v46  ;;  %v3778_v31 = vadd.f32 %v3777_v26, %v3750_v56  ;;  %v5401_v26 = vand.u32 4294901760, %v5400_v20  ;;  %v12533_v56 = vld [vmem:[#allocation2 + $0x8] sm:$0x7f] }
 0x34f   : > { %4994 = vmatmul.f32.vlgmr.msra.gmra.mxu2 %v12436_v40  ;;  %v5226_v40 = vand.u32 4294901760, %v5225_v42  ;;  %6817 = vrot.lane.b32.xlu2 %v12533_v56, %s10900_s7 }
 0x350   : > { %5254 = vmatpush.msra.mxu2 %v12471_v57  ;;  %4914 = vmatmul.f32.gmra.mxu3 %v12440_v38  ;;  %v6412_v30 = vpop.permute.xlu0 %6411 }
 0x351   : > { %6414 = vst.msk [vmem:[#allocation2 + $0x10] sm:$0x7f] %vm210_vm5, %v6412_v30  ;;  %v6424_v54 = vpop.permute.xlu2 %6423 }
 0x352   : > { %v3782_v44 = vpop.f32.mrf.mxu0  ;;  %v3806_v2 = vpop.f32.mrf.mxu1  ;;  %6420 = vst.msk [vmem:[#allocation2 + $0x10] sm:$0x7f] %vm218_vm6, %v6418_v53 }
 0x353   : > { %v3836_v9 = vpop.f32.mrf.mxu2  ;;  %v3753_v52 = vpop.f32.mrf.mxu3  ;;  %v3807_v61 = vadd.f32 %v3806_v2, %v3778_v31  ;;  %6426 = vst.msk [vmem:[#allocation2 + $0x10] sm:$0x7f] %vm226_vm7, %v6424_v54 }
 0x354   : > { %v3754_v4 = vadd.f32 %v3753_v52, %v3723_v17 }
 0x355   : > { %4942 = vmatmul.f32.gmra.mxu0 %v12417_v0  ;;  %v3837_v13 = vadd.f32 %v3836_v9, %v3807_v61  ;;  %4964 = vmatmul.f32.vlgmr.msra.gmra.mxu1 %v12391_v39 }
 0x356   : > { %v3783_v11 = vadd.f32 %v3782_v44, %v3754_v4  ;;  %5227 = vmatpush.msra.mxu1 %v5226_v40 }
 0x357   : > { %5002 = vmatmul.f32.gmra.mxu2 %v12453_v7  ;;  %7189 = vrot.lane.b32.xlu2 %v12146_v62, %s10939_s20 }
 0x358   : > { %5028 = vmatmul.f32.vlgmr.msra.gmra.mxu3 %v12391_v39 }
 0x359   : > { %5282 = vmatpush.msra.mxu3 %v12460_v46 }
 0x35a   : > { %v3912_v58 = vpop.f32.mrf.mxu0  ;;  %v3812_v50 = vpop.f32.mrf.mxu1  ;;  %v12509_v60 = vld [vmem:[#allocation2 + $0x10] sm:$0x7f] }
 0x35b   : > { %v3840_v16 = vpop.f32.mrf.mxu2  ;;  %v3813_v41 = vadd.f32 %v3812_v50, %v3783_v11  ;;  %v3862_v7 = vpop.f32.mrf.mxu3  ;;  %6819 = vrot.lane.b32.xlu1 %v12509_v60, %s10900_s7  ;;  %7197 = vrot.lane.b32.xlu0 %v12509_v60, %s10898_s5 }
 0x35c   : > { %v3863_v43 = vadd.f32 %v3862_v7, %v3837_v13 }
 0x35d   : > { %5056 = vmatmul.f32.vlgmr.msrb.gmra.mxu0 %v12400_v1  ;;  %v3841_v8 = vadd.f32 %v3840_v16, %v3813_v41  ;;  %4968 = vmatmul.f32.gmra.mxu1 %v12417_v0  ;;  %v5167_v1 = vsel %vm355_vm8, %v12246_v25, 0 }
 0x35e   : > { %5314 = vmatpush.msrb.mxu0 %v5224_v21  ;;  %v12516_v57 = vadd.f32 %v3863_v43, %v12410_v59  ;;  %v12528_v59 = vand.u32 4294901760, %v12513_v3  ;;  %v12530_v24 = vand.u32 4294901760, %v5167_v1  ;;  %v5402_v21 = vsub.f32 %v5400_v20, %v5401_v26 }
 0x35f   : > { %5115 = vmatmul.f32.vlgmr.msrb.gmra.mxu2 %v12391_v39  ;;  %7191 = vrot.lane.b32.xlu2 %v12176_v12, %s10939_s20  ;;  %s10945_s20 = smov 88  }
 0x360   : > { %5366 = vmatpush.msrb.mxu2 %v12500_v48  ;;  %5032 = vmatmul.f32.gmra.mxu3 %v12417_v0  ;;  %v5193_v31 = vsub.f32 %v12513_v3, %v12528_v59  ;;  %v12541_v42 = vsub.f32 %v5167_v1, %v12530_v24 }
 0x362   : > { %v3920_v49 = vpop.f32.mrf.mxu0  ;;  %v3946_v17 = vpop.f32.mrf.mxu1  ;;  %v5194_v30 = vand.u32 4294901760, %v5193_v31  ;;  %v8330_v31 = vld [vmem:[%s11026_s28] sm:$0x7f] }
 0x363   : > { %v3974_v18 = vpop.f32.mrf.mxu2  ;;  %v3866_v32 = vpop.f32.mrf.mxu3  ;;  %v3947_v6 = vadd.f32 %v3946_v17, %v3912_v58  ;;  %7195 = vrot.lane.b32.xlu1 %v12533_v56, %s10898_s5  ;;  %7586 = vrot.lane.b32.xlu0 %v6805_v27, %s10895_s29 }
 0x364   : > { %v3867_v25 = vadd.f32 %v3866_v32, %v3841_v8  ;;  %v5549_v32 = vsel %vm360_vm10, %v12288_v15, 0 }
 0x365   : > { %5061 = vmatmul.f32.gmra.mxu0 %v12425_v5  ;;  %v3975_v34 = vadd.f32 %v3974_v18, %v3947_v6  ;;  %5085 = vmatmul.f32.vlgmr.msrb.gmra.mxu1 %v12415_v35  ;;  %v5403_v5 = vand.u32 4294901760, %v5402_v21 }
 0x366   : > { %v12544_v44 = vadd.f32 %v3867_v25, %v12432_v23  ;;  %5340 = vmatpush.msrb.mxu1 %v12460_v46  ;;  %v12553_v23 = vand.u32 4294901760, %v12541_v42 }
 0x367   : > { %5119 = vmatmul.f32.gmra.mxu2 %v12417_v0 }
 0x368   : > { %5141 = vmatmul.f32.vlgmr.msrb.gmra.mxu3 %v12391_v39  ;;  %v5201_v39 = vsub.f32 %v12541_v42, %v12553_v23 }
 0x369   : > { %5404 = vmatpush.msrb.mxu3 %v5403_v5  ;;  %v12597_v5 = vand.u32 4294901760, %v5549_v32 }
 0x36a   : > { %v4033_v35 = vpop.f32.mrf.mxu0  ;;  %v3950_v2 = vpop.f32.mrf.mxu1  ;;  %v5202_v27 = vand.u32 4294901760, %v5201_v39 }
 0x36b   : > { %v3979_v9 = vpop.f32.mrf.mxu2  ;;  %v3951_v52 = vadd.f32 %v3950_v2, %v3920_v49  ;;  %v4003_v46 = vpop.f32.mrf.mxu3  ;;  %7575 = vrot.lane.b32.xlu1 %v12146_v62, %s10940_s25 }
 0x36c   : > { %v4004_v61 = vadd.f32 %v4003_v46, %v3975_v34 }
 0x36d   : > { %5195 = vmatmul.f32.vlgmr.msra.gmra.mxu0 %v5194_v30  ;;  %v3980_v53 = vadd.f32 %v3979_v9, %v3951_v52  ;;  %5091 = vmatmul.f32.gmra.mxu1 %v12440_v38  ;;  %v5547_v38 = vsel %vm360_vm10, %v12285_v22, 0  ;;  %v12612_v52 = vsub.f32 %v5549_v32, %v12597_v5  ;;  %v10697_v32 = vld [vmem:[%s11026_s28 + $0x40] sm:$0x7f] }
 0x36e   : > { %5431 = vmatpush.msra.mxu0 %v5400_v20  ;;  %v4034_v28 = vadd.f32 %v4033_v35, %v4004_v61  ;;  %v12565_v37 = vand.u32 4294901760, %v5547_v38  ;;  %v5543_v35 = vsel %vm355_vm8, %v12312_v33, 0 }
 0x36f   : > { %5257 = vmatmul.f32.vlgmr.msra.gmra.mxu2 %v12513_v3  ;;  %v12608_v2 = vand.u32 4294901760, %v5543_v35 }
 0x370   : > { %5491 = vmatpush.msra.mxu2 %v5401_v26  ;;  %5145 = vmatmul.f32.gmra.mxu3 %v12417_v0  ;;  %v5601_v22 = vsub.f32 %v5547_v38, %v12565_v37 }
 0x371   : > { %v12617_v39 = vsub.f32 %v5543_v35, %v12608_v2 }
 0x372   : > { %v4037_v4 = vpop.f32.mrf.mxu0  ;;  %v4059_v40 = vpop.f32.mrf.mxu1  ;;  %v5602_v7 = vand.u32 4294901760, %v5601_v22 }
 0x373   : > { %v4089_v54 = vpop.f32.mrf.mxu2  ;;  %v4009_v13 = vpop.f32.mrf.mxu3  ;;  %v4060_v11 = vadd.f32 %v4059_v40, %v4034_v28  ;;  %7588 = vrot.lane.b32.xlu1 %v12533_v56, %s10895_s29  ;;  %v10692_v40 = vld [vmem:[%s11026_s28 + $0x18] sm:$0x7f] }
 0x374   : > { %v4010_v58 = vadd.f32 %v4009_v13, %v3980_v53  ;;  %v5603_v1 = vsub.f32 %v5601_v22, %v5602_v7  ;;  %v12636_v13 = vand.u32 4294901760, %v12617_v39 }
 0x375   : > { %5203 = vmatmul.f32.gmra.mxu0 %v5202_v27  ;;  %v12568_v50 = vadd.f32 %v4060_v11, %v12464_v45  ;;  %5229 = vmatmul.f32.vlgmr.msra.gmra.mxu1 %v12505_v63 }
 0x376   : > { %v4038_v62 = vadd.f32 %v4037_v4, %v4010_v58  ;;  %5459 = vmatpush.msra.mxu1 %v12500_v48  ;;  %v5604_v21 = vand.u32 4294901760, %v5603_v1  ;;  %v10691_v4 = vld [vmem:[%s11026_s28 + $0x10] sm:$0x7f] }
 0x377   : > { %5262 = vmatmul.f32.gmra.mxu2 %v12541_v42 }
 0x378   : > { %5286 = vmatmul.f32.vlgmr.msra.gmra.mxu3 %v12528_v59 }
 0x379   : > { %5517 = vmatpush.msra.mxu3 %v12500_v48  ;;  %v7570_v48 = vld [vmem:[%s13718_s1 + $0x18] sm:$0x1] }
 0x37a   : > { %v4151_v0 = vpop.f32.mrf.mxu0  ;;  %v4063_v45 = vpop.f32.mrf.mxu1  ;;  %7581 = vrot.lane.b32.xlu0 %v7570_v48, %s10940_s25 }
 0x37b   : > { %v4097_v16 = vpop.f32.mrf.mxu2  ;;  %v4064_v20 = vadd.f32 %v4063_v45, %v4038_v62  ;;  %v4123_v41 = vpop.f32.mrf.mxu3  ;;  %7590 = vrot.lane.b32.xlu1 %v12509_v60, %s10895_s29 }
 0x37c   : > { %v4124_v43 = vadd.f32 %v4123_v41, %v4089_v54  ;;  %v5779_v54 = vand.u32 4294901760, %v12612_v52 }
 0x37d   : > { %5316 = vmatmul.f32.vlgmr.msrb.gmra.mxu0 %v12505_v63  ;;  %v12581_v8 = vadd.f32 %v4064_v20, %v12480_v47  ;;  %5233 = vmatmul.f32.gmra.mxu1 %v12530_v24  ;;  %v5571_v20 = vsub.f32 %v12617_v39, %v12636_v13 }
 0x37e   : > { %5567 = vmatpush.msrb.mxu0 %v12565_v37  ;;  %v4152_v12 = vadd.f32 %v4151_v0, %v4124_v43  ;;  %v5780_v0 = vsub.f32 %v12612_v52, %v5779_v54  ;;  %v10694_v43 = vld [vmem:[%s11026_s28 + $0x28] sm:$0x7f] }
 0x37f   : > { %5372 = vmatmul.f32.vlgmr.msrb.gmra.mxu2 %v5194_v30  ;;  %v7568_v30 = vld [vmem:[%s13718_s1 + $0x8] sm:$0xff] }
 0x380   : > { %5632 = vmatpush.msrb.mxu2 %v5601_v22  ;;  %5292 = vmatmul.f32.gmra.mxu3 %v12553_v23 }
 0x381   : > { %7577 = vrot.lane.b32.xlu2 %v7568_v30, %s10940_s25 }
 0x382   : > { %v4156_v47 = vpop.f32.mrf.mxu0  ;;  %v4180_v26 = vpop.f32.mrf.mxu1  ;;  %7962 = vrot.lane.b32.xlu0 %v7570_v48, %s10941_s17  ;;  %v5781_v48 = vand.u32 4294901760, %v5780_v0 }
 0x383   : > { %v4210_v49 = vpop.f32.mrf.mxu2  ;;  %v4127_v17 = vpop.f32.mrf.mxu3  ;;  %v4181_v18 = vadd.f32 %v4180_v26, %v4152_v12  ;;  %8332 = vrot.lane.b32.xlu1 %v8330_v31, %s10942_s26  ;;  %v10695_v12 = vld [vmem:[%s11026_s28 + $0x30] sm:$0x7f] }
 0x384   : > { %v4128_v6 = vadd.f32 %v4127_v17, %v4097_v16 }
 0x385   : > { %5320 = vmatmul.f32.gmra.mxu0 %v12530_v24  ;;  %v4211_v25 = vadd.f32 %v4210_v49, %v4181_v18  ;;  %5342 = vmatmul.f32.vlgmr.msrb.gmra.mxu1 %v12505_v63 }
 0x386   : > { %v4157_v34 = vadd.f32 %v4156_v47, %v4128_v6  ;;  %5605 = vmatpush.msrb.mxu1 %v5604_v21  ;;  %v10698_v6 = vld [vmem:[%s11026_s28 + $0x48] sm:$0x7f] }
 0x387   : > { %5380 = vmatmul.f32.gmra.mxu2 %v5202_v27  ;;  %v5545_v27 = vsel %vm355_vm8, %v12332_v14, 0  ;;  %v10690_v21 = vld [vmem:[%s11026_s28 + $0x8] sm:$0x7f] }
 0x388   : > { %5406 = vmatmul.f32.vlgmr.msrb.gmra.mxu3 %v12505_v63  ;;  %v12638_v11 = vand.u32 4294901760, %v5545_v27 }
 0x389   : > { %5660 = vmatpush.msrb.mxu3 %v12565_v37 }
 0x38a   : > { %v4434_v15 = vpop.f32.mrf.mxu0  ;;  %v4186_v33 = vpop.f32.mrf.mxu1  ;;  %8344 = vrot.lane.b32.xlu0 %v10691_v4, %s10943_s6  ;;  %v12647_v41 = vsub.f32 %v5545_v27, %v12638_v11 }
 0x38b   : > { %v4214_v9 = vpop.f32.mrf.mxu2  ;;  %v4187_v46 = vadd.f32 %v4186_v33, %v4157_v34  ;;  %v4236_v61 = vpop.f32.mrf.mxu3  ;;  %8350 = vrot.lane.b32.xlu1 %v10692_v40, %s10944_s10 }
 0x38c   : > { %v4237_v53 = vadd.f32 %v4236_v61, %v4211_v25  ;;  %v5921_v25 = vsel %vm360_vm10, %v11910_v36, 0  ;;  %v10700_v36 = vld [vmem:[%s11026_s28 + $0x58] sm:$0x7f] }
 0x38d   : > { %5434 = vmatmul.f32.vlgmr.msra.gmra.mxu0 %v12513_v3  ;;  %v4215_v28 = vadd.f32 %v4214_v9, %v4187_v46  ;;  %5346 = vmatmul.f32.gmra.mxu1 %v12530_v24  ;;  %v7569_v3 = vld [vmem:[%s13718_s1 + $0x10] sm:$0x1]  ;;  %v10701_v46 = vld [vmem:[%s11026_s28 + $0x60] sm:$0x7f] }
 0x38e   : > { %5692 = vmatpush.msra.mxu0 %v5602_v7  ;;  %v12620_v38 = vadd.f32 %v4237_v53, %v12516_v57  ;;  %7579 = vrot.lane.b32.xlu2 %v7569_v3, %s10940_s25  ;;  %s10946_s25 = smov 8   ;;  %v10693_v53 = vld [vmem:[%s11026_s28 + $0x20] sm:$0x7f] }
 0x38f   : > { %5493 = vmatmul.f32.vlgmr.msra.gmra.mxu2 %v12505_v63 }
 0x390   : > { %5744 = vmatpush.msra.mxu2 %v12597_v5  ;;  %5410 = vmatmul.f32.gmra.mxu3 %v12530_v24 }
 0x392   : > { %v4442_v57 = vpop.f32.mrf.mxu0  ;;  %v4468_v14 = vpop.f32.mrf.mxu1  ;;  %8362 = vrot.lane.b32.xlu0 %v10694_v43, %s10938_s24 }
 0x393   : > { %v4496_v58 = vpop.f32.mrf.mxu2  ;;  %v4240_v62 = vpop.f32.mrf.mxu3  ;;  %v4469_v22 = vadd.f32 %v4468_v14, %v4434_v15  ;;  %8368 = vrot.lane.b32.xlu1 %v10695_v12, %s10945_s20  ;;  %v10703_v14 = vld [vmem:[%s11026_s28 + $0x70] sm:$0x7f] }
 0x394   : > { %v4241_v45 = vadd.f32 %v4240_v62, %v4215_v28  ;;  %v10696_v62 = vld [vmem:[%s11026_s28 + $0x38] sm:$0x7f] }
 0x395   : > { %5439 = vmatmul.f32.gmra.mxu0 %v12541_v42  ;;  %v4497_v16 = vadd.f32 %v4496_v58, %v4469_v22  ;;  %5463 = vmatmul.f32.vlgmr.msra.gmra.mxu1 %v12528_v59  ;;  %v5572_v42 = vand.u32 4294901760, %v5571_v20  ;;  %v12707_v58 = vld [vmem:[%s13718_s1] sm:$0xff] }
 0x396   : > { %v12650_v7 = vadd.f32 %v4241_v45, %v12544_v44  ;;  %5718 = vmatpush.msra.mxu1 %v12565_v37  ;;  %v12660_v37 = vand.u32 4294901760, %v12647_v41  ;;  %7960 = vrot.lane.b32.xlu2 %v7568_v30, %s10941_s17 }
 0x397   : > { %5497 = vmatmul.f32.gmra.mxu2 %v12530_v24 }
 0x398   : > { %5519 = vmatmul.f32.vlgmr.msra.gmra.mxu3 %v12505_v63  ;;  %v5579_v18 = vsub.f32 %v12647_v41, %v12660_v37 }
 0x399   : > { %5782 = vmatpush.msra.mxu3 %v5781_v48  ;;  %v5923_v48 = vsel %vm360_vm10, %v11966_v51, 0 }
 0x39a   : > { %v4555_v59 = vpop.f32.mrf.mxu0  ;;  %v4472_v44 = vpop.f32.mrf.mxu1  ;;  %8380 = vrot.lane.b32.xlu0 %v10697_v32, %s10942_s26  ;;  %v5580_v35 = vand.u32 4294901760, %v5579_v18 }
 0x39b   : > { %v4501_v1 = vpop.f32.mrf.mxu2  ;;  %v4473_v47 = vadd.f32 %v4472_v44, %v4442_v57  ;;  %v4525_v26 = vpop.f32.mrf.mxu3  ;;  %8386 = vrot.lane.b32.xlu1 %v10698_v6, %s10946_s25  ;;  %v10705_v44 = vld [vmem:[%s11026_s28 + $0x80] sm:$0x7f] }
 0x39c   : > { %v4526_v49 = vadd.f32 %v4525_v26, %v4497_v16  ;;  %v12728_v26 = vand.u32 4294901760, %v5923_v48 }
 0x39d   : > { %5573 = vmatmul.f32.vlgmr.msrb.gmra.mxu0 %v5572_v42  ;;  %v4502_v63 = vadd.f32 %v4501_v1, %v4473_v47  ;;  %5469 = vmatmul.f32.gmra.mxu1 %v12553_v23  ;;  %v12724_v1 = vld [vmem:[%s13718_s1 + $0x10] sm:$0x1]  ;;  %v5917_v47 = vsel %vm355_vm8, %v12337_v19, 0 }
 0x39e   : > { %5809 = vmatpush.msrb.mxu0 %v12612_v52  ;;  %v4556_v17 = vadd.f32 %v4555_v59, %v4526_v49  ;;  %8338 = vrot.lane.b32.xlu2 %v10690_v21, %s10946_s25  ;;  %v10699_v49 = vld [vmem:[%s11026_s28 + $0x50] sm:$0x7f]  ;;  %v12739_v6 = vsub.f32 %v5923_v48, %v12728_v26  ;;  %v6429_v48 = vld [vmem:[#allocation2] sm:$0x7f] }
 0x39f   : > { %5635 = vmatmul.f32.vlgmr.msrb.gmra.mxu2 %v12617_v39 }
 0x3a0   : > { %5869 = vmatpush.msrb.mxu2 %v5779_v54  ;;  %5523 = vmatmul.f32.gmra.mxu3 %v12530_v24  ;;  %v12677_v24 = vand.u32 4294901760, %v5921_v25 }
 0x3a2   : > { %v4559_v23 = vpop.f32.mrf.mxu0  ;;  %v4581_v34 = vpop.f32.mrf.mxu1  ;;  %8398 = vrot.lane.b32.xlu0 %v10700_v36, %s10944_s10  ;;  %v12690_v61 = vsub.f32 %v5921_v25, %v12677_v24 }
 0x3a3   : > { %v4611_v31 = vpop.f32.mrf.mxu2  ;;  %v4531_v15 = vpop.f32.mrf.mxu3  ;;  %v4582_v30 = vadd.f32 %v4581_v34, %v4556_v17  ;;  %8404 = vrot.lane.b32.xlu1 %v10701_v46, %s10947_s8 }
 0x3a4   : > { %v4532_v33 = vadd.f32 %v4531_v15, %v4502_v63  ;;  %v5976_v3 = vand.u32 4294901760, %v12690_v61  ;;  %v12735_v63 = vand.u32 4294901760, %v5917_v47  ;;  %v5919_v15 = vsel %vm355_vm8, %v12348_v55, 0 }
 0x3a5   : > { %5581 = vmatmul.f32.gmra.mxu0 %v5580_v35  ;;  %v12680_v9 = vadd.f32 %v4582_v30, %v12568_v50  ;;  %5607 = vmatmul.f32.vlgmr.msrb.gmra.mxu1 %v12608_v2  ;;  %v10702_v30 = vld [vmem:[%s11026_s28 + $0x68] sm:$0x7f] }
 0x3a6   : > { %v4560_v52 = vadd.f32 %v4559_v23, %v4532_v33  ;;  %5837 = vmatpush.msrb.mxu1 %v12597_v5  ;;  %8356 = vrot.lane.b32.xlu2 %v10693_v53, %s10947_s8  ;;  %v12744_v25 = vsub.f32 %v5917_v47, %v12735_v63  ;;  %v6442_v47 = vsel %vm360_vm10, %v6429_v48, 0 }
 0x3a7   : > { %5640 = vmatmul.f32.gmra.mxu2 %v12647_v41 }
 0x3a8   : > { %5664 = vmatmul.f32.vlgmr.msrb.gmra.mxu3 %v12636_v13  ;;  %v12761_v33 = vand.u32 4294901760, %v12744_v25 }
 0x3a9   : > { %5895 = vmatpush.msrb.mxu3 %v12597_v5 }
 0x3aa   : > { %v4673_v50 = vpop.f32.mrf.mxu0  ;;  %v4585_v28 = vpop.f32.mrf.mxu1  ;;  %8416 = vrot.lane.b32.xlu0 %v10703_v14, %s10945_s20  ;;  %v10704_v14 = vld [vmem:[%s11026_s28 + $0x78] sm:$0x7f] }
 0x3ab   : > { %v4619_v4 = vpop.f32.mrf.mxu2  ;;  %v4586_v40 = vadd.f32 %v4585_v28, %v4560_v52  ;;  %v4645_v54 = vpop.f32.mrf.mxu3  ;;  %8480 = vrot.lane.b32.xlu1 %v12707_v58, %s10948_s27  ;;  %v12763_v52 = vand.u32 4294901760, %v5919_v15 }
 0x3ac   : > { %v4646_v27 = vadd.f32 %v4645_v54, %v4611_v31  ;;  %v10707_v31 = vld [vmem:[%s11026_s28 + $0x90] sm:$0x7f] }
 0x3ad   : > { %5694 = vmatmul.f32.vlgmr.msra.gmra.mxu0 %v12608_v2  ;;  %v12699_v57 = vadd.f32 %v4586_v40, %v12581_v8  ;;  %5611 = vmatmul.f32.gmra.mxu1 %v12638_v11  ;;  %v5977_v8 = vsub.f32 %v12690_v61, %v5976_v3  ;;  %v12772_v40 = vsub.f32 %v5919_v15, %v12763_v52 }
 0x3ae   : > { %5941 = vmatpush.msra.mxu0 %v12677_v24  ;;  %v4674_v5 = vadd.f32 %v4673_v50, %v4646_v27  ;;  %8374 = vrot.lane.b32.xlu2 %v10696_v62, %s10949_s4  ;;  %v12779_v27 = vpop.permute.xlu0 %6808 }
 0x3af   : > { %5750 = vmatmul.f32.vlgmr.msra.gmra.mxu2 %v5572_v42  ;;  %v5978_v12 = vand.u32 4294901760, %v5977_v8  ;;  %v12789_v8 = vpop.permute.xlu2 %6817 }
 0x3b0   : > { %6006 = vmatpush.msra.mxu2 %v12690_v61  ;;  %5670 = vmatmul.f32.gmra.mxu3 %v12660_v37 }
 0x3b2   : > { %v4678_v22 = vpop.f32.mrf.mxu0  ;;  %v4702_v0 = vpop.f32.mrf.mxu1  ;;  %8428 = vrot.lane.b32.xlu0 %v10705_v44, %s10942_s26  ;;  %v10706_v44 = vld [vmem:[%s11026_s28 + $0x88] sm:$0x7f] }
 0x3b3   : > { %v4732_v45 = vpop.f32.mrf.mxu2  ;;  %v4649_v16 = vpop.f32.mrf.mxu3  ;;  %v4703_v20 = vadd.f32 %v4702_v0, %v4674_v5  ;;  %8482 = vrot.lane.b32.xlu1 %v12724_v1, %s10948_s27  ;;  %v12794_v0 = vand.u32 4294901760, %v12772_v40 }
 0x3b4   : > { %v4650_v43 = vadd.f32 %v4649_v16, %v4619_v4  ;;  %v5945_v4 = vsub.f32 %v12744_v25, %v12761_v33 }
 0x3b5   : > { %5698 = vmatmul.f32.gmra.mxu0 %v12638_v11  ;;  %v4733_v59 = vadd.f32 %v4732_v45, %v4703_v20  ;;  %5720 = vmatmul.f32.vlgmr.msra.gmra.mxu1 %v12608_v2 }
 0x3b6   : > { %v4679_v42 = vadd.f32 %v4678_v22, %v4650_v43  ;;  %5979 = vmatpush.msra.mxu1 %v5978_v12  ;;  %8392 = vrot.lane.b32.xlu2 %v10699_v49, %s10943_s6  ;;  %v5953_v12 = vsub.f32 %v12772_v40, %v12794_v0 }
 0x3b7   : > { %5758 = vmatmul.f32.gmra.mxu2 %v5580_v35  ;;  %v10708_v35 = vld [vmem:[%s11026_s28 + $0x98] sm:$0x7f]  ;;  %v12813_v49 = vpop.permute.xlu2 %7189 }
 0x3b8   : > { %5784 = vmatmul.f32.vlgmr.msra.gmra.mxu3 %v12608_v2 }
 0x3b9   : > { %6034 = vmatpush.msra.mxu3 %v12677_v24 }
 0x3ba   : > { %v4818_v51 = vpop.f32.mrf.mxu0  ;;  %v4708_v17 = vpop.f32.mrf.mxu1  ;;  %8440 = vrot.lane.b32.xlu0 %v10707_v31, %s10943_s6 }
 0x3bb   : > { %v4736_v18 = vpop.f32.mrf.mxu2  ;;  %v4709_v19 = vadd.f32 %v4708_v17, %v4679_v42  ;;  %v4758_v32 = vpop.f32.mrf.mxu3  ;;  %8446 = vrot.lane.b32.xlu1 %v10708_v35, %s10944_s10 }
 0x3bc   : > { %v4759_v21 = vadd.f32 %v4758_v32, %v4733_v59  ;;  %v12803_v59 = vpop.permute.xlu0 %6810 }
 0x3bd   : > { %5812 = vmatmul.f32.vlgmr.msrb.gmra.mxu0 %v12617_v39  ;;  %v4737_v23 = vadd.f32 %v4736_v18, %v4709_v19  ;;  %5724 = vmatmul.f32.gmra.mxu1 %v12638_v11  ;;  %v6153_v39 = vand.u32 4294901760, %v12739_v6  ;;  %v5954_v19 = vand.u32 4294901760, %v5953_v12 }
 0x3be   : > { %6066 = vmatpush.msrb.mxu0 %v5976_v3  ;;  %v12747_v34 = vadd.f32 %v4759_v21, %v12620_v38  ;;  %8410 = vrot.lane.b32.xlu2 %v10702_v30, %s10938_s24  ;;  %v10711_v3 = vld [vmem:[%s11026_s28 + $0xb0] sm:$0x7f]  ;;  %v12816_v21 = vand.u32 4294901760, %v6442_v47  ;;  %v10709_v30 = vld [vmem:[%s11026_s28 + $0xa0] sm:$0x7f] }
 0x3bf   : > { %5871 = vmatmul.f32.vlgmr.msrb.gmra.mxu2 %v12608_v2  ;;  %v6154_v50 = vsub.f32 %v12739_v6, %v6153_v39 }
 0x3c0   : > { %6118 = vmatpush.msrb.mxu2 %v12728_v26  ;;  %5788 = vmatmul.f32.gmra.mxu3 %v12638_v11  ;;  %v12827_v15 = vsub.f32 %v6442_v47, %v12816_v21 }
 0x3c1   : > { %v6155_v5 = vand.u32 4294901760, %v6154_v50  ;;  %v12835_v50 = vpop.permute.xlu2 %7191 }
 0x3c2   : > { %v4826_v38 = vpop.f32.mrf.mxu0  ;;  %v4852_v36 = vpop.f32.mrf.mxu1 }
 0x3c3   : > { %v4880_v55 = vpop.f32.mrf.mxu2  ;;  %v4762_v46 = vpop.f32.mrf.mxu3  ;;  %v4853_v61 = vadd.f32 %v4852_v36, %v4818_v51  ;;  %8464 = vrot.lane.b32.xlu1 %v10711_v3, %s10945_s20 }
 0x3c4   : > { %v4763_v53 = vadd.f32 %v4762_v46, %v4737_v23  ;;  %v7194_v35 = vpop.permute.xlu0 %7193 }
 0x3c5   : > { %5817 = vmatmul.f32.gmra.mxu0 %v12647_v41  ;;  %v4881_v28 = vadd.f32 %v4880_v55, %v4853_v61  ;;  %5841 = vmatmul.f32.vlgmr.msrb.gmra.mxu1 %v12636_v13  ;;  %v10710_v41 = vld [vmem:[%s11026_s28 + $0xa8] sm:$0x7f]  ;;  %v12783_v13 = vpop.permute.xlu1 %6815 }
 0x3c6   : > { %v12775_v54 = vadd.f32 %v4763_v53, %v12650_v7  ;;  %6092 = vmatpush.msrb.mxu1 %v12677_v24  ;;  %8458 = vrot.lane.b32.xlu0 %v10710_v41, %s10938_s24  ;;  %v12791_v24 = vand.u32 4294901760, %v5945_v4  ;;  %s10950_s24 = smov 65  }
 0x3c7   : > { %5875 = vmatmul.f32.gmra.mxu2 %v12638_v11  ;;  %8422 = vrot.lane.b32.xlu2 %v10704_v14, %s10949_s4  ;;  %v6430_v14 = vld [vmem:[#allocation2 + $0x8] sm:$0x7f] }
 0x3c8   : > { %5897 = vmatmul.f32.vlgmr.msrb.gmra.mxu3 %v12608_v2 }
 0x3c9   : > { %6156 = vmatpush.msrb.mxu3 %v6155_v5 }
 0x3ca   : > { %v4939_v7 = vpop.f32.mrf.mxu0  ;;  %v4856_v62 = vpop.f32.mrf.mxu1 }
 0x3cb   : > { %v4885_v22 = vpop.f32.mrf.mxu2  ;;  %v4857_v45 = vadd.f32 %v4856_v62, %v4826_v38  ;;  %v4909_v16 = vpop.f32.mrf.mxu3 }
 0x3cc   : > { %v4910_v2 = vadd.f32 %v4909_v16, %v4881_v28 }
 0x3cd   : > { %5947 = vmatmul.f32.vlgmr.msra.gmra.mxu0 %v12791_v24  ;;  %v4886_v20 = vadd.f32 %v4885_v22, %v4857_v45  ;;  %5847 = vmatmul.f32.gmra.mxu1 %v12660_v37  ;;  %v6820_v42 = vpop.permute.xlu1 %6819  ;;  %v7198_v41 = vpop.permute.xlu0 %7197 }
 0x3ce   : > { %6183 = vmatpush.msra.mxu0 %v12739_v6  ;;  %v4940_v43 = vadd.f32 %v4939_v7, %v4910_v2  ;;  %8855 = vrot.lane.b32.xlu0 %v12707_v58, %s10950_s24  ;;  %v12811_v51 = vsel %vm352_vm9, %v12789_v8, %v6820_v42  ;;  %v10712_v7 = vld [vmem:[%s11026_s28 + $0xb8] sm:$0x7f] }
 0x3cf   : > { %6009 = vmatmul.f32.vlgmr.msra.gmra.mxu2 %v12744_v25  ;;  %8434 = vrot.lane.b32.xlu2 %v10706_v44, %s10946_s25  ;;  %s161_s25 = sand.u32 1, %s10885_s13  }
 0x3d0   : > { %6243 = vmatpush.msra.mxu2 %v6153_v39  ;;  %5901 = vmatmul.f32.gmra.mxu3 %v12638_v11  ;;  %s10518_s16 = scalar_lea.sflag [#allocation4], %s161_s25 }
 0x3d2   : > { %v4943_v37 = vpop.f32.mrf.mxu0  ;;  %v4965_v17 = vpop.f32.mrf.mxu1 }
 0x3d3   : > { %v4995_v18 = vpop.f32.mrf.mxu2  ;;  %v4915_v32 = vpop.f32.mrf.mxu3  ;;  %v4966_v6 = vadd.f32 %v4965_v17, %v4940_v43  ;;  %v6445_v43 = vsel %vm360_vm10, %v6430_v14, 0 }
 0x3d4   : > { %v4916_v11 = vadd.f32 %v4915_v32, %v4886_v20  ;;  %v12861_v47 = vand.u32 4294901760, %v6445_v43 }
 0x3d5   : > { %5955 = vmatmul.f32.gmra.mxu0 %v5954_v19  ;;  %v12819_v23 = vadd.f32 %v4966_v6, %v12680_v9  ;;  %5981 = vmatmul.f32.vlgmr.msra.gmra.mxu1 %v12735_v63  ;;  %v7196_v9 = vpop.permute.xlu1 %7195  ;;  %v7587_v17 = vpop.permute.xlu0 %7586 }
 0x3d6   : > { %v4944_v31 = vadd.f32 %v4943_v37, %v4916_v11  ;;  %6211 = vmatpush.msra.mxu1 %v12728_v26  ;;  %8857 = vrot.lane.b32.xlu0 %v12724_v1, %s10950_s24  ;;  %v12832_v55 = vsel %vm1091_vm11, %v7194_v35, %v7196_v9  ;;  %v12847_v3 = vsel %vm1091_vm11, %v7196_v9, %v7198_v41  ;;  %v6437_v37 = vsel %vm355_vm8, %v12443_v29, 0 }
 0x3d7   : > { %6014 = vmatmul.f32.gmra.mxu2 %v12772_v40  ;;  %8452 = vrot.lane.b32.xlu2 %v10709_v30, %s10947_s8  ;;  %v12865_v6 = vand.u32 4294901760, %v6437_v37  ;;  %v6674_v29 = vsub.f32 %v6445_v43, %v12861_v47  ;;  %s10596_s8 = sshll.u32 %s161_s25, 1 }
 0x3d8   : > { %6038 = vmatmul.f32.vlgmr.msra.gmra.mxu3 %v12761_v33  ;;  %s163_s19 = scalar_lea.vmem [#allocation3], %s10596_s8 }
 0x3d9   : > { %6269 = vmatpush.msra.mxu3 %v12728_v26  ;;  %v6498_v26 = vand.u32 4294901760, %v12827_v15  ;;  %s10530_s30 = sshll.u32 %s163_s19, 4  ;;  %s10531_s30 = int_to_ptr.vmem [resolvable:$true] %s10530_s30 }
 0x3da   : > { %v5057_v39 = vpop.f32.mrf.mxu0  ;;  %v4969_v38 = vpop.f32.mrf.mxu1 }
 0x3db   : > { %v5003_v36 = vpop.f32.mrf.mxu2  ;;  %v4970_v46 = vadd.f32 %v4969_v38, %v4944_v31  ;;  %v5029_v61 = vpop.f32.mrf.mxu3  ;;  %v6499_v5 = vsub.f32 %v12827_v15, %v6498_v26  ;;  %v12874_v38 = vsub.f32 %v6437_v37, %v12865_v6 }
 0x3dc   : > { %v5030_v53 = vadd.f32 %v5029_v61, %v4995_v18  ;;  %v7578_v12 = vpop.permute.xlu2 %7577  ;;  %v6675_v61 = vand.u32 4294901760, %v6674_v29 }
 0x3dd   : > { %6068 = vmatmul.f32.vlgmr.msrb.gmra.mxu0 %v12735_v63  ;;  %v12840_v28 = vadd.f32 %v4970_v46, %v12699_v57  ;;  %5985 = vmatmul.f32.gmra.mxu1 %v12763_v52  ;;  %v7576_v62 = vpop.permute.xlu1 %7575  ;;  %v6500_v20 = vand.u32 4294901760, %v6499_v5  ;;  %v6439_v46 = vsel %vm355_vm8, %v12458_v10, 0 }
 0x3de   : > { %6463 = vmatpush.msrb.mxu0 %v12816_v21  ;;  %v5058_v4 = vadd.f32 %v5057_v39, %v5030_v53  ;;  %v12857_v42 = vsel %vm7583_vm13, %v7576_v62, %v7578_v12  ;;  %v6676_v10 = vsub.f32 %v6674_v29, %v6675_v61 }
 0x3df   : > { %6124 = vmatmul.f32.vlgmr.msrb.gmra.mxu2 %v12791_v24  ;;  %8470 = vrot.lane.b32.xlu2 %v10712_v7, %s10949_s4  ;;  %s10528_s4 = scalar_lea.hbm %s13720_s3, %s10716_s9 }
 0x3e0   : > { %6528 = vmatpush.msrb.mxu2 %v12827_v15  ;;  %6044 = vmatmul.f32.gmra.mxu3 %v12794_v0  ;;  %s10532_s24 = sshll.u32 %s10528_s4, 4  ;;  %s10533_s24 = int_to_ptr.hbm [resolvable:$true] %s10532_s24 }
 0x3e1   : > { %s10845_s28 = sshra.s32 %s10533_s24, 4  ;;  %s10846_s28 = int_to_ptr.hbm [resolvable:$true] %s10845_s28 }
 0x3e2   : > { %v5062_v57 = vpop.f32.mrf.mxu0  ;;  %v5086_v22 = vpop.f32.mrf.mxu1  ;;  %p10852_p0 = scmp.lt.s32.totalorder %s10846_s28, %s13720_s3 }
 0x3e3   : > { %v5116_v45 = vpop.f32.mrf.mxu2  ;;  %v5033_v24 = vpop.f32.mrf.mxu3  ;;  %v5087_v16 = vadd.f32 %v5086_v22, %v5058_v4  ;;  %v12887_v4 = vand.u32 4294901760, %v6439_v46 }
 0x3e4   : > { %v5034_v2 = vadd.f32 %v5033_v24, %v5003_v36 }
 0x3e5   : > { %6072 = vmatmul.f32.gmra.mxu0 %v12763_v52  ;;  %v5117_v48 = vadd.f32 %v5116_v45, %v5087_v16  ;;  %6094 = vmatmul.f32.vlgmr.msrb.gmra.mxu1 %v12735_v63  ;;  %v7589_v32 = vpop.permute.xlu1 %7588 }
 0x3e6   : > { %v5063_v44 = vadd.f32 %v5062_v57, %v5034_v2  ;;  %6501 = vmatpush.msrb.mxu1 %v6500_v20  ;;  %v12868_v35 = vsel %vm1470_vm12, %v7587_v17, %v7589_v32  ;;  %v12902_v2 = vsub.f32 %v6439_v46, %v12887_v4 }
 0x3e7   : > { %6132 = vmatmul.f32.gmra.mxu2 %v5954_v19 }
 0x3e8   : > { %6158 = vmatmul.f32.vlgmr.msrb.gmra.mxu3 %v12735_v63  ;;  %v7580_v9 = vpop.permute.xlu2 %7579  ;;  %v12915_v37 = vand.u32 4294901760, %v12902_v2 }
 0x3e9   : > { %6556 = vmatpush.msrb.mxu3 %v12816_v21 }
 0x3ea   : > { %v5196_v18 = vpop.f32.mrf.mxu0  ;;  %v5092_v11 = vpop.f32.mrf.mxu1 }
 0x3eb   : > { %v5120_v31 = vpop.f32.mrf.mxu2  ;;  %v5093_v19 = vadd.f32 %v5092_v11, %v5063_v44  ;;  %v5142_v15 = vpop.f32.mrf.mxu3  ;;  %v6821_v11 = vsel %vm352_vm9, %v12783_v13, %v12789_v8 }
 0x3ec   : > { %v5143_v39 = vadd.f32 %v5142_v15, %v5117_v48  ;;  %v7582_v53 = vpop.permute.xlu0 %7581  ;;  %v6827_v15 = vsel %vm360_vm10, %v6821_v11, 0  ;;  %v6829_v11 = vsel %vm360_vm10, %v12811_v51, 0 }
 0x3ed   : > { %6186 = vmatmul.f32.vlgmr.msra.gmra.mxu0 %v12744_v25  ;;  %v5121_v30 = vadd.f32 %v5120_v31, %v5093_v19  ;;  %6098 = vmatmul.f32.gmra.mxu1 %v12763_v52  ;;  %v12890_v5 = vsel %vm7583_vm13, %v7580_v9, %v7582_v53  ;;  %v7591_v14 = vpop.permute.xlu1 %7590  ;;  %v6475_v19 = vsub.f32 %v12902_v2, %v12915_v37 }
 0x3ee   : > { %6588 = vmatpush.msra.mxu0 %v6498_v26  ;;  %v12877_v36 = vadd.f32 %v5143_v39, %v12747_v34  ;;  %v12885_v26 = vand.u32 4294901760, %v12874_v38  ;;  %v12894_v22 = vsel %vm1470_vm12, %v7589_v32, %v7591_v14 }
 0x3ef   : > { %6245 = vmatmul.f32.vlgmr.msra.gmra.mxu2 %v12735_v63 }
 0x3f0   : > { %6640 = vmatpush.msra.mxu2 %v12861_v47  ;;  %6162 = vmatmul.f32.gmra.mxu3 %v12763_v52  ;;  %v12896_v45 = vpop.permute.xlu2 %7960  ;;  %v6467_v16 = vsub.f32 %v12874_v38, %v12885_v26 }
 0x3f2   : > { %v5204_v25 = vpop.f32.mrf.mxu0  ;;  %v5230_v41 = vpop.f32.mrf.mxu1 }
 0x3f3   : > { %v5258_v34 = vpop.f32.mrf.mxu2  ;;  %v5146_v7 = vpop.f32.mrf.mxu3  ;;  %v5231_v57 = vadd.f32 %v5230_v41, %v5196_v18 }
 0x3f4   : > { %v5147_v62 = vadd.f32 %v5146_v7, %v5121_v30  ;;  %v12910_v12 = vpop.permute.xlu0 %7962  ;;  %v6476_v30 = vand.u32 4294901760, %v6475_v19 }
 0x3f5   : > { %6191 = vmatmul.f32.gmra.mxu0 %v12772_v40  ;;  %v5259_v24 = vadd.f32 %v5258_v34, %v5231_v57  ;;  %6215 = vmatmul.f32.vlgmr.msra.gmra.mxu1 %v12761_v33  ;;  %v6677_v40 = vand.u32 4294901760, %v6676_v10  ;;  %v12912_v33 = vand.u32 4294901760, %v6467_v16  ;;  %v8333_v18 = vpop.permute.xlu1 %8332 }
 0x3f6   : > { %v12905_v20 = vadd.f32 %v5147_v62, %v12775_v54  ;;  %6614 = vmatpush.msra.mxu1 %v12816_v21  ;;  %8335 = vst.msk [vmem:[#allocation2] sm:$0x7f] %vm170_vm0, %v8333_v18 }
 0x3f7   : > { %6249 = vmatmul.f32.gmra.mxu2 %v12763_v52 }
 0x3f8   : > { %6271 = vmatmul.f32.vlgmr.msra.gmra.mxu3 %v12735_v63  ;;  %v8339_v63 = vpop.permute.xlu2 %8338 }
 0x3f9   : > { %6678 = vmatpush.msra.mxu3 %v6677_v40  ;;  %8341 = vst.msk [vmem:[#allocation2] sm:$0x7f] %vm178_vm1, %v8339_v63 }
 0x3fa   : > { %v5317_v43 = vpop.f32.mrf.mxu0  ;;  %v5234_v48 = vpop.f32.mrf.mxu1 }
 0x3fb   : > { %v5263_v44 = vpop.f32.mrf.mxu2  ;;  %v5235_v54 = vadd.f32 %v5234_v48, %v5204_v25  ;;  %v5287_v17 = vpop.f32.mrf.mxu3  ;;  %v12930_v25 = vand.u32 4294901760, %v6827_v15 }
 0x3fc   : > { %v5288_v21 = vadd.f32 %v5287_v17, %v5259_v24 }
 0x3fd   : > { %6469 = vmatmul.f32.vlgmr.msrb.gmra.mxu0 %v12912_v33  ;;  %v5264_v32 = vadd.f32 %v5263_v44, %v5235_v54  ;;  %6221 = vmatmul.f32.gmra.mxu1 %v12794_v0  ;;  %v8345_v0 = vpop.permute.xlu0 %8344  ;;  %v8351_v8 = vpop.permute.xlu1 %8350  ;;  %v12941_v34 = vsub.f32 %v6827_v15, %v12930_v25  ;;  %v6823_v15 = vsel %vm355_vm8, %v12779_v27, 0 }
 0x3fe   : > { %6705 = vmatpush.msrb.mxu0 %v6674_v29  ;;  %v5318_v31 = vadd.f32 %v5317_v43, %v5288_v21  ;;  %8347 = vst.msk [vmem:[#allocation2] sm:$0x7f] %vm186_vm2, %v8345_v0  ;;  %v12970_v51 = vand.u32 4294901760, %v6823_v15 }
 0x3ff   : > { %6531 = vmatmul.f32.vlgmr.msrb.gmra.mxu2 %v12874_v38  ;;  %8353 = vst.msk [vmem:[#allocation2] sm:$0x7f] %vm194_vm3, %v8351_v8  ;;  %v6882_v16 = vand.u32 4294901760, %v12941_v34 }
 0x400   : > { %6765 = vmatpush.msrb.mxu2 %v6675_v61  ;;  %6275 = vmatmul.f32.gmra.mxu3 %v12763_v52  ;;  %v8357_v61 = vpop.permute.xlu2 %8356 }
 0x401   : > { %8359 = vst.msk [vmem:[#allocation2] sm:$0x7f] %vm202_vm4, %v8357_v61  ;;  %v6883_v44 = vsub.f32 %v12941_v34, %v6882_v16 }
 0x402   : > { %v5321_v39 = vpop.f32.mrf.mxu0  ;;  %v5343_v29 = vpop.f32.mrf.mxu1 }
 0x403   : > { %v5373_v9 = vpop.f32.mrf.mxu2  ;;  %v5293_v46 = vpop.f32.mrf.mxu3  ;;  %v5344_v13 = vadd.f32 %v5343_v29, %v5318_v31  ;;  %v12968_v29 = vand.u32 4294901760, %v6829_v11 }
 0x404   : > { %v5294_v53 = vadd.f32 %v5293_v46, %v5264_v32 }
 0x405   : > { %6477 = vmatmul.f32.gmra.mxu0 %v6476_v30  ;;  %v12934_v52 = vadd.f32 %v5344_v13, %v12819_v23  ;;  %6503 = vmatmul.f32.vlgmr.msrb.gmra.mxu1 %v12865_v6  ;;  %v8363_v57 = vpop.permute.xlu0 %8362  ;;  %v8369_v24 = vpop.permute.xlu1 %8368  ;;  %v12976_v8 = vsub.f32 %v6829_v11, %v12968_v29 }
 0x406   : > { %v5322_v41 = vadd.f32 %v5321_v39, %v5294_v53  ;;  %6733 = vmatpush.msrb.mxu1 %v12861_v47  ;;  %8365 = vst.msk [vmem:[#allocation2] sm:$0x7f] %vm210_vm5, %v8363_v57  ;;  %v6825_v57 = vsel %vm355_vm8, %v12803_v59, 0 }
 0x407   : > { %6536 = vmatmul.f32.gmra.mxu2 %v12902_v2  ;;  %8371 = vst.msk [vmem:[#allocation2] sm:$0x7f] %vm218_vm6, %v8369_v24 }
 0x408   : > { %6560 = vmatmul.f32.vlgmr.msrb.gmra.mxu3 %v12885_v26  ;;  %v8375_v43 = vpop.permute.xlu2 %8374 }
 0x409   : > { %6791 = vmatpush.msrb.mxu3 %v12861_v47  ;;  %8377 = vst.msk [vmem:[#allocation2] sm:$0x7f] %vm226_vm7, %v8375_v43 }
 0x40a   : > { %v5435_v7 = vpop.f32.mrf.mxu0  ;;  %v5347_v23 = vpop.f32.mrf.mxu1 }
 0x40b   : > { %v5381_v10 = vpop.f32.mrf.mxu2  ;;  %v5348_v14 = vadd.f32 %v5347_v23, %v5322_v41  ;;  %v5407_v62 = vpop.f32.mrf.mxu3  ;;  %v12979_v41 = vsub.f32 %v6823_v15, %v12970_v51 }
 0x40c   : > { %v5408_v40 = vadd.f32 %v5407_v62, %v5373_v9  ;;  %v12996_v62 = vand.u32 4294901760, %v6825_v57 }
 0x40d   : > { %6590 = vmatmul.f32.vlgmr.msra.gmra.mxu0 %v12865_v6  ;;  %v12950_v48 = vadd.f32 %v5348_v14, %v12840_v28  ;;  %6507 = vmatmul.f32.gmra.mxu1 %v12887_v4  ;;  %v8381_v17 = vpop.permute.xlu0 %8380  ;;  %v8387_v32 = vpop.permute.xlu1 %8386  ;;  %v7059_v14 = vand.u32 4294901760, %v12976_v8 }
 0x40e   : > { %6847 = vmatpush.msra.mxu0 %v12930_v25  ;;  %v5436_v47 = vadd.f32 %v5435_v7, %v5408_v40  ;;  %8383 = vst.msk [vmem:[#allocation2 + $0x8] sm:$0x7f] %vm170_vm0, %v8381_v17  ;;  %v13006_v17 = vsub.f32 %v6825_v57, %v12996_v62 }
 0x40f   : > { %6646 = vmatmul.f32.vlgmr.msra.gmra.mxu2 %v12912_v33  ;;  %v6884_v33 = vand.u32 4294901760, %v6883_v44  ;;  %8389 = vst.msk [vmem:[#allocation2 + $0x8] sm:$0x7f] %vm178_vm1, %v8387_v32 }
 0x410   : > { %6912 = vmatpush.msra.mxu2 %v12941_v34  ;;  %6566 = vmatmul.f32.gmra.mxu3 %v12915_v37  ;;  %v8393_v19 = vpop.permute.xlu2 %8392 }
 0x411   : > { %8395 = vst.msk [vmem:[#allocation2 + $0x8] sm:$0x7f] %vm186_vm2, %v8393_v19 }
 0x412   : > { %v5440_v54 = vpop.f32.mrf.mxu0  ;;  %v5464_v18 = vpop.f32.mrf.mxu1 }
 0x413   : > { %v5494_v28 = vpop.f32.mrf.mxu2  ;;  %v5411_v21 = vpop.f32.mrf.mxu3  ;;  %v5465_v63 = vadd.f32 %v5464_v18, %v5436_v47  ;;  %v7060_v47 = vsub.f32 %v12976_v8, %v7059_v14 }
 0x414   : > { %v5412_v31 = vadd.f32 %v5411_v21, %v5381_v10 }
 0x415   : > { %6594 = vmatmul.f32.gmra.mxu0 %v12887_v4  ;;  %v5495_v39 = vadd.f32 %v5494_v28, %v5465_v63  ;;  %6616 = vmatmul.f32.vlgmr.msra.gmra.mxu1 %v12865_v6  ;;  %v8399_v46 = vpop.permute.xlu0 %8398  ;;  %v7061_v32 = vand.u32 4294901760, %v7060_v47 }
 0x416   : > { %v5441_v0 = vadd.f32 %v5440_v54, %v5412_v31  ;;  %6885 = vmatpush.msra.mxu1 %v6884_v33  ;;  %8401 = vst.msk [vmem:[#allocation2 + $0x8] sm:$0x7f] %vm194_vm3, %v8399_v46 }
 0x417   : > { %6654 = vmatmul.f32.gmra.mxu2 %v6476_v30  ;;  %v8405_v30 = vpop.permute.xlu1 %8404 }
 0x418   : > { %6680 = vmatmul.f32.vlgmr.msra.gmra.mxu3 %v12865_v6  ;;  %8407 = vst.msk [vmem:[#allocation2 + $0x8] sm:$0x7f] %vm202_vm4, %v8405_v30  ;;  %v8411_v7 = vpop.permute.xlu2 %8410 }
 0x419   : > { %6940 = vmatpush.msra.mxu3 %v12930_v25  ;;  %8413 = vst.msk [vmem:[#allocation2 + $0x8] sm:$0x7f] %vm210_vm5, %v8411_v7 }
 0x41a   : > { %v5574_v9 = vpop.f32.mrf.mxu0  ;;  %v5470_v13 = vpop.f32.mrf.mxu1 }
 0x41b   : > { %v5498_v27 = vpop.f32.mrf.mxu2  ;;  %v5471_v53 = vadd.f32 %v5470_v13, %v5441_v0  ;;  %v5520_v61 = vpop.f32.mrf.mxu3 }
 0x41c   : > { %v5521_v34 = vadd.f32 %v5520_v61, %v5495_v39 }
 0x41d   : > { %6708 = vmatmul.f32.vlgmr.msrb.gmra.mxu0 %v12874_v38  ;;  %v5499_v23 = vadd.f32 %v5498_v27, %v5471_v53  ;;  %6620 = vmatmul.f32.gmra.mxu1 %v12887_v4  ;;  %v12994_v38 = vand.u32 4294901760, %v12979_v41  ;;  %v8417_v24 = vpop.permute.xlu0 %8416  ;;  %v7205_v27 = vsel %vm360_vm10, %v12832_v55, 0 }
 0x41e   : > { %6972 = vmatpush.msrb.mxu0 %v6882_v16  ;;  %v12988_v10 = vadd.f32 %v5521_v34, %v12877_v36  ;;  %8419 = vst.msk [vmem:[#allocation2 + $0x8] sm:$0x7f] %vm218_vm6, %v8417_v24  ;;  %v13036_v57 = vand.u32 4294901760, %v7205_v27 }
 0x41f   : > { %6767 = vmatmul.f32.vlgmr.msrb.gmra.mxu2 %v12865_v6  ;;  %v13001_v44 = vpop.permute.xlu1 %8480  ;;  %v6851_v54 = vsub.f32 %v12979_v41, %v12994_v38 }
 0x420   : > { %7024 = vmatpush.msrb.mxu2 %v12968_v29  ;;  %6684 = vmatmul.f32.gmra.mxu3 %v12887_v4 }
 0x421   : > { %v8423_v28 = vpop.permute.xlu2 %8422  ;;  %v13016_v11 = vand.u32 4294901760, %v6851_v54 }
 0x422   : > { %v5582_v59 = vpop.f32.mrf.mxu0  ;;  %v5608_v16 = vpop.f32.mrf.mxu1  ;;  %8425 = vst.msk [vmem:[#allocation2 + $0x8] sm:$0x7f] %vm226_vm7, %v8423_v28 }
 0x423   : > { %v5636_v40 = vpop.f32.mrf.mxu2  ;;  %v5524_v36 = vpop.f32.mrf.mxu3  ;;  %v5609_v43 = vadd.f32 %v5608_v16, %v5574_v9 }
 0x424   : > { %v5525_v18 = vadd.f32 %v5524_v36, %v5499_v23 }
 0x425   : > { %6713 = vmatmul.f32.gmra.mxu0 %v12902_v2  ;;  %v5637_v21 = vadd.f32 %v5636_v40, %v5609_v43  ;;  %6737 = vmatmul.f32.vlgmr.msrb.gmra.mxu1 %v12885_v26  ;;  %v13020_v2 = vand.u32 4294901760, %v13006_v17  ;;  %v8429_v26 = vpop.permute.xlu0 %8428 }
 0x426   : > { %v13012_v63 = vadd.f32 %v5525_v18, %v12905_v20  ;;  %6998 = vmatpush.msrb.mxu1 %v12930_v25  ;;  %8431 = vst.msk [vmem:[#allocation2 + $0x10] sm:$0x7f] %vm170_vm0, %v8429_v26 }
 0x427   : > { %6771 = vmatmul.f32.gmra.mxu2 %v12887_v4  ;;  %v13023_v25 = vpop.permute.xlu1 %8482 }
 0x428   : > { %6793 = vmatmul.f32.vlgmr.msrb.gmra.mxu3 %v12865_v6  ;;  %v6859_v6 = vsub.f32 %v13006_v17, %v13020_v2 }
 0x429   : > { %7062 = vmatpush.msrb.mxu3 %v7061_v32  ;;  %v8435_v0 = vpop.permute.xlu2 %8434 }
 0x42a   : > { %v5695_v31 = vpop.f32.mrf.mxu0  ;;  %v5612_v33 = vpop.f32.mrf.mxu1  ;;  %8437 = vst.msk [vmem:[#allocation2 + $0x10] sm:$0x7f] %vm178_vm1, %v8435_v0  ;;  %v6860_v13 = vand.u32 4294901760, %v6859_v6 }
 0x42b   : > { %v5641_v19 = vpop.f32.mrf.mxu2  ;;  %v5613_v20 = vadd.f32 %v5612_v33, %v5582_v59  ;;  %v5665_v15 = vpop.f32.mrf.mxu3  ;;  %v7259_v59 = vsub.f32 %v7205_v27, %v13036_v57 }
 0x42c   : > { %v5666_v39 = vadd.f32 %v5665_v15, %v5637_v21  ;;  %v13052_v21 = vld [vmem:[#allocation2] sm:$0x7f]  ;;  %v7207_v15 = vsel %vm360_vm10, %v12847_v3, 0 }
 0x42d   : > { %6853 = vmatmul.f32.vlgmr.msra.gmra.mxu0 %v13016_v11  ;;  %v5642_v9 = vadd.f32 %v5641_v19, %v5613_v20  ;;  %6743 = vmatmul.f32.gmra.mxu1 %v12915_v37  ;;  %v8441_v61 = vpop.permute.xlu0 %8440  ;;  %v7260_v54 = vand.u32 4294901760, %v7259_v59  ;;  %v13074_v27 = vand.u32 4294901760, %v7207_v15 }
 0x42e   : > { %7089 = vmatpush.msra.mxu0 %v12976_v8  ;;  %v5696_v46 = vadd.f32 %v5695_v31, %v5666_v39  ;;  %8443 = vst.msk [vmem:[#allocation2 + $0x10] sm:$0x7f] %vm186_vm2, %v8441_v61  ;;  %9240 = vrot.lane.b32.xlu0 %v13052_v21, %s10898_s5 }
 0x42f   : > { %6915 = vmatmul.f32.vlgmr.msra.gmra.mxu2 %v12979_v41  ;;  %v8447_v7 = vpop.permute.xlu1 %8446  ;;  %8862 = vrot.lane.b32.xlu1 %v13052_v21, %s10900_s7 }
 0x430   : > { %7149 = vmatpush.msra.mxu2 %v7059_v14  ;;  %6797 = vmatmul.f32.gmra.mxu3 %v12887_v4  ;;  %8449 = vst.msk [vmem:[#allocation2 + $0x10] sm:$0x7f] %vm194_vm3, %v8447_v7 }
 0x431   : > { %v8453_v4 = vpop.permute.xlu2 %8452 }
 0x432   : > { %v5699_v53 = vpop.f32.mrf.mxu0  ;;  %v5721_v30 = vpop.f32.mrf.mxu1  ;;  %8455 = vst.msk [vmem:[#allocation2 + $0x10] sm:$0x7f] %vm202_vm4, %v8453_v4 }
 0x433   : > { %v5751_v34 = vpop.f32.mrf.mxu2  ;;  %v5671_v37 = vpop.f32.mrf.mxu3  ;;  %v5722_v8 = vadd.f32 %v5721_v30, %v5696_v46  ;;  %v7201_v46 = vsel %vm355_vm8, %v12813_v49, 0  ;;  %v7436_v30 = vsub.f32 %v7207_v15, %v13074_v27 }
 0x434   : > { %v5672_v23 = vadd.f32 %v5671_v37, %v5642_v9 }
 0x435   : > { %6861 = vmatmul.f32.gmra.mxu0 %v6860_v13  ;;  %v13040_v14 = vadd.f32 %v5722_v8, %v12934_v52  ;;  %6887 = vmatmul.f32.vlgmr.msra.gmra.mxu1 %v12970_v51  ;;  %v8853_v8 = vld [vmem:[#allocation2 + $0x8] sm:$0x7f] }
 0x436   : > { %v5700_v55 = vadd.f32 %v5699_v53, %v5672_v23  ;;  %7117 = vmatpush.msra.mxu1 %v12968_v29  ;;  %v13082_v53 = vand.u32 4294901760, %v7201_v46  ;;  %8864 = vrot.lane.b32.xlu2 %v8853_v8, %s10900_s7 }
 0x437   : > { %6920 = vmatmul.f32.gmra.mxu2 %v13006_v17  ;;  %v8465_v47 = vpop.permute.xlu1 %8464 }
 0x438   : > { %6944 = vmatmul.f32.vlgmr.msra.gmra.mxu3 %v12994_v38  ;;  %v8459_v16 = vpop.permute.xlu0 %8458  ;;  %v13088_v23 = vsub.f32 %v7201_v46, %v13082_v53 }
 0x439   : > { %7175 = vmatpush.msra.mxu3 %v12968_v29  ;;  %8461 = vst.msk [vmem:[#allocation2 + $0x10] sm:$0x7f] %vm210_vm5, %v8459_v16  ;;  %v8471_v28 = vpop.permute.xlu2 %8470 }
 0x43a   : > { %v5813_v24 = vpop.f32.mrf.mxu0  ;;  %v5725_v40 = vpop.f32.mrf.mxu1  ;;  %8467 = vst.msk [vmem:[#allocation2 + $0x10] sm:$0x7f] %vm218_vm6, %v8465_v47  ;;  %vm10509_vm6 = vcmask 1040384  }
 0x43b   : > { %v5759_v52 = vpop.f32.mrf.mxu2  ;;  %v5726_v36 = vadd.f32 %v5725_v40, %v5700_v55  ;;  %v5785_v43 = vpop.f32.mrf.mxu3  ;;  %8473 = vst.msk [vmem:[#allocation2 + $0x10] sm:$0x7f] %vm226_vm7, %v8471_v28  ;;  %v7203_v55 = vsel %vm355_vm8, %v12835_v50, 0 }
 0x43c   : > { %v5786_v18 = vadd.f32 %v5785_v43, %v5751_v34 }
 0x43d   : > { %6974 = vmatmul.f32.vlgmr.msrb.gmra.mxu0 %v12970_v51  ;;  %v13055_v29 = vadd.f32 %v5726_v36, %v12950_v48  ;;  %6891 = vmatmul.f32.gmra.mxu1 %v12996_v62  ;;  %v7261_v48 = vsub.f32 %v7259_v59, %v7260_v54 }
 0x43e   : > { %7225 = vmatpush.msrb.mxu0 %v13036_v57  ;;  %v5814_v32 = vadd.f32 %v5813_v24, %v5786_v18  ;;  %v13104_v24 = vand.u32 4294901760, %v7203_v55  ;;  %9236 = vrot.lane.b32.xlu2 %v12707_v58, %s10909_s11 }
 0x43f   : > { %7030 = vmatmul.f32.vlgmr.msrb.gmra.mxu2 %v13016_v11  ;;  %v7262_v11 = vand.u32 4294901760, %v7261_v48 }
 0x440   : > { %7290 = vmatpush.msrb.mxu2 %v7259_v59  ;;  %6950 = vmatmul.f32.gmra.mxu3 %v13020_v2  ;;  %v7437_v59 = vand.u32 4294901760, %v7436_v30  ;;  %v13111_v18 = vsub.f32 %v7203_v55, %v13104_v24 }
 0x442   : > { %v5818_v31 = vpop.f32.mrf.mxu0  ;;  %v5842_v26 = vpop.f32.mrf.mxu1  ;;  %v13069_v6 = vld [vmem:[#allocation2 + $0x10] sm:$0x7f]  ;;  %v7438_v50 = vsub.f32 %v7436_v30, %v7437_v59 }
 0x443   : > { %v5872_v33 = vpop.f32.mrf.mxu2  ;;  %v5789_v19 = vpop.f32.mrf.mxu3  ;;  %v5843_v20 = vadd.f32 %v5842_v26, %v5814_v32  ;;  %9244 = vrot.lane.b32.xlu0 %v13069_v6, %s10898_s5  ;;  %8866 = vrot.lane.b32.xlu1 %v13069_v6, %s10900_s7  ;;  %v13122_v26 = vand.u32 4294901760, %v13111_v18 }
 0x444   : > { %v5790_v39 = vadd.f32 %v5789_v19, %v5759_v52  ;;  %v7439_v32 = vand.u32 4294901760, %v7438_v50 }
 0x445   : > { %6978 = vmatmul.f32.gmra.mxu0 %v12996_v62  ;;  %v5873_v0 = vadd.f32 %v5872_v33, %v5843_v20  ;;  %7000 = vmatmul.f32.vlgmr.msrb.gmra.mxu1 %v12970_v51  ;;  %v7237_v58 = vsub.f32 %v13111_v18, %v13122_v26 }
 0x446   : > { %v5819_v9 = vadd.f32 %v5818_v31, %v5790_v39  ;;  %7263 = vmatpush.msrb.mxu1 %v7262_v11  ;;  %9238 = vrot.lane.b32.xlu2 %v12724_v1, %s10909_s11  ;;  %s10851_s11 = scalar_lea.hbm %s13720_s3, 4 }
 0x447   : > { %7038 = vmatmul.f32.gmra.mxu2 %v6860_v13 }
 0x448   : > { %7064 = vmatmul.f32.vlgmr.msrb.gmra.mxu3 %v12970_v51 }
 0x449   : > { %7318 = vmatpush.msrb.mxu3 %v13036_v57 }
 0x44a   : > { %v5948_v3 = vpop.f32.mrf.mxu0  ;;  %v5848_v61 = vpop.f32.mrf.mxu1 }
 0x44b   : > { %v5876_v13 = vpop.f32.mrf.mxu2  ;;  %v5849_v49 = vadd.f32 %v5848_v61, %v5819_v9  ;;  %v5898_v34 = vpop.f32.mrf.mxu3  ;;  %9624 = vrot.lane.b32.xlu0 %v8853_v8, %s10895_s29  ;;  %9242 = vrot.lane.b32.xlu1 %v8853_v8, %s10898_s5  ;;  %s10951_s5 = smov 123  }
 0x44c   : > { %v5899_v37 = vadd.f32 %v5898_v34, %v5873_v0 }
 0x44d   : > { %7092 = vmatmul.f32.vlgmr.msra.gmra.mxu0 %v12979_v41  ;;  %v5877_v7 = vadd.f32 %v5876_v13, %v5849_v49  ;;  %7004 = vmatmul.f32.gmra.mxu1 %v12996_v62 }
 0x44e   : > { %7350 = vmatpush.msra.mxu0 %v7260_v54  ;;  %v13091_v4 = vadd.f32 %v5899_v37, %v12988_v10  ;;  %v13102_v10 = vand.u32 4294901760, %v13088_v23  ;;  %9622 = vrot.lane.b32.xlu2 %v13052_v21, %s10895_s29 }
 0x44f   : > { %7151 = vmatmul.f32.vlgmr.msra.gmra.mxu2 %v12970_v51 }
 0x450   : > { %7402 = vmatpush.msra.mxu2 %v13074_v27  ;;  %7068 = vmatmul.f32.gmra.mxu3 %v12996_v62  ;;  %v7229_v54 = vsub.f32 %v13088_v23, %v13102_v10 }
 0x452   : > { %v5956_v41 = vpop.f32.mrf.mxu0  ;;  %v5982_v16 = vpop.f32.mrf.mxu1 }
 0x453   : > { %v6010_v40 = vpop.f32.mrf.mxu2  ;;  %v5902_v52 = vpop.f32.mrf.mxu3  ;;  %v5983_v36 = vadd.f32 %v5982_v16, %v5948_v3 }
 0x454   : > { %v5903_v43 = vadd.f32 %v5902_v52, %v5877_v7 }
 0x455   : > { %7097 = vmatmul.f32.gmra.mxu0 %v13006_v17  ;;  %v6011_v47 = vadd.f32 %v6010_v40, %v5983_v36  ;;  %7121 = vmatmul.f32.vlgmr.msra.gmra.mxu1 %v12994_v38  ;;  %v7230_v17 = vand.u32 4294901760, %v7229_v54 }
 0x456   : > { %v13114_v28 = vadd.f32 %v5903_v43, %v13012_v63  ;;  %7376 = vmatpush.msra.mxu1 %v13036_v57  ;;  %9626 = vrot.lane.b32.xlu2 %v13069_v6, %s10895_s29  ;;  %v7594_v6 = vsel %vm355_vm8, %v12857_v42, 0  ;;  %s10847_s29 = scalar_lea.hbm %s10846_s28, 2 }
 0x457   : > { %7155 = vmatmul.f32.gmra.mxu2 %v12996_v62  ;;  %p10848_p11 = scmp.ne.s32.totalorder %s10846_s28, %s10847_s29  ;;  %p10853_p1 = scmp.lt.s32.totalorder %s10851_s11, %s10847_s29 }
 0x458   : > { %7177 = vmatmul.f32.vlgmr.msra.gmra.mxu3 %v12970_v51  ;;  %v7598_v51 = vsel %vm360_vm10, %v12868_v35, 0 }
 0x459   : > { %7440 = vmatpush.msra.mxu3 %v7439_v32  ;;  %v13133_v46 = vand.u32 4294901760, %v7598_v51  ;;  %p10849_p12 = pnand %p10848_p11, %p11011_p5  ;;  %p10854_p2 = por %p10853_p1, %p10852_p0 }
 0x45a   : > { %v6069_v38 = vpop.f32.mrf.mxu0  ;;  %v5986_v48 = vpop.f32.mrf.mxu1 }
 0x45b   : > { %v6015_v31 = vpop.f32.mrf.mxu2  ;;  %v5987_v63 = vadd.f32 %v5986_v48, %v5956_v41  ;;  %v6039_v33 = vpop.f32.mrf.mxu3  ;;  %v7652_v35 = vsub.f32 %v7598_v51, %v13133_v46  ;;  %p10850_p13 = pneg %p10849_p12 }
 0x45c   : > { %v6040_v19 = vadd.f32 %v6039_v33, %v6011_v47  ;;  %v13165_v47 = vand.u32 4294901760, %v7594_v6 }
 0x45d   : > { %7231 = vmatmul.f32.vlgmr.msrb.gmra.mxu0 %v7230_v17  ;;  %v6016_v57 = vadd.f32 %v6015_v31, %v5987_v63  ;;  %7127 = vmatmul.f32.gmra.mxu1 %v13020_v2  ;;  %v7238_v2 = vand.u32 4294901760, %v7237_v58  ;;  %v7653_v34 = vand.u32 4294901760, %v7652_v35  ;;  %p10855_p3 = pnand %p10854_p2, %p10850_p13 }
 0x45e   : > { %7467 = vmatpush.msrb.mxu0 %v7436_v30  ;;  %v6070_v20 = vadd.f32 %v6069_v38, %v6040_v19  ;;  %v13171_v42 = vsub.f32 %v7594_v6, %v13165_v47  ;;  %v7596_v19 = vsel %vm355_vm8, %v12890_v5, 0 }
 0x45f   : > { %7293 = vmatmul.f32.vlgmr.msrb.gmra.mxu2 %v13088_v23  ;;  %v13184_v58 = vand.u32 4294901760, %v7596_v19 }
 0x460   : > { %7527 = vmatpush.msrb.mxu2 %v7437_v59  ;;  %7181 = vmatmul.f32.gmra.mxu3 %v12996_v62 }
 0x462   : > { %v6073_v15 = vpop.f32.mrf.mxu0  ;;  %v6095_v39 = vpop.f32.mrf.mxu1 }
 0x463   : > { %v6125_v11 = vpop.f32.mrf.mxu2  ;;  %v6045_v0 = vpop.f32.mrf.mxu3  ;;  %v6096_v9 = vadd.f32 %v6095_v39, %v6070_v20  ;;  %v13182_v20 = vand.u32 4294901760, %v13171_v42 }
 0x464   : > { %v6046_v3 = vadd.f32 %v6045_v0, %v6016_v57 }
 0x465   : > { %7239 = vmatmul.f32.gmra.mxu0 %v7238_v2  ;;  %v13136_v61 = vadd.f32 %v6096_v9, %v13040_v14  ;;  %7265 = vmatmul.f32.vlgmr.msrb.gmra.mxu1 %v13082_v53  ;;  %v7622_v0 = vsub.f32 %v13171_v42, %v13182_v20  ;;  %v13191_v9 = vsub.f32 %v7596_v19, %v13184_v58  ;;  %v7970_v19 = vsel %vm360_vm10, %v12509_v60, 0 }
 0x466   : > { %v6074_v1 = vadd.f32 %v6073_v15, %v6046_v3  ;;  %7495 = vmatpush.msrb.mxu1 %v13074_v27 }
 0x467   : > { %7298 = vmatmul.f32.gmra.mxu2 %v13111_v18 }
 0x468   : > { %7322 = vmatmul.f32.vlgmr.msrb.gmra.mxu3 %v13102_v10 }
 0x469   : > { %7553 = vmatpush.msrb.mxu3 %v13074_v27  ;;  %v7654_v27 = vsub.f32 %v7652_v35, %v7653_v34 }
 0x46a   : > { %v6187_v62 = vpop.f32.mrf.mxu0  ;;  %v6099_v13 = vpop.f32.mrf.mxu1 }
 0x46b   : > { %v6133_v14 = vpop.f32.mrf.mxu2  ;;  %v6100_v30 = vadd.f32 %v6099_v13, %v6074_v1  ;;  %v6159_v49 = vpop.f32.mrf.mxu3  ;;  %v7655_v52 = vand.u32 4294901760, %v7654_v27  ;;  %v13200_v13 = vand.u32 4294901760, %v13191_v9 }
 0x46c   : > { %v6160_v37 = vadd.f32 %v6159_v49, %v6125_v11 }
 0x46d   : > { %7352 = vmatmul.f32.vlgmr.msra.gmra.mxu0 %v13082_v53  ;;  %v13148_v8 = vadd.f32 %v6100_v30, %v13055_v29  ;;  %7269 = vmatmul.f32.gmra.mxu1 %v13104_v24  ;;  %v7600_v29 = vsel %vm360_vm10, %v12894_v22, 0 }
 0x46e   : > { %7618 = vmatpush.msra.mxu0 %v13133_v46  ;;  %v6188_v21 = vadd.f32 %v6187_v62, %v6160_v37  ;;  %v13161_v43 = vand.u32 4294901760, %v7600_v29  ;;  %v7623_v62 = vand.u32 4294901760, %v7622_v0  ;;  %v7968_v37 = vsel %vm360_vm10, %v12533_v56, 0 }
 0x46f   : > { %7408 = vmatmul.f32.vlgmr.msra.gmra.mxu2 %v7230_v17 }
 0x470   : > { %7683 = vmatpush.msra.mxu2 %v7652_v35  ;;  %7328 = vmatmul.f32.gmra.mxu3 %v13122_v26  ;;  %v7829_v38 = vsub.f32 %v7600_v29, %v13161_v43 }
 0x472   : > { %v6192_v7 = vpop.f32.mrf.mxu0  ;;  %v6216_v55 = vpop.f32.mrf.mxu1  ;;  %v7830_v57 = vand.u32 4294901760, %v7829_v38 }
 0x473   : > { %v6246_v59 = vpop.f32.mrf.mxu2  ;;  %v6163_v41 = vpop.f32.mrf.mxu3  ;;  %v6217_v16 = vadd.f32 %v6216_v55, %v6188_v21 }
 0x474   : > { %v6164_v40 = vadd.f32 %v6163_v41, %v6133_v14  ;;  %v7831_v11 = vsub.f32 %v7829_v38, %v7830_v57  ;;  %v13209_v41 = vand.u32 4294901760, %v7968_v37 }
 0x475   : > { %7356 = vmatmul.f32.gmra.mxu0 %v13104_v24  ;;  %v6247_v36 = vadd.f32 %v6246_v59, %v6217_v16  ;;  %7378 = vmatmul.f32.vlgmr.msra.gmra.mxu1 %v13082_v53 }
 0x476   : > { %v6193_v50 = vadd.f32 %v6192_v7, %v6164_v40  ;;  %7656 = vmatpush.msra.mxu1 %v7655_v52  ;;  %v7832_v1 = vand.u32 4294901760, %v7831_v11  ;;  %v8022_v56 = vsub.f32 %v7968_v37, %v13209_v41 }
 0x477   : > { %7416 = vmatmul.f32.gmra.mxu2 %v7238_v2 }
 0x478   : > { %7442 = vmatmul.f32.vlgmr.msra.gmra.mxu3 %v13082_v53  ;;  %v8023_v6 = vand.u32 4294901760, %v8022_v56 }
 0x479   : > { %7711 = vmatpush.msra.mxu3 %v13133_v46 }
 0x47a   : > { %v6470_v22 = vpop.f32.mrf.mxu0  ;;  %v6222_v54 = vpop.f32.mrf.mxu1 }
 0x47b   : > { %v6250_v32 = vpop.f32.mrf.mxu2  ;;  %v6223_v17 = vadd.f32 %v6222_v54, %v6193_v50  ;;  %v6272_v48 = vpop.f32.mrf.mxu3 }
 0x47c   : > { %v6273_v31 = vadd.f32 %v6272_v48, %v6247_v36 }
 0x47d   : > { %7470 = vmatmul.f32.vlgmr.msrb.gmra.mxu0 %v13088_v23  ;;  %v6251_v63 = vadd.f32 %v6250_v32, %v6223_v17  ;;  %7382 = vmatmul.f32.gmra.mxu1 %v13104_v24 }
 0x47e   : > { %7743 = vmatpush.msrb.mxu0 %v7653_v34  ;;  %v13174_v33 = vadd.f32 %v6273_v31, %v13091_v4 }
 0x47f   : > { %7529 = vmatmul.f32.vlgmr.msrb.gmra.mxu2 %v13082_v53 }
 0x480   : > { %7795 = vmatpush.msrb.mxu2 %v13161_v43  ;;  %7446 = vmatmul.f32.gmra.mxu3 %v13104_v24 }
 0x482   : > { %v6478_v23 = vpop.f32.mrf.mxu0  ;;  %v6504_v51 = vpop.f32.mrf.mxu1 }
 0x483   : > { %v6532_v15 = vpop.f32.mrf.mxu2  ;;  %v6276_v4 = vpop.f32.mrf.mxu3  ;;  %v6505_v39 = vadd.f32 %v6504_v51, %v6470_v22  ;;  %v7964_v51 = vsel %vm355_vm8, %v12896_v45, 0 }
 0x484   : > { %v6277_v2 = vadd.f32 %v6276_v4, %v6251_v63 }
 0x485   : > { %7475 = vmatmul.f32.gmra.mxu0 %v13111_v18  ;;  %v6533_v5 = vadd.f32 %v6532_v15, %v6505_v39  ;;  %7499 = vmatmul.f32.vlgmr.msrb.gmra.mxu1 %v13102_v10  ;;  %v13233_v15 = vand.u32 4294901760, %v7970_v19  ;;  %v13237_v39 = vand.u32 4294901760, %v7964_v51 }
 0x486   : > { %v13194_v3 = vadd.f32 %v6277_v2, %v13114_v28  ;;  %7769 = vmatpush.msrb.mxu1 %v13133_v46 }
 0x487   : > { %7533 = vmatmul.f32.gmra.mxu2 %v13104_v24  ;;  %v8199_v0 = vsub.f32 %v7970_v19, %v13233_v15  ;;  %v13243_v45 = vsub.f32 %v7964_v51, %v13237_v39 }
 0x488   : > { %7555 = vmatmul.f32.vlgmr.msrb.gmra.mxu3 %v13082_v53  ;;  %v7630_v53 = vsub.f32 %v13191_v9, %v13200_v13 }
 0x489   : > { %7833 = vmatpush.msrb.mxu3 %v7832_v1 }
 0x48a   : > { %v6591_v18 = vpop.f32.mrf.mxu0  ;;  %v6508_v35 = vpop.f32.mrf.mxu1  ;;  %v7631_v7 = vand.u32 4294901760, %v7630_v53 }
 0x48b   : > { %v6537_v10 = vpop.f32.mrf.mxu2  ;;  %v6509_v14 = vadd.f32 %v6508_v35, %v6478_v23  ;;  %v6561_v30 = vpop.f32.mrf.mxu3 }
 0x48c   : > { %v6562_v49 = vadd.f32 %v6561_v30, %v6533_v5 }
 0x48d   : > { %7624 = vmatmul.f32.vlgmr.msra.gmra.mxu0 %v7623_v62  ;;  %v6538_v28 = vadd.f32 %v6537_v10, %v6509_v14  ;;  %7505 = vmatmul.f32.gmra.mxu1 %v13122_v26  ;;  %v7966_v10 = vsel %vm355_vm8, %v12910_v12, 0  ;;  %v13254_v14 = vand.u32 4294901760, %v13243_v45 }
 0x48e   : > { %7860 = vmatpush.msra.mxu0 %v7829_v38  ;;  %v6592_v46 = vadd.f32 %v6591_v18, %v6562_v49  ;;  %v13256_v30 = vand.u32 4294901760, %v7966_v10 }
 0x48f   : > { %7686 = vmatmul.f32.vlgmr.msra.gmra.mxu2 %v13171_v42  ;;  %v7992_v37 = vsub.f32 %v13243_v45, %v13254_v14 }
 0x490   : > { %7920 = vmatpush.msra.mxu2 %v7830_v57  ;;  %7559 = vmatmul.f32.gmra.mxu3 %v13104_v24 }
 0x492   : > { %v6595_v34 = vpop.f32.mrf.mxu0  ;;  %v6617_v21 = vpop.f32.mrf.mxu1 }
 0x493   : > { %v6647_v27 = vpop.f32.mrf.mxu2  ;;  %v6567_v55 = vpop.f32.mrf.mxu3  ;;  %v6618_v59 = vadd.f32 %v6617_v21, %v6592_v46  ;;  %v13263_v21 = vsub.f32 %v7966_v10, %v13256_v30 }
 0x494   : > { %v6568_v26 = vadd.f32 %v6567_v55, %v6538_v28  ;;  %v7993_v55 = vand.u32 4294901760, %v7992_v37 }
 0x495   : > { %7632 = vmatmul.f32.gmra.mxu0 %v7631_v7  ;;  %v13212_v16 = vadd.f32 %v6618_v59, %v13136_v61  ;;  %7658 = vmatmul.f32.vlgmr.msra.gmra.mxu1 %v13165_v47 }
 0x496   : > { %v6596_v29 = vadd.f32 %v6595_v34, %v6568_v26  ;;  %7888 = vmatpush.msra.mxu1 %v13161_v43  ;;  %v13272_v26 = vand.u32 4294901760, %v13263_v21 }
 0x497   : > { %7691 = vmatmul.f32.gmra.mxu2 %v13191_v9 }
 0x498   : > { %7715 = vmatmul.f32.vlgmr.msra.gmra.mxu3 %v13182_v20 }
 0x499   : > { %7946 = vmatpush.msra.mxu3 %v13161_v43  ;;  %v8024_v43 = vsub.f32 %v8022_v56, %v8023_v6 }
 0x49a   : > { %v6709_v24 = vpop.f32.mrf.mxu0  ;;  %v6621_v40 = vpop.f32.mrf.mxu1 }
 0x49b   : > { %v6655_v52 = vpop.f32.mrf.mxu2  ;;  %v6622_v36 = vadd.f32 %v6621_v40, %v6596_v29  ;;  %v6681_v50 = vpop.f32.mrf.mxu3  ;;  %v8476_v40 = vld [vmem:[#allocation2] sm:$0x7f] }
 0x49c   : > { %v6682_v61 = vadd.f32 %v6681_v50, %v6647_v27 }
 0x49d   : > { %7745 = vmatmul.f32.vlgmr.msrb.gmra.mxu0 %v13165_v47  ;;  %v13222_v22 = vadd.f32 %v6622_v36, %v13148_v8  ;;  %7662 = vmatmul.f32.gmra.mxu1 %v13184_v58  ;;  %v8025_v8 = vand.u32 4294901760, %v8024_v43  ;;  %v8489_v36 = vsel %vm360_vm10, %v8476_v40, 0 }
 0x49e   : > { %7988 = vmatpush.msrb.mxu0 %v13209_v41  ;;  %v6710_v54 = vadd.f32 %v6709_v24, %v6682_v61 }
 0x49f   : > { %7801 = vmatmul.f32.vlgmr.msrb.gmra.mxu2 %v7623_v62  ;;  %v8200_v62 = vand.u32 4294901760, %v8199_v0 }
 0x4a0   : > { %8053 = vmatpush.msrb.mxu2 %v8022_v56  ;;  %7721 = vmatmul.f32.gmra.mxu3 %v13200_v13 }
 0x4a1   : > { %v8201_v53 = vsub.f32 %v8199_v0, %v8200_v62 }
 0x4a2   : > { %v6714_v32 = vpop.f32.mrf.mxu0  ;;  %v6738_v38 = vpop.f32.mrf.mxu1 }
 0x4a3   : > { %v6768_v17 = vpop.f32.mrf.mxu2  ;;  %v6685_v48 = vpop.f32.mrf.mxu3  ;;  %v6739_v31 = vadd.f32 %v6738_v38, %v6710_v54 }
 0x4a4   : > { %v6686_v63 = vadd.f32 %v6685_v48, %v6655_v52 }
 0x4a5   : > { %7749 = vmatmul.f32.gmra.mxu0 %v13184_v58  ;;  %v6769_v57 = vadd.f32 %v6768_v17, %v6739_v31  ;;  %7771 = vmatmul.f32.vlgmr.msrb.gmra.mxu1 %v13165_v47 }
 0x4a6   : > { %v6715_v23 = vadd.f32 %v6714_v32, %v6686_v63  ;;  %8026 = vmatpush.msrb.mxu1 %v8025_v8  ;;  %v13280_v32 = vand.u32 4294901760, %v8489_v36 }
 0x4a7   : > { %7809 = vmatmul.f32.gmra.mxu2 %v7631_v7  ;;  %v8202_v7 = vand.u32 4294901760, %v8201_v53 }
 0x4a8   : > { %7835 = vmatmul.f32.vlgmr.msrb.gmra.mxu3 %v13165_v47 }
 0x4a9   : > { %8081 = vmatpush.msrb.mxu3 %v13209_v41 }
 0x4aa   : > { %v6854_v4 = vpop.f32.mrf.mxu0  ;;  %v6744_v11 = vpop.f32.mrf.mxu1 }
 0x4ab   : > { %v6772_v60 = vpop.f32.mrf.mxu2  ;;  %v6745_v2 = vadd.f32 %v6744_v11, %v6715_v23  ;;  %v6794_v5 = vpop.f32.mrf.mxu3  ;;  %v8477_v11 = vld [vmem:[#allocation2 + $0x8] sm:$0x7f] }
 0x4ac   : > { %v6795_v1 = vadd.f32 %v6794_v5, %v6769_v57 }
 0x4ad   : > { %7863 = vmatmul.f32.vlgmr.msra.gmra.mxu0 %v13171_v42  ;;  %v6773_v18 = vadd.f32 %v6772_v60, %v6745_v2  ;;  %7775 = vmatmul.f32.gmra.mxu1 %v13184_v58 }
 0x4ae   : > { %8113 = vmatpush.msra.mxu0 %v8023_v6  ;;  %v13246_v35 = vadd.f32 %v6795_v1, %v13174_v33 }
 0x4af   : > { %7922 = vmatmul.f32.vlgmr.msra.gmra.mxu2 %v13165_v47 }
 0x4b0   : > { %8165 = vmatpush.msra.mxu2 %v13233_v15  ;;  %7839 = vmatmul.f32.gmra.mxu3 %v13184_v58 }
 0x4b2   : > { %v6862_v42 = vpop.f32.mrf.mxu0  ;;  %v6888_v49 = vpop.f32.mrf.mxu1 }
 0x4b3   : > { %v6916_v28 = vpop.f32.mrf.mxu2  ;;  %v6798_v33 = vpop.f32.mrf.mxu3  ;;  %v6889_v46 = vadd.f32 %v6888_v49, %v6854_v4 }
 0x4b4   : > { %v6799_v34 = vadd.f32 %v6798_v33, %v6773_v18  ;;  %v8492_v18 = vsel %vm360_vm10, %v8477_v11, 0 }
 0x4b5   : > { %7868 = vmatmul.f32.gmra.mxu0 %v13191_v9  ;;  %v6917_v12 = vadd.f32 %v6916_v28, %v6889_v46  ;;  %7892 = vmatmul.f32.vlgmr.msra.gmra.mxu1 %v13182_v20  ;;  %v13303_v49 = vand.u32 4294901760, %v8492_v18 }
 0x4b6   : > { %v13266_v27 = vadd.f32 %v6799_v34, %v13194_v3  ;;  %8139 = vmatpush.msra.mxu1 %v13209_v41 }
 0x4b7   : > { %7926 = vmatmul.f32.gmra.mxu2 %v13184_v58  ;;  %v8721_v37 = vsub.f32 %v8492_v18, %v13303_v49 }
 0x4b8   : > { %7948 = vmatmul.f32.vlgmr.msra.gmra.mxu3 %v13165_v47  ;;  %v8000_v47 = vsub.f32 %v13263_v21, %v13272_v26 }
 0x4b9   : > { %8203 = vmatpush.msra.mxu3 %v8202_v7 }
 0x4ba   : > { %v6975_v9 = vpop.f32.mrf.mxu0  ;;  %v6892_v20 = vpop.f32.mrf.mxu1  ;;  %v8001_v6 = vand.u32 4294901760, %v8000_v47 }
 0x4bb   : > { %v6921_v59 = vpop.f32.mrf.mxu2  ;;  %v6893_v29 = vadd.f32 %v6892_v20, %v6862_v42  ;;  %v6945_v56 = vpop.f32.mrf.mxu3  ;;  %v8484_v42 = vsel %vm355_vm8, %v13001_v44, 0  ;;  %v9614_v20 = vld [vmem:[%s13718_s1 + $0x8] sm:$0xff] }
 0x4bc   : > { %v6946_v24 = vadd.f32 %v6945_v56, %v6917_v12  ;;  %v13307_v33 = vand.u32 4294901760, %v8484_v42  ;;  %9618 = vrot.lane.b32.xlu1 %v9614_v20, %s10951_s5  ;;  %9996 = vrot.lane.b32.xlu0 %v9614_v20, %s10945_s20 }
 0x4bd   : > { %7994 = vmatmul.f32.vlgmr.msrb.gmra.mxu0 %v7993_v55  ;;  %v6922_v3 = vadd.f32 %v6921_v59, %v6893_v29  ;;  %7898 = vmatmul.f32.gmra.mxu1 %v13200_v13  ;;  %v8486_v59 = vsel %vm355_vm8, %v13023_v25, 0 }
 0x4be   : > { %8230 = vmatpush.msrb.mxu0 %v8199_v0  ;;  %v6976_v41 = vadd.f32 %v6975_v9, %v6946_v24  ;;  %v13313_v44 = vsub.f32 %v8484_v42, %v13307_v33  ;;  %v13330_v56 = vand.u32 4294901760, %v8486_v59 }
 0x4bf   : > { %8056 = vmatmul.f32.vlgmr.msrb.gmra.mxu2 %v13243_v45 }
 0x4c0   : > { %8290 = vmatpush.msrb.mxu2 %v8200_v62  ;;  %7952 = vmatmul.f32.gmra.mxu3 %v13184_v58  ;;  %v8544_v58 = vsub.f32 %v8489_v36, %v13280_v32  ;;  %v13328_v29 = vand.u32 4294901760, %v13313_v44 }
 0x4c2   : > { %v6979_v52 = vpop.f32.mrf.mxu0  ;;  %v7001_v50 = vpop.f32.mrf.mxu1  ;;  %v8545_v57 = vand.u32 4294901760, %v8544_v58  ;;  %v8514_v36 = vsub.f32 %v13313_v44, %v13328_v29 }
 0x4c3   : > { %v7031_v61 = vpop.f32.mrf.mxu2  ;;  %v6951_v54 = vpop.f32.mrf.mxu3  ;;  %v7002_v43 = vadd.f32 %v7001_v50, %v6976_v41  ;;  %v13337_v50 = vsub.f32 %v8486_v59, %v13330_v56 }
 0x4c4   : > { %v6952_v13 = vadd.f32 %v6951_v54, %v6922_v3  ;;  %v8515_v54 = vand.u32 4294901760, %v8514_v36 }
 0x4c5   : > { %8002 = vmatmul.f32.gmra.mxu0 %v8001_v6  ;;  %v13283_v38 = vadd.f32 %v7002_v43, %v13212_v16  ;;  %8028 = vmatmul.f32.vlgmr.msrb.gmra.mxu1 %v13237_v39 }
 0x4c6   : > { %v6980_v17 = vadd.f32 %v6979_v52, %v6952_v13  ;;  %8258 = vmatpush.msrb.mxu1 %v13233_v15 }
 0x4c7   : > { %8061 = vmatmul.f32.gmra.mxu2 %v13263_v21 }
 0x4c8   : > { %8085 = vmatmul.f32.vlgmr.msrb.gmra.mxu3 %v13254_v14 }
 0x4c9   : > { %8316 = vmatpush.msrb.mxu3 %v13233_v15  ;;  %v8546_v15 = vsub.f32 %v8544_v58, %v8545_v57 }
 0x4ca   : > { %v7093_v48 = vpop.f32.mrf.mxu0  ;;  %v7005_v31 = vpop.f32.mrf.mxu1 }
 0x4cb   : > { %v7039_v63 = vpop.f32.mrf.mxu2  ;;  %v7006_v8 = vadd.f32 %v7005_v31, %v6980_v17  ;;  %v7065_v19 = vpop.f32.mrf.mxu3 }
 0x4cc   : > { %v7066_v16 = vadd.f32 %v7065_v19, %v7031_v61  ;;  %v8863_v31 = vpop.permute.xlu1 %8862 }
 0x4cd   : > { %8115 = vmatmul.f32.vlgmr.msra.gmra.mxu0 %v13237_v39  ;;  %v13293_v23 = vadd.f32 %v7006_v8, %v13222_v22  ;;  %8032 = vmatmul.f32.gmra.mxu1 %v13256_v30  ;;  %v8547_v22 = vand.u32 4294901760, %v8546_v15 }
 0x4ce   : > { %8510 = vmatpush.msra.mxu0 %v13280_v32  ;;  %v7094_v51 = vadd.f32 %v7093_v48, %v7066_v16  ;;  %v8865_v48 = vpop.permute.xlu2 %8864 }
 0x4cf   : > { %8171 = vmatmul.f32.vlgmr.msra.gmra.mxu2 %v7993_v55 }
 0x4d0   : > { %8575 = vmatpush.msra.mxu2 %v8544_v58  ;;  %8091 = vmatmul.f32.gmra.mxu3 %v13272_v26 }
 0x4d2   : > { %v7098_v4 = vpop.f32.mrf.mxu0  ;;  %v7122_v60 = vpop.f32.mrf.mxu1 }
 0x4d3   : > { %v7152_v2 = vpop.f32.mrf.mxu2  ;;  %v7069_v5 = vpop.f32.mrf.mxu3  ;;  %v7123_v0 = vadd.f32 %v7122_v60, %v7094_v51 }
 0x4d4   : > { %v7070_v1 = vadd.f32 %v7069_v5, %v7039_v63 }
 0x4d5   : > { %8119 = vmatmul.f32.gmra.mxu0 %v13256_v30  ;;  %v7153_v10 = vadd.f32 %v7152_v2, %v7123_v0  ;;  %8141 = vmatmul.f32.vlgmr.msra.gmra.mxu1 %v13237_v39 }
 0x4d6   : > { %v7099_v62 = vadd.f32 %v7098_v4, %v7070_v1  ;;  %8548 = vmatpush.msra.mxu1 %v8547_v22 }
 0x4d7   : > { %8179 = vmatmul.f32.gmra.mxu2 %v8001_v6 }
 0x4d8   : > { %8205 = vmatmul.f32.vlgmr.msra.gmra.mxu3 %v13237_v39 }
 0x4d9   : > { %8603 = vmatpush.msra.mxu3 %v13280_v32 }
 0x4da   : > { %v7232_v28 = vpop.f32.mrf.mxu0  ;;  %v7128_v46 = vpop.f32.mrf.mxu1 }
 0x4db   : > { %v7156_v53 = vpop.f32.mrf.mxu2  ;;  %v7129_v34 = vadd.f32 %v7128_v46, %v7099_v62  ;;  %v7178_v12 = vpop.f32.mrf.mxu3 }
 0x4dc   : > { %v7179_v7 = vadd.f32 %v7178_v12, %v7153_v10 }
 0x4dd   : > { %8233 = vmatmul.f32.vlgmr.msrb.gmra.mxu0 %v13243_v45  ;;  %v7157_v9 = vadd.f32 %v7156_v53, %v7129_v34  ;;  %8145 = vmatmul.f32.gmra.mxu1 %v13256_v30  ;;  %v8722_v45 = vand.u32 4294901760, %v8721_v37  ;;  %v8856_v34 = vpop.permute.xlu0 %8855 }
 0x4de   : > { %8635 = vmatpush.msrb.mxu0 %v8545_v57  ;;  %v13316_v55 = vadd.f32 %v7179_v7, %v13246_v35 }
 0x4df   : > { %8292 = vmatmul.f32.vlgmr.msrb.gmra.mxu2 %v13237_v39  ;;  %v8723_v25 = vsub.f32 %v8721_v37, %v8722_v45 }
 0x4e0   : > { %8687 = vmatpush.msrb.mxu2 %v13303_v49  ;;  %8209 = vmatmul.f32.gmra.mxu3 %v13256_v30 }
 0x4e1   : > { %v8724_v6 = vand.u32 4294901760, %v8723_v25 }
 0x4e2   : > { %v7240_v35 = vpop.f32.mrf.mxu0  ;;  %v7266_v24 = vpop.f32.mrf.mxu1 }
 0x4e3   : > { %v7294_v3 = vpop.f32.mrf.mxu2  ;;  %v7182_v41 = vpop.f32.mrf.mxu3  ;;  %v7267_v47 = vadd.f32 %v7266_v24, %v7232_v28  ;;  %v8870_v24 = vsel %vm355_vm8, %v8856_v34, 0 }
 0x4e4   : > { %v7183_v40 = vadd.f32 %v7182_v41, %v7157_v9  ;;  %v13384_v25 = vand.u32 4294901760, %v8870_v24 }
 0x4e5   : > { %8238 = vmatmul.f32.gmra.mxu0 %v13263_v21  ;;  %v7295_v52 = vadd.f32 %v7294_v3, %v7267_v47  ;;  %8262 = vmatmul.f32.vlgmr.msrb.gmra.mxu1 %v13254_v14  ;;  %v9615_v21 = vld [vmem:[%s13718_s1 + $0x18] sm:$0x1] }
 0x4e6   : > { %v13340_v61 = vadd.f32 %v7183_v40, %v13266_v27  ;;  %8661 = vmatpush.msrb.mxu1 %v13280_v32  ;;  %9620 = vrot.lane.b32.xlu1 %v9615_v21, %s10951_s5  ;;  %v13349_v27 = vand.u32 4294901760, %v13337_v50 }
 0x4e7   : > { %8296 = vmatmul.f32.gmra.mxu2 %v13256_v30 }
 0x4e8   : > { %8318 = vmatmul.f32.vlgmr.msrb.gmra.mxu3 %v13237_v39  ;;  %v8868_v39 = vsel %vm352_vm9, %v8863_v31, %v8865_v48  ;;  %v8522_v19 = vsub.f32 %v13337_v50, %v13349_v27 }
 0x4e9   : > { %8725 = vmatpush.msrb.mxu3 %v8724_v6  ;;  %v8874_v16 = vsel %vm360_vm10, %v8868_v39, 0 }
 0x4ea   : > { %v7353_v14 = vpop.f32.mrf.mxu0  ;;  %v7270_v43 = vpop.f32.mrf.mxu1  ;;  %v13359_v60 = vand.u32 4294901760, %v8874_v16 }
 0x4eb   : > { %v7299_v13 = vpop.f32.mrf.mxu2  ;;  %v7271_v17 = vadd.f32 %v7270_v43, %v7240_v35  ;;  %v7323_v32 = vpop.f32.mrf.mxu3 }
 0x4ec   : > { %v7324_v58 = vadd.f32 %v7323_v32, %v7295_v52  ;;  %v8858_v43 = vpop.permute.xlu0 %8857 }
 0x4ed   : > { %8516 = vmatmul.f32.vlgmr.msra.gmra.mxu0 %v8515_v54  ;;  %v7300_v63 = vadd.f32 %v7299_v13, %v7271_v17  ;;  %8268 = vmatmul.f32.gmra.mxu1 %v13272_v26  ;;  %v8523_v26 = vand.u32 4294901760, %v8522_v19  ;;  %v8872_v17 = vsel %vm355_vm8, %v8858_v43, 0 }
 0x4ee   : > { %8752 = vmatpush.msra.mxu0 %v8721_v37  ;;  %v7354_v8 = vadd.f32 %v7353_v14, %v7324_v58  ;;  %9998 = vrot.lane.b32.xlu1 %v9615_v21, %s10945_s20 }
 0x4ef   : > { %8578 = vmatmul.f32.vlgmr.msra.gmra.mxu2 %v13313_v44 }
 0x4f0   : > { %8812 = vmatpush.msra.mxu2 %v8722_v45  ;;  %8322 = vmatmul.f32.gmra.mxu3 %v13256_v30  ;;  %v8928_v30 = vsub.f32 %v8874_v16, %v13359_v60 }
 0x4f2   : > { %v7357_v57 = vpop.f32.mrf.mxu0  ;;  %v7379_v51 = vpop.f32.mrf.mxu1 }
 0x4f3   : > { %v7409_v15 = vpop.f32.mrf.mxu2  ;;  %v7329_v4 = vpop.f32.mrf.mxu3  ;;  %v7380_v11 = vadd.f32 %v7379_v51, %v7354_v8 }
 0x4f4   : > { %v7330_v2 = vadd.f32 %v7329_v4, %v7300_v63  ;;  %v13403_v63 = vand.u32 4294901760, %v8872_v17 }
 0x4f5   : > { %8524 = vmatmul.f32.gmra.mxu0 %v8523_v26  ;;  %v13362_v5 = vadd.f32 %v7380_v11, %v13283_v38  ;;  %8550 = vmatmul.f32.vlgmr.msra.gmra.mxu1 %v13307_v33  ;;  %v8929_v38 = vand.u32 4294901760, %v8928_v30 }
 0x4f6   : > { %v7358_v0 = vadd.f32 %v7357_v57, %v7330_v2  ;;  %8780 = vmatpush.msra.mxu1 %v13303_v49  ;;  %v13409_v51 = vsub.f32 %v8872_v17, %v13403_v63 }
 0x4f7   : > { %8583 = vmatmul.f32.gmra.mxu2 %v13337_v50  ;;  %v8930_v53 = vsub.f32 %v8928_v30, %v8929_v38 }
 0x4f8   : > { %8607 = vmatmul.f32.vlgmr.msra.gmra.mxu3 %v13328_v29 }
 0x4f9   : > { %8838 = vmatpush.msra.mxu3 %v13303_v49  ;;  %v8867_v49 = vpop.permute.xlu1 %8866  ;;  %v8931_v35 = vand.u32 4294901760, %v8930_v53 }
 0x4fa   : > { %v7471_v1 = vpop.f32.mrf.mxu0  ;;  %v7383_v22 = vpop.f32.mrf.mxu1  ;;  %v8869_v12 = vsel %vm352_vm9, %v8865_v48, %v8867_v49 }
 0x4fb   : > { %v7417_v18 = vpop.f32.mrf.mxu2  ;;  %v7384_v10 = vadd.f32 %v7383_v22, %v7358_v0  ;;  %v7443_v62 = vpop.f32.mrf.mxu3  ;;  %v8876_v59 = vsel %vm360_vm10, %v8869_v12, 0  ;;  %v13420_v0 = vand.u32 4294901760, %v13409_v51 }
 0x4fc   : > { %v7444_v42 = vadd.f32 %v7443_v62, %v7409_v15  ;;  %v13382_v47 = vand.u32 4294901760, %v8876_v59 }
 0x4fd   : > { %8637 = vmatmul.f32.vlgmr.msrb.gmra.mxu0 %v13307_v33  ;;  %v13372_v28 = vadd.f32 %v7384_v10, %v13293_v23  ;;  %8554 = vmatmul.f32.gmra.mxu1 %v13330_v56  ;;  %v9241_v10 = vpop.permute.xlu0 %9240 }
 0x4fe   : > { %8894 = vmatpush.msrb.mxu0 %v13359_v60  ;;  %v7472_v46 = vadd.f32 %v7471_v1, %v7444_v42  ;;  %v9105_v21 = vsub.f32 %v8876_v59, %v13382_v47 }
 0x4ff   : > { %8693 = vmatmul.f32.vlgmr.msrb.gmra.mxu2 %v8515_v54  ;;  %v13390_v54 = vsub.f32 %v8870_v24, %v13384_v25 }
 0x500   : > { %8959 = vmatpush.msrb.mxu2 %v8928_v30  ;;  %8613 = vmatmul.f32.gmra.mxu3 %v13349_v27  ;;  %v9106_v48 = vand.u32 4294901760, %v9105_v21 }
 0x501   : > { %v13401_v31 = vand.u32 4294901760, %v13390_v54  ;;  %v9243_v22 = vpop.permute.xlu1 %9242 }
 0x502   : > { %v7476_v37 = vpop.f32.mrf.mxu0  ;;  %v7500_v7 = vpop.f32.mrf.mxu1  ;;  %v9107_v57 = vsub.f32 %v9105_v21, %v9106_v48 }
 0x503   : > { %v7530_v9 = vpop.f32.mrf.mxu2  ;;  %v7447_v20 = vpop.f32.mrf.mxu3  ;;  %v7501_v23 = vadd.f32 %v7500_v7, %v7472_v46 }
 0x504   : > { %v7448_v45 = vadd.f32 %v7447_v20, %v7417_v18  ;;  %v9108_v11 = vand.u32 4294901760, %v9107_v57 }
 0x505   : > { %8641 = vmatmul.f32.gmra.mxu0 %v13330_v56  ;;  %v7531_v3 = vadd.f32 %v7530_v9, %v7501_v23  ;;  %8663 = vmatmul.f32.vlgmr.msrb.gmra.mxu1 %v13307_v33 }
 0x506   : > { %v7477_v41 = vadd.f32 %v7476_v37, %v7448_v45  ;;  %8932 = vmatpush.msrb.mxu1 %v8931_v35 }
 0x507   : > { %8701 = vmatmul.f32.gmra.mxu2 %v8523_v26 }
 0x508   : > { %8727 = vmatmul.f32.vlgmr.msrb.gmra.mxu3 %v13307_v33 }
 0x509   : > { %8987 = vmatpush.msrb.mxu3 %v13359_v60 }
 0x50a   : > { %v7625_v40 = vpop.f32.mrf.mxu0  ;;  %v7506_v52 = vpop.f32.mrf.mxu1 }
 0x50b   : > { %v7534_v36 = vpop.f32.mrf.mxu2  ;;  %v7507_v6 = vadd.f32 %v7506_v52, %v7477_v41  ;;  %v7556_v14 = vpop.f32.mrf.mxu3 }
 0x50c   : > { %v7557_v13 = vadd.f32 %v7556_v14, %v7531_v3 }
 0x50d   : > { %8755 = vmatmul.f32.vlgmr.msra.gmra.mxu0 %v13313_v44  ;;  %v7535_v32 = vadd.f32 %v7534_v36, %v7507_v6  ;;  %8667 = vmatmul.f32.gmra.mxu1 %v13330_v56  ;;  %v9237_v36 = vpop.permute.xlu2 %9236 }
 0x50e   : > { %9019 = vmatpush.msra.mxu0 %v8929_v38  ;;  %v13396_v58 = vadd.f32 %v7557_v13, %v13316_v55  ;;  %v8898_v55 = vsub.f32 %v13390_v54, %v13401_v31 }
 0x50f   : > { %8814 = vmatmul.f32.vlgmr.msra.gmra.mxu2 %v13307_v33 }
 0x510   : > { %9071 = vmatpush.msra.mxu2 %v13382_v47  ;;  %8731 = vmatmul.f32.gmra.mxu3 %v13330_v56  ;;  %v8899_v2 = vand.u32 4294901760, %v8898_v55 }
 0x512   : > { %v7633_v44 = vpop.f32.mrf.mxu0  ;;  %v7659_v39 = vpop.f32.mrf.mxu1 }
 0x513   : > { %v7687_v8 = vpop.f32.mrf.mxu2  ;;  %v7560_v19 = vpop.f32.mrf.mxu3  ;;  %v7660_v16 = vadd.f32 %v7659_v39, %v7625_v40 }
 0x514   : > { %v7561_v15 = vadd.f32 %v7560_v19, %v7535_v32 }
 0x515   : > { %8760 = vmatmul.f32.gmra.mxu0 %v13337_v50  ;;  %v7688_v26 = vadd.f32 %v7687_v8, %v7660_v16  ;;  %8784 = vmatmul.f32.vlgmr.msra.gmra.mxu1 %v13328_v29 }
 0x516   : > { %v13414_v4 = vadd.f32 %v7561_v15, %v13340_v61  ;;  %9045 = vmatpush.msra.mxu1 %v13359_v60  ;;  %v8906_v60 = vsub.f32 %v13409_v51, %v13420_v0 }
 0x517   : > { %8818 = vmatmul.f32.gmra.mxu2 %v13330_v56 }
 0x518   : > { %8840 = vmatmul.f32.vlgmr.msra.gmra.mxu3 %v13307_v33  ;;  %v9246_v33 = vsel %vm1091_vm11, %v9241_v10, %v9243_v22  ;;  %v8907_v42 = vand.u32 4294901760, %v8906_v60 }
 0x519   : > { %9109 = vmatpush.msra.mxu3 %v9108_v11  ;;  %v9252_v46 = vsel %vm360_vm10, %v9246_v33, 0 }
 0x51a   : > { %v7746_v30 = vpop.f32.mrf.mxu0  ;;  %v7663_v50 = vpop.f32.mrf.mxu1  ;;  %v13429_v7 = vand.u32 4294901760, %v9252_v46 }
 0x51b   : > { %v7692_v1 = vpop.f32.mrf.mxu2  ;;  %v7664_v29 = vadd.f32 %v7663_v50, %v7633_v44  ;;  %v7716_v18 = vpop.f32.mrf.mxu3  ;;  %v9248_v44 = vsel %vm355_vm8, %v9237_v36, 0 }
 0x51c   : > { %v7717_v61 = vadd.f32 %v7716_v18, %v7688_v26  ;;  %v13454_v16 = vand.u32 4294901760, %v9248_v44  ;;  %v9239_v50 = vpop.permute.xlu2 %9238 }
 0x51d   : > { %8900 = vmatmul.f32.vlgmr.msrb.gmra.mxu0 %v8899_v2  ;;  %v7693_v62 = vadd.f32 %v7692_v1, %v7664_v29  ;;  %8790 = vmatmul.f32.gmra.mxu1 %v13349_v27 }
 0x51e   : > { %9136 = vmatpush.msrb.mxu0 %v9105_v21  ;;  %v7747_v38 = vadd.f32 %v7746_v30, %v7717_v61  ;;  %v13460_v30 = vsub.f32 %v9248_v44, %v13454_v16 }
 0x51f   : > { %8962 = vmatmul.f32.vlgmr.msrb.gmra.mxu2 %v13390_v54 }
 0x520   : > { %9196 = vmatpush.msrb.mxu2 %v9106_v48  ;;  %8844 = vmatmul.f32.gmra.mxu3 %v13330_v56  ;;  %v9306_v56 = vsub.f32 %v9252_v46, %v13429_v7  ;;  %v13471_v60 = vand.u32 4294901760, %v13460_v30 }
 0x522   : > { %v7750_v49 = vpop.f32.mrf.mxu0  ;;  %v7772_v53 = vpop.f32.mrf.mxu1 }
 0x523   : > { %v7802_v34 = vpop.f32.mrf.mxu2  ;;  %v7722_v12 = vpop.f32.mrf.mxu3  ;;  %v7773_v37 = vadd.f32 %v7772_v53, %v7747_v38 }
 0x524   : > { %v7723_v27 = vadd.f32 %v7722_v12, %v7693_v62 }
 0x525   : > { %8908 = vmatmul.f32.gmra.mxu0 %v8907_v42  ;;  %v13432_v9 = vadd.f32 %v7773_v37, %v13362_v5  ;;  %8934 = vmatmul.f32.vlgmr.msrb.gmra.mxu1 %v13384_v25  ;;  %v9307_v5 = vand.u32 4294901760, %v9306_v56 }
 0x526   : > { %v7751_v20 = vadd.f32 %v7750_v49, %v7723_v27  ;;  %9164 = vmatpush.msrb.mxu1 %v13382_v47 }
 0x527   : > { %8967 = vmatmul.f32.gmra.mxu2 %v13409_v51  ;;  %v9308_v52 = vsub.f32 %v9306_v56, %v9307_v5 }
 0x528   : > { %8991 = vmatmul.f32.vlgmr.msrb.gmra.mxu3 %v13401_v31 }
 0x529   : > { %9222 = vmatpush.msrb.mxu3 %v13382_v47  ;;  %v9245_v47 = vpop.permute.xlu0 %9244  ;;  %v9309_v48 = vand.u32 4294901760, %v9308_v52 }
 0x52a   : > { %v7864_v23 = vpop.f32.mrf.mxu0  ;;  %v7776_v59 = vpop.f32.mrf.mxu1  ;;  %v9247_v21 = vsel %vm1091_vm11, %v9243_v22, %v9245_v47  ;;  %v9250_v22 = vsel %vm355_vm8, %v9239_v50, 0 }
 0x52b   : > { %v7810_v45 = vpop.f32.mrf.mxu2  ;;  %v7777_v35 = vadd.f32 %v7776_v59, %v7751_v20  ;;  %v7836_v24 = vpop.f32.mrf.mxu3  ;;  %v9254_v17 = vsel %vm360_vm10, %v9247_v21, 0  ;;  %v13473_v10 = vand.u32 4294901760, %v9250_v22 }
 0x52c   : > { %v7837_v3 = vadd.f32 %v7836_v24, %v7802_v34  ;;  %v13452_v19 = vand.u32 4294901760, %v9254_v17 }
 0x52d   : > { %9021 = vmatmul.f32.vlgmr.msra.gmra.mxu0 %v13384_v25  ;;  %v13442_v41 = vadd.f32 %v7777_v35, %v13372_v28  ;;  %8938 = vmatmul.f32.gmra.mxu1 %v13403_v63  ;;  %v13479_v49 = vsub.f32 %v9250_v22, %v13473_v10 }
 0x52e   : > { %9272 = vmatpush.msra.mxu0 %v13429_v7  ;;  %v7865_v40 = vadd.f32 %v7864_v23, %v7837_v3  ;;  %v9483_v26 = vsub.f32 %v9254_v17, %v13452_v19 }
 0x52f   : > { %9077 = vmatmul.f32.vlgmr.msra.gmra.mxu2 %v8899_v2  ;;  %v13490_v20 = vand.u32 4294901760, %v13479_v49 }
 0x530   : > { %9337 = vmatpush.msra.mxu2 %v9306_v56  ;;  %8997 = vmatmul.f32.gmra.mxu3 %v13420_v0  ;;  %v9484_v61 = vand.u32 4294901760, %v9483_v26  ;;  %v9623_v56 = vpop.permute.xlu2 %9622 }
 0x532   : > { %v7869_v6 = vpop.f32.mrf.mxu0  ;;  %v7893_v14 = vpop.f32.mrf.mxu1  ;;  %v9485_v46 = vsub.f32 %v9483_v26, %v9484_v61 }
 0x533   : > { %v7923_v43 = vpop.f32.mrf.mxu2  ;;  %v7840_v13 = vpop.f32.mrf.mxu3  ;;  %v7894_v28 = vadd.f32 %v7893_v14, %v7865_v40 }
 0x534   : > { %v7841_v32 = vadd.f32 %v7840_v13, %v7810_v45  ;;  %v9486_v37 = vand.u32 4294901760, %v9485_v46 }
 0x535   : > { %9025 = vmatmul.f32.gmra.mxu0 %v13403_v63  ;;  %v7924_v39 = vadd.f32 %v7923_v43, %v7894_v28  ;;  %9047 = vmatmul.f32.vlgmr.msra.gmra.mxu1 %v13384_v25 }
 0x536   : > { %v7870_v8 = vadd.f32 %v7869_v6, %v7841_v32  ;;  %9310 = vmatpush.msra.mxu1 %v9309_v48 }
 0x537   : > { %9085 = vmatmul.f32.gmra.mxu2 %v8907_v42 }
 0x538   : > { %9111 = vmatmul.f32.vlgmr.msra.gmra.mxu3 %v13384_v25 }
 0x539   : > { %9365 = vmatpush.msra.mxu3 %v13429_v7 }
 0x53a   : > { %v7995_v57 = vpop.f32.mrf.mxu0  ;;  %v7899_v55 = vpop.f32.mrf.mxu1 }
 0x53b   : > { %v7927_v15 = vpop.f32.mrf.mxu2  ;;  %v7900_v11 = vadd.f32 %v7899_v55, %v7870_v8  ;;  %v7949_v2 = vpop.f32.mrf.mxu3 }
 0x53c   : > { %v7950_v1 = vadd.f32 %v7949_v2, %v7924_v39 }
 0x53d   : > { %9139 = vmatmul.f32.vlgmr.msrb.gmra.mxu0 %v13390_v54  ;;  %v7928_v29 = vadd.f32 %v7927_v15, %v7900_v11  ;;  %9051 = vmatmul.f32.gmra.mxu1 %v13403_v63 }
 0x53e   : > { %9397 = vmatpush.msrb.mxu0 %v9307_v5  ;;  %v13466_v18 = vadd.f32 %v7950_v1, %v13396_v58  ;;  %v9276_v58 = vsub.f32 %v13460_v30, %v13471_v60 }
 0x53f   : > { %9198 = vmatmul.f32.vlgmr.msrb.gmra.mxu2 %v13384_v25 }
 0x540   : > { %9449 = vmatpush.msrb.mxu2 %v13452_v19  ;;  %9115 = vmatmul.f32.gmra.mxu3 %v13403_v63  ;;  %v9277_v27 = vand.u32 4294901760, %v9276_v58 }
 0x542   : > { %v8003_v54 = vpop.f32.mrf.mxu0  ;;  %v8029_v62 = vpop.f32.mrf.mxu1 }
 0x543   : > { %v8057_v33 = vpop.f32.mrf.mxu2  ;;  %v7953_v38 = vpop.f32.mrf.mxu3  ;;  %v8030_v42 = vadd.f32 %v8029_v62, %v7995_v57 }
 0x544   : > { %v7954_v53 = vadd.f32 %v7953_v38, %v7928_v29  ;;  %v9627_v57 = vpop.permute.xlu2 %9626 }
 0x545   : > { %9144 = vmatmul.f32.gmra.mxu0 %v13409_v51  ;;  %v8058_v34 = vadd.f32 %v8057_v33, %v8030_v42  ;;  %9168 = vmatmul.f32.vlgmr.msrb.gmra.mxu1 %v13401_v31  ;;  %v9625_v31 = vpop.permute.xlu0 %9624 }
 0x546   : > { %v13484_v12 = vadd.f32 %v7954_v53, %v13414_v4  ;;  %9423 = vmatpush.msrb.mxu1 %v13429_v7  ;;  %v9284_v7 = vsub.f32 %v13479_v49, %v13490_v20 }
 0x547   : > { %9202 = vmatmul.f32.gmra.mxu2 %v13403_v63 }
 0x548   : > { %9224 = vmatmul.f32.vlgmr.msrb.gmra.mxu3 %v13384_v25  ;;  %v9628_v25 = vsel %vm1470_vm12, %v9623_v56, %v9625_v31  ;;  %v9285_v3 = vand.u32 4294901760, %v9284_v7 }
 0x549   : > { %9487 = vmatpush.msrb.mxu3 %v9486_v37  ;;  %v9634_v40 = vsel %vm360_vm10, %v9628_v25, 0 }
 0x54a   : > { %v8116_v51 = vpop.f32.mrf.mxu0  ;;  %v8033_v23 = vpop.f32.mrf.mxu1  ;;  %v13499_v14 = vand.u32 4294901760, %v9634_v40 }
 0x54b   : > { %v8062_v59 = vpop.f32.mrf.mxu2  ;;  %v8034_v45 = vadd.f32 %v8033_v23, %v8003_v54  ;;  %v8086_v4 = vpop.f32.mrf.mxu3 }
 0x54c   : > { %v8087_v35 = vadd.f32 %v8086_v4, %v8058_v34 }
 0x54d   : > { %9278 = vmatmul.f32.vlgmr.msra.gmra.mxu0 %v9277_v27  ;;  %v8063_v24 = vadd.f32 %v8062_v59, %v8034_v45  ;;  %9174 = vmatmul.f32.gmra.mxu1 %v13420_v0 }
 0x54e   : > { %9514 = vmatpush.msra.mxu0 %v9483_v26  ;;  %v8117_v5 = vadd.f32 %v8116_v51, %v8087_v35  ;;  %v9629_v26 = vsel %vm1470_vm12, %v9625_v31, %v9627_v57 }
 0x54f   : > { %9340 = vmatmul.f32.vlgmr.msra.gmra.mxu2 %v13460_v30  ;;  %v9636_v22 = vsel %vm360_vm10, %v9629_v26, 0 }
 0x550   : > { %9574 = vmatpush.msra.mxu2 %v9484_v61  ;;  %9228 = vmatmul.f32.gmra.mxu3 %v13403_v63  ;;  %v9688_v63 = vsub.f32 %v9634_v40, %v13499_v14  ;;  %v13522_v38 = vand.u32 4294901760, %v9636_v22 }
 0x552   : > { %v8120_v47 = vpop.f32.mrf.mxu0  ;;  %v8142_v52 = vpop.f32.mrf.mxu1  ;;  %v9865_v37 = vsub.f32 %v9636_v22, %v13522_v38 }
 0x553   : > { %v8172_v36 = vpop.f32.mrf.mxu2  ;;  %v8092_v21 = vpop.f32.mrf.mxu3  ;;  %v8143_v6 = vadd.f32 %v8142_v52, %v8117_v5 }
 0x554   : > { %v8093_v0 = vadd.f32 %v8092_v21, %v8063_v24  ;;  %v9866_v4 = vand.u32 4294901760, %v9865_v37 }
 0x555   : > { %9286 = vmatmul.f32.gmra.mxu0 %v9285_v3  ;;  %v13502_v43 = vadd.f32 %v8143_v6, %v13432_v9  ;;  %9312 = vmatmul.f32.vlgmr.msra.gmra.mxu1 %v13454_v16  ;;  %v9689_v9 = vand.u32 4294901760, %v9688_v63 }
 0x556   : > { %v8121_v13 = vadd.f32 %v8120_v47, %v8093_v0  ;;  %9542 = vmatpush.msra.mxu1 %v13452_v19  ;;  %v9867_v40 = vsub.f32 %v9865_v37, %v9866_v4 }
 0x557   : > { %9345 = vmatmul.f32.gmra.mxu2 %v13479_v49  ;;  %v9690_v15 = vsub.f32 %v9688_v63, %v9689_v9 }
 0x558   : > { %9369 = vmatmul.f32.vlgmr.msra.gmra.mxu3 %v13471_v60  ;;  %v9868_v6 = vand.u32 4294901760, %v9867_v40 }
 0x559   : > { %9600 = vmatpush.msra.mxu3 %v13452_v19  ;;  %v9619_v19 = vpop.permute.xlu1 %9618  ;;  %v9691_v61 = vand.u32 4294901760, %v9690_v15 }
 0x55a   : > { %v8234_v28 = vpop.f32.mrf.mxu0  ;;  %v8146_v17 = vpop.f32.mrf.mxu1  ;;  %v9630_v62 = vsel %vm355_vm8, %v9619_v19, 0 }
 0x55b   : > { %v8180_v32 = vpop.f32.mrf.mxu2  ;;  %v8147_v48 = vadd.f32 %v8146_v17, %v8121_v13  ;;  %v8206_v44 = vpop.f32.mrf.mxu3  ;;  %v13525_v42 = vand.u32 4294901760, %v9630_v62 }
 0x55c   : > { %v8207_v39 = vadd.f32 %v8206_v44, %v8172_v36  ;;  %v10829_v44 = vld [vmem:[#allocation2 + $0x8] sm:$0x7f] }
 0x55d   : > { %9399 = vmatmul.f32.vlgmr.msrb.gmra.mxu0 %v13454_v16  ;;  %v13512_v8 = vadd.f32 %v8147_v48, %v13442_v41  ;;  %9316 = vmatmul.f32.gmra.mxu1 %v13473_v10  ;;  %v13531_v23 = vsub.f32 %v9630_v62, %v13525_v42 }
 0x55e   : > { %9654 = vmatpush.msrb.mxu0 %v13499_v14  ;;  %v8235_v55 = vadd.f32 %v8234_v28, %v8207_v39 }
 0x55f   : > { %9455 = vmatmul.f32.vlgmr.msrb.gmra.mxu2 %v9277_v27 }
 0x560   : > { %9719 = vmatpush.msrb.mxu2 %v9688_v63  ;;  %9375 = vmatmul.f32.gmra.mxu3 %v13490_v20 }
 0x561   : > { %v9621_v58 = vpop.permute.xlu1 %9620 }
 0x562   : > { %v8239_v11 = vpop.f32.mrf.mxu0  ;;  %v8263_v2 = vpop.f32.mrf.mxu1  ;;  %v9632_v31 = vsel %vm355_vm8, %v9621_v58, 0 }
 0x563   : > { %v8293_v50 = vpop.f32.mrf.mxu2  ;;  %v8210_v1 = vpop.f32.mrf.mxu3  ;;  %v8264_v41 = vadd.f32 %v8263_v2, %v8235_v55  ;;  %v13544_v35 = vand.u32 4294901760, %v9632_v31 }
 0x564   : > { %v8211_v29 = vadd.f32 %v8210_v1, %v8180_v32 }
 0x565   : > { %9403 = vmatmul.f32.gmra.mxu0 %v13473_v10  ;;  %v8294_v54 = vadd.f32 %v8293_v50, %v8264_v41  ;;  %9425 = vmatmul.f32.vlgmr.msrb.gmra.mxu1 %v13454_v16  ;;  %v13550_v52 = vsub.f32 %v9632_v31, %v13544_v35 }
 0x566   : > { %v8240_v33 = vadd.f32 %v8239_v11, %v8211_v29  ;;  %9692 = vmatpush.msrb.mxu1 %v9691_v61 }
 0x567   : > { %9463 = vmatmul.f32.gmra.mxu2 %v9285_v3  ;;  %v13560_v13 = vand.u32 4294901760, %v13550_v52 }
 0x568   : > { %9489 = vmatmul.f32.vlgmr.msrb.gmra.mxu3 %v13454_v16 }
 0x569   : > { %9747 = vmatpush.msrb.mxu3 %v13499_v14 }
 0x56a   : > { %v8517_v46 = vpop.f32.mrf.mxu0  ;;  %v8269_v53 = vpop.f32.mrf.mxu1 }
 0x56b   : > { %v8297_v34 = vpop.f32.mrf.mxu2  ;;  %v8270_v27 = vadd.f32 %v8269_v53, %v8240_v33  ;;  %v8319_v56 = vpop.f32.mrf.mxu3 }
 0x56c   : > { %v8320_v51 = vadd.f32 %v8319_v56, %v8294_v54 }
 0x56d   : > { %9517 = vmatmul.f32.vlgmr.msra.gmra.mxu0 %v13460_v30  ;;  %v8298_v59 = vadd.f32 %v8297_v34, %v8270_v27  ;;  %9429 = vmatmul.f32.gmra.mxu1 %v13473_v10  ;;  %v13542_v30 = vand.u32 4294901760, %v13531_v23  ;;  %v10830_v27 = vld [vmem:[#allocation2 + $0x10] sm:$0x7f] }
 0x56e   : > { %9779 = vmatpush.msra.mxu0 %v9689_v9  ;;  %v13536_v45 = vadd.f32 %v8320_v51, %v13466_v18  ;;  %v10004_v9 = vsel %vm360_vm10, %v10829_v44, 0 }
 0x56f   : > { %9576 = vmatmul.f32.vlgmr.msra.gmra.mxu2 %v13454_v16  ;;  %v9658_v18 = vsub.f32 %v13531_v23, %v13542_v30  ;;  %v13568_v11 = vand.u32 4294901760, %v10004_v9 }
 0x570   : > { %9831 = vmatpush.msra.mxu2 %v13522_v38  ;;  %9493 = vmatmul.f32.gmra.mxu3 %v13473_v10 }
 0x571   : > { %v9659_v0 = vand.u32 4294901760, %v9658_v18 }
 0x572   : > { %v8525_v7 = vpop.f32.mrf.mxu0  ;;  %v8551_v24 = vpop.f32.mrf.mxu1 }
 0x573   : > { %v8579_v25 = vpop.f32.mrf.mxu2  ;;  %v8323_v5 = vpop.f32.mrf.mxu3  ;;  %v8552_v3 = vadd.f32 %v8551_v24, %v8517_v46 }
 0x574   : > { %v8324_v47 = vadd.f32 %v8323_v5, %v8298_v59  ;;  %v9997_v46 = vpop.permute.xlu0 %9996  ;;  %v9999_v5 = vpop.permute.xlu1 %9998 }
 0x575   : > { %9522 = vmatmul.f32.gmra.mxu0 %v13479_v49  ;;  %v8580_v36 = vadd.f32 %v8579_v25, %v8552_v3  ;;  %9546 = vmatmul.f32.vlgmr.msra.gmra.mxu1 %v13471_v60  ;;  %v10000_v31 = vsel %vm355_vm8, %v9997_v46, 0 }
 0x576   : > { %v13554_v21 = vadd.f32 %v8324_v47, %v13484_v12  ;;  %9805 = vmatpush.msra.mxu1 %v13499_v14  ;;  %v9666_v12 = vsub.f32 %v13550_v52, %v13560_v13  ;;  %v13593_v24 = vand.u32 4294901760, %v10000_v31 }
 0x577   : > { %9580 = vmatmul.f32.gmra.mxu2 %v13473_v10 }
 0x578   : > { %9602 = vmatmul.f32.vlgmr.msra.gmra.mxu3 %v13454_v16  ;;  %v9667_v16 = vand.u32 4294901760, %v9666_v12 }
 0x579   : > { %9869 = vmatpush.msra.mxu3 %v9868_v6 }
 0x57a   : > { %v8638_v49 = vpop.f32.mrf.mxu0  ;;  %v8555_v63 = vpop.f32.mrf.mxu1 }
 0x57b   : > { %v8584_v28 = vpop.f32.mrf.mxu2  ;;  %v8556_v17 = vadd.f32 %v8555_v63, %v8525_v7  ;;  %v8608_v60 = vpop.f32.mrf.mxu3  ;;  %v10002_v63 = vsel %vm355_vm8, %v9999_v5, 0 }
 0x57c   : > { %v8609_v32 = vadd.f32 %v8608_v60, %v8580_v36  ;;  %v13612_v60 = vand.u32 4294901760, %v10002_v63 }
 0x57d   : > { %9660 = vmatmul.f32.vlgmr.msrb.gmra.mxu0 %v9659_v0  ;;  %v8585_v14 = vadd.f32 %v8584_v28, %v8556_v17  ;;  %9552 = vmatmul.f32.gmra.mxu1 %v13490_v20 }
 0x57e   : > { %9896 = vmatpush.msrb.mxu0 %v9865_v37  ;;  %v8639_v48 = vadd.f32 %v8638_v49, %v8609_v32 }
 0x57f   : > { %9722 = vmatmul.f32.vlgmr.msrb.gmra.mxu2 %v13531_v23 }
 0x580   : > { %9956 = vmatpush.msrb.mxu2 %v9866_v4  ;;  %9606 = vmatmul.f32.gmra.mxu3 %v13473_v10  ;;  %v10058_v10 = vsub.f32 %v10004_v9, %v13568_v11 }
 0x582   : > { %v8642_v39 = vpop.f32.mrf.mxu0  ;;  %v8664_v57 = vpop.f32.mrf.mxu1  ;;  %v10059_v61 = vand.u32 4294901760, %v10058_v10 }
 0x583   : > { %v8694_v55 = vpop.f32.mrf.mxu2  ;;  %v8614_v19 = vpop.f32.mrf.mxu3  ;;  %v8665_v15 = vadd.f32 %v8664_v57, %v8639_v48 }
 0x584   : > { %v8615_v26 = vadd.f32 %v8614_v19, %v8585_v14  ;;  %v10060_v33 = vsub.f32 %v10058_v10, %v10059_v61 }
 0x585   : > { %9668 = vmatmul.f32.gmra.mxu0 %v9667_v16  ;;  %v13571_v20 = vadd.f32 %v8665_v15, %v13502_v43  ;;  %9694 = vmatmul.f32.vlgmr.msrb.gmra.mxu1 %v13525_v42 }
 0x586   : > { %v8643_v2 = vadd.f32 %v8642_v39, %v8615_v26  ;;  %9924 = vmatpush.msrb.mxu1 %v13522_v38  ;;  %v10061_v51 = vand.u32 4294901760, %v10060_v33  ;;  %v13618_v39 = vsub.f32 %v10002_v63, %v13612_v60  ;;  %v10366_v63 = vld [vmem:[%s13719_s2] sm:$0xff] }
 0x587   : > { %9727 = vmatmul.f32.gmra.mxu2 %v13550_v52 }
 0x588   : > { %9751 = vmatmul.f32.vlgmr.msrb.gmra.mxu3 %v13542_v30  ;;  %v13628_v26 = vand.u32 4294901760, %v13618_v39 }
 0x589   : > { %9982 = vmatpush.msrb.mxu3 %v13522_v38 }
 0x58a   : > { %v8756_v50 = vpop.f32.mrf.mxu0  ;;  %v8668_v1 = vpop.f32.mrf.mxu1 }
 0x58b   : > { %v8702_v41 = vpop.f32.mrf.mxu2  ;;  %v8669_v22 = vadd.f32 %v8668_v1, %v8643_v2  ;;  %v8728_v29 = vpop.f32.mrf.mxu3 }
 0x58c   : > { %v8729_v43 = vadd.f32 %v8728_v29, %v8694_v55 }
 0x58d   : > { %9781 = vmatmul.f32.vlgmr.msra.gmra.mxu0 %v13525_v42  ;;  %v13581_v54 = vadd.f32 %v8669_v22, %v13512_v8  ;;  %9698 = vmatmul.f32.gmra.mxu1 %v13544_v35  ;;  %v10006_v8 = vsel %vm360_vm10, %v10830_v27, 0  ;;  %v10952_v27 = vmov 0  }
 0x58e   : > { %10024 = vmatpush.msra.mxu0 %v13568_v11  ;;  %v8757_v62 = vadd.f32 %v8756_v50, %v8729_v43  ;;  %v13590_v7 = vand.u32 4294901760, %v10006_v8  ;;  %10818 = vset.pattern.permute.xlu0 %v10952_v27 }
 0x58f   : > { %9837 = vmatmul.f32.vlgmr.msra.gmra.mxu2 %v9659_v0  ;;  %v13599_v0 = vsub.f32 %v10000_v31, %v13593_v24  ;;  %10817 = vset.pattern.permute.xlu2 %v10952_v27 }
 0x590   : > { %10089 = vmatpush.msra.mxu2 %v10058_v10  ;;  %9757 = vmatmul.f32.gmra.mxu3 %v13560_v13  ;;  %v10235_v36 = vsub.f32 %v10006_v8, %v13590_v7  ;;  %v10367_v8 = vld [vmem:[%s13719_s2 + $0x8] sm:$0x1] }
 0x591   : > { %10375 = vperm.xlu0 %10818, %v10367_v8   ;;  %10370 = vperm.xlu2 %10817, %v10366_v63  }
 0x592   : > { %v8761_v38 = vpop.f32.mrf.mxu0  ;;  %v8785_v58 = vpop.f32.mrf.mxu1  ;;  %v10236_v17 = vand.u32 4294901760, %v10235_v36 }
 0x593   : > { %v8815_v53 = vpop.f32.mrf.mxu2  ;;  %v8732_v34 = vpop.f32.mrf.mxu3  ;;  %v8786_v37 = vadd.f32 %v8785_v58, %v8757_v62 }
 0x594   : > { %v8733_v56 = vadd.f32 %v8732_v34, %v8702_v41  ;;  %v10237_v44 = vsub.f32 %v10235_v36, %v10236_v17 }
 0x595   : > { %9785 = vmatmul.f32.gmra.mxu0 %v13544_v35  ;;  %v8816_v59 = vadd.f32 %v8815_v53, %v8786_v37  ;;  %9807 = vmatmul.f32.vlgmr.msra.gmra.mxu1 %v13525_v42 }
 0x596   : > { %v8762_v4 = vadd.f32 %v8761_v38, %v8733_v56  ;;  %10062 = vmatpush.msra.mxu1 %v10061_v51  ;;  %v10238_v19 = vand.u32 4294901760, %v10237_v44 }
 0x597   : > { %9845 = vmatmul.f32.gmra.mxu2 %v9667_v16 }
 0x598   : > { %9871 = vmatmul.f32.vlgmr.msra.gmra.mxu3 %v13525_v42 }
 0x599   : > { %10117 = vmatpush.msra.mxu3 %v13568_v11 }
 0x59a   : > { %v8901_v25 = vpop.f32.mrf.mxu0  ;;  %v8791_v3 = vpop.f32.mrf.mxu1 }
 0x59b   : > { %v8819_v40 = vpop.f32.mrf.mxu2  ;;  %v8792_v18 = vadd.f32 %v8791_v3, %v8762_v4  ;;  %v8841_v47 = vpop.f32.mrf.mxu3 }
 0x59c   : > { %v8842_v6 = vadd.f32 %v8841_v47, %v8816_v59 }
 0x59d   : > { %9899 = vmatmul.f32.vlgmr.msrb.gmra.mxu0 %v13531_v23  ;;  %v8820_v49 = vadd.f32 %v8819_v40, %v8792_v18  ;;  %9811 = vmatmul.f32.gmra.mxu1 %v13544_v35  ;;  %v13610_v23 = vand.u32 4294901760, %v13599_v0 }
 0x59e   : > { %10149 = vmatpush.msrb.mxu0 %v10059_v61  ;;  %v13604_v28 = vadd.f32 %v8842_v6, %v13536_v45 }
 0x59f   : > { %9958 = vmatmul.f32.vlgmr.msrb.gmra.mxu2 %v13525_v42  ;;  %v10028_v45 = vsub.f32 %v13599_v0, %v13610_v23 }
 0x5a0   : > { %10201 = vmatpush.msrb.mxu2 %v13590_v7  ;;  %9875 = vmatmul.f32.gmra.mxu3 %v13544_v35 }
 0x5a1   : > { %v10029_v15 = vand.u32 4294901760, %v10028_v45 }
 0x5a2   : > { %v8909_v32 = vpop.f32.mrf.mxu0  ;;  %v8935_v12 = vpop.f32.mrf.mxu1 }
 0x5a3   : > { %v8963_v14 = vpop.f32.mrf.mxu2  ;;  %v8845_v48 = vpop.f32.mrf.mxu3  ;;  %v8936_v16 = vadd.f32 %v8935_v12, %v8901_v25 }
 0x5a4   : > { %v8846_v9 = vadd.f32 %v8845_v48, %v8820_v49 }
 0x5a5   : > { %9904 = vmatmul.f32.gmra.mxu0 %v13550_v52  ;;  %v8964_v57 = vadd.f32 %v8963_v14, %v8936_v16  ;;  %9928 = vmatmul.f32.vlgmr.msrb.gmra.mxu1 %v13542_v30 }
 0x5a6   : > { %v13622_v55 = vadd.f32 %v8846_v9, %v13554_v21  ;;  %10175 = vmatpush.msrb.mxu1 %v13568_v11  ;;  %v10036_v21 = vsub.f32 %v13618_v39, %v13628_v26 }
 0x5a7   : > { %9962 = vmatmul.f32.gmra.mxu2 %v13544_v35 }
 0x5a8   : > { %9984 = vmatmul.f32.vlgmr.msrb.gmra.mxu3 %v13525_v42  ;;  %v10037_v42 = vand.u32 4294901760, %v10036_v21 }
 0x5a9   : > { %10239 = vmatpush.msrb.mxu3 %v10238_v19 }
 0x5aa   : > { %v9022_v52 = vpop.f32.mrf.mxu0  ;;  %v8939_v2 = vpop.f32.mrf.mxu1 }
 0x5ab   : > { %v8968_v10 = vpop.f32.mrf.mxu2  ;;  %v8940_v50 = vadd.f32 %v8939_v2, %v8909_v32  ;;  %v8992_v30 = vpop.f32.mrf.mxu3 }
 0x5ac   : > { %v8993_v1 = vadd.f32 %v8992_v30, %v8964_v57 }
 0x5ad   : > { %10030 = vmatmul.f32.vlgmr.msra.gmra.mxu0 %v10029_v15  ;;  %v8969_v11 = vadd.f32 %v8968_v10, %v8940_v50  ;;  %9934 = vmatmul.f32.gmra.mxu1 %v13560_v13 }
 0x5ae   : > { %10266 = vmatpush.msra.mxu0 %v10235_v36  ;;  %v9023_v41 = vadd.f32 %v9022_v52, %v8993_v1 }
 0x5af   : > { %10092 = vmatmul.f32.vlgmr.msra.gmra.mxu2 %v13599_v0 }
 0x5b0   : > { %10326 = vmatpush.msra.mxu2 %v10236_v17  ;;  %9988 = vmatmul.f32.gmra.mxu3 %v13544_v35 }
 0x5b2   : > { %v9026_v22 = vpop.f32.mrf.mxu0  ;;  %v9048_v29 = vpop.f32.mrf.mxu1 }
 0x5b3   : > { %v9078_v43 = vpop.f32.mrf.mxu2  ;;  %v8998_v61 = vpop.f32.mrf.mxu3  ;;  %v9049_v62 = vadd.f32 %v9048_v29, %v9023_v41 }
 0x5b4   : > { %v8999_v33 = vadd.f32 %v8998_v61, %v8969_v11 }
 0x5b5   : > { %10038 = vmatmul.f32.gmra.mxu0 %v10037_v42  ;;  %v13636_v38 = vadd.f32 %v9049_v62, %v13571_v20  ;;  %10064 = vmatmul.f32.vlgmr.msra.gmra.mxu1 %v13593_v24 }
 0x5b6   : > { %v9027_v13 = vadd.f32 %v9026_v22, %v8999_v33  ;;  %10294 = vmatpush.msra.mxu1 %v13590_v7 }
 0x5b7   : > { %10097 = vmatmul.f32.gmra.mxu2 %v13618_v39 }
 0x5b8   : > { %10121 = vmatmul.f32.vlgmr.msra.gmra.mxu3 %v13610_v23 }
 0x5b9   : > { %10352 = vmatpush.msra.mxu3 %v13590_v7 }
 0x5ba   : > { %v9140_v35 = vpop.f32.mrf.mxu0  ;;  %v9052_v46 = vpop.f32.mrf.mxu1 }
 0x5bb   : > { %v9086_v58 = vpop.f32.mrf.mxu2  ;;  %v9053_v53 = vadd.f32 %v9052_v46, %v9027_v13  ;;  %v9112_v34 = vpop.f32.mrf.mxu3 }
 0x5bc   : > { %v9113_v37 = vadd.f32 %v9112_v34, %v9078_v43 }
 0x5bd   : > { %10151 = vmatmul.f32.vlgmr.msrb.gmra.mxu0 %v13593_v24  ;;  %v13645_v20 = vadd.f32 %v9053_v53, %v13581_v54  ;;  %10068 = vmatmul.f32.gmra.mxu1 %v13612_v60 }
 0x5be   : > { %v9141_v56 = vadd.f32 %v9140_v35, %v9113_v37 }
 0x5bf   : > { %10207 = vmatmul.f32.vlgmr.msrb.gmra.mxu2 %v10029_v15 }
 0x5c0   : > { %10127 = vmatmul.f32.gmra.mxu3 %v13628_v26 }
 0x5c2   : > { %v9145_v51 = vpop.f32.mrf.mxu0  ;;  %v9169_v59 = vpop.f32.mrf.mxu1 }
 0x5c3   : > { %v9199_v31 = vpop.f32.mrf.mxu2  ;;  %v9116_v4 = vpop.f32.mrf.mxu3  ;;  %v9170_v54 = vadd.f32 %v9169_v59, %v9141_v56 }
 0x5c4   : > { %v9117_v7 = vadd.f32 %v9116_v4, %v9086_v58 }
 0x5c5   : > { %10155 = vmatmul.f32.gmra.mxu0 %v13612_v60  ;;  %v9200_v25 = vadd.f32 %v9199_v31, %v9170_v54  ;;  %10177 = vmatmul.f32.vlgmr.msrb.gmra.mxu1 %v13593_v24 }
 0x5c6   : > { %v9146_v5 = vadd.f32 %v9145_v51, %v9117_v7 }
 0x5c7   : > { %10215 = vmatmul.f32.gmra.mxu2 %v10037_v42 }
 0x5c8   : > { %10241 = vmatmul.f32.vlgmr.msrb.gmra.mxu3 %v13593_v24 }
 0x5ca   : > { %v9279_v3 = vpop.f32.mrf.mxu0  ;;  %v9175_v40 = vpop.f32.mrf.mxu1 }
 0x5cb   : > { %v9203_v18 = vpop.f32.mrf.mxu2  ;;  %v9176_v47 = vadd.f32 %v9175_v40, %v9146_v5  ;;  %v9225_v36 = vpop.f32.mrf.mxu3 }
 0x5cc   : > { %v9226_v6 = vadd.f32 %v9225_v36, %v9200_v25 }
 0x5cd   : > { %10269 = vmatmul.f32.vlgmr.msra.gmra.mxu0 %v13599_v0  ;;  %v9204_v49 = vadd.f32 %v9203_v18, %v9176_v47  ;;  %10181 = vmatmul.f32.gmra.mxu1 %v13612_v60 }
 0x5ce   : > { %v9233_v17 = vadd.f32 %v9226_v6, %v13604_v28 }
 0x5cf   : > { %10328 = vmatmul.f32.vlgmr.msra.gmra.mxu2 %v13593_v24 }
 0x5d0   : > { %10245 = vmatmul.f32.gmra.mxu3 %v13612_v60 }
 0x5d2   : > { %v9287_v32 = vpop.f32.mrf.mxu0  ;;  %v9313_v12 = vpop.f32.mrf.mxu1 }
 0x5d3   : > { %v9341_v14 = vpop.f32.mrf.mxu2  ;;  %v9229_v48 = vpop.f32.mrf.mxu3  ;;  %v9314_v16 = vadd.f32 %v9313_v12, %v9279_v3 }
 0x5d4   : > { %v9230_v0 = vadd.f32 %v9229_v48, %v9204_v49 }
 0x5d5   : > { %10274 = vmatmul.f32.gmra.mxu0 %v13618_v39  ;;  %v9342_v44 = vadd.f32 %v9341_v14, %v9314_v16  ;;  %10298 = vmatmul.f32.vlgmr.msra.gmra.mxu1 %v13610_v23 }
 0x5d6   : > { %v9235_v45 = vadd.f32 %v9230_v0, %v13622_v55 }
 0x5d7   : > { %10332 = vmatmul.f32.gmra.mxu2 %v13612_v60 }
 0x5d8   : > { %10354 = vmatmul.f32.vlgmr.msra.gmra.mxu3 %v13593_v24 }
 0x5da   : > { %v9400_v28 = vpop.f32.mrf.mxu0  ;;  %v9317_v9 = vpop.f32.mrf.mxu1 }
 0x5db   : > { %v9346_v57 = vpop.f32.mrf.mxu2  ;;  %v9318_v19 = vadd.f32 %v9317_v9, %v9287_v32  ;;  %v9370_v15 = vpop.f32.mrf.mxu3 }
 0x5dc   : > { %v9371_v52 = vadd.f32 %v9370_v15, %v9342_v44 }
 0x5dd   : > { %v9347_v2 = vadd.f32 %v9346_v57, %v9318_v19  ;;  %10304 = vmatmul.f32.gmra.mxu1 %v13628_v26 }
 0x5de   : > { %v9401_v10 = vadd.f32 %v9400_v28, %v9371_v52 }
 0x5e0   : > { %10358 = vmatmul.f32.gmra.mxu3 %v13612_v60 }
 0x5e2   : > { %v9404_v39 = vpop.f32.mrf.mxu0  ;;  %v9426_v23 = vpop.f32.mrf.mxu1 }
 0x5e3   : > { %v9456_v50 = vpop.f32.mrf.mxu2  ;;  %v9376_v55 = vpop.f32.mrf.mxu3  ;;  %v9427_v30 = vadd.f32 %v9426_v23, %v9401_v10 }
 0x5e4   : > { %v9377_v1 = vadd.f32 %v9376_v55, %v9347_v2 }
 0x5e5   : > { %v9610_v24 = vadd.f32 %v9427_v30, %v13636_v38 }
 0x5e6   : > { %v9405_v21 = vadd.f32 %v9404_v39, %v9377_v1 }
 0x5ea   : > { %v9518_v11 = vpop.f32.mrf.mxu0  ;;  %v9430_v41 = vpop.f32.mrf.mxu1 }
 0x5eb   : > { %v9464_v42 = vpop.f32.mrf.mxu2  ;;  %v9431_v22 = vadd.f32 %v9430_v41, %v9405_v21  ;;  %v9490_v29 = vpop.f32.mrf.mxu3 }
 0x5ec   : > { %v9491_v43 = vadd.f32 %v9490_v29, %v9456_v50 }
 0x5ed   : > { %v9612_v26 = vadd.f32 %v9431_v22, %v13645_v20 }
 0x5ee   : > { %v9519_v61 = vadd.f32 %v9518_v11, %v9491_v43 }
 0x5f2   : > { %v9523_v62 = vpop.f32.mrf.mxu0  ;;  %v9547_v60 = vpop.f32.mrf.mxu1 }
 0x5f3   : > { %v9577_v33 = vpop.f32.mrf.mxu2  ;;  %v9494_v13 = vpop.f32.mrf.mxu3  ;;  %v9548_v35 = vadd.f32 %v9547_v60, %v9519_v61 }
 0x5f4   : > { %v9495_v46 = vadd.f32 %v9494_v13, %v9464_v42 }
 0x5f5   : > { %v9578_v58 = vadd.f32 %v9577_v33, %v9548_v35 }
 0x5f6   : > { %v9524_v53 = vadd.f32 %v9523_v62, %v9495_v46 }
 0x5fa   : > { %v9661_v34 = vpop.f32.mrf.mxu0  ;;  %v9553_v38 = vpop.f32.mrf.mxu1 }
 0x5fb   : > { %v9581_v37 = vpop.f32.mrf.mxu2  ;;  %v9554_v27 = vadd.f32 %v9553_v38, %v9524_v53  ;;  %v9603_v8 = vpop.f32.mrf.mxu3 }
 0x5fc   : > { %v9604_v56 = vadd.f32 %v9603_v8, %v9578_v58 }
 0x5fd   : > { %v9582_v51 = vadd.f32 %v9581_v37, %v9554_v27 }
 0x5fe   : > { %v13672_v59 = vadd.f32 %v9604_v56, %v9233_v17 }
 0x602   : > { %v9669_v31 = vpop.f32.mrf.mxu0  ;;  %v9695_v20 = vpop.f32.mrf.mxu1 }
 0x603   : > { %v9723_v4 = vpop.f32.mrf.mxu2  ;;  %v9607_v54 = vpop.f32.mrf.mxu3  ;;  %v9696_v7 = vadd.f32 %v9695_v20, %v9661_v34 }
 0x604   : > { %v9608_v25 = vadd.f32 %v9607_v54, %v9582_v51  ;;  %v10371_v51 = vpop.permute.xlu2 %10370 }
 0x605   : > { %v9724_v5 = vadd.f32 %v9723_v4, %v9696_v7 }
 0x606   : > { %v9613_v3 = vadd.f32 %v9608_v25, %v9235_v45 }
 0x60a   : > { %v9782_v40 = vpop.f32.mrf.mxu0  ;;  %v9699_v18 = vpop.f32.mrf.mxu1 }
 0x60b   : > { %v9728_v47 = vpop.f32.mrf.mxu2  ;;  %v9700_v36 = vadd.f32 %v9699_v18, %v9669_v31  ;;  %v9752_v6 = vpop.f32.mrf.mxu3 }
 0x60c   : > { %v9753_v49 = vadd.f32 %v9752_v6, %v9724_v5 }
 0x60d   : > { %v9729_v63 = vadd.f32 %v9728_v47, %v9700_v36 }
 0x60e   : > { %v9783_v32 = vadd.f32 %v9782_v40, %v9753_v49 }
 0x612   : > { %v9786_v12 = vpop.f32.mrf.mxu0  ;;  %v9808_v14 = vpop.f32.mrf.mxu1 }
 0x613   : > { %v9838_v17 = vpop.f32.mrf.mxu2  ;;  %v9758_v48 = vpop.f32.mrf.mxu3  ;;  %v9809_v16 = vadd.f32 %v9808_v14, %v9783_v32 }
 0x614   : > { %v9759_v0 = vadd.f32 %v9758_v48, %v9729_v63 }
 0x615   : > { %v9992_v44 = vadd.f32 %v9809_v16, %v9610_v24 }
 0x616   : > { %v9787_v28 = vadd.f32 %v9786_v12, %v9759_v0 }
 0x61a   : > { %v9900_v9 = vpop.f32.mrf.mxu0  ;;  %v9812_v57 = vpop.f32.mrf.mxu1 }
 0x61b   : > { %v9846_v19 = vpop.f32.mrf.mxu2  ;;  %v9813_v45 = vadd.f32 %v9812_v57, %v9787_v28  ;;  %v9872_v15 = vpop.f32.mrf.mxu3 }
 0x61c   : > { %v9873_v18 = vadd.f32 %v9872_v15, %v9838_v17 }
 0x61d   : > { %v9994_v52 = vadd.f32 %v9813_v45, %v9612_v26 }
 0x61e   : > { %v9901_v6 = vadd.f32 %v9900_v9, %v9873_v18 }
 0x622   : > { %v9905_v2 = vpop.f32.mrf.mxu0  ;;  %v9929_v10 = vpop.f32.mrf.mxu1 }
 0x623   : > { %v9959_v39 = vpop.f32.mrf.mxu2  ;;  %v9876_v23 = vpop.f32.mrf.mxu3  ;;  %v9930_v32 = vadd.f32 %v9929_v10, %v9901_v6 }
 0x624   : > { %v9877_v50 = vadd.f32 %v9876_v23, %v9846_v19 }
 0x626   : > { %v9906_v55 = vadd.f32 %v9905_v2, %v9877_v50 }
 0x62a   : > { %v10031_v30 = vpop.f32.mrf.mxu0  ;;  %v9935_v1 = vpop.f32.mrf.mxu1 }
 0x62b   : > { %v9963_v21 = vpop.f32.mrf.mxu2  ;;  %v9936_v11 = vadd.f32 %v9935_v1, %v9906_v55  ;;  %v9985_v41 = vpop.f32.mrf.mxu3 }
 0x62d   : > { %v9964_v42 = vadd.f32 %v9963_v21, %v9936_v11 }
 0x632   : > { %v10065_v24 = vpop.f32.mrf.mxu1  ;;  %v10039_v61 = vpop.f32.mrf.mxu0 }
 0x633   : > { %v10093_v22 = vpop.f32.mrf.mxu2  ;;  %v9989_v29 = vpop.f32.mrf.mxu3  ;;  %v10066_v26 = vadd.f32 %v10065_v24, %v10031_v30 }
 0x634   : > { %v9990_v43 = vadd.f32 %v9989_v29, %v9964_v42 }
 0x635   : > { %v10094_v33 = vadd.f32 %v10093_v22, %v10066_v26 }
 0x636   : > { %v13674_v62 = vadd.f32 %v9990_v43, %v9613_v3 }
 0x63a   : > { %v10069_v60 = vpop.f32.mrf.mxu1  ;;  %v10152_v34 = vpop.f32.mrf.mxu0 }
 0x63b   : > { %v10070_v13 = vadd.f32 %v10069_v60, %v10039_v61  ;;  %v10098_v35 = vpop.f32.mrf.mxu2  ;;  %v10122_v46 = vpop.f32.mrf.mxu3 }
 0x63c   : > { %v10123_v53 = vadd.f32 %v10122_v46, %v10094_v33 }
 0x63d   : > { %v10099_v58 = vadd.f32 %v10098_v35, %v10070_v13 }
 0x63e   : > { %v10153_v38 = vadd.f32 %v10152_v34, %v10123_v53 }
 0x642   : > { %v10178_v37 = vpop.f32.mrf.mxu1  ;;  %v10156_v54 = vpop.f32.mrf.mxu0 }
 0x643   : > { %v10128_v27 = vpop.f32.mrf.mxu3  ;;  %v10179_v8 = vadd.f32 %v10178_v37, %v10153_v38  ;;  %v10208_v31 = vpop.f32.mrf.mxu2 }
 0x644   : > { %v10129_v56 = vadd.f32 %v10128_v27, %v10099_v58 }
 0x645   : > { %v10362_v20 = vadd.f32 %v10179_v8, %v9992_v44  ;;  %v9960_v44 = vadd.f32 %v9959_v39, %v9930_v32 }
 0x646   : > { %v10157_v7 = vadd.f32 %v10156_v54, %v10129_v56 }
 0x647   : > { %v10378_v4 = vadd.f32 %v10371_v51, %v10362_v20  ;;  %v9986_v57 = vadd.f32 %v9985_v41, %v9960_v44 }
 0x649   : > { %v10713_v25 = vmul.f32 -1.442695, %v10378_v4  ;;  %v9993_v15 = vadd.f32 %v9986_v57, %v13672_v59  ;;  %v10376_v59 = vpop.permute.xlu0 %10375 }
 0x64a   : > { %v10182_v5 = vpop.f32.mrf.mxu1  ;;  %v10270_v14 = vpop.f32.mrf.mxu0 }
 0x64b   : > { %10819 = vpow2.f32 %v10713_v25  ;;  %v10183_v3 = vadd.f32 %v10182_v5, %v10157_v7  ;;  %v10242_v40 = vpop.f32.mrf.mxu3  ;;  %v10216_v36 = vpop.f32.mrf.mxu2 }
 0x64c   : > { %v10243_v49 = vadd.f32 %v10242_v40, %v10208_v31 }
 0x64d   : > { %v10364_v47 = vadd.f32 %v10183_v3, %v9994_v52 }
 0x64e   : > { %v10271_v0 = vadd.f32 %v10270_v14, %v10243_v49 }
 0x64f   : > { %v10380_v26 = vadd.f32 %v10376_v59, %v10364_v47 }
 0x651   : > { %v10820_v63 = vpop.eup %10819 }
 0x652   : > { %v10388_v12 = vadd.f32 1.0, %v10820_v63  ;;  %v10299_v16 = vpop.f32.mrf.mxu1  ;;  %v10275_v54 = vpop.f32.mrf.mxu0 }
 0x653   : > { %v10246_v48 = vpop.f32.mrf.mxu3  ;;  %v10300_v28 = vadd.f32 %v10299_v16, %v10271_v0  ;;  %v10329_v19 = vpop.f32.mrf.mxu2 }
 0x654   : > { %10821 = vrcp.f32 %v10388_v12  ;;  %v10401_v50 = vand.u32 2147483648, %v10388_v12  ;;  %v10399_v30 = vand.u32 2147483647, %v10388_v12  ;;  %vm10395_vm15 = vweird.f32 %v10388_v12 }
 0x655   : > { %v10330_v2 = vadd.f32 %v10329_v19, %v10300_v28  ;;  %v10247_v27 = vadd.f32 %v10246_v48, %v10216_v36 }
 0x656   : > { %v10402_v39 = vor.u32 1.1754944e-38, %v10401_v50  ;;  %vm10400_vm1 = vcmp.eq.f32.partialorder %v10399_v30, 8.507059e+37 }
 0x657   : > { %v10276_v3 = vadd.f32 %v10275_v54, %v10247_v27 }
 0x65a   : > { %v10822_v45 = vpop.eup %10821  ;;  %v10305_v7 = vpop.f32.mrf.mxu1 }
 0x65b   : > { %v10391_v23 = vmul.f32 %v10822_v45, %v10388_v12  ;;  %v10355_v17 = vpop.f32.mrf.mxu3  ;;  %vm10396_vm14 = vweird.f32 %v10822_v45  ;;  %v10306_v6 = vadd.f32 %v10305_v7, %v10276_v3  ;;  %v10333_v63 = vpop.f32.mrf.mxu2 }
 0x65c   : > { %v10356_v9 = vadd.f32 %v10355_v17, %v10330_v2  ;;  %vm10397_vm0 = vmor %vm10395_vm15, %vm10396_vm14 }
 0x65d   : > { %v10392_v52 = vsub.f32 1.0, %v10391_v23  ;;  %v10334_v14 = vadd.f32 %v10333_v63, %v10306_v6 }
 0x65e   : > { %v10363_v10 = vadd.f32 %v10356_v9, %v9993_v15 }
 0x65f   : > { %v10393_v55 = vmul.f32 %v10822_v45, %v10392_v52 }
 0x660   : > { %v13677_v1 = vadd.f32 %v10371_v51, %v10363_v10 }
 0x661   : > { %v10394_v21 = vadd.f32 %v10822_v45, %v10393_v55 }
 0x662   : > { %v10714_v11 = vmul.f32 -1.442695, %v13677_v1 }
 0x663   : > { %v10398_v41 = vsel %vm10397_vm0, %v10822_v45, %v10394_v21  ;;  %v10359_v36 = vpop.f32.mrf.mxu3 }
 0x664   : > { %v10403_v42 = vsel %vm10400_vm1, %v10402_v39, %v10398_v41  ;;  %10823 = vpow2.f32 %v10714_v11  ;;  %v10360_v44 = vadd.f32 %v10359_v36, %v10334_v14 }
 0x665   : > { %v10428_v24 = vsub.f32 1.0, %v10403_v42  ;;  %v10422_v22 = vrot.slane %v10403_v42, 4  ;;  %v10446_v29 = vrot.slane %v10403_v42, 3  ;;  %v10466_v31 = vrot.slane %v10403_v42, 6 }
 0x666   : > { %v10486_v47 = vrot.slane %v10403_v42, 7  ;;  %v10365_v2 = vadd.f32 %v10360_v44, %v13674_v62 }
 0x667   : > { %v10432_v43 = vrot.slane %v10428_v24, 3  ;;  %v10452_v61 = vrot.slane %v10428_v24, 2  ;;  %v10492_v60 = vrot.slane %v10428_v24, 7  ;;  %v10426_v46 = vmul.f32 %v10422_v22, %v10378_v4 }
 0x668   : > { %v10450_v53 = vmul.f32 %v10446_v29, %v10378_v4  ;;  %v10472_v51 = vrot.slane %v10428_v24, 4  ;;  %v10381_v50 = vadd.f32 %v10376_v59, %v10365_v2 }
 0x669   : > { %v10436_v33 = vmul.f32 %v10432_v43, %v10378_v4  ;;  %v10456_v13 = vmul.f32 %v10452_v61, %v10378_v4  ;;  %v10496_v58 = vmul.f32 %v10492_v60, %v10380_v26 }
 0x66a   : > { %v10824_v35 = vpop.eup %10823 }
 0x66b   : > { %v10440_v34 = vrot.slane %v10436_v33, 1  ;;  %v10460_v38 = vrot.slane %v10456_v13, 1  ;;  %v10389_v37 = vadd.f32 1.0, %v10824_v35 }
 0x66d   : > { %v10444_v8 = vadd.f32 %v10440_v34, %v10426_v46  ;;  %v10464_v56 = vadd.f32 %v10460_v38, %v10450_v53  ;;  %10825 = vrcp.f32 %v10389_v37  ;;  %v10416_v48 = vand.u32 2147483648, %v10389_v37 }
 0x66e   : > { %v10414_v0 = vand.u32 2147483647, %v10389_v37  ;;  %vm10410_vm3 = vweird.f32 %v10389_v37  ;;  %v10512_v53 = vlaneseq }
 0x66f   : > { %v10476_v20 = vmul.f32 %v10472_v51, %v10464_v56  ;;  %v10470_v25 = vmul.f32 %v10466_v31, %v10444_v8  ;;  %v10417_v57 = vor.u32 1.1754944e-38, %v10416_v48 }
 0x670   : > { %vm10415_vm5 = vcmp.eq.f32.partialorder %v10414_v0, 8.507059e+37  ;;  %vm10514_vm7 = vcmp.lt.s32.totalorder %v10512_v53, 256 }
 0x671   : > { %v10480_v5 = vrot.slane %v10476_v20, 2 }
 0x673   : > { %v10826_v40 = vpop.eup %10825  ;;  %v10484_v18 = vadd.f32 %v10480_v5, %v10470_v25 }
 0x674   : > { %v10406_v4 = vmul.f32 %v10826_v40, %v10389_v37  ;;  %vm10411_vm2 = vweird.f32 %v10826_v40 }
 0x675   : > { %v10490_v49 = vmul.f32 %v10486_v47, %v10484_v18  ;;  %vm10412_vm4 = vmor %vm10410_vm3, %vm10411_vm2 }
 0x676   : > { %v10407_v32 = vsub.f32 1.0, %v10406_v4 }
 0x677   : > { %v10498_v12 = vadd.f32 %v10496_v58, %v10490_v49 }
 0x678   : > { %v10408_v16 = vmul.f32 %v10826_v40, %v10407_v32 }
 0x679   : > { %v10500_v13 = vadd.f32 1.0, %v10498_v12 }
 0x67a   : > { %v10409_v28 = vadd.f32 %v10826_v40, %v10408_v16 }
 0x67c   : > { %v10413_v19 = vsel %vm10412_vm4, %v10826_v40, %v10409_v28 }
 0x67d   : > { %v10418_v45 = vsel %vm10415_vm5, %v10417_v57, %v10413_v19 }
 0x67e   : > { %v10429_v23 = vsub.f32 1.0, %v10418_v45  ;;  %v10423_v17 = vrot.slane %v10418_v45, 4  ;;  %v10447_v15 = vrot.slane %v10418_v45, 3  ;;  %v10467_v29 = vrot.slane %v10418_v45, 6 }
 0x67f   : > { %v10487_v60 = vrot.slane %v10418_v45, 7 }
 0x680   : > { %v10433_v9 = vrot.slane %v10429_v23, 3  ;;  %v10453_v52 = vrot.slane %v10429_v23, 2  ;;  %v10493_v10 = vrot.slane %v10429_v23, 7  ;;  %v10427_v39 = vmul.f32 %v10423_v17, %v13677_v1 }
 0x681   : > { %v10451_v11 = vmul.f32 %v10447_v15, %v13677_v1  ;;  %v10473_v22 = vrot.slane %v10429_v23, 4 }
 0x682   : > { %v10437_v55 = vmul.f32 %v10433_v9, %v13677_v1  ;;  %v10457_v30 = vmul.f32 %v10453_v52, %v13677_v1  ;;  %v10497_v21 = vmul.f32 %v10493_v10, %v10381_v50  ;;  %v10502_v1 = vmax.f32 %v10500_v13, 0.0 }
 0x684   : > { %v10441_v41 = vrot.slane %v10437_v55, 1  ;;  %v10461_v62 = vrot.slane %v10457_v30, 1  ;;  %v10504_v38 = vadd.f32 1e-08, %v10502_v1 }
 0x686   : > { %v10445_v42 = vadd.f32 %v10441_v41, %v10427_v39  ;;  %v10465_v24 = vadd.f32 %v10461_v62, %v10451_v11 }
 0x688   : > { %v10477_v43 = vmul.f32 %v10473_v22, %v10465_v24  ;;  %v10471_v59 = vmul.f32 %v10467_v29, %v10445_v42 }
 0x68a   : > { %v10481_v61 = vrot.slane %v10477_v43, 2 }
 0x68c   : > { %v10485_v26 = vadd.f32 %v10481_v61, %v10471_v59 }
 0x68e   : > { %v10491_v33 = vmul.f32 %v10487_v60, %v10485_v26 }
 0x690   : > { %v10499_v35 = vadd.f32 %v10497_v21, %v10491_v33 }
 0x692   : > { %v10501_v46 = vadd.f32 1.0, %v10499_v35 }
 0x694   : > { %v10503_v58 = vmax.f32 %v10501_v46, 0.0 }
 0x696   : > { %v10505_v34 = vadd.f32 1e-08, %v10503_v58 }
 0x698   : > { %v10508_v37 = vrot.slane %v10505_v34, 7 }
 0x69a   : > { %v10510_v27 = vsel %vm10509_vm6, %v10504_v38, %v10508_v37 }
 0x69b   : > { %10516 = vst.msk [vmem:[%s163_s19] sm:$0x3] %vm10514_vm7, %v10510_v27 }
 0x69c   : > { %10858 = shalt.err (!%p10855_p3)
}
 0x69d   : > { %10720 = dma.vmem_to_hbm [thread:$0]  (%p11011_p5), %s10531_s30, 32, %s10533_s24, %s10518_s16  }
 0x69e PF: > { %p10726_p4 = scmp.ge.s32.totalorder %s10893_s15, 2  ;;  %s10544_s10 = sand.u32 1, %s10881_s12  }
 0x69f   : > { %s10545_s20 = scalar_lea.sflag [#allocation4], %s10544_s10 }
 0x6a0   : > { %p10723_p7 = pnand %p10726_p4, %p11015_p6 }
 0x6a2   : > { %p10724_p8 = pneg %p10723_p7 }
 0x6a4   : > { %10876 = dma.done.wait (%p10724_p8), %s10545_s20, 32  }
 0x6a5   : > { %10878 = vsyncadd (%p10724_p8), %s10545_s20, 4294967264  ;;  %p13_p9 = scmp.ge.s32.totalorder %s10998_s18, 4   ;;  %s13723_s12 = smov %s10885_s13 }
 0x6a6   : > { %s13724_s13 = smov %s10889_s14  ;;  %s13725_s14 = smov %s11009_s21 }
 0x6a7   : > { %s13726_s15 = smov %s10998_s18  ;;  %15 = sbr.rel (!%p13_p9) target bundleno = 3 (0x3), region = 90 }
 0x6ac   :  { %10551 = vsyncpa [#allocation4], 1 }
 0x6ad   :  { %10553 = vsyncpa [#allocation4 + $0x1], 1 }

</bundles_post_ra>
